<compile_context>
chip_gen: v5e
topology: v5e:2x2
jax: 0.10.0
libtpu: 0.0.40
codegen_flags: <defaults>
</compile_context>

<pallas_src>
import functools

import jax
import jax.numpy as jnp
from jax.experimental import pallas as pl
from jax.experimental.pallas import tpu as pltpu


# ----------------------------------------------------------------------------
# Pallas kernels
# ----------------------------------------------------------------------------
def _matmul_bias_kernel(x_ref, w_ref, b_ref, o_ref):
    """(M,K)f32 @ (K,N)bf16 + (1,N)f32 -> (M,N)f32 (bf16 MXU, f32 accumulate)."""
    o_ref[...] = (jnp.dot(x_ref[...].astype(jnp.bfloat16), w_ref[...],
                          preferred_element_type=jnp.float32) + b_ref[...])


def _encoder_stack_kernel(x_ref, ln1g_ref, ln1b_ref, wqkv_ref, bqkv_ref,
                          wo_ref, bo_ref, ln2g_ref, ln2b_ref, w1_ref, w2_ref,
                          o_ref, qkv_ref,
                          *, num_layers, batch_tile, seq_pad, seq_len,
                          num_heads, head_dim, eps):
    """All ViT encoder blocks for one batch tile, fully VMEM-resident.

    x_ref / o_ref : (batch_tile*S_pad, E) f32 row blocks (batch folded into M).
    Weight refs carry a leading L (layer) axis.
    qkv_ref       : (batch_tile*S_pad, 3E) bf16 VMEM scratch.
    """
    f32, bf16 = jnp.float32, jnp.bfloat16
    x = x_ref[...]                                 # (M, E) f32
    emb = x.shape[-1]

    # Key mask for padded sequence positions (hoisted: shared by all layers).
    key_mask = jnp.where(
        jax.lax.broadcasted_iota(jnp.int32, (1, seq_pad), 1) < seq_len,
        0.0, -1e30).astype(f32)

    for layer in range(num_layers):               # static layer unroll
        # ---- LayerNorm 1 (f32, biased variance like torch) ----
        mu = jnp.mean(x, axis=-1, keepdims=True)
        var = jnp.mean(jnp.square(x - mu), axis=-1, keepdims=True)
        xln = ((x - mu) * jax.lax.rsqrt(var + eps) * ln1g_ref[layer]
               + ln1b_ref[layer])

        # ---- fused QKV projection (scale pre-folded into Q cols), bf16 scratch
        qkv_ref[...] = (jnp.dot(xln.astype(bf16), wqkv_ref[layer],
                                preferred_element_type=f32)
                        + bqkv_ref[layer]).astype(bf16)

        # ---- multi-head attention, per batch element ----
        ctx_rows = []
        for b in range(batch_tile):
            rows = pl.ds(b * seq_pad, seq_pad)
            # E-wide Q/K/V slices hoisted out of the head loop (already bf16).
            q_all = qkv_ref[rows, pl.ds(0, emb)]
            k_all = qkv_ref[rows, pl.ds(emb, emb)]
            v_all = qkv_ref[rows, pl.ds(2 * emb, emb)]
            heads = []
            # TODO(synk): at real head counts (12+) switch to
            # lax.fori_loop(..., unroll=2) to bound live ranges.
            for h in range(num_heads):
                sl = slice(h * head_dim, (h + 1) * head_dim)
                s = jnp.einsum('sd,td->st', q_all[:, sl], k_all[:, sl],
                               preferred_element_type=f32) + key_mask
                s = s - jnp.max(s, axis=-1, keepdims=True)
                p = jnp.exp(s)
                p = p / jnp.sum(p, axis=-1, keepdims=True)   # exact softmax
                heads.append(jnp.dot(p.astype(bf16), v_all[:, sl],
                                     preferred_element_type=f32))
            ctx_rows.append(jnp.concatenate(heads, axis=-1))  # (S_pad, E)

        # ---- single out-projection matmul over all batch rows + residual ----
        ctx = jnp.concatenate(ctx_rows, axis=0).astype(bf16)  # (M, E)
        x = x + jnp.dot(ctx, wo_ref[layer],
                        preferred_element_type=f32) + bo_ref[layer]

        # ---- LayerNorm 2 + FFN (bias-free linears, exact erf GELU) ----
        mu2 = jnp.mean(x, axis=-1, keepdims=True)
        var2 = jnp.mean(jnp.square(x - mu2), axis=-1, keepdims=True)
        xln2 = ((x - mu2) * jax.lax.rsqrt(var2 + eps) * ln2g_ref[layer]
                + ln2b_ref[layer])
        hid = jnp.dot(xln2.astype(bf16), w1_ref[layer],
                      preferred_element_type=f32)
        hid = 0.5 * hid * (1.0 + jax.lax.erf(hid * 0.7071067811865476))
        x = x + jnp.dot(hid.astype(bf16), w2_ref[layer],
                        preferred_element_type=f32)

    o_ref[...] = x


# ----------------------------------------------------------------------------
# Pallas wrappers
# ----------------------------------------------------------------------------
def pallas_linear(x, w, b):
    """Single-block matmul+bias (problem is tiny; whole arrays fit in VMEM)."""
    # TODO(synk): at real ViT sizes (E=768, H=3072, S=197) replace with a
    # (tm,tn,tk) K-accumulator kernel sized so 2*(tm*tk + tk*tn)*2B + tm*tn*4B
    # fits the scoped VMEM limit (budget against 64 MiB on v7x).
    M, K = x.shape
    _, N = w.shape
    return pl.pallas_call(
        _matmul_bias_kernel,
        out_shape=jax.ShapeDtypeStruct((M, N), jnp.float32),
        grid=(1,),
        in_specs=[pl.BlockSpec((M, K), lambda i: (0, 0)),
                  pl.BlockSpec((K, N), lambda i: (0, 0)),
                  pl.BlockSpec((1, N), lambda i: (0, 0))],
        out_specs=pl.BlockSpec((M, N), lambda i: (0, 0)),
        compiler_params=pltpu.CompilerParams(
            dimension_semantics=("arbitrary",)),
    )(x, w, b)


def _num_batch_grid(batch):
    """v7x (2 TCs): keep a 2-way parallel batch grid; v5e/v6e: fold fully."""
    try:
        kind = jax.devices()[0].device_kind.lower()
    except Exception:
        kind = ""
    n_tc = 2 if "v7" in kind else 1
    g = max(1, min(n_tc, batch))
    while batch % g:
        g -= 1
    return g


def encoder_stack_forward(xseq, blocks, *, seq_len, num_heads):
    """Run the whole stacked-encoder in one fused pallas_call."""
    B, S_pad, E = xseq.shape
    L, _, H = blocks["w1"].shape
    Dh = E // num_heads
    g = _num_batch_grid(B)
    bt = B // g
    M = bt * S_pad

    kernel = functools.partial(
        _encoder_stack_kernel, num_layers=L, batch_tile=bt, seq_pad=S_pad,
        seq_len=seq_len, num_heads=num_heads, head_dim=Dh, eps=1e-5)

    def wspec(shape):
        nd = len(shape)
        return pl.BlockSpec(shape, lambda i: (0,) * nd)

    x2d = xseq.reshape(B * S_pad, E)               # fold batch into M rows
    out2d = pl.pallas_call(
        kernel,
        out_shape=jax.ShapeDtypeStruct((B * S_pad, E), jnp.float32),
        grid=(g,),
        in_specs=[
            pl.BlockSpec((M, E), lambda i: (i, 0)),          # x rows
            wspec((L, 1, E)), wspec((L, 1, E)),              # ln1 gamma/beta
            wspec((L, E, 3 * E)), wspec((L, 1, 3 * E)),      # qkv W / b
            wspec((L, E, E)), wspec((L, 1, E)),              # out-proj W / b
            wspec((L, 1, E)), wspec((L, 1, E)),              # ln2 gamma/beta
            wspec((L, E, H)), wspec((L, H, E)),              # ffn W1 / W2
        ],
        out_specs=pl.BlockSpec((M, E), lambda i: (i, 0)),
        scratch_shapes=[pltpu.VMEM((M, 3 * E), jnp.bfloat16)],
        compiler_params=pltpu.CompilerParams(
            dimension_semantics=("parallel",)),    # shard batch tiles over TCs
    )(x2d, blocks["ln1_g"], blocks["ln1_b"], blocks["wqkv"], blocks["bqkv"],
      blocks["wout"], blocks["bout"], blocks["ln2_g"], blocks["ln2_b"],
      blocks["w1"], blocks["w2"])
    return out2d.reshape(B, S_pad, E)


# ----------------------------------------------------------------------------
# ViT model (small synthetic config)
# ----------------------------------------------------------------------------
CFG = dict(
    embedding_size=32,
    patch_size=4,
    num_heads=4,
    hidden_emb=64,
    image_hw=16,
    num_channels=3,
    classes=10,
    num_block=2,
)


def init_params(key, cfg):
    """Parameters in PyTorch-native layout."""
    E = cfg["embedding_size"]
    p = cfg["patch_size"]
    C = cfg["num_channels"]
    H = cfg["hidden_emb"]
    S = (cfg["image_hw"] // p) ** 2 + 1
    cls = cfg["classes"]

    def nrm(k, shape, scale=0.02):
        return scale * jax.random.normal(k, shape, dtype=jnp.float32)

    keys = jax.random.split(key, 8 + 10 * cfg["num_block"])
    ki = iter(keys)
    params = {
        "conv_w": nrm(next(ki), (E, C, p, p)),
        "conv_b": nrm(next(ki), (E,)),
        "pos_emb": jax.random.uniform(next(ki), (1, S, E), dtype=jnp.float32),
        "cls_token": jax.random.uniform(next(ki), (1, 1, E), dtype=jnp.float32),
        "cls_w": nrm(next(ki), (cls, E)),
        "cls_b": nrm(next(ki), (cls,)),
        "blocks": [],
    }
    for _ in range(cfg["num_block"]):
        params["blocks"].append({
            "ln1_g": jnp.ones((E,), jnp.float32),
            "ln1_b": jnp.zeros((E,), jnp.float32),
            "in_proj_w": nrm(next(ki), (3 * E, E)),
            "in_proj_b": nrm(next(ki), (3 * E,)),
            "out_proj_w": nrm(next(ki), (E, E)),
            "out_proj_b": nrm(next(ki), (E,)),
            "ln2_g": jnp.ones((E,), jnp.float32),
            "ln2_b": jnp.zeros((E,), jnp.float32),
            "ffn_w1": nrm(next(ki), (H, E)),      # FFN linears are bias-free
            "ffn_w2": nrm(next(ki), (E, H)),      # (matches nn.Linear bias=False)
        })
    return params


def prepare_params(raw, cfg):
    """One-time weight prep: transpose / stack layers / fold scale / bf16 cast."""
    E = cfg["embedding_size"]
    p = cfg["patch_size"]
    C = cfg["num_channels"]
    nh = cfg["num_heads"]
    cls = cfg["classes"]
    Dh = E // nh
    bf16, f32 = jnp.bfloat16, jnp.float32

    # Classifier weights padded to a 128-lane-dense output (sliced outside).
    n_cls_pad = ((cls + 127) // 128) * 128
    cls_w = jnp.zeros((E, n_cls_pad), f32).at[:, :cls].set(raw["cls_w"].T)
    cls_b = jnp.zeros((1, n_cls_pad), f32).at[:, :cls].set(raw["cls_b"][None, :])

    # Fold 1/sqrt(head_dim) into the Q columns of the fused QKV weight & bias.
    qkv_scale = jnp.concatenate(
        [jnp.full((E,), 1.0 / (Dh ** 0.5), f32), jnp.ones((2 * E,), f32)])

    def stack(fn):
        return jnp.stack([fn(blk) for blk in raw["blocks"]])

    return {
        "patch_w": raw["conv_w"].reshape(E, C * p * p).T.astype(bf16),
        "patch_b": raw["conv_b"].reshape(1, E).astype(f32),
        "pos_emb": raw["pos_emb"].astype(f32),                 # (1, S, E)
        "cls_token": raw["cls_token"].astype(f32),             # (1, 1, E)
        "cls_w": cls_w.astype(bf16),                           # (E, cls_pad)
        "cls_b": cls_b,
        "blocks": {
            "ln1_g": stack(lambda b: b["ln1_g"].reshape(1, E).astype(f32)),
            "ln1_b": stack(lambda b: b["ln1_b"].reshape(1, E).astype(f32)),
            "wqkv": stack(lambda b: (b["in_proj_w"].T * qkv_scale).astype(bf16)),
            "bqkv": stack(lambda b: (b["in_proj_b"] * qkv_scale)
                          .reshape(1, 3 * E).astype(f32)),
            "wout": stack(lambda b: b["out_proj_w"].T.astype(bf16)),
            "bout": stack(lambda b: b["out_proj_b"].reshape(1, E).astype(f32)),
            "ln2_g": stack(lambda b: b["ln2_g"].reshape(1, E).astype(f32)),
            "ln2_b": stack(lambda b: b["ln2_b"].reshape(1, E).astype(f32)),
            "w1": stack(lambda b: b["ffn_w1"].T.astype(bf16)),   # (E, H)
            "w2": stack(lambda b: b["ffn_w2"].T.astype(bf16)),   # (H, E)
        },
    }


def vit_forward(params, x, cfg):
    B, C, Himg, Wimg = x.shape
    p = cfg["patch_size"]
    E = cfg["embedding_size"]
    nh = cfg["num_heads"]
    gh, gw = Himg // p, Wimg // p
    Np = gh * gw
    S = Np + 1
    S_pad = ((S + 7) // 8) * 8           # pad sequence to 8-aligned sublanes

    # ---- PatchEmbeddings: Conv2d(k=p, stride=p) == unfold + matmul ----
    patches = (x.reshape(B, C, gh, p, gw, p)
                .transpose(0, 2, 4, 1, 3, 5)
                .reshape(B * Np, C * p * p))
    emb = pallas_linear(patches, params["patch_w"], params["patch_b"])
    xseq = emb.reshape(B, Np, E)

    # ---- cls token appended at END (torch.cat((x, cls), dim=1)) + pos emb ----
    cls_tok = jnp.broadcast_to(params["cls_token"], (B, 1, E))
    xseq = jnp.concatenate([xseq, cls_tok], axis=1) + params["pos_emb"]
    xseq = jnp.pad(xseq, ((0, 0), (0, S_pad - S), (0, 0)))
    # positional / attention / ffn dropout -> identity at inference

    # ---- fused encoder stack (single pallas_call for all blocks) ----
    xseq = encoder_stack_forward(xseq, params["blocks"], seq_len=S,
                                 num_heads=nh)

    # ---- classifier on the last real token (the cls token) ----
    cls_feat = xseq[:, S - 1]                                 # (B, E)
    logits = pallas_linear(cls_feat, params["cls_w"], params["cls_b"])
    return logits[:, :cfg["classes"]]                         # drop lane padding


if __name__ == "__main__":
    key = jax.random.PRNGKey(0)
    kp_key, kx_key = jax.random.split(key)
    raw_params = init_params(kp_key, CFG)
    params = prepare_params(raw_params, CFG)
    x = jax.random.normal(
        kx_key,
        (2, CFG["num_channels"], CFG["image_hw"], CFG["image_hw"]),
        dtype=jnp.float32)

    fwd = jax.jit(functools.partial(vit_forward, cfg=CFG))
    logits = fwd(params, x)
    jax.block_until_ready(logits)
    assert logits.shape == (2, CFG["classes"])
    print("KERNEL_OK")
</pallas_src>

<mosaic_0001>
module attributes {stable_mosaic.version = 11 : i64} {
  func.func @_matmul_bias_kernel(%arg0: i32, %arg1: memref<32x48xf32, #tpu.memory_space<vmem>>, %arg2: memref<48x32xbf16, #tpu.memory_space<vmem>>, %arg3: memref<1x32xf32, #tpu.memory_space<vmem>>, %arg4: memref<32x32xf32, #tpu.memory_space<vmem>>) attributes {dimension_semantics = [#tpu.dimension_semantics<arbitrary>], iteration_bounds = array<i64: 1>, scalar_prefetch = 0 : i64, scratch_operands = 0 : i64, tpu.core_type = #tpu.core_type<tc>, window_params = [{pipeline_mode = #tpu.pipeline_mode<synchronous>, transform_indices = @transform_0, window_bounds = array<i64: 32, 48>}, {pipeline_mode = #tpu.pipeline_mode<synchronous>, transform_indices = @transform_1, window_bounds = array<i64: 48, 32>}, {pipeline_mode = #tpu.pipeline_mode<synchronous>, transform_indices = @transform_2, window_bounds = array<i64: 1, 32>}, {pipeline_mode = #tpu.pipeline_mode<synchronous>, transform_indices = @transform_3, window_bounds = array<i64: 32, 32>}]} {
    %c0 = arith.constant 0 : index
    %c0_0 = arith.constant 0 : index
    %0 = vector.load %arg1[%c0, %c0_0] : memref<32x48xf32, #tpu.memory_space<vmem>>, vector<32x48xf32>
    %1 = arith.truncf %0 : vector<32x48xf32> to vector<32x48xbf16>
    %c0_1 = arith.constant 0 : index
    %c0_2 = arith.constant 0 : index
    %2 = vector.load %arg2[%c0_1, %c0_2] : memref<48x32xbf16, #tpu.memory_space<vmem>>, vector<48x32xbf16>
    %cst = arith.constant dense<0.000000e+00> : vector<32x32xf32>
    %3 = tpu.matmul %1, %2, %cst {dimension_numbers = #tpu.dot_dimension_numbers<[1], [0], [0], [1], [0, 0, 1, 1], [], []>} : vector<32x48xbf16>, vector<48x32xbf16>, vector<32x32xf32> -> vector<32x32xf32>
    %c0_3 = arith.constant 0 : index
    %c0_4 = arith.constant 0 : index
    %4 = vector.load %arg3[%c0_3, %c0_4] : memref<1x32xf32, #tpu.memory_space<vmem>>, vector<1x32xf32>
    %5 = vector.broadcast %4 : vector<1x32xf32> to vector<32x32xf32>
    %6 = arith.addf %3, %5 : vector<32x32xf32>
    %c0_5 = arith.constant 0 : index
    %c0_6 = arith.constant 0 : index
    %7 = vector.load %arg4[%c0_5, %c0_6] : memref<32x32xf32, #tpu.memory_space<vmem>>, vector<32x32xf32>
    tpu.vector_store %arg4[%c0_5, %c0_6], %6 {strides = array<i32>} : memref<32x32xf32, #tpu.memory_space<vmem>>, vector<32x32xf32>,
    return
  }
  func.func @transform_0(%arg0: i32) -> (i32, i32) {
    %c0_i32 = arith.constant 0 : i32
    %c0_i32_0 = arith.constant 0 : i32
    %c0_i32_1 = arith.constant 0 : i32
    return %c0_i32, %c0_i32_0 : i32, i32
  }
  func.func @transform_1(%arg0: i32) -> (i32, i32) {
    %c0_i32 = arith.constant 0 : i32
    %c0_i32_0 = arith.constant 0 : i32
    %c0_i32_1 = arith.constant 0 : i32
    return %c0_i32, %c0_i32_0 : i32, i32
  }
  func.func @transform_2(%arg0: i32) -> (i32, i32) {
    %c0_i32 = arith.constant 0 : i32
    %c0_i32_0 = arith.constant 0 : i32
    %c0_i32_1 = arith.constant 0 : i32
    return %c0_i32, %c0_i32_0 : i32, i32
  }
  func.func @transform_3(%arg0: i32) -> (i32, i32) {
    %c0_i32 = arith.constant 0 : i32
    %c0_i32_0 = arith.constant 0 : i32
    %c0_i32_1 = arith.constant 0 : i32
    return %c0_i32, %c0_i32_0 : i32, i32
  }
}

module attributes {stable_mosaic.version = 11 : i64} {
  func.func @_matmul_bias_kernel(%arg0: i32, %arg1: memref<2x32xf32, #tpu.memory_space<vmem>>, %arg2: memref<32x128xbf16, #tpu.memory_space<vmem>>, %arg3: memref<1x128xf32, #tpu.memory_space<vmem>>, %arg4: memref<2x128xf32, #tpu.memory_space<vmem>>) attributes {dimension_semantics = [#tpu.dimension_semantics<arbitrary>], iteration_bounds = array<i64: 1>, scalar_prefetch = 0 : i64, scratch_operands = 0 : i64, tpu.core_type = #tpu.core_type<tc>, window_params = [{pipeline_mode = #tpu.pipeline_mode<synchronous>, transform_indices = @transform_0, window_bounds = array<i64: 2, 32>}, {pipeline_mode = #tpu.pipeline_mode<synchronous>, transform_indices = @transform_1, window_bounds = array<i64: 32, 128>}, {pipeline_mode = #tpu.pipeline_mode<synchronous>, transform_indices = @transform_2, window_bounds = array<i64: 1, 128>}, {pipeline_mode = #tpu.pipeline_mode<synchronous>, transform_indices = @transform_3, window_bounds = array<i64: 2, 128>}]} {
    %c0 = arith.constant 0 : index
    %c0_0 = arith.constant 0 : index
    %0 = vector.load %arg1[%c0, %c0_0] : memref<2x32xf32, #tpu.memory_space<vmem>>, vector<2x32xf32>
    %1 = arith.truncf %0 : vector<2x32xf32> to vector<2x32xbf16>
    %c0_1 = arith.constant 0 : index
    %c0_2 = arith.constant 0 : index
    %2 = vector.load %arg2[%c0_1, %c0_2] : memref<32x128xbf16, #tpu.memory_space<vmem>>, vector<32x128xbf16>
    %cst = arith.constant dense<0.000000e+00> : vector<2x128xf32>
    %3 = tpu.matmul %1, %2, %cst {dimension_numbers = #tpu.dot_dimension_numbers<[1], [0], [0], [1], [0, 0, 1, 1], [], []>} : vector<2x32xbf16>, vector<32x128xbf16>, vector<2x128xf32> -> vector<2x128xf32>
    %c0_3 = arith.constant 0 : index
    %c0_4 = arith.constant 0 : index
    %4 = vector.load %arg3[%c0_3, %c0_4] : memref<1x128xf32, #tpu.memory_space<vmem>>, vector<1x128xf32>
    %5 = vector.broadcast %4 : vector<1x128xf32> to vector<2x128xf32>
    %6 = arith.addf %3, %5 : vector<2x128xf32>
    %c0_5 = arith.constant 0 : index
    %c0_6 = arith.constant 0 : index
    %7 = vector.load %arg4[%c0_5, %c0_6] : memref<2x128xf32, #tpu.memory_space<vmem>>, vector<2x128xf32>
    tpu.vector_store %arg4[%c0_5, %c0_6], %6 {strides = array<i32>} : memref<2x128xf32, #tpu.memory_space<vmem>>, vector<2x128xf32>,
    return
  }
  func.func @transform_0(%arg0: i32) -> (i32, i32) {
    %c0_i32 = arith.constant 0 : i32
    %c0_i32_0 = arith.constant 0 : i32
    %c0_i32_1 = arith.constant 0 : i32
    return %c0_i32, %c0_i32_0 : i32, i32
  }
  func.func @transform_1(%arg0: i32) -> (i32, i32) {
    %c0_i32 = arith.constant 0 : i32
    %c0_i32_0 = arith.constant 0 : i32
    %c0_i32_1 = arith.constant 0 : i32
    return %c0_i32, %c0_i32_0 : i32, i32
  }
  func.func @transform_2(%arg0: i32) -> (i32, i32) {
    %c0_i32 = arith.constant 0 : i32
    %c0_i32_0 = arith.constant 0 : i32
    %c0_i32_1 = arith.constant 0 : i32
    return %c0_i32, %c0_i32_0 : i32, i32
  }
  func.func @transform_3(%arg0: i32) -> (i32, i32) {
    %c0_i32 = arith.constant 0 : i32
    %c0_i32_0 = arith.constant 0 : i32
    %c0_i32_1 = arith.constant 0 : i32
    return %c0_i32, %c0_i32_0 : i32, i32
  }
}

module attributes {stable_mosaic.version = 11 : i64} {
  func.func @_encoder_stack_kernel(%arg0: i32, %arg1: memref<48x32xf32, #tpu.memory_space<vmem>>, %arg2: memref<2x1x32xf32, #tpu.memory_space<vmem>>, %arg3: memref<2x1x32xf32, #tpu.memory_space<vmem>>, %arg4: memref<2x32x96xbf16, #tpu.memory_space<vmem>>, %arg5: memref<2x1x96xf32, #tpu.memory_space<vmem>>, %arg6: memref<2x32x32xbf16, #tpu.memory_space<vmem>>, %arg7: memref<2x1x32xf32, #tpu.memory_space<vmem>>, %arg8: memref<2x1x32xf32, #tpu.memory_space<vmem>>, %arg9: memref<2x1x32xf32, #tpu.memory_space<vmem>>, %arg10: memref<2x32x64xbf16, #tpu.memory_space<vmem>>, %arg11: memref<2x64x32xbf16, #tpu.memory_space<vmem>>, %arg12: memref<48x32xf32, #tpu.memory_space<vmem>>, %arg13: memref<48x96xbf16, #tpu.memory_space<vmem>>) attributes {dimension_semantics = [#tpu.dimension_semantics<parallel>], iteration_bounds = array<i64: 1>, scalar_prefetch = 0 : i64, scratch_operands = 1 : i64, tpu.core_type = #tpu.core_type<tc>, window_params = [{transform_indices = @transform_0, window_bounds = array<i64: 48, 32>}, {pipeline_mode = #tpu.pipeline_mode<synchronous>, transform_indices = @transform_1, window_bounds = array<i64: 2, 1, 32>}, {pipeline_mode = #tpu.pipeline_mode<synchronous>, transform_indices = @transform_2, window_bounds = array<i64: 2, 1, 32>}, {pipeline_mode = #tpu.pipeline_mode<synchronous>, transform_indices = @transform_3, window_bounds = array<i64: 2, 32, 96>}, {pipeline_mode = #tpu.pipeline_mode<synchronous>, transform_indices = @transform_4, window_bounds = array<i64: 2, 1, 96>}, {pipeline_mode = #tpu.pipeline_mode<synchronous>, transform_indices = @transform_5, window_bounds = array<i64: 2, 32, 32>}, {pipeline_mode = #tpu.pipeline_mode<synchronous>, transform_indices = @transform_6, window_bounds = array<i64: 2, 1, 32>}, {pipeline_mode = #tpu.pipeline_mode<synchronous>, transform_indices = @transform_7, window_bounds = array<i64: 2, 1, 32>}, {pipeline_mode = #tpu.pipeline_mode<synchronous>, transform_indices = @transform_8, window_bounds = array<i64: 2, 1, 32>}, {pipeline_mode = #tpu.pipeline_mode<synchronous>, transform_indices = @transform_9, window_bounds = array<i64: 2, 32, 64>}, {pipeline_mode = #tpu.pipeline_mode<synchronous>, transform_indices = @transform_10, window_bounds = array<i64: 2, 64, 32>}, {transform_indices = @transform_11, window_bounds = array<i64: 48, 32>}]} {
    %c0 = arith.constant 0 : index
    %c0_0 = arith.constant 0 : index
    %0 = vector.load %arg1[%c0, %c0_0] : memref<48x32xf32, #tpu.memory_space<vmem>>, vector<48x32xf32>
    %1 = tpu.iota {dimensions = array<i32: 1>} : vector<1x24xi32>
    %c17_i32 = arith.constant 17 : i32
    %2 = vector.broadcast %c17_i32 : i32 to vector<1x24xi32>
    %3 = arith.cmpi slt, %1, %2 : vector<1x24xi32>
    %cst = arith.constant 0.000000e+00 : f32
    %cst_1 = arith.constant -1.000000e+30 : f32
    %4 = vector.broadcast %cst : f32 to vector<1x24xf32>
    %5 = vector.broadcast %cst_1 : f32 to vector<1x24xf32>
    %6 = arith.select %3, %4, %5 : vector<1x24xi1>, vector<1x24xf32>
    %cst_2 = arith.constant dense<0.000000e+00> : vector<48xf32>
    %7 = vector.multi_reduction <add>, %0, %cst_2 [1] : vector<48x32xf32> to vector<48xf32>
    %8 = vector.shape_cast %7 : vector<48xf32> to vector<48x1xf32>
    %cst_3 = arith.constant 3.200000e+01 : f32
    %9 = vector.broadcast %cst_3 : f32 to vector<48x1xf32>
    %10 = arith.divf %8, %9 : vector<48x1xf32>
    %11 = vector.broadcast %10 : vector<48x1xf32> to vector<48x32xf32>
    %12 = arith.subf %0, %11 : vector<48x32xf32>
    %13 = arith.mulf %12, %12 : vector<48x32xf32>
    %cst_4 = arith.constant dense<0.000000e+00> : vector<48xf32>
    %14 = vector.multi_reduction <add>, %13, %cst_4 [1] : vector<48x32xf32> to vector<48xf32>
    %15 = vector.shape_cast %14 : vector<48xf32> to vector<48x1xf32>
    %cst_5 = arith.constant 3.200000e+01 : f32
    %16 = vector.broadcast %cst_5 : f32 to vector<48x1xf32>
    %17 = arith.divf %15, %16 : vector<48x1xf32>
    %18 = vector.broadcast %10 : vector<48x1xf32> to vector<48x32xf32>
    %19 = arith.subf %0, %18 : vector<48x32xf32>
    %cst_6 = arith.constant 9.99999974E-6 : f32
    %20 = vector.broadcast %cst_6 : f32 to vector<48x1xf32>
    %21 = arith.addf %17, %20 : vector<48x1xf32>
    %22 = math.rsqrt %21 : vector<48x1xf32>
    %23 = vector.broadcast %22 : vector<48x1xf32> to vector<48x32xf32>
    %24 = arith.mulf %19, %23 : vector<48x32xf32>
    %c0_7 = arith.constant 0 : index
    %c0_8 = arith.constant 0 : index
    %c0_9 = arith.constant 0 : index
    %25 = vector.load %arg2[%c0_7, %c0_8, %c0_9] : memref<2x1x32xf32, #tpu.memory_space<vmem>>, vector<1x1x32xf32>
    %26 = vector.shape_cast %25 : vector<1x1x32xf32> to vector<1x32xf32>
    %27 = vector.broadcast %26 : vector<1x32xf32> to vector<48x32xf32>
    %28 = arith.mulf %24, %27 : vector<48x32xf32>
    %c0_10 = arith.constant 0 : index
    %c0_11 = arith.constant 0 : index
    %c0_12 = arith.constant 0 : index
    %29 = vector.load %arg3[%c0_10, %c0_11, %c0_12] : memref<2x1x32xf32, #tpu.memory_space<vmem>>, vector<1x1x32xf32>
    %30 = vector.shape_cast %29 : vector<1x1x32xf32> to vector<1x32xf32>
    %31 = vector.broadcast %30 : vector<1x32xf32> to vector<48x32xf32>
    %32 = arith.addf %28, %31 : vector<48x32xf32>
    %33 = arith.truncf %32 : vector<48x32xf32> to vector<48x32xbf16>
    %c0_13 = arith.constant 0 : index
    %c0_14 = arith.constant 0 : index
    %c0_15 = arith.constant 0 : index
    %34 = vector.load %arg4[%c0_13, %c0_14, %c0_15] : memref<2x32x96xbf16, #tpu.memory_space<vmem>>, vector<1x32x96xbf16>
    %35 = vector.shape_cast %34 : vector<1x32x96xbf16> to vector<32x96xbf16>
    %cst_16 = arith.constant dense<0.000000e+00> : vector<48x96xf32>
    %36 = tpu.matmul %33, %35, %cst_16 {dimension_numbers = #tpu.dot_dimension_numbers<[1], [0], [0], [1], [0, 0, 1, 1], [], []>} : vector<48x32xbf16>, vector<32x96xbf16>, vector<48x96xf32> -> vector<48x96xf32>
    %c0_17 = arith.constant 0 : index
    %c0_18 = arith.constant 0 : index
    %c0_19 = arith.constant 0 : index
    %37 = vector.load %arg5[%c0_17, %c0_18, %c0_19] : memref<2x1x96xf32, #tpu.memory_space<vmem>>, vector<1x1x96xf32>
    %38 = vector.shape_cast %37 : vector<1x1x96xf32> to vector<1x96xf32>
    %39 = vector.broadcast %38 : vector<1x96xf32> to vector<48x96xf32>
    %40 = arith.addf %36, %39 : vector<48x96xf32>
    %41 = arith.truncf %40 : vector<48x96xf32> to vector<48x96xbf16>
    %c0_20 = arith.constant 0 : index
    %c0_21 = arith.constant 0 : index
    %42 = vector.load %arg13[%c0_20, %c0_21] : memref<48x96xbf16, #tpu.memory_space<vmem>>, vector<48x96xbf16>
    tpu.vector_store %arg13[%c0_20, %c0_21], %41 {strides = array<i32>} : memref<48x96xbf16, #tpu.memory_space<vmem>>, vector<48x96xbf16>,
    %c0_22 = arith.constant 0 : index
    %c0_23 = arith.constant 0 : index
    %43 = vector.load %arg13[%c0_22, %c0_23] : memref<48x96xbf16, #tpu.memory_space<vmem>>, vector<24x32xbf16>
    %c0_24 = arith.constant 0 : index
    %c32 = arith.constant 32 : index
    %44 = vector.load %arg13[%c0_24, %c32] : memref<48x96xbf16, #tpu.memory_space<vmem>>, vector<24x32xbf16>
    %c0_25 = arith.constant 0 : index
    %c64 = arith.constant 64 : index
    %45 = vector.load %arg13[%c0_25, %c64] : memref<48x96xbf16, #tpu.memory_space<vmem>>, vector<24x32xbf16>
    %46 = vector.extract_strided_slice %43 {offsets = [0, 0], sizes = [24, 8], strides = [1, 1]} : vector<24x32xbf16> to vector<24x8xbf16>
    %47 = vector.extract_strided_slice %44 {offsets = [0, 0], sizes = [24, 8], strides = [1, 1]} : vector<24x32xbf16> to vector<24x8xbf16>
    "tpu.trace_start"() <{level = 10 : i32, message = "sd,td->st"}> : () -> ()
    %cst_26 = arith.constant dense<0.000000e+00> : vector<24x24xf32>
    %48 = tpu.matmul %46, %47, %cst_26 {dimension_numbers = #tpu.dot_dimension_numbers<[1], [1], [0], [0], [0, 0, 1, 0], [], []>} : vector<24x8xbf16>, vector<24x8xbf16>, vector<24x24xf32> -> vector<24x24xf32>
    "tpu.trace_stop"() : () -> ()
    %49 = vector.broadcast %6 : vector<1x24xf32> to vector<24x24xf32>
    %50 = arith.addf %48, %49 : vector<24x24xf32>
    %cst_27 = arith.constant dense<0xFF800000> : vector<24xf32>
    %51 = vector.multi_reduction <maximumf>, %50, %cst_27 [1] : vector<24x24xf32> to vector<24xf32>
    %52 = vector.shape_cast %51 : vector<24xf32> to vector<24x1xf32>
    %53 = vector.broadcast %52 : vector<24x1xf32> to vector<24x24xf32>
    %54 = arith.subf %50, %53 : vector<24x24xf32>
    %55 = math.exp %54 : vector<24x24xf32>
    %cst_28 = arith.constant dense<0.000000e+00> : vector<24xf32>
    %56 = vector.multi_reduction <add>, %55, %cst_28 [1] : vector<24x24xf32> to vector<24xf32>
    %57 = vector.shape_cast %56 : vector<24xf32> to vector<24x1xf32>
    %58 = vector.broadcast %57 : vector<24x1xf32> to vector<24x24xf32>
    %59 = arith.divf %55, %58 : vector<24x24xf32>
    %60 = arith.truncf %59 : vector<24x24xf32> to vector<24x24xbf16>
    %61 = vector.extract_strided_slice %45 {offsets = [0, 0], sizes = [24, 8], strides = [1, 1]} : vector<24x32xbf16> to vector<24x8xbf16>
    %cst_29 = arith.constant dense<0.000000e+00> : vector<24x8xf32>
    %62 = tpu.matmul %60, %61, %cst_29 {dimension_numbers = #tpu.dot_dimension_numbers<[1], [0], [0], [1], [0, 0, 1, 1], [], []>} : vector<24x24xbf16>, vector<24x8xbf16>, vector<24x8xf32> -> vector<24x8xf32>
    %63 = vector.extract_strided_slice %43 {offsets = [0, 8], sizes = [24, 8], strides = [1, 1]} : vector<24x32xbf16> to vector<24x8xbf16>
    %64 = vector.extract_strided_slice %44 {offsets = [0, 8], sizes = [24, 8], strides = [1, 1]} : vector<24x32xbf16> to vector<24x8xbf16>
    "tpu.trace_start"() <{level = 10 : i32, message = "sd,td->st"}> : () -> ()
    %cst_30 = arith.constant dense<0.000000e+00> : vector<24x24xf32>
    %65 = tpu.matmul %63, %64, %cst_30 {dimension_numbers = #tpu.dot_dimension_numbers<[1], [1], [0], [0], [0, 0, 1, 0], [], []>} : vector<24x8xbf16>, vector<24x8xbf16>, vector<24x24xf32> -> vector<24x24xf32>
    "tpu.trace_stop"() : () -> ()
    %66 = vector.broadcast %6 : vector<1x24xf32> to vector<24x24xf32>
    %67 = arith.addf %65, %66 : vector<24x24xf32>
    %cst_31 = arith.constant dense<0xFF800000> : vector<24xf32>
    %68 = vector.multi_reduction <maximumf>, %67, %cst_31 [1] : vector<24x24xf32> to vector<24xf32>
    %69 = vector.shape_cast %68 : vector<24xf32> to vector<24x1xf32>
    %70 = vector.broadcast %69 : vector<24x1xf32> to vector<24x24xf32>
    %71 = arith.subf %67, %70 : vector<24x24xf32>
    %72 = math.exp %71 : vector<24x24xf32>
    %cst_32 = arith.constant dense<0.000000e+00> : vector<24xf32>
    %73 = vector.multi_reduction <add>, %72, %cst_32 [1] : vector<24x24xf32> to vector<24xf32>
    %74 = vector.shape_cast %73 : vector<24xf32> to vector<24x1xf32>
    %75 = vector.broadcast %74 : vector<24x1xf32> to vector<24x24xf32>
    %76 = arith.divf %72, %75 : vector<24x24xf32>
    %77 = arith.truncf %76 : vector<24x24xf32> to vector<24x24xbf16>
    %78 = vector.extract_strided_slice %45 {offsets = [0, 8], sizes = [24, 8], strides = [1, 1]} : vector<24x32xbf16> to vector<24x8xbf16>
    %cst_33 = arith.constant dense<0.000000e+00> : vector<24x8xf32>
    %79 = tpu.matmul %77, %78, %cst_33 {dimension_numbers = #tpu.dot_dimension_numbers<[1], [0], [0], [1], [0, 0, 1, 1], [], []>} : vector<24x24xbf16>, vector<24x8xbf16>, vector<24x8xf32> -> vector<24x8xf32>
    %80 = vector.extract_strided_slice %43 {offsets = [0, 16], sizes = [24, 8], strides = [1, 1]} : vector<24x32xbf16> to vector<24x8xbf16>
    %81 = vector.extract_strided_slice %44 {offsets = [0, 16], sizes = [24, 8], strides = [1, 1]} : vector<24x32xbf16> to vector<24x8xbf16>
    "tpu.trace_start"() <{level = 10 : i32, message = "sd,td->st"}> : () -> ()
    %cst_34 = arith.constant dense<0.000000e+00> : vector<24x24xf32>
    %82 = tpu.matmul %80, %81, %cst_34 {dimension_numbers = #tpu.dot_dimension_numbers<[1], [1], [0], [0], [0, 0, 1, 0], [], []>} : vector<24x8xbf16>, vector<24x8xbf16>, vector<24x24xf32> -> vector<24x24xf32>
    "tpu.trace_stop"() : () -> ()
    %83 = vector.broadcast %6 : vector<1x24xf32> to vector<24x24xf32>
    %84 = arith.addf %82, %83 : vector<24x24xf32>
    %cst_35 = arith.constant dense<0xFF800000> : vector<24xf32>
    %85 = vector.multi_reduction <maximumf>, %84, %cst_35 [1] : vector<24x24xf32> to vector<24xf32>
    %86 = vector.shape_cast %85 : vector<24xf32> to vector<24x1xf32>
    %87 = vector.broadcast %86 : vector<24x1xf32> to vector<24x24xf32>
    %88 = arith.subf %84, %87 : vector<24x24xf32>
    %89 = math.exp %88 : vector<24x24xf32>
    %cst_36 = arith.constant dense<0.000000e+00> : vector<24xf32>
    %90 = vector.multi_reduction <add>, %89, %cst_36 [1] : vector<24x24xf32> to vector<24xf32>
    %91 = vector.shape_cast %90 : vector<24xf32> to vector<24x1xf32>
    %92 = vector.broadcast %91 : vector<24x1xf32> to vector<24x24xf32>
    %93 = arith.divf %89, %92 : vector<24x24xf32>
    %94 = arith.truncf %93 : vector<24x24xf32> to vector<24x24xbf16>
    %95 = vector.extract_strided_slice %45 {offsets = [0, 16], sizes = [24, 8], strides = [1, 1]} : vector<24x32xbf16> to vector<24x8xbf16>
    %cst_37 = arith.constant dense<0.000000e+00> : vector<24x8xf32>
    %96 = tpu.matmul %94, %95, %cst_37 {dimension_numbers = #tpu.dot_dimension_numbers<[1], [0], [0], [1], [0, 0, 1, 1], [], []>} : vector<24x24xbf16>, vector<24x8xbf16>, vector<24x8xf32> -> vector<24x8xf32>
    %97 = vector.extract_strided_slice %43 {offsets = [0, 24], sizes = [24, 8], strides = [1, 1]} : vector<24x32xbf16> to vector<24x8xbf16>
    %98 = vector.extract_strided_slice %44 {offsets = [0, 24], sizes = [24, 8], strides = [1, 1]} : vector<24x32xbf16> to vector<24x8xbf16>
    "tpu.trace_start"() <{level = 10 : i32, message = "sd,td->st"}> : () -> ()
    %cst_38 = arith.constant dense<0.000000e+00> : vector<24x24xf32>
    %99 = tpu.matmul %97, %98, %cst_38 {dimension_numbers = #tpu.dot_dimension_numbers<[1], [1], [0], [0], [0, 0, 1, 0], [], []>} : vector<24x8xbf16>, vector<24x8xbf16>, vector<24x24xf32> -> vector<24x24xf32>
    "tpu.trace_stop"() : () -> ()
    %100 = vector.broadcast %6 : vector<1x24xf32> to vector<24x24xf32>
    %101 = arith.addf %99, %100 : vector<24x24xf32>
    %cst_39 = arith.constant dense<0xFF800000> : vector<24xf32>
    %102 = vector.multi_reduction <maximumf>, %101, %cst_39 [1] : vector<24x24xf32> to vector<24xf32>
    %103 = vector.shape_cast %102 : vector<24xf32> to vector<24x1xf32>
    %104 = vector.broadcast %103 : vector<24x1xf32> to vector<24x24xf32>
    %105 = arith.subf %101, %104 : vector<24x24xf32>
    %106 = math.exp %105 : vector<24x24xf32>
    %cst_40 = arith.constant dense<0.000000e+00> : vector<24xf32>
    %107 = vector.multi_reduction <add>, %106, %cst_40 [1] : vector<24x24xf32> to vector<24xf32>
    %108 = vector.shape_cast %107 : vector<24xf32> to vector<24x1xf32>
    %109 = vector.broadcast %108 : vector<24x1xf32> to vector<24x24xf32>
    %110 = arith.divf %106, %109 : vector<24x24xf32>
    %111 = arith.truncf %110 : vector<24x24xf32> to vector<24x24xbf16>
    %112 = vector.extract_strided_slice %45 {offsets = [0, 24], sizes = [24, 8], strides = [1, 1]} : vector<24x32xbf16> to vector<24x8xbf16>
    %cst_41 = arith.constant dense<0.000000e+00> : vector<24x8xf32>
    %113 = tpu.matmul %111, %112, %cst_41 {dimension_numbers = #tpu.dot_dimension_numbers<[1], [0], [0], [1], [0, 0, 1, 1], [], []>} : vector<24x24xbf16>, vector<24x8xbf16>, vector<24x8xf32> -> vector<24x8xf32>
    %114 = tpu.concatenate %62, %79, %96, %113 in 1 : vector<24x8xf32>, vector<24x8xf32>, vector<24x8xf32>, vector<24x8xf32> -> vector<24x32xf32>
    %c24 = arith.constant 24 : index
    %c0_42 = arith.constant 0 : index
    %115 = vector.load %arg13[%c24, %c0_42] : memref<48x96xbf16, #tpu.memory_space<vmem>>, vector<24x32xbf16>
    %c24_43 = arith.constant 24 : index
    %c32_44 = arith.constant 32 : index
    %116 = vector.load %arg13[%c24_43, %c32_44] : memref<48x96xbf16, #tpu.memory_space<vmem>>, vector<24x32xbf16>
    %c24_45 = arith.constant 24 : index
    %c64_46 = arith.constant 64 : index
    %117 = vector.load %arg13[%c24_45, %c64_46] : memref<48x96xbf16, #tpu.memory_space<vmem>>, vector<24x32xbf16>
    %118 = vector.extract_strided_slice %115 {offsets = [0, 0], sizes = [24, 8], strides = [1, 1]} : vector<24x32xbf16> to vector<24x8xbf16>
    %119 = vector.extract_strided_slice %116 {offsets = [0, 0], sizes = [24, 8], strides = [1, 1]} : vector<24x32xbf16> to vector<24x8xbf16>
    "tpu.trace_start"() <{level = 10 : i32, message = "sd,td->st"}> : () -> ()
    %cst_47 = arith.constant dense<0.000000e+00> : vector<24x24xf32>
    %120 = tpu.matmul %118, %119, %cst_47 {dimension_numbers = #tpu.dot_dimension_numbers<[1], [1], [0], [0], [0, 0, 1, 0], [], []>} : vector<24x8xbf16>, vector<24x8xbf16>, vector<24x24xf32> -> vector<24x24xf32>
    "tpu.trace_stop"() : () -> ()
    %121 = vector.broadcast %6 : vector<1x24xf32> to vector<24x24xf32>
    %122 = arith.addf %120, %121 : vector<24x24xf32>
    %cst_48 = arith.constant dense<0xFF800000> : vector<24xf32>
    %123 = vector.multi_reduction <maximumf>, %122, %cst_48 [1] : vector<24x24xf32> to vector<24xf32>
    %124 = vector.shape_cast %123 : vector<24xf32> to vector<24x1xf32>
    %125 = vector.broadcast %124 : vector<24x1xf32> to vector<24x24xf32>
    %126 = arith.subf %122, %125 : vector<24x24xf32>
    %127 = math.exp %126 : vector<24x24xf32>
    %cst_49 = arith.constant dense<0.000000e+00> : vector<24xf32>
    %128 = vector.multi_reduction <add>, %127, %cst_49 [1] : vector<24x24xf32> to vector<24xf32>
    %129 = vector.shape_cast %128 : vector<24xf32> to vector<24x1xf32>
    %130 = vector.broadcast %129 : vector<24x1xf32> to vector<24x24xf32>
    %131 = arith.divf %127, %130 : vector<24x24xf32>
    %132 = arith.truncf %131 : vector<24x24xf32> to vector<24x24xbf16>
    %133 = vector.extract_strided_slice %117 {offsets = [0, 0], sizes = [24, 8], strides = [1, 1]} : vector<24x32xbf16> to vector<24x8xbf16>
    %cst_50 = arith.constant dense<0.000000e+00> : vector<24x8xf32>
    %134 = tpu.matmul %132, %133, %cst_50 {dimension_numbers = #tpu.dot_dimension_numbers<[1], [0], [0], [1], [0, 0, 1, 1], [], []>} : vector<24x24xbf16>, vector<24x8xbf16>, vector<24x8xf32> -> vector<24x8xf32>
    %135 = vector.extract_strided_slice %115 {offsets = [0, 8], sizes = [24, 8], strides = [1, 1]} : vector<24x32xbf16> to vector<24x8xbf16>
    %136 = vector.extract_strided_slice %116 {offsets = [0, 8], sizes = [24, 8], strides = [1, 1]} : vector<24x32xbf16> to vector<24x8xbf16>
    "tpu.trace_start"() <{level = 10 : i32, message = "sd,td->st"}> : () -> ()
    %cst_51 = arith.constant dense<0.000000e+00> : vector<24x24xf32>
    %137 = tpu.matmul %135, %136, %cst_51 {dimension_numbers = #tpu.dot_dimension_numbers<[1], [1], [0], [0], [0, 0, 1, 0], [], []>} : vector<24x8xbf16>, vector<24x8xbf16>, vector<24x24xf32> -> vector<24x24xf32>
    "tpu.trace_stop"() : () -> ()
    %138 = vector.broadcast %6 : vector<1x24xf32> to vector<24x24xf32>
    %139 = arith.addf %137, %138 : vector<24x24xf32>
    %cst_52 = arith.constant dense<0xFF800000> : vector<24xf32>
    %140 = vector.multi_reduction <maximumf>, %139, %cst_52 [1] : vector<24x24xf32> to vector<24xf32>
    %141 = vector.shape_cast %140 : vector<24xf32> to vector<24x1xf32>
    %142 = vector.broadcast %141 : vector<24x1xf32> to vector<24x24xf32>
    %143 = arith.subf %139, %142 : vector<24x24xf32>
    %144 = math.exp %143 : vector<24x24xf32>
    %cst_53 = arith.constant dense<0.000000e+00> : vector<24xf32>
    %145 = vector.multi_reduction <add>, %144, %cst_53 [1] : vector<24x24xf32> to vector<24xf32>
    %146 = vector.shape_cast %145 : vector<24xf32> to vector<24x1xf32>
    %147 = vector.broadcast %146 : vector<24x1xf32> to vector<24x24xf32>
    %148 = arith.divf %144, %147 : vector<24x24xf32>
    %149 = arith.truncf %148 : vector<24x24xf32> to vector<24x24xbf16>
    %150 = vector.extract_strided_slice %117 {offsets = [0, 8], sizes = [24, 8], strides = [1, 1]} : vector<24x32xbf16> to vector<24x8xbf16>
    %cst_54 = arith.constant dense<0.000000e+00> : vector<24x8xf32>
    %151 = tpu.matmul %149, %150, %cst_54 {dimension_numbers = #tpu.dot_dimension_numbers<[1], [0], [0], [1], [0, 0, 1, 1], [], []>} : vector<24x24xbf16>, vector<24x8xbf16>, vector<24x8xf32> -> vector<24x8xf32>
    %152 = vector.extract_strided_slice %115 {offsets = [0, 16], sizes = [24, 8], strides = [1, 1]} : vector<24x32xbf16> to vector<24x8xbf16>
    %153 = vector.extract_strided_slice %116 {offsets = [0, 16], sizes = [24, 8], strides = [1, 1]} : vector<24x32xbf16> to vector<24x8xbf16>
    "tpu.trace_start"() <{level = 10 : i32, message = "sd,td->st"}> : () -> ()
    %cst_55 = arith.constant dense<0.000000e+00> : vector<24x24xf32>
    %154 = tpu.matmul %152, %153, %cst_55 {dimension_numbers = #tpu.dot_dimension_numbers<[1], [1], [0], [0], [0, 0, 1, 0], [], []>} : vector<24x8xbf16>, vector<24x8xbf16>, vector<24x24xf32> -> vector<24x24xf32>
    "tpu.trace_stop"() : () -> ()
    %155 = vector.broadcast %6 : vector<1x24xf32> to vector<24x24xf32>
    %156 = arith.addf %154, %155 : vector<24x24xf32>
    %cst_56 = arith.constant dense<0xFF800000> : vector<24xf32>
    %157 = vector.multi_reduction <maximumf>, %156, %cst_56 [1] : vector<24x24xf32> to vector<24xf32>
    %158 = vector.shape_cast %157 : vector<24xf32> to vector<24x1xf32>
    %159 = vector.broadcast %158 : vector<24x1xf32> to vector<24x24xf32>
    %160 = arith.subf %156, %159 : vector<24x24xf32>
    %161 = math.exp %160 : vector<24x24xf32>
    %cst_57 = arith.constant dense<0.000000e+00> : vector<24xf32>
    %162 = vector.multi_reduction <add>, %161, %cst_57 [1] : vector<24x24xf32> to vector<24xf32>
    %163 = vector.shape_cast %162 : vector<24xf32> to vector<24x1xf32>
    %164 = vector.broadcast %163 : vector<24x1xf32> to vector<24x24xf32>
    %165 = arith.divf %161, %164 : vector<24x24xf32>
    %166 = arith.truncf %165 : vector<24x24xf32> to vector<24x24xbf16>
    %167 = vector.extract_strided_slice %117 {offsets = [0, 16], sizes = [24, 8], strides = [1, 1]} : vector<24x32xbf16> to vector<24x8xbf16>
    %cst_58 = arith.constant dense<0.000000e+00> : vector<24x8xf32>
    %168 = tpu.matmul %166, %167, %cst_58 {dimension_numbers = #tpu.dot_dimension_numbers<[1], [0], [0], [1], [0, 0, 1, 1], [], []>} : vector<24x24xbf16>, vector<24x8xbf16>, vector<24x8xf32> -> vector<24x8xf32>
    %169 = vector.extract_strided_slice %115 {offsets = [0, 24], sizes = [24, 8], strides = [1, 1]} : vector<24x32xbf16> to vector<24x8xbf16>
    %170 = vector.extract_strided_slice %116 {offsets = [0, 24], sizes = [24, 8], strides = [1, 1]} : vector<24x32xbf16> to vector<24x8xbf16>
    "tpu.trace_start"() <{level = 10 : i32, message = "sd,td->st"}> : () -> ()
    %cst_59 = arith.constant dense<0.000000e+00> : vector<24x24xf32>
    %171 = tpu.matmul %169, %170, %cst_59 {dimension_numbers = #tpu.dot_dimension_numbers<[1], [1], [0], [0], [0, 0, 1, 0], [], []>} : vector<24x8xbf16>, vector<24x8xbf16>, vector<24x24xf32> -> vector<24x24xf32>
    "tpu.trace_stop"() : () -> ()
    %172 = vector.broadcast %6 : vector<1x24xf32> to vector<24x24xf32>
    %173 = arith.addf %171, %172 : vector<24x24xf32>
    %cst_60 = arith.constant dense<0xFF800000> : vector<24xf32>
    %174 = vector.multi_reduction <maximumf>, %173, %cst_60 [1] : vector<24x24xf32> to vector<24xf32>
    %175 = vector.shape_cast %174 : vector<24xf32> to vector<24x1xf32>
    %176 = vector.broadcast %175 : vector<24x1xf32> to vector<24x24xf32>
    %177 = arith.subf %173, %176 : vector<24x24xf32>
    %178 = math.exp %177 : vector<24x24xf32>
    %cst_61 = arith.constant dense<0.000000e+00> : vector<24xf32>
    %179 = vector.multi_reduction <add>, %178, %cst_61 [1] : vector<24x24xf32> to vector<24xf32>
    %180 = vector.shape_cast %179 : vector<24xf32> to vector<24x1xf32>
    %181 = vector.broadcast %180 : vector<24x1xf32> to vector<24x24xf32>
    %182 = arith.divf %178, %181 : vector<24x24xf32>
    %183 = arith.truncf %182 : vector<24x24xf32> to vector<24x24xbf16>
    %184 = vector.extract_strided_slice %117 {offsets = [0, 24], sizes = [24, 8], strides = [1, 1]} : vector<24x32xbf16> to vector<24x8xbf16>
    %cst_62 = arith.constant dense<0.000000e+00> : vector<24x8xf32>
    %185 = tpu.matmul %183, %184, %cst_62 {dimension_numbers = #tpu.dot_dimension_numbers<[1], [0], [0], [1], [0, 0, 1, 1], [], []>} : vector<24x24xbf16>, vector<24x8xbf16>, vector<24x8xf32> -> vector<24x8xf32>
    %186 = tpu.concatenate %134, %151, %168, %185 in 1 : vector<24x8xf32>, vector<24x8xf32>, vector<24x8xf32>, vector<24x8xf32> -> vector<24x32xf32>
    %187 = tpu.concatenate %114, %186 in 0 : vector<24x32xf32>, vector<24x32xf32> -> vector<48x32xf32>
    %188 = arith.truncf %187 : vector<48x32xf32> to vector<48x32xbf16>
    %c0_63 = arith.constant 0 : index
    %c0_64 = arith.constant 0 : index
    %c0_65 = arith.constant 0 : index
    %189 = vector.load %arg6[%c0_63, %c0_64, %c0_65] : memref<2x32x32xbf16, #tpu.memory_space<vmem>>, vector<1x32x32xbf16>
    %190 = vector.shape_cast %189 : vector<1x32x32xbf16> to vector<32x32xbf16>
    %cst_66 = arith.constant dense<0.000000e+00> : vector<48x32xf32>
    %191 = tpu.matmul %188, %190, %cst_66 {dimension_numbers = #tpu.dot_dimension_numbers<[1], [0], [0], [1], [0, 0, 1, 1], [], []>} : vector<48x32xbf16>, vector<32x32xbf16>, vector<48x32xf32> -> vector<48x32xf32>
    %192 = arith.addf %0, %191 : vector<48x32xf32>
    %c0_67 = arith.constant 0 : index
    %c0_68 = arith.constant 0 : index
    %c0_69 = arith.constant 0 : index
    %193 = vector.load %arg7[%c0_67, %c0_68, %c0_69] : memref<2x1x32xf32, #tpu.memory_space<vmem>>, vector<1x1x32xf32>
    %194 = vector.shape_cast %193 : vector<1x1x32xf32> to vector<1x32xf32>
    %195 = vector.broadcast %194 : vector<1x32xf32> to vector<48x32xf32>
    %196 = arith.addf %192, %195 : vector<48x32xf32>
    %cst_70 = arith.constant dense<0.000000e+00> : vector<48xf32>
    %197 = vector.multi_reduction <add>, %196, %cst_70 [1] : vector<48x32xf32> to vector<48xf32>
    %198 = vector.shape_cast %197 : vector<48xf32> to vector<48x1xf32>
    %cst_71 = arith.constant 3.200000e+01 : f32
    %199 = vector.broadcast %cst_71 : f32 to vector<48x1xf32>
    %200 = arith.divf %198, %199 : vector<48x1xf32>
    %201 = vector.broadcast %200 : vector<48x1xf32> to vector<48x32xf32>
    %202 = arith.subf %196, %201 : vector<48x32xf32>
    %203 = arith.mulf %202, %202 : vector<48x32xf32>
    %cst_72 = arith.constant dense<0.000000e+00> : vector<48xf32>
    %204 = vector.multi_reduction <add>, %203, %cst_72 [1] : vector<48x32xf32> to vector<48xf32>
    %205 = vector.shape_cast %204 : vector<48xf32> to vector<48x1xf32>
    %cst_73 = arith.constant 3.200000e+01 : f32
    %206 = vector.broadcast %cst_73 : f32 to vector<48x1xf32>
    %207 = arith.divf %205, %206 : vector<48x1xf32>
    %208 = vector.broadcast %200 : vector<48x1xf32> to vector<48x32xf32>
    %209 = arith.subf %196, %208 : vector<48x32xf32>
    %cst_74 = arith.constant 9.99999974E-6 : f32
    %210 = vector.broadcast %cst_74 : f32 to vector<48x1xf32>
    %211 = arith.addf %207, %210 : vector<48x1xf32>
    %212 = math.rsqrt %211 : vector<48x1xf32>
    %213 = vector.broadcast %212 : vector<48x1xf32> to vector<48x32xf32>
    %214 = arith.mulf %209, %213 : vector<48x32xf32>
    %c0_75 = arith.constant 0 : index
    %c0_76 = arith.constant 0 : index
    %c0_77 = arith.constant 0 : index
    %215 = vector.load %arg8[%c0_75, %c0_76, %c0_77] : memref<2x1x32xf32, #tpu.memory_space<vmem>>, vector<1x1x32xf32>
    %216 = vector.shape_cast %215 : vector<1x1x32xf32> to vector<1x32xf32>
    %217 = vector.broadcast %216 : vector<1x32xf32> to vector<48x32xf32>
    %218 = arith.mulf %214, %217 : vector<48x32xf32>
    %c0_78 = arith.constant 0 : index
    %c0_79 = arith.constant 0 : index
    %c0_80 = arith.constant 0 : index
    %219 = vector.load %arg9[%c0_78, %c0_79, %c0_80] : memref<2x1x32xf32, #tpu.memory_space<vmem>>, vector<1x1x32xf32>
    %220 = vector.shape_cast %219 : vector<1x1x32xf32> to vector<1x32xf32>
    %221 = vector.broadcast %220 : vector<1x32xf32> to vector<48x32xf32>
    %222 = arith.addf %218, %221 : vector<48x32xf32>
    %223 = arith.truncf %222 : vector<48x32xf32> to vector<48x32xbf16>
    %c0_81 = arith.constant 0 : index
    %c0_82 = arith.constant 0 : index
    %c0_83 = arith.constant 0 : index
    %224 = vector.load %arg10[%c0_81, %c0_82, %c0_83] : memref<2x32x64xbf16, #tpu.memory_space<vmem>>, vector<1x32x64xbf16>
    %225 = vector.shape_cast %224 : vector<1x32x64xbf16> to vector<32x64xbf16>
    %cst_84 = arith.constant dense<0.000000e+00> : vector<48x64xf32>
    %226 = tpu.matmul %223, %225, %cst_84 {dimension_numbers = #tpu.dot_dimension_numbers<[1], [0], [0], [1], [0, 0, 1, 1], [], []>} : vector<48x32xbf16>, vector<32x64xbf16>, vector<48x64xf32> -> vector<48x64xf32>
    %cst_85 = arith.constant 5.000000e-01 : f32
    %227 = vector.broadcast %cst_85 : f32 to vector<48x64xf32>
    %228 = arith.mulf %227, %226 : vector<48x64xf32>
    %cst_86 = arith.constant 0.707106769 : f32
    %229 = vector.broadcast %cst_86 : f32 to vector<48x64xf32>
    %230 = arith.mulf %226, %229 : vector<48x64xf32>
    %231 = math.erf %230 : vector<48x64xf32>
    %cst_87 = arith.constant 1.000000e+00 : f32
    %232 = vector.broadcast %cst_87 : f32 to vector<48x64xf32>
    %233 = arith.addf %232, %231 : vector<48x64xf32>
    %234 = arith.mulf %228, %233 : vector<48x64xf32>
    %235 = arith.truncf %234 : vector<48x64xf32> to vector<48x64xbf16>
    %c0_88 = arith.constant 0 : index
    %c0_89 = arith.constant 0 : index
    %c0_90 = arith.constant 0 : index
    %236 = vector.load %arg11[%c0_88, %c0_89, %c0_90] : memref<2x64x32xbf16, #tpu.memory_space<vmem>>, vector<1x64x32xbf16>
    %237 = vector.shape_cast %236 : vector<1x64x32xbf16> to vector<64x32xbf16>
    %cst_91 = arith.constant dense<0.000000e+00> : vector<48x32xf32>
    %238 = tpu.matmul %235, %237, %cst_91 {dimension_numbers = #tpu.dot_dimension_numbers<[1], [0], [0], [1], [0, 0, 1, 1], [], []>} : vector<48x64xbf16>, vector<64x32xbf16>, vector<48x32xf32> -> vector<48x32xf32>
    %239 = arith.addf %196, %238 : vector<48x32xf32>
    %cst_92 = arith.constant dense<0.000000e+00> : vector<48xf32>
    %240 = vector.multi_reduction <add>, %239, %cst_92 [1] : vector<48x32xf32> to vector<48xf32>
    %241 = vector.shape_cast %240 : vector<48xf32> to vector<48x1xf32>
    %cst_93 = arith.constant 3.200000e+01 : f32
    %242 = vector.broadcast %cst_93 : f32 to vector<48x1xf32>
    %243 = arith.divf %241, %242 : vector<48x1xf32>
    %244 = vector.broadcast %243 : vector<48x1xf32> to vector<48x32xf32>
    %245 = arith.subf %239, %244 : vector<48x32xf32>
    %246 = arith.mulf %245, %245 : vector<48x32xf32>
    %cst_94 = arith.constant dense<0.000000e+00> : vector<48xf32>
    %247 = vector.multi_reduction <add>, %246, %cst_94 [1] : vector<48x32xf32> to vector<48xf32>
    %248 = vector.shape_cast %247 : vector<48xf32> to vector<48x1xf32>
    %cst_95 = arith.constant 3.200000e+01 : f32
    %249 = vector.broadcast %cst_95 : f32 to vector<48x1xf32>
    %250 = arith.divf %248, %249 : vector<48x1xf32>
    %251 = vector.broadcast %243 : vector<48x1xf32> to vector<48x32xf32>
    %252 = arith.subf %239, %251 : vector<48x32xf32>
    %cst_96 = arith.constant 9.99999974E-6 : f32
    %253 = vector.broadcast %cst_96 : f32 to vector<48x1xf32>
    %254 = arith.addf %250, %253 : vector<48x1xf32>
    %255 = math.rsqrt %254 : vector<48x1xf32>
    %256 = vector.broadcast %255 : vector<48x1xf32> to vector<48x32xf32>
    %257 = arith.mulf %252, %256 : vector<48x32xf32>
    %c1 = arith.constant 1 : index
    %c0_97 = arith.constant 0 : index
    %c0_98 = arith.constant 0 : index
    %258 = vector.load %arg2[%c1, %c0_97, %c0_98] : memref<2x1x32xf32, #tpu.memory_space<vmem>>, vector<1x1x32xf32>
    %259 = vector.shape_cast %258 : vector<1x1x32xf32> to vector<1x32xf32>
    %260 = vector.broadcast %259 : vector<1x32xf32> to vector<48x32xf32>
    %261 = arith.mulf %257, %260 : vector<48x32xf32>
    %c1_99 = arith.constant 1 : index
    %c0_100 = arith.constant 0 : index
    %c0_101 = arith.constant 0 : index
    %262 = vector.load %arg3[%c1_99, %c0_100, %c0_101] : memref<2x1x32xf32, #tpu.memory_space<vmem>>, vector<1x1x32xf32>
    %263 = vector.shape_cast %262 : vector<1x1x32xf32> to vector<1x32xf32>
    %264 = vector.broadcast %263 : vector<1x32xf32> to vector<48x32xf32>
    %265 = arith.addf %261, %264 : vector<48x32xf32>
    %266 = arith.truncf %265 : vector<48x32xf32> to vector<48x32xbf16>
    %c1_102 = arith.constant 1 : index
    %c0_103 = arith.constant 0 : index
    %c0_104 = arith.constant 0 : index
    %267 = vector.load %arg4[%c1_102, %c0_103, %c0_104] : memref<2x32x96xbf16, #tpu.memory_space<vmem>>, vector<1x32x96xbf16>
    %268 = vector.shape_cast %267 : vector<1x32x96xbf16> to vector<32x96xbf16>
    %cst_105 = arith.constant dense<0.000000e+00> : vector<48x96xf32>
    %269 = tpu.matmul %266, %268, %cst_105 {dimension_numbers = #tpu.dot_dimension_numbers<[1], [0], [0], [1], [0, 0, 1, 1], [], []>} : vector<48x32xbf16>, vector<32x96xbf16>, vector<48x96xf32> -> vector<48x96xf32>
    %c1_106 = arith.constant 1 : index
    %c0_107 = arith.constant 0 : index
    %c0_108 = arith.constant 0 : index
    %270 = vector.load %arg5[%c1_106, %c0_107, %c0_108] : memref<2x1x96xf32, #tpu.memory_space<vmem>>, vector<1x1x96xf32>
    %271 = vector.shape_cast %270 : vector<1x1x96xf32> to vector<1x96xf32>
    %272 = vector.broadcast %271 : vector<1x96xf32> to vector<48x96xf32>
    %273 = arith.addf %269, %272 : vector<48x96xf32>
    %274 = arith.truncf %273 : vector<48x96xf32> to vector<48x96xbf16>
    %c0_109 = arith.constant 0 : index
    %c0_110 = arith.constant 0 : index
    %275 = vector.load %arg13[%c0_109, %c0_110] : memref<48x96xbf16, #tpu.memory_space<vmem>>, vector<48x96xbf16>
    tpu.vector_store %arg13[%c0_109, %c0_110], %274 {strides = array<i32>} : memref<48x96xbf16, #tpu.memory_space<vmem>>, vector<48x96xbf16>,
    %c0_111 = arith.constant 0 : index
    %c0_112 = arith.constant 0 : index
    %276 = vector.load %arg13[%c0_111, %c0_112] : memref<48x96xbf16, #tpu.memory_space<vmem>>, vector<24x32xbf16>
    %c0_113 = arith.constant 0 : index
    %c32_114 = arith.constant 32 : index
    %277 = vector.load %arg13[%c0_113, %c32_114] : memref<48x96xbf16, #tpu.memory_space<vmem>>, vector<24x32xbf16>
    %c0_115 = arith.constant 0 : index
    %c64_116 = arith.constant 64 : index
    %278 = vector.load %arg13[%c0_115, %c64_116] : memref<48x96xbf16, #tpu.memory_space<vmem>>, vector<24x32xbf16>
    %279 = vector.extract_strided_slice %276 {offsets = [0, 0], sizes = [24, 8], strides = [1, 1]} : vector<24x32xbf16> to vector<24x8xbf16>
    %280 = vector.extract_strided_slice %277 {offsets = [0, 0], sizes = [24, 8], strides = [1, 1]} : vector<24x32xbf16> to vector<24x8xbf16>
    "tpu.trace_start"() <{level = 10 : i32, message = "sd,td->st"}> : () -> ()
    %cst_117 = arith.constant dense<0.000000e+00> : vector<24x24xf32>
    %281 = tpu.matmul %279, %280, %cst_117 {dimension_numbers = #tpu.dot_dimension_numbers<[1], [1], [0], [0], [0, 0, 1, 0], [], []>} : vector<24x8xbf16>, vector<24x8xbf16>, vector<24x24xf32> -> vector<24x24xf32>
    "tpu.trace_stop"() : () -> ()
    %282 = vector.broadcast %6 : vector<1x24xf32> to vector<24x24xf32>
    %283 = arith.addf %281, %282 : vector<24x24xf32>
    %cst_118 = arith.constant dense<0xFF800000> : vector<24xf32>
    %284 = vector.multi_reduction <maximumf>, %283, %cst_118 [1] : vector<24x24xf32> to vector<24xf32>
    %285 = vector.shape_cast %284 : vector<24xf32> to vector<24x1xf32>
    %286 = vector.broadcast %285 : vector<24x1xf32> to vector<24x24xf32>
    %287 = arith.subf %283, %286 : vector<24x24xf32>
    %288 = math.exp %287 : vector<24x24xf32>
    %cst_119 = arith.constant dense<0.000000e+00> : vector<24xf32>
    %289 = vector.multi_reduction <add>, %288, %cst_119 [1] : vector<24x24xf32> to vector<24xf32>
    %290 = vector.shape_cast %289 : vector<24xf32> to vector<24x1xf32>
    %291 = vector.broadcast %290 : vector<24x1xf32> to vector<24x24xf32>
    %292 = arith.divf %288, %291 : vector<24x24xf32>
    %293 = arith.truncf %292 : vector<24x24xf32> to vector<24x24xbf16>
    %294 = vector.extract_strided_slice %278 {offsets = [0, 0], sizes = [24, 8], strides = [1, 1]} : vector<24x32xbf16> to vector<24x8xbf16>
    %cst_120 = arith.constant dense<0.000000e+00> : vector<24x8xf32>
    %295 = tpu.matmul %293, %294, %cst_120 {dimension_numbers = #tpu.dot_dimension_numbers<[1], [0], [0], [1], [0, 0, 1, 1], [], []>} : vector<24x24xbf16>, vector<24x8xbf16>, vector<24x8xf32> -> vector<24x8xf32>
    %296 = vector.extract_strided_slice %276 {offsets = [0, 8], sizes = [24, 8], strides = [1, 1]} : vector<24x32xbf16> to vector<24x8xbf16>
    %297 = vector.extract_strided_slice %277 {offsets = [0, 8], sizes = [24, 8], strides = [1, 1]} : vector<24x32xbf16> to vector<24x8xbf16>
    "tpu.trace_start"() <{level = 10 : i32, message = "sd,td->st"}> : () -> ()
    %cst_121 = arith.constant dense<0.000000e+00> : vector<24x24xf32>
    %298 = tpu.matmul %296, %297, %cst_121 {dimension_numbers = #tpu.dot_dimension_numbers<[1], [1], [0], [0], [0, 0, 1, 0], [], []>} : vector<24x8xbf16>, vector<24x8xbf16>, vector<24x24xf32> -> vector<24x24xf32>
    "tpu.trace_stop"() : () -> ()
    %299 = vector.broadcast %6 : vector<1x24xf32> to vector<24x24xf32>
    %300 = arith.addf %298, %299 : vector<24x24xf32>
    %cst_122 = arith.constant dense<0xFF800000> : vector<24xf32>
    %301 = vector.multi_reduction <maximumf>, %300, %cst_122 [1] : vector<24x24xf32> to vector<24xf32>
    %302 = vector.shape_cast %301 : vector<24xf32> to vector<24x1xf32>
    %303 = vector.broadcast %302 : vector<24x1xf32> to vector<24x24xf32>
    %304 = arith.subf %300, %303 : vector<24x24xf32>
    %305 = math.exp %304 : vector<24x24xf32>
    %cst_123 = arith.constant dense<0.000000e+00> : vector<24xf32>
    %306 = vector.multi_reduction <add>, %305, %cst_123 [1] : vector<24x24xf32> to vector<24xf32>
    %307 = vector.shape_cast %306 : vector<24xf32> to vector<24x1xf32>
    %308 = vector.broadcast %307 : vector<24x1xf32> to vector<24x24xf32>
    %309 = arith.divf %305, %308 : vector<24x24xf32>
    %310 = arith.truncf %309 : vector<24x24xf32> to vector<24x24xbf16>
    %311 = vector.extract_strided_slice %278 {offsets = [0, 8], sizes = [24, 8], strides = [1, 1]} : vector<24x32xbf16> to vector<24x8xbf16>
    %cst_124 = arith.constant dense<0.000000e+00> : vector<24x8xf32>
    %312 = tpu.matmul %310, %311, %cst_124 {dimension_numbers = #tpu.dot_dimension_numbers<[1], [0], [0], [1], [0, 0, 1, 1], [], []>} : vector<24x24xbf16>, vector<24x8xbf16>, vector<24x8xf32> -> vector<24x8xf32>
    %313 = vector.extract_strided_slice %276 {offsets = [0, 16], sizes = [24, 8], strides = [1, 1]} : vector<24x32xbf16> to vector<24x8xbf16>
    %314 = vector.extract_strided_slice %277 {offsets = [0, 16], sizes = [24, 8], strides = [1, 1]} : vector<24x32xbf16> to vector<24x8xbf16>
    "tpu.trace_start"() <{level = 10 : i32, message = "sd,td->st"}> : () -> ()
    %cst_125 = arith.constant dense<0.000000e+00> : vector<24x24xf32>
    %315 = tpu.matmul %313, %314, %cst_125 {dimension_numbers = #tpu.dot_dimension_numbers<[1], [1], [0], [0], [0, 0, 1, 0], [], []>} : vector<24x8xbf16>, vector<24x8xbf16>, vector<24x24xf32> -> vector<24x24xf32>
    "tpu.trace_stop"() : () -> ()
    %316 = vector.broadcast %6 : vector<1x24xf32> to vector<24x24xf32>
    %317 = arith.addf %315, %316 : vector<24x24xf32>
    %cst_126 = arith.constant dense<0xFF800000> : vector<24xf32>
    %318 = vector.multi_reduction <maximumf>, %317, %cst_126 [1] : vector<24x24xf32> to vector<24xf32>
    %319 = vector.shape_cast %318 : vector<24xf32> to vector<24x1xf32>
    %320 = vector.broadcast %319 : vector<24x1xf32> to vector<24x24xf32>
    %321 = arith.subf %317, %320 : vector<24x24xf32>
    %322 = math.exp %321 : vector<24x24xf32>
    %cst_127 = arith.constant dense<0.000000e+00> : vector<24xf32>
    %323 = vector.multi_reduction <add>, %322, %cst_127 [1] : vector<24x24xf32> to vector<24xf32>
    %324 = vector.shape_cast %323 : vector<24xf32> to vector<24x1xf32>
    %325 = vector.broadcast %324 : vector<24x1xf32> to vector<24x24xf32>
    %326 = arith.divf %322, %325 : vector<24x24xf32>
    %327 = arith.truncf %326 : vector<24x24xf32> to vector<24x24xbf16>
    %328 = vector.extract_strided_slice %278 {offsets = [0, 16], sizes = [24, 8], strides = [1, 1]} : vector<24x32xbf16> to vector<24x8xbf16>
    %cst_128 = arith.constant dense<0.000000e+00> : vector<24x8xf32>
    %329 = tpu.matmul %327, %328, %cst_128 {dimension_numbers = #tpu.dot_dimension_numbers<[1], [0], [0], [1], [0, 0, 1, 1], [], []>} : vector<24x24xbf16>, vector<24x8xbf16>, vector<24x8xf32> -> vector<24x8xf32>
    %330 = vector.extract_strided_slice %276 {offsets = [0, 24], sizes = [24, 8], strides = [1, 1]} : vector<24x32xbf16> to vector<24x8xbf16>
    %331 = vector.extract_strided_slice %277 {offsets = [0, 24], sizes = [24, 8], strides = [1, 1]} : vector<24x32xbf16> to vector<24x8xbf16>
    "tpu.trace_start"() <{level = 10 : i32, message = "sd,td->st"}> : () -> ()
    %cst_129 = arith.constant dense<0.000000e+00> : vector<24x24xf32>
    %332 = tpu.matmul %330, %331, %cst_129 {dimension_numbers = #tpu.dot_dimension_numbers<[1], [1], [0], [0], [0, 0, 1, 0], [], []>} : vector<24x8xbf16>, vector<24x8xbf16>, vector<24x24xf32> -> vector<24x24xf32>
    "tpu.trace_stop"() : () -> ()
    %333 = vector.broadcast %6 : vector<1x24xf32> to vector<24x24xf32>
    %334 = arith.addf %332, %333 : vector<24x24xf32>
    %cst_130 = arith.constant dense<0xFF800000> : vector<24xf32>
    %335 = vector.multi_reduction <maximumf>, %334, %cst_130 [1] : vector<24x24xf32> to vector<24xf32>
    %336 = vector.shape_cast %335 : vector<24xf32> to vector<24x1xf32>
    %337 = vector.broadcast %336 : vector<24x1xf32> to vector<24x24xf32>
    %338 = arith.subf %334, %337 : vector<24x24xf32>
    %339 = math.exp %338 : vector<24x24xf32>
    %cst_131 = arith.constant dense<0.000000e+00> : vector<24xf32>
    %340 = vector.multi_reduction <add>, %339, %cst_131 [1] : vector<24x24xf32> to vector<24xf32>
    %341 = vector.shape_cast %340 : vector<24xf32> to vector<24x1xf32>
    %342 = vector.broadcast %341 : vector<24x1xf32> to vector<24x24xf32>
    %343 = arith.divf %339, %342 : vector<24x24xf32>
    %344 = arith.truncf %343 : vector<24x24xf32> to vector<24x24xbf16>
    %345 = vector.extract_strided_slice %278 {offsets = [0, 24], sizes = [24, 8], strides = [1, 1]} : vector<24x32xbf16> to vector<24x8xbf16>
    %cst_132 = arith.constant dense<0.000000e+00> : vector<24x8xf32>
    %346 = tpu.matmul %344, %345, %cst_132 {dimension_numbers = #tpu.dot_dimension_numbers<[1], [0], [0], [1], [0, 0, 1, 1], [], []>} : vector<24x24xbf16>, vector<24x8xbf16>, vector<24x8xf32> -> vector<24x8xf32>
    %347 = tpu.concatenate %295, %312, %329, %346 in 1 : vector<24x8xf32>, vector<24x8xf32>, vector<24x8xf32>, vector<24x8xf32> -> vector<24x32xf32>
    %c24_133 = arith.constant 24 : index
    %c0_134 = arith.constant 0 : index
    %348 = vector.load %arg13[%c24_133, %c0_134] : memref<48x96xbf16, #tpu.memory_space<vmem>>, vector<24x32xbf16>
    %c24_135 = arith.constant 24 : index
    %c32_136 = arith.constant 32 : index
    %349 = vector.load %arg13[%c24_135, %c32_136] : memref<48x96xbf16, #tpu.memory_space<vmem>>, vector<24x32xbf16>
    %c24_137 = arith.constant 24 : index
    %c64_138 = arith.constant 64 : index
    %350 = vector.load %arg13[%c24_137, %c64_138] : memref<48x96xbf16, #tpu.memory_space<vmem>>, vector<24x32xbf16>
    %351 = vector.extract_strided_slice %348 {offsets = [0, 0], sizes = [24, 8], strides = [1, 1]} : vector<24x32xbf16> to vector<24x8xbf16>
    %352 = vector.extract_strided_slice %349 {offsets = [0, 0], sizes = [24, 8], strides = [1, 1]} : vector<24x32xbf16> to vector<24x8xbf16>
    "tpu.trace_start"() <{level = 10 : i32, message = "sd,td->st"}> : () -> ()
    %cst_139 = arith.constant dense<0.000000e+00> : vector<24x24xf32>
    %353 = tpu.matmul %351, %352, %cst_139 {dimension_numbers = #tpu.dot_dimension_numbers<[1], [1], [0], [0], [0, 0, 1, 0], [], []>} : vector<24x8xbf16>, vector<24x8xbf16>, vector<24x24xf32> -> vector<24x24xf32>
    "tpu.trace_stop"() : () -> ()
    %354 = vector.broadcast %6 : vector<1x24xf32> to vector<24x24xf32>
    %355 = arith.addf %353, %354 : vector<24x24xf32>
    %cst_140 = arith.constant dense<0xFF800000> : vector<24xf32>
    %356 = vector.multi_reduction <maximumf>, %355, %cst_140 [1] : vector<24x24xf32> to vector<24xf32>
    %357 = vector.shape_cast %356 : vector<24xf32> to vector<24x1xf32>
    %358 = vector.broadcast %357 : vector<24x1xf32> to vector<24x24xf32>
    %359 = arith.subf %355, %358 : vector<24x24xf32>
    %360 = math.exp %359 : vector<24x24xf32>
    %cst_141 = arith.constant dense<0.000000e+00> : vector<24xf32>
    %361 = vector.multi_reduction <add>, %360, %cst_141 [1] : vector<24x24xf32> to vector<24xf32>
    %362 = vector.shape_cast %361 : vector<24xf32> to vector<24x1xf32>
    %363 = vector.broadcast %362 : vector<24x1xf32> to vector<24x24xf32>
    %364 = arith.divf %360, %363 : vector<24x24xf32>
    %365 = arith.truncf %364 : vector<24x24xf32> to vector<24x24xbf16>
    %366 = vector.extract_strided_slice %350 {offsets = [0, 0], sizes = [24, 8], strides = [1, 1]} : vector<24x32xbf16> to vector<24x8xbf16>
    %cst_142 = arith.constant dense<0.000000e+00> : vector<24x8xf32>
    %367 = tpu.matmul %365, %366, %cst_142 {dimension_numbers = #tpu.dot_dimension_numbers<[1], [0], [0], [1], [0, 0, 1, 1], [], []>} : vector<24x24xbf16>, vector<24x8xbf16>, vector<24x8xf32> -> vector<24x8xf32>
    %368 = vector.extract_strided_slice %348 {offsets = [0, 8], sizes = [24, 8], strides = [1, 1]} : vector<24x32xbf16> to vector<24x8xbf16>
    %369 = vector.extract_strided_slice %349 {offsets = [0, 8], sizes = [24, 8], strides = [1, 1]} : vector<24x32xbf16> to vector<24x8xbf16>
    "tpu.trace_start"() <{level = 10 : i32, message = "sd,td->st"}> : () -> ()
    %cst_143 = arith.constant dense<0.000000e+00> : vector<24x24xf32>
    %370 = tpu.matmul %368, %369, %cst_143 {dimension_numbers = #tpu.dot_dimension_numbers<[1], [1], [0], [0], [0, 0, 1, 0], [], []>} : vector<24x8xbf16>, vector<24x8xbf16>, vector<24x24xf32> -> vector<24x24xf32>
    "tpu.trace_stop"() : () -> ()
    %371 = vector.broadcast %6 : vector<1x24xf32> to vector<24x24xf32>
    %372 = arith.addf %370, %371 : vector<24x24xf32>
    %cst_144 = arith.constant dense<0xFF800000> : vector<24xf32>
    %373 = vector.multi_reduction <maximumf>, %372, %cst_144 [1] : vector<24x24xf32> to vector<24xf32>
    %374 = vector.shape_cast %373 : vector<24xf32> to vector<24x1xf32>
    %375 = vector.broadcast %374 : vector<24x1xf32> to vector<24x24xf32>
    %376 = arith.subf %372, %375 : vector<24x24xf32>
    %377 = math.exp %376 : vector<24x24xf32>
    %cst_145 = arith.constant dense<0.000000e+00> : vector<24xf32>
    %378 = vector.multi_reduction <add>, %377, %cst_145 [1] : vector<24x24xf32> to vector<24xf32>
    %379 = vector.shape_cast %378 : vector<24xf32> to vector<24x1xf32>
    %380 = vector.broadcast %379 : vector<24x1xf32> to vector<24x24xf32>
    %381 = arith.divf %377, %380 : vector<24x24xf32>
    %382 = arith.truncf %381 : vector<24x24xf32> to vector<24x24xbf16>
    %383 = vector.extract_strided_slice %350 {offsets = [0, 8], sizes = [24, 8], strides = [1, 1]} : vector<24x32xbf16> to vector<24x8xbf16>
    %cst_146 = arith.constant dense<0.000000e+00> : vector<24x8xf32>
    %384 = tpu.matmul %382, %383, %cst_146 {dimension_numbers = #tpu.dot_dimension_numbers<[1], [0], [0], [1], [0, 0, 1, 1], [], []>} : vector<24x24xbf16>, vector<24x8xbf16>, vector<24x8xf32> -> vector<24x8xf32>
    %385 = vector.extract_strided_slice %348 {offsets = [0, 16], sizes = [24, 8], strides = [1, 1]} : vector<24x32xbf16> to vector<24x8xbf16>
    %386 = vector.extract_strided_slice %349 {offsets = [0, 16], sizes = [24, 8], strides = [1, 1]} : vector<24x32xbf16> to vector<24x8xbf16>
    "tpu.trace_start"() <{level = 10 : i32, message = "sd,td->st"}> : () -> ()
    %cst_147 = arith.constant dense<0.000000e+00> : vector<24x24xf32>
    %387 = tpu.matmul %385, %386, %cst_147 {dimension_numbers = #tpu.dot_dimension_numbers<[1], [1], [0], [0], [0, 0, 1, 0], [], []>} : vector<24x8xbf16>, vector<24x8xbf16>, vector<24x24xf32> -> vector<24x24xf32>
    "tpu.trace_stop"() : () -> ()
    %388 = vector.broadcast %6 : vector<1x24xf32> to vector<24x24xf32>
    %389 = arith.addf %387, %388 : vector<24x24xf32>
    %cst_148 = arith.constant dense<0xFF800000> : vector<24xf32>
    %390 = vector.multi_reduction <maximumf>, %389, %cst_148 [1] : vector<24x24xf32> to vector<24xf32>
    %391 = vector.shape_cast %390 : vector<24xf32> to vector<24x1xf32>
    %392 = vector.broadcast %391 : vector<24x1xf32> to vector<24x24xf32>
    %393 = arith.subf %389, %392 : vector<24x24xf32>
    %394 = math.exp %393 : vector<24x24xf32>
    %cst_149 = arith.constant dense<0.000000e+00> : vector<24xf32>
    %395 = vector.multi_reduction <add>, %394, %cst_149 [1] : vector<24x24xf32> to vector<24xf32>
    %396 = vector.shape_cast %395 : vector<24xf32> to vector<24x1xf32>
    %397 = vector.broadcast %396 : vector<24x1xf32> to vector<24x24xf32>
    %398 = arith.divf %394, %397 : vector<24x24xf32>
    %399 = arith.truncf %398 : vector<24x24xf32> to vector<24x24xbf16>
    %400 = vector.extract_strided_slice %350 {offsets = [0, 16], sizes = [24, 8], strides = [1, 1]} : vector<24x32xbf16> to vector<24x8xbf16>
    %cst_150 = arith.constant dense<0.000000e+00> : vector<24x8xf32>
    %401 = tpu.matmul %399, %400, %cst_150 {dimension_numbers = #tpu.dot_dimension_numbers<[1], [0], [0], [1], [0, 0, 1, 1], [], []>} : vector<24x24xbf16>, vector<24x8xbf16>, vector<24x8xf32> -> vector<24x8xf32>
    %402 = vector.extract_strided_slice %348 {offsets = [0, 24], sizes = [24, 8], strides = [1, 1]} : vector<24x32xbf16> to vector<24x8xbf16>
    %403 = vector.extract_strided_slice %349 {offsets = [0, 24], sizes = [24, 8], strides = [1, 1]} : vector<24x32xbf16> to vector<24x8xbf16>
    "tpu.trace_start"() <{level = 10 : i32, message = "sd,td->st"}> : () -> ()
    %cst_151 = arith.constant dense<0.000000e+00> : vector<24x24xf32>
    %404 = tpu.matmul %402, %403, %cst_151 {dimension_numbers = #tpu.dot_dimension_numbers<[1], [1], [0], [0], [0, 0, 1, 0], [], []>} : vector<24x8xbf16>, vector<24x8xbf16>, vector<24x24xf32> -> vector<24x24xf32>
    "tpu.trace_stop"() : () -> ()
    %405 = vector.broadcast %6 : vector<1x24xf32> to vector<24x24xf32>
    %406 = arith.addf %404, %405 : vector<24x24xf32>
    %cst_152 = arith.constant dense<0xFF800000> : vector<24xf32>
    %407 = vector.multi_reduction <maximumf>, %406, %cst_152 [1] : vector<24x24xf32> to vector<24xf32>
    %408 = vector.shape_cast %407 : vector<24xf32> to vector<24x1xf32>
    %409 = vector.broadcast %408 : vector<24x1xf32> to vector<24x24xf32>
    %410 = arith.subf %406, %409 : vector<24x24xf32>
    %411 = math.exp %410 : vector<24x24xf32>
    %cst_153 = arith.constant dense<0.000000e+00> : vector<24xf32>
    %412 = vector.multi_reduction <add>, %411, %cst_153 [1] : vector<24x24xf32> to vector<24xf32>
    %413 = vector.shape_cast %412 : vector<24xf32> to vector<24x1xf32>
    %414 = vector.broadcast %413 : vector<24x1xf32> to vector<24x24xf32>
    %415 = arith.divf %411, %414 : vector<24x24xf32>
    %416 = arith.truncf %415 : vector<24x24xf32> to vector<24x24xbf16>
    %417 = vector.extract_strided_slice %350 {offsets = [0, 24], sizes = [24, 8], strides = [1, 1]} : vector<24x32xbf16> to vector<24x8xbf16>
    %cst_154 = arith.constant dense<0.000000e+00> : vector<24x8xf32>
    %418 = tpu.matmul %416, %417, %cst_154 {dimension_numbers = #tpu.dot_dimension_numbers<[1], [0], [0], [1], [0, 0, 1, 1], [], []>} : vector<24x24xbf16>, vector<24x8xbf16>, vector<24x8xf32> -> vector<24x8xf32>
    %419 = tpu.concatenate %367, %384, %401, %418 in 1 : vector<24x8xf32>, vector<24x8xf32>, vector<24x8xf32>, vector<24x8xf32> -> vector<24x32xf32>
    %420 = tpu.concatenate %347, %419 in 0 : vector<24x32xf32>, vector<24x32xf32> -> vector<48x32xf32>
    %421 = arith.truncf %420 : vector<48x32xf32> to vector<48x32xbf16>
    %c1_155 = arith.constant 1 : index
    %c0_156 = arith.constant 0 : index
    %c0_157 = arith.constant 0 : index
    %422 = vector.load %arg6[%c1_155, %c0_156, %c0_157] : memref<2x32x32xbf16, #tpu.memory_space<vmem>>, vector<1x32x32xbf16>
    %423 = vector.shape_cast %422 : vector<1x32x32xbf16> to vector<32x32xbf16>
    %cst_158 = arith.constant dense<0.000000e+00> : vector<48x32xf32>
    %424 = tpu.matmul %421, %423, %cst_158 {dimension_numbers = #tpu.dot_dimension_numbers<[1], [0], [0], [1], [0, 0, 1, 1], [], []>} : vector<48x32xbf16>, vector<32x32xbf16>, vector<48x32xf32> -> vector<48x32xf32>
    %425 = arith.addf %239, %424 : vector<48x32xf32>
    %c1_159 = arith.constant 1 : index
    %c0_160 = arith.constant 0 : index
    %c0_161 = arith.constant 0 : index
    %426 = vector.load %arg7[%c1_159, %c0_160, %c0_161] : memref<2x1x32xf32, #tpu.memory_space<vmem>>, vector<1x1x32xf32>
    %427 = vector.shape_cast %426 : vector<1x1x32xf32> to vector<1x32xf32>
    %428 = vector.broadcast %427 : vector<1x32xf32> to vector<48x32xf32>
    %429 = arith.addf %425, %428 : vector<48x32xf32>
    %cst_162 = arith.constant dense<0.000000e+00> : vector<48xf32>
    %430 = vector.multi_reduction <add>, %429, %cst_162 [1] : vector<48x32xf32> to vector<48xf32>
    %431 = vector.shape_cast %430 : vector<48xf32> to vector<48x1xf32>
    %cst_163 = arith.constant 3.200000e+01 : f32
    %432 = vector.broadcast %cst_163 : f32 to vector<48x1xf32>
    %433 = arith.divf %431, %432 : vector<48x1xf32>
    %434 = vector.broadcast %433 : vector<48x1xf32> to vector<48x32xf32>
    %435 = arith.subf %429, %434 : vector<48x32xf32>
    %436 = arith.mulf %435, %435 : vector<48x32xf32>
    %cst_164 = arith.constant dense<0.000000e+00> : vector<48xf32>
    %437 = vector.multi_reduction <add>, %436, %cst_164 [1] : vector<48x32xf32> to vector<48xf32>
    %438 = vector.shape_cast %437 : vector<48xf32> to vector<48x1xf32>
    %cst_165 = arith.constant 3.200000e+01 : f32
    %439 = vector.broadcast %cst_165 : f32 to vector<48x1xf32>
    %440 = arith.divf %438, %439 : vector<48x1xf32>
    %441 = vector.broadcast %433 : vector<48x1xf32> to vector<48x32xf32>
    %442 = arith.subf %429, %441 : vector<48x32xf32>
    %cst_166 = arith.constant 9.99999974E-6 : f32
    %443 = vector.broadcast %cst_166 : f32 to vector<48x1xf32>
    %444 = arith.addf %440, %443 : vector<48x1xf32>
    %445 = math.rsqrt %444 : vector<48x1xf32>
    %446 = vector.broadcast %445 : vector<48x1xf32> to vector<48x32xf32>
    %447 = arith.mulf %442, %446 : vector<48x32xf32>
    %c1_167 = arith.constant 1 : index
    %c0_168 = arith.constant 0 : index
    %c0_169 = arith.constant 0 : index
    %448 = vector.load %arg8[%c1_167, %c0_168, %c0_169] : memref<2x1x32xf32, #tpu.memory_space<vmem>>, vector<1x1x32xf32>
    %449 = vector.shape_cast %448 : vector<1x1x32xf32> to vector<1x32xf32>
    %450 = vector.broadcast %449 : vector<1x32xf32> to vector<48x32xf32>
    %451 = arith.mulf %447, %450 : vector<48x32xf32>
    %c1_170 = arith.constant 1 : index
    %c0_171 = arith.constant 0 : index
    %c0_172 = arith.constant 0 : index
    %452 = vector.load %arg9[%c1_170, %c0_171, %c0_172] : memref<2x1x32xf32, #tpu.memory_space<vmem>>, vector<1x1x32xf32>
    %453 = vector.shape_cast %452 : vector<1x1x32xf32> to vector<1x32xf32>
    %454 = vector.broadcast %453 : vector<1x32xf32> to vector<48x32xf32>
    %455 = arith.addf %451, %454 : vector<48x32xf32>
    %456 = arith.truncf %455 : vector<48x32xf32> to vector<48x32xbf16>
    %c1_173 = arith.constant 1 : index
    %c0_174 = arith.constant 0 : index
    %c0_175 = arith.constant 0 : index
    %457 = vector.load %arg10[%c1_173, %c0_174, %c0_175] : memref<2x32x64xbf16, #tpu.memory_space<vmem>>, vector<1x32x64xbf16>
    %458 = vector.shape_cast %457 : vector<1x32x64xbf16> to vector<32x64xbf16>
    %cst_176 = arith.constant dense<0.000000e+00> : vector<48x64xf32>
    %459 = tpu.matmul %456, %458, %cst_176 {dimension_numbers = #tpu.dot_dimension_numbers<[1], [0], [0], [1], [0, 0, 1, 1], [], []>} : vector<48x32xbf16>, vector<32x64xbf16>, vector<48x64xf32> -> vector<48x64xf32>
    %cst_177 = arith.constant 5.000000e-01 : f32
    %460 = vector.broadcast %cst_177 : f32 to vector<48x64xf32>
    %461 = arith.mulf %460, %459 : vector<48x64xf32>
    %cst_178 = arith.constant 0.707106769 : f32
    %462 = vector.broadcast %cst_178 : f32 to vector<48x64xf32>
    %463 = arith.mulf %459, %462 : vector<48x64xf32>
    %464 = math.erf %463 : vector<48x64xf32>
    %cst_179 = arith.constant 1.000000e+00 : f32
    %465 = vector.broadcast %cst_179 : f32 to vector<48x64xf32>
    %466 = arith.addf %465, %464 : vector<48x64xf32>
    %467 = arith.mulf %461, %466 : vector<48x64xf32>
    %468 = arith.truncf %467 : vector<48x64xf32> to vector<48x64xbf16>
    %c1_180 = arith.constant 1 : index
    %c0_181 = arith.constant 0 : index
    %c0_182 = arith.constant 0 : index
    %469 = vector.load %arg11[%c1_180, %c0_181, %c0_182] : memref<2x64x32xbf16, #tpu.memory_space<vmem>>, vector<1x64x32xbf16>
    %470 = vector.shape_cast %469 : vector<1x64x32xbf16> to vector<64x32xbf16>
    %cst_183 = arith.constant dense<0.000000e+00> : vector<48x32xf32>
    %471 = tpu.matmul %468, %470, %cst_183 {dimension_numbers = #tpu.dot_dimension_numbers<[1], [0], [0], [1], [0, 0, 1, 1], [], []>} : vector<48x64xbf16>, vector<64x32xbf16>, vector<48x32xf32> -> vector<48x32xf32>
    %472 = arith.addf %429, %471 : vector<48x32xf32>
    %c0_184 = arith.constant 0 : index
    %c0_185 = arith.constant 0 : index
    %473 = vector.load %arg12[%c0_184, %c0_185] : memref<48x32xf32, #tpu.memory_space<vmem>>, vector<48x32xf32>
    tpu.vector_store %arg12[%c0_184, %c0_185], %472 {strides = array<i32>} : memref<48x32xf32, #tpu.memory_space<vmem>>, vector<48x32xf32>,
    return
  }
  func.func @transform_0(%arg0: i32) -> (i32, i32) {
    %c0_i32 = arith.constant 0 : i32
    %c0_i32_0 = arith.constant 0 : i32
    return %arg0, %c0_i32 : i32, i32
  }
  func.func @transform_1(%arg0: i32) -> (i32, i32, i32) {
    %c0_i32 = arith.constant 0 : i32
    %c0_i32_0 = arith.constant 0 : i32
    %c0_i32_1 = arith.constant 0 : i32
    %c0_i32_2 = arith.constant 0 : i32
    return %c0_i32, %c0_i32_0, %c0_i32_1 : i32, i32, i32
  }
  func.func @transform_2(%arg0: i32) -> (i32, i32, i32) {
    %c0_i32 = arith.constant 0 : i32
    %c0_i32_0 = arith.constant 0 : i32
    %c0_i32_1 = arith.constant 0 : i32
    %c0_i32_2 = arith.constant 0 : i32
    return %c0_i32, %c0_i32_0, %c0_i32_1 : i32, i32, i32
  }
  func.func @transform_3(%arg0: i32) -> (i32, i32, i32) {
    %c0_i32 = arith.constant 0 : i32
    %c0_i32_0 = arith.constant 0 : i32
    %c0_i32_1 = arith.constant 0 : i32
    %c0_i32_2 = arith.constant 0 : i32
    return %c0_i32, %c0_i32_0, %c0_i32_1 : i32, i32, i32
  }
  func.func @transform_4(%arg0: i32) -> (i32, i32, i32) {
    %c0_i32 = arith.constant 0 : i32
    %c0_i32_0 = arith.constant 0 : i32
    %c0_i32_1 = arith.constant 0 : i32
    %c0_i32_2 = arith.constant 0 : i32
    return %c0_i32, %c0_i32_0, %c0_i32_1 : i32, i32, i32
  }
  func.func @transform_5(%arg0: i32) -> (i32, i32, i32) {
    %c0_i32 = arith.constant 0 : i32
    %c0_i32_0 = arith.constant 0 : i32
    %c0_i32_1 = arith.constant 0 : i32
    %c0_i32_2 = arith.constant 0 : i32
    return %c0_i32, %c0_i32_0, %c0_i32_1 : i32, i32, i32
  }
  func.func @transform_6(%arg0: i32) -> (i32, i32, i32) {
    %c0_i32 = arith.constant 0 : i32
    %c0_i32_0 = arith.constant 0 : i32
    %c0_i32_1 = arith.constant 0 : i32
    %c0_i32_2 = arith.constant 0 : i32
    return %c0_i32, %c0_i32_0, %c0_i32_1 : i32, i32, i32
  }
  func.func @transform_7(%arg0: i32) -> (i32, i32, i32) {
    %c0_i32 = arith.constant 0 : i32
    %c0_i32_0 = arith.constant 0 : i32
    %c0_i32_1 = arith.constant 0 : i32
    %c0_i32_2 = arith.constant 0 : i32
    return %c0_i32, %c0_i32_0, %c0_i32_1 : i32, i32, i32
  }
  func.func @transform_8(%arg0: i32) -> (i32, i32, i32) {
    %c0_i32 = arith.constant 0 : i32
    %c0_i32_0 = arith.constant 0 : i32
    %c0_i32_1 = arith.constant 0 : i32
    %c0_i32_2 = arith.constant 0 : i32
    return %c0_i32, %c0_i32_0, %c0_i32_1 : i32, i32, i32
  }
  func.func @transform_9(%arg0: i32) -> (i32, i32, i32) {
    %c0_i32 = arith.constant 0 : i32
    %c0_i32_0 = arith.constant 0 : i32
    %c0_i32_1 = arith.constant 0 : i32
    %c0_i32_2 = arith.constant 0 : i32
    return %c0_i32, %c0_i32_0, %c0_i32_1 : i32, i32, i32
  }
  func.func @transform_10(%arg0: i32) -> (i32, i32, i32) {
    %c0_i32 = arith.constant 0 : i32
    %c0_i32_0 = arith.constant 0 : i32
    %c0_i32_1 = arith.constant 0 : i32
    %c0_i32_2 = arith.constant 0 : i32
    return %c0_i32, %c0_i32_0, %c0_i32_1 : i32, i32, i32
  }
  func.func @transform_11(%arg0: i32) -> (i32, i32) {
    %c0_i32 = arith.constant 0 : i32
    %c0_i32_0 = arith.constant 0 : i32
    return %arg0, %c0_i32 : i32, i32
  }
}

</mosaic_0001>

<bundles_post_ra>
// kernel: vit_forward.5
= control target key start
LH: loop header
LB: loop body
LE: loop exit
PB: predicated region body
PF: predicated region fallthrough
CT: control target
= control target key end

     0   :  { %s147_s0 = inlined_call_operand.vmem [shape: f32[2,32], index: 0, kind: input, shape index: {}]   ;;  %s148_s1 = inlined_call_operand.vmem [shape: bf16[32,128], index: 1, kind: input, shape index: {}]   ;;  %s149_s2 = inlined_call_operand.vmem [shape: f32[1,128], index: 2, kind: input, shape index: {}]   ;;  %s150_s3 = inlined_call_operand.hbm [shape: f32[2,128], index: 3, kind: output, shape index: {}]  }
   0x1   :  { %v82_v0 = vld [vmem:[%s148_s1 + $0x8] sm:$0xff] }
   0x2   :  { %8 = vsyncpa [#allocation3], 0  ;;  %48 = vmatpush.bf16.msra.mxu0 %v82_v0  ;;  %v81_v1 = vld [vmem:[%s148_s1] sm:$0xff]  ;;  %vm38_vm0 = vcmask 261120   ;;  %s111_s20 = smov [#allocation2]   ;;  %s63_s24 = sshll.u32 %s150_s3, 4  ;;  %s64_s24 = int_to_ptr.hbm [resolvable:$true] %s63_s24 }
   0x3   :  { %v16_v2 = vld [vmem:[%s147_s0] sm:$0x3]  ;;  %s61_s21 = sshll.u32 %s111_s20, 4  ;;  %s62_s21 = int_to_ptr.vmem [resolvable:$true] %s61_s21 }
   0x4   :  { %v17_v3 = vpack.c.bf16 %v16_v2, %v16_v2  ;;  %v84_v4 = vld [vmem:[%s149_s2] ss:$0 sm:$0xff] }
   0x6   :  { %49 = vmatpush.bf16.msra.mxu0 %v81_v1 }
   0x9   :  { %80 = vmatmul.msk.bf16.vlgmr.msra.gmra.mxu0 %vm38_vm0, %v17_v3 }
  0x86   :  { %v51_v5 = vpop.f32.mrf.mxu0 }
  0x87   :  { %v52_v6 = vadd.f32 %v84_v4, %v51_v5 }
  0x89   :  { %55 = vst [vmem:[#allocation2] sm:$0x3] %v52_v6 }
  0x8a   :  { %66 = dma.vmem_to_hbm [thread:$0]  %s62_s21, 32, %s64_s24, [#allocation3]  }
  0x8e   :  { %v53_v7 = vpop.f32.mrf.mxu0 }
  0x8f   :  { %109 = dma.done.wait [#allocation3], 32  }
  0x90   :  { %110 = vsyncadd [#allocation3], 4294967264 }
  0x91   :  { %71 = vsyncpa [#allocation3], 1 }

// kernel: vit_forward.3
= control target key start
LH: loop header
LB: loop body
LE: loop exit
PB: predicated region body
PF: predicated region fallthrough
CT: control target
= control target key end

     0   :  { %vm49_vm0 = vcmask 392192   ;;  %vm75_vm1 = vcmask 261120   ;;  %s161_s1 = inlined_call_operand.vmem [shape: bf16[48,32], index: 1, kind: input, shape index: {}]   ;;  %s162_s2 = inlined_call_operand.vmem [shape: f32[1,32], index: 2, kind: input, shape index: {}]   ;;  %s163_s0 = inlined_call_operand.vmem [shape: f32[32,48], index: 0, kind: input, shape index: {}]   ;;  %s164_s3 = inlined_call_operand.vmem [shape: f32[32,32], index: 3, kind: output, shape index: {}]  }
   0x1   :  { %v100_v0 = vld [vmem:[%s161_s1 + $0x10] sm:$0xff]  ;;  %v99_v1 = vld [vmem:[%s161_s1 + $0x8] sm:$0xff]  ;;  %v98_v2 = vld [vmem:[%s161_s1] sm:$0xff] }
   0x2   :  { %61 = vmatpush.bf16.msra.mxu0 %v100_v0  ;;  %101 = vmatpush.bf16.msra.mxu1 %v100_v0  ;;  %v15_v3 = vld [vmem:[%s163_s0] sm:$0xff]  ;;  %v16_v4 = vld [vmem:[%s163_s0 + $0x8] sm:$0xff]  ;;  %v17_v5 = vld [vmem:[%s163_s0 + $0x10] sm:$0xff] }
   0x3   :  { %v18_v6 = vld [vmem:[%s163_s0 + $0x18] sm:$0xff]  ;;  %v19_v7 = vpack.c.bf16 %v16_v4, %v15_v3  ;;  %v104_v9 = vld [vmem:[%s162_s2] ss:$0 sm:$0xff] }
   0x4   :  { %v20_v8 = vpack.c.bf16 %v18_v6, %v17_v5 }
   0x6   :  { %62 = vmatpush.bf16.msra.mxu0 %v99_v1  ;;  %102 = vmatpush.bf16.msra.mxu1 %v99_v1 }
   0xa   :  { %63 = vmatpush.bf16.msra.mxu0 %v98_v2  ;;  %103 = vmatpush.bf16.msra.mxu1 %v98_v2 }
   0xd   :  { %96 = vmatmul.msk.bf16.vlgmr.msra.gmra.mxu0 %vm49_vm0, %v19_v7  ;;  %97 = vmatmul.msk.bf16.vlgmr.msra.gmra.mxu1 %vm49_vm0, %v20_v8 }
  0x8a   :  { %v65_v10 = vpop.f32.mrf.mxu0  ;;  %v70_v11 = vpop.f32.mrf.mxu1 }
  0x8b   :  { %v66_v12 = vadd.f32 %v104_v9, %v65_v10  ;;  %v71_v13 = vadd.f32 %v104_v9, %v70_v11 }
  0x8d   :  { %76 = vst.msk [vmem:[%s164_s3] sm:$0xff] %vm75_vm1, %v66_v12 }
  0x8e   :  { %78 = vst.msk [vmem:[%s164_s3 + $0x10] sm:$0xff] %vm75_vm1, %v71_v13 }
  0x92   :  { %v67_v14 = vpop.f32.mrf.mxu0  ;;  %v72_v15 = vpop.f32.mrf.mxu1 }
  0x93   :  { %v68_v16 = vadd.f32 %v104_v9, %v67_v14  ;;  %v73_v17 = vadd.f32 %v104_v9, %v72_v15 }
  0x95   :  { %77 = vst.msk [vmem:[%s164_s3 + $0x8] sm:$0xff] %vm75_vm1, %v68_v16 }
  0x96   :  { %79 = vst.msk [vmem:[%s164_s3 + $0x18] sm:$0xff] %vm75_vm1, %v73_v17 }

// kernel: vit_forward.4
= control target key start
LH: loop header
LB: loop body
LE: loop exit
PB: predicated region body
PF: predicated region fallthrough
CT: control target
= control target key end

     0   :  { %vm7066_vm0 = vcmask 261120   ;;  %v4893_v8 = vmov 32.0   ;;  %vm271_vm14 = vcmask 781312   ;;  %s4894_s16 = smov 96   ;;  %s4895_s17 = smov 120   ;;  %vm293_vm15 = vcmask 64512   ;;  %s7051_s0 = inlined_call_operand.vmem [shape: f32[48,32], index: 0, kind: input, shape index: {}]   ;;  %s7052_s1 = inlined_call_operand.vmem [shape: f32[2,1,32], index: 1, kind: input, shape index: {}]   ;;  %s7053_s2 = inlined_call_operand.vmem [shape: f32[2,1,32], index: 2, kind: input, shape index: {}]   ;;  %s7054_s4 = inlined_call_operand.vmem [shape: f32[2,1,96], index: 4, kind: input, shape index: {}]   ;;  %s7055_s3 = inlined_call_operand.vmem [shape: bf16[2,32,96], index: 3, kind: input, shape index: {}]   ;;  %s7056_s5 = inlined_call_operand.vmem [shape: bf16[2,32,32], index: 5, kind: input, shape index: {}]   ;;  %s7057_s6 = inlined_call_operand.vmem [shape: f32[2,1,32], index: 6, kind: input, shape index: {}]   ;;  %s7058_s7 = inlined_call_operand.vmem [shape: f32[2,1,32], index: 7, kind: input, shape index: {}]   ;;  %s7059_s8 = inlined_call_operand.vmem [shape: f32[2,1,32], index: 8, kind: input, shape index: {}]   ;;  %s7060_s9 = inlined_call_operand.vmem [shape: bf16[2,32,64], index: 9, kind: input, shape index: {}]   ;;  %s7061_s10 = inlined_call_operand.vmem [shape: bf16[2,64,32], index: 10, kind: input, shape index: {}]   ;;  %s7062_s11 = inlined_call_operand.vmem [shape: f32[48,32], index: 11, kind: output, shape index: {}]  }
   0x1   :  { %v41_v0 = vld [vmem:[%s7051_s0 + $0x10] sm:$0xff]  ;;  %v39_v1 = vld [vmem:[%s7051_s0] sm:$0xff]  ;;  %v42_v4 = vld [vmem:[%s7051_s0 + $0x18] sm:$0xff]  ;;  %4621 = vrcp.f32 %v4893_v8  ;;  %s4896_s18 = smov 88   ;;  %s4898_s23 = smov 64  }
   0x2   :  { %v56_v2 = vsel %vm7066_vm0, %v41_v0, 0.0  ;;  %v50_v3 = vsel %vm7066_vm0, %v39_v1, 0.0  ;;  %v40_v5 = vld [vmem:[%s7051_s0 + $0x8] sm:$0xff]  ;;  %v59_v6 = vsel %vm7066_vm0, %v42_v4, 0.0  ;;  %v4477_v39 = vld [vmem:[%s7055_s3] sm:$0xff]  ;;  %s4899_s24 = smov 56  }
   0x3   :  { %57 = vadd.xlane.f32.xlu1 %v56_v2  ;;  %51 = vadd.xlane.f32.xlu0 %v50_v3  ;;  %v53_v7 = vsel %vm7066_vm0, %v40_v5, 0.0  ;;  %v4478_v35 = vld [vmem:[%s7055_s3 + $0x8] sm:$0xff]  ;;  %s4900_s25 = smov 80   ;;  %s4901_s26 = smov 72  }
   0x4   :  { %247 = vmatpush.bf16.msra.mxu0 %v4478_v35  ;;  %s4902_s27 = smov 104   ;;  %s4903_s28 = smov 112  }
   0x5   :  { %s4904_s29 = smov 48   ;;  %s4905_s30 = smov 40  }
   0x6   :  { %s4906_s12 = smov 8   ;;  %s4907_s13 = smov 16  }
   0x7   :  { %v4622_v9 = vpop.eup %4621  ;;  %s7063_s14 = smov 24  }
   0x8   :  { %v69_v10 = vmul.f32 32.0, %v4622_v9  ;;  %vm73_vm1 = vweird.f32 %v4622_v9  ;;  %248 = vmatpush.bf16.msra.mxu0 %v4477_v39 }
   0xa   :  { %v70_v11 = vsub.f32 1.0, %v69_v10 }
   0xb   :  { %60 = vadd.xlane.f32.xlu1 %v59_v6  ;;  %54 = vadd.xlane.f32.xlu0 %v53_v7 }
   0xc   :  { %v71_v12 = vmul.f32 %v4622_v9, %v70_v11 }
   0xe   :  { %v72_v13 = vadd.f32 %v4622_v9, %v71_v12  ;;  %v5032_v12 = vld [vmem:[%s7053_s2] ss:$0 sm:$0xff] }
  0x10   :  { %v4985_v14 = vsel %vm73_vm1, %v4622_v9, %v72_v13 }
  0x76   :  { %v58_v15 = vpop.xlane.xlu1 %57  ;;  %v52_v16 = vpop.xlane.xlu0 %51 }
  0x77   :  { %v77_v17 = vmul.f32 %v4985_v14, %v58_v15  ;;  %v75_v18 = vmul.f32 %v4985_v14, %v52_v16 }
  0x79   :  { %v4989_v19 = vsub.f32 %v41_v0, %v77_v17  ;;  %v4991_v20 = vsub.f32 %v39_v1, %v75_v18 }
  0x7b   :  { %v89_v21 = vmul.f32 %v4989_v19, %v4989_v19  ;;  %v87_v22 = vmul.f32 %v4991_v20, %v4991_v20 }
  0x7d   :  { %v99_v23 = vsel %vm7066_vm0, %v89_v21, 0.0  ;;  %v93_v24 = vsel %vm7066_vm0, %v87_v22, 0.0 }
  0x7e   :  { %v61_v25 = vpop.xlane.xlu1 %60  ;;  %100 = vadd.xlane.f32.xlu0 %v99_v23  ;;  %94 = vadd.xlane.f32.xlu2 %v93_v24  ;;  %v55_v26 = vpop.xlane.xlu0 %54 }
  0x7f   :  { %v78_v27 = vmul.f32 %v4985_v14, %v61_v25  ;;  %v76_v28 = vmul.f32 %v4985_v14, %v55_v26 }
  0x81   :  { %v5001_v29 = vsub.f32 %v42_v4, %v78_v27  ;;  %v5003_v30 = vsub.f32 %v40_v5, %v76_v28  ;;  %v5025_v5 = vld [vmem:[%s7052_s1] ss:$0 sm:$0xff] }
  0x83   :  { %v90_v31 = vmul.f32 %v5001_v29, %v5001_v29  ;;  %v88_v32 = vmul.f32 %v5003_v30, %v5003_v30 }
  0x85   :  { %v102_v33 = vsel %vm7066_vm0, %v90_v31, 0.0  ;;  %v96_v34 = vsel %vm7066_vm0, %v88_v32, 0.0  ;;  %v5048_v32 = vld [vmem:[%s7054_s4] ss:$0 sm:$0xff] }
  0x86   :  { %103 = vadd.xlane.f32.xlu1 %v102_v33  ;;  %97 = vadd.xlane.f32.xlu2 %v96_v34 }
  0xf1   :  { %v95_v36 = vpop.xlane.xlu2 %94  ;;  %v101_v38 = vpop.xlane.xlu0 %100 }
  0xf2   :  { %v111_v37 = vmul.f32 %v95_v36, %v4985_v14  ;;  %v113_v41 = vmul.f32 %v101_v38, %v4985_v14 }
  0xf4   :  { %v117_v40 = vadd.f32 1e-05, %v111_v37  ;;  %v119_v42 = vadd.f32 1e-05, %v113_v41 }
  0xf6   :  { %4623 = vrsqrt.f32 %v117_v40  ;;  %vm129_vm3 = vweird.f32 %v117_v40  ;;  %vm149_vm10 = vweird.f32 %v119_v42 }
  0xf7   :  { %4625 = vrsqrt.f32 %v119_v42 }
  0xf9   :  { %v104_v43 = vpop.xlane.xlu1 %103  ;;  %v98_v44 = vpop.xlane.xlu2 %97 }
  0xfa   :  { %v114_v45 = vmul.f32 %v104_v43, %v4985_v14  ;;  %v112_v46 = vmul.f32 %v98_v44, %v4985_v14 }
  0xfc   :  { %v4624_v47 = vpop.eup %4623  ;;  %v120_v48 = vadd.f32 1e-05, %v114_v45  ;;  %v118_v49 = vadd.f32 1e-05, %v112_v46 }
  0xfd   :  { %v124_v50 = vmul.f32 %v4624_v47, %v117_v40  ;;  %v4626_v53 = vpop.eup %4625  ;;  %vm130_vm2 = vweird.f32 %v4624_v47 }
  0xfe   :  { %4627 = vrsqrt.f32 %v120_v48  ;;  %v144_v59 = vmul.f32 %v4626_v53, %v119_v42  ;;  %vm131_vm4 = vmor %vm129_vm3, %vm130_vm2  ;;  %vm139_vm6 = vweird.f32 %v118_v49  ;;  %vm159_vm8 = vweird.f32 %v120_v48 }
  0xff   :  { %v125_v51 = vmul.f32 %v4624_v47, %v124_v50  ;;  %4629 = vrsqrt.f32 %v118_v49  ;;  %vm150_vm11 = vweird.f32 %v4626_v53  ;;  %vm324_vm2 = vcmask 195584  }
 0x100   :  { %v145_v0 = vmul.f32 %v4626_v53, %v144_v59  ;;  %vm151_vm13 = vmor %vm149_vm10, %vm150_vm11 }
 0x101   :  { %v126_v52 = vmul.f32 0.5, %v125_v51  ;;  %v43_v51 = vld [vmem:[%s7051_s0 + $0x20] sm:$0xff] }
 0x102   :  { %v146_v6 = vmul.f32 0.5, %v145_v0 }
 0x103   :  { %v127_v54 = vsub.f32 1.5, %v126_v52  ;;  %v62_v52 = vsel %vm7066_vm0, %v43_v51, 0.0 }
 0x104   :  { %v4628_v55 = vpop.eup %4627  ;;  %v147_v13 = vsub.f32 1.5, %v146_v6 }
 0x105   :  { %v4630_v56 = vpop.eup %4629  ;;  %v154_v57 = vmul.f32 %v4628_v55, %v120_v48  ;;  %v128_v58 = vmul.f32 %v4624_v47, %v127_v54  ;;  %vm160_vm9 = vweird.f32 %v4628_v55 }
 0x106   :  { %v134_v60 = vmul.f32 %v4630_v56, %v118_v49  ;;  %vm140_vm5 = vweird.f32 %v4630_v56  ;;  %vm161_vm12 = vmor %vm159_vm8, %vm160_vm9  ;;  %v44_v49 = vld [vmem:[%s7051_s0 + $0x28] sm:$0xff]  ;;  %vm410_vm9 = vcmask 1043456  }
 0x107   :  { %v155_v61 = vmul.f32 %v4628_v55, %v154_v57  ;;  %v132_v63 = vsel %vm131_vm4, %v4624_v47, %v128_v58  ;;  %vm141_vm7 = vmor %vm139_vm6, %vm140_vm5  ;;  %v65_v50 = vsel %vm7066_vm0, %v44_v49, 0.0 }
 0x108   :  { %v135_v62 = vmul.f32 %v4630_v56, %v134_v60  ;;  %v183_v4 = vmul.f32 %v132_v63, %v4991_v20  ;;  %v148_v20 = vmul.f32 %v4626_v53, %v147_v13  ;;  %v4897_v13 = vmov -1e+30  }
 0x109   :  { %v156_v2 = vmul.f32 0.5, %v155_v61 }
 0x10a   :  { %v136_v1 = vmul.f32 0.5, %v135_v62  ;;  %v193_v11 = vmul.f32 %v5025_v5, %v183_v4  ;;  %v152_v23 = vsel %vm151_vm13, %v4626_v53, %v148_v20 }
 0x10b   :  { %v157_v8 = vsub.f32 1.5, %v156_v2  ;;  %v185_v25 = vmul.f32 %v152_v23, %v4989_v19 }
 0x10c   :  { %v137_v3 = vsub.f32 1.5, %v136_v1  ;;  %v203_v17 = vadd.f32 %v5032_v12, %v193_v11 }
 0x10d   :  { %v158_v16 = vmul.f32 %v4628_v55, %v157_v8  ;;  %v195_v27 = vmul.f32 %v5025_v5, %v185_v25 }
 0x10e   :  { %v138_v7 = vmul.f32 %v4630_v56, %v137_v3 }
 0x10f   :  { %v162_v22 = vsel %vm161_vm12, %v4628_v55, %v158_v16 }
 0x110   :  { %v142_v9 = vsel %vm141_vm7, %v4630_v56, %v138_v7  ;;  %v186_v24 = vmul.f32 %v162_v22, %v5001_v29 }
 0x111   :  { %v184_v10 = vmul.f32 %v142_v9, %v5003_v30  ;;  %v205_v30 = vadd.f32 %v5032_v12, %v195_v27 }
 0x112   :  { %v196_v26 = vmul.f32 %v5025_v5, %v186_v24 }
 0x113   :  { %v194_v15 = vmul.f32 %v5025_v5, %v184_v10  ;;  %v45_v10 = vlaneseq }
 0x114   :  { %v206_v28 = vadd.f32 %v5032_v12, %v196_v26 }
 0x115   :  { %v204_v18 = vadd.f32 %v5032_v12, %v194_v15  ;;  %v46_v11 = vand.u32 127, %v45_v10 }
 0x116   :  { %v210_v31 = vpack.c.bf16 %v206_v28, %v205_v30 }
 0x117   :  { %v209_v21 = vpack.c.bf16 %v204_v18, %v203_v17  ;;  %vm47_vm1 = vcmp.lt.s32.totalorder %v46_v11, 17 }
 0x118   :  { %v5104_v15 = vsel %vm47_vm1, 0.0, %v4897_v13 }
 0x119   :  { %4263 = vmatmul.msk.bf16.vlgmr.msra.gmra.mxu0 %vm7066_vm0, %v209_v21 }
 0x129   :  { %4264 = vmatmul.msk.bf16.gmra.mxu0 %vm7066_vm0, %v210_v31 }
 0x196   :  { %v250_v33 = vpop.f32.mrf.mxu0 }
 0x197   :  { %v251_v29 = vadd.f32 %v5048_v32, %v250_v33 }
 0x199   :  { %v265_v19 = vpack.c.bf16 %v251_v29, %v251_v29 }
 0x19b   :  { %272 = vst.msk [vmem:[#allocation2] sm:$0xf] %vm271_vm14, %v265_v19 }
 0x19e   :  { %v252_v34 = vpop.f32.mrf.mxu0 }
 0x19f   :  { %v253_v35 = vadd.f32 %v5048_v32, %v252_v34 }
 0x1a1   :  { %v266_v36 = vpack.c.bf16 %v253_v35, %v253_v35 }
 0x1a2   :  { %v4268_v40 = vld [vmem:[#allocation2] sm:$0xf] }
 0x1a3   :  { %273 = vst.msk [vmem:[#allocation2 + $0x4] sm:$0xf] %vm271_vm14, %v266_v36 }
 0x1a6   :  { %v255_v37 = vpop.f32.mrf.mxu0 }
 0x1a7   :  { %v256_v38 = vadd.f32 %v5048_v32, %v255_v37 }
 0x1a9   :  { %v267_v39 = vpack.c.bf16 %v256_v38, %v256_v38 }
 0x1aa   :  { %v4479_v41 = vld [vmem:[#allocation2] sm:$0xf0] }
 0x1ab   :  { %v5055_v42 = vor.u32 %v4479_v41, %v4268_v40  ;;  %274 = vst.msk [vmem:[#allocation2 + $0x8] sm:$0xf] %vm271_vm14, %v267_v39 }
 0x1ad   :  { %289 = vrot.lane.b32.xlu0 %v5055_v42, %s4894_s16 }
 0x1ae   :  { %v257_v43 = vpop.f32.mrf.mxu0 }
 0x1af   :  { %v258_v44 = vadd.f32 %v5048_v32, %v257_v43 }
 0x1b1   :  { %v268_v45 = vpack.c.bf16 %v258_v44, %v258_v44 }
 0x1b2   :  { %v280_v46 = vld [vmem:[#allocation2 + $0x8] sm:$0xf] }
 0x1b3   :  { %v286_v47 = vunpack.c.l.b16 %v280_v46  ;;  %275 = vst.msk [vmem:[#allocation2 + $0xc] sm:$0xf] %vm271_vm14, %v268_v45 }
 0x1b5   :  { %v5062_v48 = vpack.c.b16 %v286_v47, %v286_v47  ;;  %432 = vrot.lane.b32.xlu0 %v5055_v42, %s4895_s17 }
 0x1b7   :  { %438 = vrot.lane.b32.xlu1 %v5062_v48, %s4896_s18  ;;  %291 = vrot.lane.b32.xlu2 %v5062_v48, %s4894_s16 }
 0x1bd   :  { %434 = vrot.lane.b32.xlu0 %v5062_v48, %s4895_s17 }
 0x1bf   :  { %436 = vrot.lane.b32.xlu2 %v5055_v42, %s4896_s18 }
 0x1e1   :  { %66 = vadd.xlane.f32.xlu1 %v65_v50 }
 0x1e8   :  { %63 = vadd.xlane.f32.xlu2 %v62_v52 }
 0x211   :  { %v292_v53 = vpop.permute.xlu2 %291 }
 0x212   :  { %v304_v54 = vsel %vm293_vm15, %v292_v53, 0 }
 0x213   :  { %312 = vmatpush.bf16.xpose.msra.mxu1 %v304_v54 }
 0x219   :  { %v437_v59 = vpop.permute.xlu2 %436 }
 0x21a   :  { %v447_v60 = vsel %vm293_vm15, %v437_v59, 0 }
 0x21f   :  { %v290_v55 = vpop.permute.xlu0 %289 }
 0x220   :  { %v301_v56 = vsel %vm293_vm15, %v290_v55, 0 }
 0x221   :  { %313 = vmatpush.bf16.xpose.msra.mxu1 %v301_v56 }
 0x227   :  { %v433_v61 = vpop.permute.xlu0 %432 }
 0x228   :  { %4270 = vmatmul.msk.bf16.vlgmr.msra.gmra.mxu1 %vm293_vm15, %v5055_v42 }
 0x229   :  { %v439_v57 = vpop.permute.xlu1 %438 }
 0x22a   :  { %v450_v58 = vsel %vm293_vm15, %v439_v57, 0 }
 0x22b   :  { %458 = vmatpush.bf16.xpose.msra.mxu3 %v450_v58 }
 0x22f   :  { %v435_v62 = vpop.permute.xlu0 %434 }
 0x233   :  { %459 = vmatpush.bf16.xpose.msra.mxu3 %v447_v60 }
 0x238   :  { %4271 = vmatmul.msk.bf16.gmra.mxu1 %vm293_vm15, %v5062_v48 }
 0x23a   :  { %4274 = vmatmul.msk.bf16.vlgmr.msra.gmra.mxu3 %vm293_vm15, %v433_v61 }
 0x24a   :  { %4275 = vmatmul.msk.bf16.gmra.mxu3 %vm293_vm15, %v435_v62 }
 0x254   :  { %v67_v63 = vpop.xlane.xlu1 %66 }
 0x255   :  { %v80_v0 = vmul.f32 %v4985_v14, %v67_v63 }
 0x257   :  { %v5093_v1 = vsub.f32 %v44_v49, %v80_v0 }
 0x259   :  { %v92_v2 = vmul.f32 %v5093_v1, %v5093_v1 }
 0x25b   :  { %v64_v3 = vpop.xlane.xlu2 %63  ;;  %v108_v4 = vsel %vm7066_vm0, %v92_v2, 0.0 }
 0x25c   :  { %v79_v6 = vmul.f32 %v4985_v14, %v64_v3  ;;  %109 = vadd.xlane.f32.xlu2 %v108_v4 }
 0x25e   :  { %v5099_v7 = vsub.f32 %v43_v51, %v79_v6 }
 0x260   :  { %v91_v8 = vmul.f32 %v5099_v7, %v5099_v7 }
 0x262   :  { %v105_v9 = vsel %vm7066_vm0, %v91_v8, 0.0 }
 0x263   :  { %106 = vadd.xlane.f32.xlu0 %v105_v9 }
 0x2a5   :  { %v315_v16 = vpop.f32.mrf.mxu1 }
 0x2a6   :  { %v5107_v17 = vadd.f32 %v315_v16, %v5104_v15 }
 0x2a8   :  { %v325_v18 = vsel %vm324_vm2, %v5107_v17, -inf }
 0x2a9   :  { %326 = vmax.xlane.f32.xlu1 %v325_v18 }
 0x2ad   :  { %v317_v20 = vpop.f32.mrf.mxu1 }
 0x2ae   :  { %v5112_v21 = vadd.f32 %v317_v20, %v5104_v15 }
 0x2b0   :  { %v328_v22 = vsel %vm324_vm2, %v5112_v21, -inf }
 0x2b1   :  { %329 = vmax.xlane.f32.xlu2 %v328_v22 }
 0x2b5   :  { %v320_v23 = vpop.f32.mrf.mxu1 }
 0x2b6   :  { %v5117_v24 = vadd.f32 %v320_v23, %v5104_v15 }
 0x2b8   :  { %v331_v25 = vsel %vm324_vm2, %v5117_v24, -inf }
 0x2b9   :  { %332 = vmax.xlane.f32.xlu1 %v331_v25 }
 0x2bd   :  { %v322_v26 = vpop.f32.mrf.mxu1  ;;  %v461_v27 = vpop.f32.mrf.mxu3 }
 0x2be   :  { %v5122_v28 = vadd.f32 %v461_v27, %v5104_v15 }
 0x2c0   :  { %v470_v30 = vsel %vm324_vm2, %v5122_v28, -inf }
 0x2c1   :  { %471 = vmax.xlane.f32.xlu0 %v470_v30 }
 0x2c5   :  { %v463_v31 = vpop.f32.mrf.mxu3 }
 0x2c6   :  { %v5127_v33 = vadd.f32 %v463_v31, %v5104_v15 }
 0x2c8   :  { %v473_v29 = vsel %vm324_vm2, %v5127_v33, -inf }
 0x2c9   :  { %474 = vmax.xlane.f32.xlu2 %v473_v29 }
 0x2cd   :  { %v466_v19 = vpop.f32.mrf.mxu3 }
 0x2ce   :  { %v5132_v34 = vadd.f32 %v466_v19, %v5104_v15 }
 0x2cf   :  { %v110_v35 = vpop.xlane.xlu2 %109 }
 0x2d0   :  { %v116_v36 = vmul.f32 %v110_v35, %v4985_v14  ;;  %v476_v37 = vsel %vm324_vm2, %v5132_v34, -inf }
 0x2d1   :  { %477 = vmax.xlane.f32.xlu1 %v476_v37 }
 0x2d2   :  { %v122_v38 = vadd.f32 1e-05, %v116_v36 }
 0x2d4   :  { %4631 = vrsqrt.f32 %v122_v38  ;;  %vm179_vm3 = vweird.f32 %v122_v38 }
 0x2d5   :  { %v468_v39 = vpop.f32.mrf.mxu3 }
 0x2d6   :  { %v107_v40 = vpop.xlane.xlu0 %106 }
 0x2d7   :  { %v115_v41 = vmul.f32 %v107_v40, %v4985_v14 }
 0x2d9   :  { %v121_v43 = vadd.f32 1e-05, %v115_v41 }
 0x2da   :  { %v4632_v44 = vpop.eup %4631 }
 0x2db   :  { %v174_v45 = vmul.f32 %v4632_v44, %v122_v38  ;;  %4633 = vrsqrt.f32 %v121_v43  ;;  %vm180_vm4 = vweird.f32 %v4632_v44  ;;  %vm169_vm6 = vweird.f32 %v121_v43 }
 0x2dc   :  { %vm181_vm5 = vmor %vm179_vm3, %vm180_vm4 }
 0x2dd   :  { %v175_v46 = vmul.f32 %v4632_v44, %v174_v45  ;;  %v4288_v45 = vld [vmem:[#allocation2 + $0xc] sm:$0xf] }
 0x2df   :  { %v176_v47 = vmul.f32 0.5, %v175_v46 }
 0x2e1   :  { %v4634_v49 = vpop.eup %4633  ;;  %v177_v50 = vsub.f32 1.5, %v176_v47 }
 0x2e2   :  { %v164_v51 = vmul.f32 %v4634_v49, %v121_v43  ;;  %vm170_vm7 = vweird.f32 %v4634_v49 }
 0x2e3   :  { %v178_v52 = vmul.f32 %v4632_v44, %v177_v50  ;;  %vm171_vm8 = vmor %vm169_vm6, %vm170_vm7 }
 0x2e4   :  { %v165_v53 = vmul.f32 %v4634_v49, %v164_v51 }
 0x2e5   :  { %v182_v54 = vsel %vm181_vm5, %v4632_v44, %v178_v52 }
 0x2e6   :  { %v166_v55 = vmul.f32 0.5, %v165_v53  ;;  %v188_v57 = vmul.f32 %v182_v54, %v5093_v1 }
 0x2e8   :  { %v167_v56 = vsub.f32 1.5, %v166_v55  ;;  %v198_v61 = vmul.f32 %v5025_v5, %v188_v57 }
 0x2ea   :  { %v168_v58 = vmul.f32 %v4634_v49, %v167_v56  ;;  %401 = vrot.lane.b32.xlu1 %v5062_v48, %s4898_s23  ;;  %v208_v0 = vadd.f32 %v5032_v12, %v198_v61 }
 0x2ec   :  { %v172_v59 = vsel %vm171_vm8, %v4634_v49, %v168_v58 }
 0x2ed   :  { %v187_v60 = vmul.f32 %v172_v59, %v5099_v7 }
 0x2ef   :  { %v197_v62 = vmul.f32 %v5025_v5, %v187_v60 }
 0x2f1   :  { %v207_v63 = vadd.f32 %v5032_v12, %v197_v62 }
 0x2f2   :  { %546 = vrot.lane.b32.xlu1 %v5062_v48, %s4899_s24 }
 0x2f3   :  { %v211_v1 = vpack.c.bf16 %v208_v0, %v207_v63 }
 0x2f5   :  { %4265 = vmatmul.msk.bf16.gmra.mxu0 %vm7066_vm0, %v211_v1 }
 0x2fa   :  { %582 = vrot.lane.b32.xlu1 %v5062_v48, %s4900_s25 }
 0x302   :  { %724 = vrot.lane.b32.xlu1 %v5055_v42, %s4901_s26 }
 0x30a   :  { %720 = vrot.lane.b32.xlu1 %v5055_v42, %s4902_s27 }
 0x31c   :  { %v327_v5 = vpop.xlane.xlu1 %326 }
 0x31d   :  { %v334_v12 = vsub.f32 %v5107_v17, %v327_v5 }
 0x31f   :  { %v337_v2 = vmul.f32 1.442695, %v334_v12 }
 0x321   :  { %4635 = vpow2.f32 %v337_v2 }
 0x324   :  { %v330_v3 = vpop.xlane.xlu2 %329 }
 0x325   :  { %v335_v4 = vsub.f32 %v5112_v21, %v330_v3 }
 0x327   :  { %v5157_v6 = vpop.eup %4635  ;;  %v339_v7 = vmul.f32 1.442695, %v335_v4 }
 0x328   :  { %v343_v8 = vsel %vm324_vm2, %v5157_v6, 0.0 }
 0x329   :  { %4637 = vpow2.f32 %v339_v7  ;;  %344 = vadd.xlane.f32.xlu0 %v343_v8 }
 0x32c   :  { %v333_v17 = vpop.xlane.xlu1 %332 }
 0x32d   :  { %v336_v22 = vsub.f32 %v5117_v24, %v333_v17 }
 0x32f   :  { %v5161_v9 = vpop.eup %4637  ;;  %v341_v26 = vmul.f32 1.442695, %v336_v22 }
 0x330   :  { %v346_v10 = vsel %vm324_vm2, %v5161_v9, 0.0 }
 0x331   :  { %347 = vadd.xlane.f32.xlu2 %v346_v10 }
 0x334   :  { %v472_v11 = vpop.xlane.xlu0 %471 }
 0x335   :  { %v479_v13 = vsub.f32 %v5122_v28, %v472_v11 }
 0x337   :  { %v482_v16 = vmul.f32 1.442695, %v479_v13 }
 0x339   :  { %4639 = vpow2.f32 %v482_v16 }
 0x33c   :  { %v475_v18 = vpop.xlane.xlu2 %474 }
 0x33d   :  { %v480_v20 = vsub.f32 %v5127_v33, %v475_v18 }
 0x33f   :  { %v5167_v21 = vpop.eup %4639  ;;  %v484_v23 = vmul.f32 1.442695, %v480_v20 }
 0x340   :  { %v488_v25 = vsel %vm324_vm2, %v5167_v21, 0.0 }
 0x341   :  { %4641 = vpow2.f32 %v484_v23  ;;  %489 = vadd.xlane.f32.xlu0 %v488_v25 }
 0x342   :  { %4643 = vpow2.f32 %v341_v26 }
 0x344   :  { %v478_v31 = vpop.xlane.xlu1 %477 }
 0x345   :  { %v481_v43 = vsub.f32 %v5132_v34, %v478_v31 }
 0x347   :  { %v5172_v27 = vpop.eup %4641  ;;  %v486_v49 = vmul.f32 1.442695, %v481_v43 }
 0x348   :  { %v491_v28 = vsel %vm324_vm2, %v5172_v27, 0.0  ;;  %v5178_v30 = vpop.eup %4643 }
 0x349   :  { %399 = vrot.lane.b32.xlu2 %v5055_v42, %s4898_s23  ;;  %492 = vadd.xlane.f32.xlu0 %v491_v28  ;;  %v349_v24 = vsel %vm324_vm2, %v5178_v30, 0.0  ;;  %4645 = vpow2.f32 %v486_v49 }
 0x34f   :  { %v5207_v53 = vpop.eup %4645 }
 0x351   :  { %544 = vrot.lane.b32.xlu2 %v5055_v42, %s4899_s24  ;;  %350 = vadd.xlane.f32.xlu0 %v349_v24 }
 0x359   :  { %580 = vrot.lane.b32.xlu2 %v5055_v42, %s4900_s25 }
 0x35c   :  { %v402_v33 = vpop.permute.xlu1 %401 }
 0x35d   :  { %v412_v29 = vsel %vm410_vm9, %v402_v33, 0 }
 0x35e   :  { %420 = vmatpush.bf16.msra.mxu2 %v412_v29 }
 0x361   :  { %576 = vrot.lane.b32.xlu2 %v5055_v42, %s4903_s28 }
 0x364   :  { %v547_v19 = vpop.permute.xlu1 %546 }
 0x365   :  { %726 = vrot.lane.b32.xlu0 %v5062_v48, %s4901_s26  ;;  %v556_v62 = vsel %vm410_vm9, %v547_v19, 0 }
 0x369   :  { %578 = vrot.lane.b32.xlu2 %v5062_v48, %s4903_s28 }
 0x36c   :  { %v583_v35 = vpop.permute.xlu1 %582 }
 0x36d   :  { %v594_v36 = vsel %vm293_vm15, %v583_v35, 0 }
 0x36e   :  { %602 = vmatpush.bf16.xpose.msrb.mxu1 %v594_v36 }
 0x371   :  { %722 = vrot.lane.b32.xlu2 %v5062_v48, %s4902_s27 }
 0x372   :  { %v260_v37 = vpop.f32.mrf.mxu0 }
 0x373   :  { %v261_v38 = vadd.f32 %v5048_v32, %v260_v37 }
 0x375   :  { %v269_v39 = vpack.c.bf16 %v261_v38, %v261_v38 }
 0x377   :  { %276 = vst.msk [vmem:[#allocation2 + $0x10] sm:$0xf] %vm271_vm14, %v269_v39 }
 0x37a   :  { %v262_v40 = vpop.f32.mrf.mxu0 }
 0x37b   :  { %v263_v41 = vadd.f32 %v5048_v32, %v262_v40  ;;  %v494_v32 = vsel %vm324_vm2, %v5207_v53, 0.0 }
 0x37d   :  { %v270_v44 = vpack.c.bf16 %v263_v41, %v263_v41 }
 0x37e   :  { %v4480_v46 = vld [vmem:[#allocation2 + $0xc] sm:$0xf0] }
 0x37f   :  { %v5200_v47 = vor.u32 %v4480_v46, %v4288_v45  ;;  %277 = vst.msk [vmem:[#allocation2 + $0x14] sm:$0xf] %vm271_vm14, %v270_v44 }
 0x381   :  { %1061 = vrot.lane.b32.xlu2 %v5200_v47, %s4895_s17 }
 0x386   :  { %v912_v50 = vld [vmem:[#allocation2 + $0x14] sm:$0xf] }
 0x387   :  { %v918_v51 = vunpack.c.l.b16 %v912_v50 }
 0x389   :  { %v5205_v52 = vpack.c.b16 %v918_v51, %v918_v51 }
 0x38b   :  { %1067 = vrot.lane.b32.xlu1 %v5205_v52, %s4896_s18  ;;  %1355 = vrot.lane.b32.xlu2 %v5205_v52, %s4901_s26 }
 0x38f   :  { %495 = vadd.xlane.f32.xlu0 %v494_v32 }
 0x393   :  { %1205 = vrot.lane.b32.xlu2 %v5200_v47, %s4903_s28  ;;  %1065 = vrot.lane.b32.xlu1 %v5200_v47, %s4896_s18 }
 0x39b   :  { %1351 = vrot.lane.b32.xlu2 %v5205_v52, %s4902_s27  ;;  %1063 = vrot.lane.b32.xlu1 %v5205_v52, %s4895_s17 }
 0x39c   :  { %v345_v34 = vpop.xlane.xlu0 %344 }
 0x39d   :  { %4647 = vrcp.f32 %v345_v34  ;;  %v363_v0 = vand.u32 2147483648, %v345_v34  ;;  %vm357_vm11 = vweird.f32 %v345_v34  ;;  %v361_v5 = vand.u32 2147483647, %v345_v34 }
 0x39f   :  { %v364_v7 = vor.u32 1.1754944e-38, %v363_v0  ;;  %vm362_vm3 = vcmp.eq.f32.partialorder %v361_v5, 8.507059e+37 }
 0x3a3   :  { %v4648_v54 = vpop.eup %4647  ;;  %1353 = vrot.lane.b32.xlu1 %v5200_v47, %s4901_s26  ;;  %923 = vrot.lane.b32.xlu0 %v5205_v52, %s4894_s16 }
 0x3a4   :  { %v353_v55 = vmul.f32 %v4648_v54, %v345_v34  ;;  %v348_v56 = vpop.xlane.xlu2 %347  ;;  %vm358_vm10 = vweird.f32 %v4648_v54 }
 0x3a5   :  { %4649 = vrcp.f32 %v348_v56  ;;  %v378_v2 = vand.u32 2147483648, %v348_v56  ;;  %vm359_vm12 = vmor %vm357_vm11, %vm358_vm10  ;;  %v376_v4 = vand.u32 2147483647, %v348_v56  ;;  %vm372_vm1 = vweird.f32 %v348_v56 }
 0x3a6   :  { %v354_v57 = vsub.f32 1.0, %v353_v55 }
 0x3a7   :  { %v379_v17 = vor.u32 1.1754944e-38, %v378_v2  ;;  %vm377_vm5 = vcmp.eq.f32.partialorder %v376_v4, 8.507059e+37 }
 0x3a8   :  { %v355_v58 = vmul.f32 %v4648_v54, %v354_v57 }
 0x3aa   :  { %v356_v63 = vadd.f32 %v4648_v54, %v355_v58 }
 0x3ab   :  { %v4650_v59 = vpop.eup %4649  ;;  %1207 = vrot.lane.b32.xlu1 %v5205_v52, %s4903_s28  ;;  %921 = vrot.lane.b32.xlu0 %v5200_v47, %s4894_s16 }
 0x3ac   :  { %v368_v60 = vmul.f32 %v4650_v59, %v348_v56  ;;  %v400_v61 = vpop.permute.xlu2 %399  ;;  %vm373_vm13 = vweird.f32 %v4650_v59  ;;  %v360_v3 = vsel %vm359_vm12, %v4648_v54, %v356_v63 }
 0x3ad   :  { %421 = vmatpush.bf16.msra.mxu2 %v400_v61  ;;  %vm374_vm4 = vmor %vm372_vm1, %vm373_vm13  ;;  %v365_v13 = vsel %vm362_vm3, %v364_v7, %v360_v3 }
 0x3ae   :  { %v369_v1 = vsub.f32 1.0, %v368_v60  ;;  %v366_v20 = vmul.f32 %v5157_v6, %v365_v13  ;;  %v725_v60 = vpop.permute.xlu1 %724 }
 0x3af   :  { %v735_v0 = vsel %vm293_vm15, %v725_v60, 0 }
 0x3b0   :  { %v370_v12 = vmul.f32 %v4650_v59, %v369_v1 }
 0x3b1   :  { %564 = vmatpush.bf16.msrb.mxu2 %v556_v62 }
 0x3b2   :  { %v371_v8 = vadd.f32 %v4650_v59, %v370_v12 }
 0x3b3   :  { %1211 = vrot.lane.b32.xlu0 %v5205_v52, %s4900_s25 }
 0x3b4   :  { %v545_v10 = vpop.permute.xlu2 %544  ;;  %v5234_v11 = vpop.xlane.xlu0 %489  ;;  %v375_v16 = vsel %vm374_vm4, %v4650_v59, %v371_v8 }
 0x3b5   :  { %565 = vmatpush.bf16.msrb.mxu2 %v545_v10  ;;  %v380_v18 = vsel %vm377_vm5, %v379_v17, %v375_v16  ;;  %v508_v61 = vand.u32 2147483648, %v5234_v11  ;;  %vm502_vm3 = vweird.f32 %v5234_v11 }
 0x3b6   :  { %v381_v22 = vmul.f32 %v5161_v9, %v380_v18  ;;  %v721_v7 = vpop.permute.xlu1 %720 }
 0x3b7   :  { %v509_v5 = vor.u32 1.1754944e-38, %v508_v61 }
 0x3b8   :  { %v397_v23 = vpack.c.bf16 %v381_v22, %v366_v20 }
 0x3ba   :  { %4272 = vmatmul.msk.bf16.vlgmr.msra.gmra.mxu2 %vm324_vm2, %v397_v23 }
 0x3bb   :  { %1209 = vrot.lane.b32.xlu0 %v5200_v47, %s4900_s25 }
 0x3bc   :  { %v581_v25 = vpop.permute.xlu2 %580  ;;  %v493_v26 = vpop.xlane.xlu0 %492 }
 0x3bd   :  { %v591_v28 = vsel %vm293_vm15, %v581_v25, 0  ;;  %4651 = vrcp.f32 %v493_v26  ;;  %v523_v57 = vand.u32 2147483648, %v493_v26  ;;  %vm517_vm13 = vweird.f32 %v493_v26 }
 0x3be   :  { %603 = vmatpush.bf16.xpose.msrb.mxu1 %v591_v28  ;;  %v521_v59 = vand.u32 2147483647, %v493_v26 }
 0x3bf   :  { %v524_v63 = vor.u32 1.1754944e-38, %v523_v57 }
 0x3c0   :  { %vm522_vm5 = vcmp.eq.f32.partialorder %v521_v59, 8.507059e+37 }
 0x3c3   :  { %1349 = vrot.lane.b32.xlu0 %v5200_v47, %s4902_s27  ;;  %v4652_v6 = vpop.eup %4651 }
 0x3c4   :  { %v577_v24 = vpop.permute.xlu2 %576  ;;  %v351_v31 = vpop.xlane.xlu0 %350  ;;  %v513_v19 = vmul.f32 %v4652_v6, %v493_v26  ;;  %vm518_vm11 = vweird.f32 %v4652_v6 }
 0x3c5   :  { %4653 = vrcp.f32 %v351_v31  ;;  %4278 = vmatmul.msk.bf16.vlgmr.msrb.gmra.mxu1 %vm293_vm15, %v577_v24  ;;  %v393_v36 = vand.u32 2147483648, %v351_v31  ;;  %v391_v39 = vand.u32 2147483647, %v351_v31  ;;  %vm387_vm7 = vweird.f32 %v351_v31  ;;  %vm519_vm1 = vmor %vm517_vm13, %vm518_vm11 }
 0x3c6   :  { %4655 = vrcp.f32 %v5234_v11  ;;  %v514_v40 = vsub.f32 1.0, %v513_v19 }
 0x3c7   :  { %v394_v43 = vor.u32 1.1754944e-38, %v393_v36  ;;  %vm392_vm10 = vcmp.eq.f32.partialorder %v391_v39, 8.507059e+37 }
 0x3c8   :  { %v515_v50 = vmul.f32 %v4652_v6, %v514_v40 }
 0x3ca   :  { %v516_v56 = vadd.f32 %v4652_v6, %v515_v50 }
 0x3cb   :  { %v4654_v9 = vpop.eup %4653 }
 0x3cc   :  { %v383_v33 = vmul.f32 %v4654_v9, %v351_v31  ;;  %v4656_v29 = vpop.eup %4655  ;;  %vm388_vm6 = vweird.f32 %v4654_v9  ;;  %v579_v46 = vpop.permute.xlu2 %578  ;;  %v520_v62 = vsel %vm519_vm1, %v4652_v6, %v516_v56 }
 0x3cd   :  { %v498_v37 = vmul.f32 %v4656_v29, %v5234_v11  ;;  %vm389_vm8 = vmor %vm387_vm7, %vm388_vm6  ;;  %vm503_vm12 = vweird.f32 %v4656_v29  ;;  %v525_v12 = vsel %vm522_vm5, %v524_v63, %v520_v62 }
 0x3ce   :  { %v384_v35 = vsub.f32 1.0, %v383_v33  ;;  %vm504_vm4 = vmor %vm502_vm3, %vm503_vm12  ;;  %v526_v3 = vmul.f32 %v5172_v27, %v525_v12 }
 0x3cf   :  { %v499_v44 = vsub.f32 1.0, %v498_v37 }
 0x3d0   :  { %v385_v38 = vmul.f32 %v4654_v9, %v384_v35 }
 0x3d1   :  { %v500_v34 = vmul.f32 %v4656_v29, %v499_v44 }
 0x3d2   :  { %v386_v41 = vadd.f32 %v4654_v9, %v385_v38 }
 0x3d3   :  { %v501_v58 = vadd.f32 %v4656_v29, %v500_v34 }
 0x3d4   :  { %v390_v45 = vsel %vm389_vm8, %v4654_v9, %v386_v41  ;;  %v723_v10 = vpop.permute.xlu2 %722 }
 0x3d5   :  { %v395_v49 = vsel %vm392_vm10, %v394_v43, %v390_v45  ;;  %4279 = vmatmul.msk.bf16.gmra.mxu1 %vm293_vm15, %v579_v46  ;;  %v505_v1 = vsel %vm504_vm4, %v4656_v29, %v501_v58 }
 0x3d6   :  { %v396_v51 = vmul.f32 %v5178_v30, %v395_v49  ;;  %v506_v30 = vand.u32 2147483647, %v5234_v11 }
 0x3d7   :  { %v727_v32 = vpop.permute.xlu0 %726 }
 0x3d8   :  { %v738_v54 = vsel %vm293_vm15, %v727_v32, 0  ;;  %v398_v55 = vpack.c.bf16 %v396_v51, %v396_v51  ;;  %vm507_vm6 = vcmp.eq.f32.partialorder %v506_v30, 8.507059e+37 }
 0x3d9   :  { %746 = vmatpush.bf16.xpose.msrb.mxu0 %v738_v54  ;;  %4501 = vmatpush.bf16.xpose.msra.mxu2 %v738_v54  ;;  %v510_v2 = vsel %vm507_vm6, %v509_v5, %v505_v1 }
 0x3da   :  { %4273 = vmatmul.msk.bf16.gmra.mxu2 %vm324_vm2, %v398_v55  ;;  %v511_v4 = vmul.f32 %v5167_v21, %v510_v2 }
 0x3dc   :  { %v542_v8 = vpack.c.bf16 %v526_v3, %v511_v4  ;;  %v1062_v11 = vpop.permute.xlu2 %1061 }
 0x3e1   :  { %747 = vmatpush.bf16.xpose.msrb.mxu0 %v735_v0  ;;  %4502 = vmatpush.bf16.xpose.msra.mxu2 %v735_v0 }
 0x3e5   :  { %v1356_v18 = vpop.permute.xlu2 %1355 }
 0x3e6   :  { %v1367_v21 = vsel %vm293_vm15, %v1356_v18, 0 }
 0x3e8   :  { %4282 = vmatmul.msk.bf16.vlgmr.msrb.gmra.mxu0 %vm293_vm15, %v721_v7 }
 0x3ea   :  { %4276 = vmatmul.msk.bf16.vlgmr.msrb.gmra.mxu2 %vm324_vm2, %v542_v8 }
 0x3ed   :  { %v1206_v49 = vpop.permute.xlu2 %1205 }
 0x3f5   :  { %v1352_v32 = vpop.permute.xlu2 %1351 }
 0x3fd   :  { %v1068_v13 = vpop.permute.xlu1 %1067 }
 0x3fe   :  { %v1079_v16 = vsel %vm293_vm15, %v1068_v13, 0 }
 0x3ff   :  { %1087 = vmatpush.bf16.xpose.msra.mxu0 %v1079_v16 }
 0x402   :  { %v496_v17 = vpop.xlane.xlu0 %495 }
 0x403   :  { %4657 = vrcp.f32 %v496_v17  ;;  %v538_v28 = vand.u32 2147483648, %v496_v17  ;;  %v536_v31 = vand.u32 2147483647, %v496_v17  ;;  %vm532_vm8 = vweird.f32 %v496_v17 }
 0x405   :  { %v1066_v20 = vpop.permute.xlu1 %1065  ;;  %v539_v9 = vor.u32 1.1754944e-38, %v538_v28  ;;  %vm537_vm11 = vcmp.eq.f32.partialorder %v536_v31, 8.507059e+37 }
 0x406   :  { %v1076_v27 = vsel %vm293_vm15, %v1066_v20, 0 }
 0x407   :  { %1088 = vmatpush.bf16.xpose.msra.mxu0 %v1076_v27 }
 0x409   :  { %v4658_v22 = vpop.eup %4657 }
 0x40a   :  { %v528_v23 = vmul.f32 %v4658_v22, %v496_v17  ;;  %vm533_vm7 = vweird.f32 %v4658_v22 }
 0x40b   :  { %vm534_vm10 = vmor %vm532_vm8, %vm533_vm7 }
 0x40c   :  { %v529_v25 = vsub.f32 1.0, %v528_v23 }
 0x40d   :  { %v1064_v26 = vpop.permute.xlu1 %1063 }
 0x40e   :  { %4294 = vmatmul.msk.bf16.vlgmr.msra.gmra.mxu0 %vm293_vm15, %v1062_v11  ;;  %v530_v24 = vmul.f32 %v4658_v22, %v529_v25 }
 0x40f   :  { %1375 = vmatpush.bf16.xpose.msrb.mxu0 %v1367_v21 }
 0x410   :  { %v531_v6 = vadd.f32 %v4658_v22, %v530_v24 }
 0x412   :  { %v535_v33 = vsel %vm534_vm10, %v4658_v22, %v531_v6 }
 0x413   :  { %v540_v29 = vsel %vm537_vm11, %v539_v9, %v535_v33 }
 0x414   :  { %v541_v19 = vmul.f32 %v5207_v53, %v540_v29 }
 0x415   :  { %v1354_v35 = vpop.permute.xlu1 %1353  ;;  %v924_v36 = vpop.permute.xlu0 %923 }
 0x416   :  { %v935_v37 = vsel %vm293_vm15, %v924_v36, 0  ;;  %v1364_v38 = vsel %vm293_vm15, %v1354_v35, 0  ;;  %v543_v39 = vpack.c.bf16 %v541_v19, %v541_v19 }
 0x417   :  { %943 = vmatpush.bf16.xpose.msra.mxu1 %v935_v37  ;;  %1376 = vmatpush.bf16.xpose.msrb.mxu0 %v1364_v38 }
 0x418   :  { %4277 = vmatmul.msk.bf16.gmra.mxu2 %vm324_vm2, %v543_v39 }
 0x41d   :  { %v922_v40 = vpop.permute.xlu0 %921  ;;  %v1208_v60 = vpop.permute.xlu1 %1207 }
 0x41e   :  { %4295 = vmatmul.msk.bf16.gmra.mxu0 %vm293_vm15, %v1064_v26  ;;  %v932_v41 = vsel %vm293_vm15, %v922_v40, 0 }
 0x41f   :  { %944 = vmatpush.bf16.xpose.msra.mxu1 %v932_v41 }
 0x425   :  { %v1212_v43 = vpop.permute.xlu0 %1211 }
 0x426   :  { %v1223_v53 = vsel %vm293_vm15, %v1212_v43, 0  ;;  %4290 = vmatmul.msk.bf16.vlgmr.msra.gmra.mxu1 %vm293_vm15, %v5200_v47 }
 0x427   :  { %1231 = vmatpush.bf16.xpose.msrb.mxu1 %v1223_v53 }
 0x428   :  { %4283 = vmatmul.msk.bf16.vlgmr.msra.gmra.mxu2 %vm293_vm15, %v723_v10 }
 0x42d   :  { %v1210_v44 = vpop.permute.xlu0 %1209 }
 0x42e   :  { %v1220_v45 = vsel %vm293_vm15, %v1210_v44, 0 }
 0x42f   :  { %1232 = vmatpush.bf16.xpose.msrb.mxu1 %v1220_v45 }
 0x435   :  { %v1350_v46 = vpop.permute.xlu0 %1349 }
 0x436   :  { %4291 = vmatmul.msk.bf16.gmra.mxu1 %vm293_vm15, %v5205_v52  ;;  %4302 = vmatmul.msk.bf16.vlgmr.msrb.gmra.mxu0 %vm293_vm15, %v1350_v46 }
 0x43d   :  { %v5284_v54 = vpop.f32.mrf.mxu2 }
 0x442   :  { %v605_v50 = vpop.f32.mrf.mxu1 }
 0x443   :  { %v5278_v51 = vadd.f32 %v605_v50, %v5104_v15 }
 0x445   :  { %v614_v34 = vsel %vm324_vm2, %v5278_v51, -inf  ;;  %v5294_v61 = vpop.f32.mrf.mxu2 }
 0x446   :  { %4298 = vmatmul.msk.bf16.vlgmr.msrb.gmra.mxu1 %vm293_vm15, %v1206_v49  ;;  %4303 = vmatmul.msk.bf16.gmra.mxu0 %vm293_vm15, %v1352_v32 }
 0x447   :  { %615 = vmax.xlane.f32.xlu0 %v614_v34 }
 0x44a   :  { %v607_v55 = vpop.f32.mrf.mxu1 }
 0x44b   :  { %v5287_v56 = vadd.f32 %v607_v55, %v5104_v15 }
 0x44d   :  { %v617_v57 = vsel %vm324_vm2, %v5287_v56, -inf }
 0x44e   :  { %618 = vmax.xlane.f32.xlu1 %v617_v57 }
 0x452   :  { %v610_v58 = vpop.f32.mrf.mxu1 }
 0x453   :  { %v5292_v59 = vadd.f32 %v610_v58, %v5104_v15 }
 0x455   :  { %v620_v30 = vsel %vm324_vm2, %v5292_v59, -inf }
 0x456   :  { %4299 = vmatmul.msk.bf16.gmra.mxu1 %vm293_vm15, %v1208_v60  ;;  %621 = vmax.xlane.f32.xlu1 %v620_v30 }
 0x45a   :  { %v612_v62 = vpop.f32.mrf.mxu1 }
 0x45d   :  { %v5299_v63 = vpop.f32.mrf.mxu2 }
 0x465   :  { %v430_v0 = vpop.f32.mrf.mxu2  ;;  %v749_v1 = vpop.f32.mrf.mxu0 }
 0x466   :  { %v750_v5 = vadd.f32 %v749_v1, %v5104_v15 }
 0x468   :  { %v758_v12 = vsel %vm324_vm2, %v750_v5, -inf }
 0x469   :  { %759 = vmax.xlane.f32.xlu2 %v758_v12 }
 0x46d   :  { %v751_v2 = vpop.f32.mrf.mxu0  ;;  %v5305_v7 = vpop.f32.mrf.mxu2 }
 0x46e   :  { %v752_v3 = vadd.f32 %v751_v2, %v5104_v15 }
 0x470   :  { %v761_v4 = vsel %vm324_vm2, %v752_v3, -inf }
 0x471   :  { %762 = vmax.xlane.f32.xlu0 %v761_v4 }
 0x475   :  { %v5312_v13 = vpop.f32.mrf.mxu2 }
 0x48b   :  { %v1090_v8 = vpop.f32.mrf.mxu0 }
 0x48c   :  { %v5308_v10 = vadd.f32 %v1090_v8, %v5104_v15 }
 0x48e   :  { %v1099_v11 = vsel %vm324_vm2, %v5308_v10, -inf }
 0x48f   :  { %1100 = vmax.xlane.f32.xlu2 %v1099_v11 }
 0x493   :  { %v1092_v16 = vpop.f32.mrf.mxu0 }
 0x494   :  { %v5327_v28 = vadd.f32 %v1092_v16, %v5104_v15 }
 0x496   :  { %v1102_v33 = vsel %vm324_vm2, %v5327_v28, -inf }
 0x49b   :  { %v5314_v17 = vpop.f32.mrf.mxu2  ;;  %v1095_v18 = vpop.f32.mrf.mxu0 }
 0x49c   :  { %v5317_v20 = vadd.f32 %v1095_v18, %v5104_v15 }
 0x49e   :  { %v1105_v27 = vsel %vm324_vm2, %v5317_v20, -inf }
 0x49f   :  { %1106 = vmax.xlane.f32.xlu2 %v1105_v27 }
 0x4a3   :  { %v574_v21 = vpop.f32.mrf.mxu2  ;;  %v946_v22 = vpop.f32.mrf.mxu1 }
 0x4a4   :  { %v5322_v23 = vadd.f32 %v946_v22, %v5104_v15  ;;  %v1097_v25 = vpop.f32.mrf.mxu0 }
 0x4a6   :  { %v955_v26 = vsel %vm324_vm2, %v5322_v23, -inf }
 0x4a7   :  { %956 = vmax.xlane.f32.xlu0 %v955_v26 }
 0x4ab   :  { %v5329_v24 = vpop.f32.mrf.mxu2  ;;  %v948_v31 = vpop.f32.mrf.mxu1 }
 0x4ac   :  { %v5332_v6 = vadd.f32 %v948_v31, %v5104_v15 }
 0x4ae   :  { %v958_v9 = vsel %vm324_vm2, %v5332_v6, -inf }
 0x4af   :  { %959 = vmax.xlane.f32.xlu1 %v958_v9  ;;  %1103 = vmax.xlane.f32.xlu0 %v1102_v33 }
 0x4b3   :  { %v756_v29 = vpop.f32.mrf.mxu2  ;;  %v951_v19 = vpop.f32.mrf.mxu1 }
 0x4b4   :  { %v5339_v35 = vadd.f32 %v951_v19, %v5104_v15  ;;  %v1378_v36 = vpop.f32.mrf.mxu0 }
 0x4b5   :  { %v5375_v4 = vadd.f32 %v1378_v36, %v5104_v15 }
 0x4b6   :  { %v961_v37 = vsel %vm324_vm2, %v5339_v35, -inf }
 0x4b7   :  { %962 = vmax.xlane.f32.xlu1 %v961_v37  ;;  %v1387_v8 = vsel %vm324_vm2, %v5375_v4, -inf }
 0x4ba   :  { %v5357_v34 = vpop.xlane.xlu0 %615 }
 0x4bb   :  { %v953_v38 = vpop.f32.mrf.mxu1 }
 0x4bc   :  { %v1380_v39 = vpop.f32.mrf.mxu0 }
 0x4bd   :  { %v5351_v44 = vadd.f32 %v1380_v39, %v5104_v15 }
 0x4bf   :  { %v1390_v49 = vsel %vm324_vm2, %v5351_v44, -inf }
 0x4c1   :  { %v619_v16 = vpop.xlane.xlu1 %618 }
 0x4c2   :  { %v624_v21 = vsub.f32 %v5287_v56, %v619_v16 }
 0x4c3   :  { %v1234_v40 = vpop.f32.mrf.mxu1 }
 0x4c4   :  { %v5344_v41 = vadd.f32 %v1234_v40, %v5104_v15  ;;  %v5346_v43 = vpop.f32.mrf.mxu0  ;;  %v628_v22 = vmul.f32 1.442695, %v624_v21 }
 0x4c6   :  { %v1243_v53 = vsel %vm324_vm2, %v5344_v41, -inf }
 0x4c7   :  { %1244 = vmax.xlane.f32.xlu1 %v1243_v53 }
 0x4c9   :  { %v622_v25 = vpop.xlane.xlu1 %621 }
 0x4ca   :  { %v625_v31 = vsub.f32 %v5292_v59, %v622_v25 }
 0x4cb   :  { %v1236_v45 = vpop.f32.mrf.mxu1 }
 0x4cc   :  { %v1385_v46 = vpop.f32.mrf.mxu0  ;;  %v5366_v12 = vadd.f32 %v1236_v45, %v5104_v15 }
 0x4ce   :  { %v1246_v2 = vsel %vm324_vm2, %v5366_v12, -inf }
 0x4cf   :  { %1391 = vmax.xlane.f32.xlu1 %v1390_v49  ;;  %v623_v49 = vsub.f32 %v5278_v51, %v5357_v34 }
 0x4d3   :  { %v5355_v50 = vpop.f32.mrf.mxu1 }
 0x4db   :  { %v1241_v32 = vpop.f32.mrf.mxu1 }
 0x4dc   :  { %v760_v55 = vpop.xlane.xlu2 %759 }
 0x4dd   :  { %v767_v57 = vsub.f32 %v750_v5, %v760_v55 }
 0x4df   :  { %v770_v58 = vmul.f32 1.442695, %v767_v57 }
 0x4e1   :  { %4659 = vpow2.f32 %v770_v58 }
 0x4e4   :  { %v763_v60 = vpop.xlane.xlu0 %762 }
 0x4e5   :  { %v768_v30 = vsub.f32 %v752_v3, %v763_v60 }
 0x4e7   :  { %v5359_v62 = vpop.eup %4659  ;;  %v772_v0 = vmul.f32 1.442695, %v768_v30  ;;  %v5426_v30 = vadd.f32 %v5329_v24, %v5104_v15 }
 0x4e8   :  { %688 = vrot.lane.b32.xlu1 %v5055_v42, %s4904_s29  ;;  %v776_v1 = vsel %vm324_vm2, %v5359_v62, 0.0 }
 0x4e9   :  { %4661 = vpow2.f32 %v772_v0  ;;  %777 = vadd.xlane.f32.xlu2 %v776_v1 }
 0x4ef   :  { %v5368_v5 = vpop.eup %4661 }
 0x4f0   :  { %v779_v3 = vsel %vm324_vm2, %v5368_v5, 0.0 }
 0x4f1   :  { %1247 = vmax.xlane.f32.xlu2 %v1246_v2  ;;  %780 = vadd.xlane.f32.xlu0 %v779_v3  ;;  %v764_v2 = vsel %vm324_vm2, %v5426_v30, -inf }
 0x4f9   :  { %1388 = vmax.xlane.f32.xlu0 %v1387_v8 }
 0x502   :  { %v1101_v11 = vpop.xlane.xlu2 %1100 }
 0x503   :  { %v1108_v18 = vsub.f32 %v5308_v10, %v1101_v11  ;;  %v630_v10 = vmul.f32 1.442695, %v625_v31 }
 0x505   :  { %v1111_v27 = vmul.f32 1.442695, %v1108_v18 }
 0x507   :  { %4663 = vpow2.f32 %v1111_v27 }
 0x508   :  { %4665 = vpow2.f32 %v628_v22 }
 0x509   :  { %690 = vrot.lane.b32.xlu2 %v5062_v48, %s4904_s29  ;;  %4667 = vpow2.f32 %v630_v10 }
 0x50d   :  { %834 = vrot.lane.b32.xlu0 %v5062_v48, %s4905_s30  ;;  %v5385_v26 = vpop.eup %4663 }
 0x50e   :  { %v1117_v56 = vsel %vm324_vm2, %v5385_v26, 0.0  ;;  %v5394_v9 = vpop.eup %4665 }
 0x50f   :  { %v635_v48 = vsel %vm324_vm2, %v5394_v9, 0.0  ;;  %v5400_v59 = vpop.eup %4667 }
 0x510   :  { %v638_v29 = vsel %vm324_vm2, %v5400_v59, 0.0 }
 0x511   :  { %1175 = vrot.lane.b32.xlu2 %v5205_v52, %s4899_s24 }
 0x512   :  { %1118 = vadd.xlane.f32.xlu1 %v1117_v56  ;;  %v1107_v57 = vpop.xlane.xlu2 %1106 }
 0x515   :  { %832 = vrot.lane.b32.xlu0 %v5055_v42, %s4905_s30 }
 0x51a   :  { %636 = vadd.xlane.f32.xlu1 %v635_v48  ;;  %v957_v33 = vpop.xlane.xlu0 %956 }
 0x51b   :  { %v964_v53 = vsub.f32 %v5322_v23, %v957_v33  ;;  %v1110_v23 = vsub.f32 %v5317_v20, %v1107_v57 }
 0x51d   :  { %1031 = vrot.lane.b32.xlu0 %v5205_v52, %s4898_s23  ;;  %v967_v45 = vmul.f32 1.442695, %v964_v53  ;;  %v1115_v60 = vmul.f32 1.442695, %v1110_v23 }
 0x522   :  { %v960_v19 = vpop.xlane.xlu1 %959  ;;  %639 = vadd.xlane.f32.xlu1 %v638_v29  ;;  %v1104_v36 = vpop.xlane.xlu0 %1103 }
 0x523   :  { %v1109_v42 = vsub.f32 %v5327_v28, %v1104_v36  ;;  %v965_v0 = vsub.f32 %v5332_v6, %v960_v19 }
 0x525   :  { %v1113_v39 = vmul.f32 1.442695, %v1109_v42  ;;  %v969_v20 = vmul.f32 1.442695, %v965_v0 }
 0x52a   :  { %v963_v37 = vpop.xlane.xlu1 %962 }
 0x52b   :  { %v966_v38 = vsub.f32 %v5339_v35, %v963_v37  ;;  %v626_v35 = vmul.f32 1.442695, %v623_v49 }
 0x52d   :  { %v971_v40 = vmul.f32 1.442695, %v966_v38 }
 0x52f   :  { %4669 = vpow2.f32 %v971_v40 }
 0x530   :  { %4671 = vpow2.f32 %v1113_v39 }
 0x531   :  { %4673 = vpow2.f32 %v967_v45 }
 0x532   :  { %4675 = vpow2.f32 %v626_v35 }
 0x533   :  { %4677 = vpow2.f32 %v1115_v60 }
 0x534   :  { %4679 = vpow2.f32 %v969_v20 }
 0x535   :  { %v5407_v46 = vpop.eup %4669 }
 0x536   :  { %v5411_v32 = vpop.eup %4671  ;;  %v979_v28 = vsel %vm324_vm2, %v5407_v46, 0.0 }
 0x537   :  { %980 = vadd.xlane.f32.xlu1 %v979_v28  ;;  %v1120_v55 = vsel %vm324_vm2, %v5411_v32, 0.0  ;;  %v5418_v58 = vpop.eup %4673 }
 0x538   :  { %v973_v51 = vsel %vm324_vm2, %v5418_v58, 0.0  ;;  %v5422_v34 = vpop.eup %4675 }
 0x539   :  { %v632_v1 = vsel %vm324_vm2, %v5422_v34, 0.0  ;;  %v5433_v3 = vpop.eup %4677 }
 0x53a   :  { %1121 = vadd.xlane.f32.xlu2 %v1120_v55  ;;  %v1123_v8 = vsel %vm324_vm2, %v5433_v3, 0.0  ;;  %v5437_v24 = vpop.eup %4679  ;;  %v1245_v16 = vpop.xlane.xlu1 %1244 }
 0x53b   :  { %v976_v6 = vsel %vm324_vm2, %v5437_v24, 0.0 }
 0x542   :  { %974 = vadd.xlane.f32.xlu2 %v973_v51  ;;  %v1392_v21 = vpop.xlane.xlu1 %1391 }
 0x543   :  { %v1397_v33 = vsub.f32 %v5351_v44, %v1392_v21 }
 0x545   :  { %v1401_v37 = vmul.f32 1.442695, %v1397_v33 }
 0x547   :  { %633 = vadd.xlane.f32.xlu0 %v632_v1 }
 0x54a   :  { %765 = vmax.xlane.f32.xlu2 %v764_v2 }
 0x54f   :  { %1124 = vadd.xlane.f32.xlu0 %v1123_v8 }
 0x557   :  { %977 = vadd.xlane.f32.xlu0 %v976_v6 }
 0x55a   :  { %v689_v36 = vpop.permute.xlu1 %688 }
 0x55c   :  { %v778_v11 = vpop.xlane.xlu2 %777 }
 0x55d   :  { %v796_v60 = vand.u32 2147483648, %v778_v11  ;;  %vm790_vm4 = vweird.f32 %v778_v11 }
 0x562   :  { %1173 = vrot.lane.b32.xlu2 %v5200_v47, %s4899_s24 }
 0x564   :  { %v5443_v18 = vpop.xlane.xlu2 %1247  ;;  %v781_v27 = vpop.xlane.xlu0 %780 }
 0x565   :  { %4681 = vrcp.f32 %v781_v27  ;;  %v811_v35 = vand.u32 2147483648, %v781_v27  ;;  %vm805_vm1 = vweird.f32 %v781_v27  ;;  %v809_v23 = vand.u32 2147483647, %v781_v27 }
 0x566   :  { %4683 = vrcp.f32 %v778_v11 }
 0x567   :  { %v812_v20 = vor.u32 1.1754944e-38, %v811_v35  ;;  %vm810_vm6 = vcmp.eq.f32.partialorder %v809_v23, 8.507059e+37 }
 0x56b   :  { %v4682_v22 = vpop.eup %4681 }
 0x56c   :  { %v691_v25 = vpop.permute.xlu2 %690  ;;  %v1389_v31 = vpop.xlane.xlu0 %1388  ;;  %v801_v29 = vmul.f32 %v4682_v22, %v781_v27  ;;  %vm806_vm12 = vweird.f32 %v4682_v22 }
 0x56d   :  { %v1396_v56 = vsub.f32 %v5375_v4, %v1389_v31  ;;  %v700_v10 = vsel %vm410_vm9, %v691_v25, 0  ;;  %v4684_v48 = vpop.eup %4683  ;;  %v1252_v4 = vsub.f32 %v5344_v41, %v1245_v16  ;;  %vm5455_vm3 = vmor %vm805_vm1, %vm806_vm12  ;;  %v794_v41 = vand.u32 2147483647, %v778_v11 }
 0x56e   :  { %708 = vmatpush.bf16.msrb.mxu3 %v700_v10  ;;  %v786_v42 = vmul.f32 %v4684_v48, %v778_v11  ;;  %v802_v38 = vsub.f32 1.0, %v801_v29  ;;  %vm791_vm13 = vweird.f32 %v4684_v48  ;;  %v797_v16 = vor.u32 1.1754944e-38, %v796_v60 }
 0x56f   :  { %v1399_v19 = vmul.f32 1.442695, %v1396_v56  ;;  %v1255_v28 = vmul.f32 1.442695, %v1252_v4  ;;  %vm792_vm5 = vmor %vm790_vm4, %vm791_vm13  ;;  %vm795_vm7 = vcmp.eq.f32.partialorder %v794_v41, 8.507059e+37  ;;  %v5466_v11 = vadd.f32 %v5346_v43, %v5104_v15 }
 0x570   :  { %v787_v39 = vsub.f32 1.0, %v786_v42  ;;  %v803_v53 = vmul.f32 %v4682_v22, %v802_v38 }
 0x571   :  { %4685 = vpow2.f32 %v1399_v19  ;;  %v1393_v33 = vsel %vm324_vm2, %v5466_v11, -inf }
 0x572   :  { %709 = vmatpush.bf16.msrb.mxu3 %v689_v36  ;;  %4687 = vpow2.f32 %v1401_v37  ;;  %v788_v49 = vmul.f32 %v4684_v48, %v787_v39  ;;  %v804_v44 = vadd.f32 %v4682_v22, %v803_v53 }
 0x573   :  { %4689 = vpow2.f32 %v1255_v28 }
 0x574   :  { %v789_v57 = vadd.f32 %v4684_v48, %v788_v49  ;;  %v808_v0 = vsel %vm5455_vm3, %v4682_v22, %v804_v44  ;;  %v1176_v22 = vpop.permute.xlu2 %1175 }
 0x575   :  { %v813_v27 = vsel %vm810_vm6, %v812_v20, %v808_v0 }
 0x576   :  { %v793_v6 = vsel %vm792_vm5, %v4684_v48, %v789_v57  ;;  %v814_v25 = vmul.f32 %v5368_v5, %v813_v27  ;;  %v1185_v48 = vsel %vm410_vm9, %v1176_v22, 0  ;;  %v5480_v5 = vadd.f32 %v5355_v50, %v5104_v15 }
 0x577   :  { %v5448_v40 = vpop.eup %4685  ;;  %v798_v21 = vsel %vm795_vm7, %v797_v16, %v793_v6 }
 0x578   :  { %v1405_v45 = vsel %vm324_vm2, %v5448_v40, 0.0  ;;  %v5453_v55 = vpop.eup %4687  ;;  %v799_v10 = vmul.f32 %v5359_v62, %v798_v21  ;;  %v1249_v36 = vsel %vm324_vm2, %v5480_v5, -inf }
 0x579   :  { %1406 = vadd.xlane.f32.xlu0 %v1405_v45  ;;  %v1408_v8 = vsel %vm324_vm2, %v5453_v55, 0.0  ;;  %v5469_v31 = vpop.eup %4689 }
 0x57a   :  { %v830_v29 = vpack.c.bf16 %v814_v25, %v799_v10  ;;  %v1261_v43 = vsel %vm324_vm2, %v5469_v31, 0.0 }
 0x57f   :  { %v835_v1 = vpop.permute.xlu0 %834 }
 0x580   :  { %v844_v2 = vsel %vm410_vm9, %v835_v1, 0 }
 0x581   :  { %1409 = vadd.xlane.f32.xlu0 %v1408_v8  ;;  %852 = vmatpush.bf16.msrb.mxu2 %v844_v2 }
 0x585   :  { %v5487_v42 = vpop.xlane.xlu1 %1118 }
 0x587   :  { %v833_v56 = vpop.permute.xlu0 %832 }
 0x588   :  { %853 = vmatpush.bf16.msrb.mxu2 %v833_v56 }
 0x589   :  { %1394 = vmax.xlane.f32.xlu0 %v1393_v33 }
 0x58b   :  { %1262 = vadd.xlane.f32.xlu2 %v1261_v43  ;;  %4284 = vmatmul.msk.bf16.vlgmr.msrb.gmra.mxu2 %vm324_vm2, %v830_v29 }
 0x58c   :  { %1193 = vmatpush.bf16.msra.mxu2 %v1185_v48 }
 0x58d   :  { %v637_v37 = vpop.xlane.xlu1 %636 }
 0x58e   :  { %4691 = vrcp.f32 %v637_v37  ;;  %v667_v41 = vand.u32 2147483648, %v637_v37  ;;  %vm661_vm10 = vweird.f32 %v637_v37  ;;  %v665_v1 = vand.u32 2147483647, %v637_v37 }
 0x58f   :  { %v1032_v62 = vpop.permute.xlu0 %1031 }
 0x590   :  { %v1041_v19 = vsel %vm410_vm9, %v1032_v62, 0  ;;  %v668_v22 = vor.u32 1.1754944e-38, %v667_v41  ;;  %vm666_vm1 = vcmp.eq.f32.partialorder %v665_v1, 8.507059e+37 }
 0x591   :  { %1049 = vmatpush.bf16.msra.mxu3 %v1041_v19 }
 0x593   :  { %1250 = vmax.xlane.f32.xlu2 %v1249_v36 }
 0x594   :  { %v4692_v38 = vpop.eup %4691 }
 0x595   :  { %v657_v53 = vmul.f32 %v4692_v38, %v637_v37  ;;  %v640_v4 = vpop.xlane.xlu1 %639  ;;  %vm662_vm8 = vweird.f32 %v4692_v38 }
 0x596   :  { %vm5498_vm11 = vmor %vm661_vm10, %vm662_vm8  ;;  %vm676_vm6 = vweird.f32 %v640_v4 }
 0x597   :  { %v658_v49 = vsub.f32 1.0, %v657_v53  ;;  %v682_v53 = vand.u32 2147483648, %v640_v4 }
 0x599   :  { %v659_v35 = vmul.f32 %v4692_v38, %v658_v49 }
 0x59b   :  { %v660_v51 = vadd.f32 %v4692_v38, %v659_v35 }
 0x59d   :  { %1463 = vrot.lane.b32.xlu0 %v5205_v52, %s4905_s30  ;;  %v664_v27 = vsel %vm5498_vm11, %v4692_v38, %v660_v51 }
 0x59e   :  { %v669_v29 = vsel %vm666_vm1, %v668_v22, %v664_v27  ;;  %v4519_v22 = vpack.i.bf16 %v5312_v13, %v5305_v7 }
 0x59f   :  { %v670_v19 = vmul.f32 %v5394_v9, %v669_v29 }
 0x5a5   :  { %1461 = vrot.lane.b32.xlu0 %v5200_v47, %s4905_s30 }
 0x5ab   :  { %1319 = vrot.lane.b32.xlu2 %v5205_v52, %s4904_s29 }
 0x5ad   :  { %v5493_v50 = vpop.xlane.xlu2 %1121 }
 0x5b5   :  { %v5495_v39 = vpop.xlane.xlu2 %974 }
 0x5ba   :  { %v634_v45 = vpop.xlane.xlu0 %633 }
 0x5bb   :  { %4693 = vrcp.f32 %v634_v45  ;;  %v650_v16 = vand.u32 2147483647, %v634_v45  ;;  %vm646_vm13 = vweird.f32 %v634_v45 }
 0x5bc   :  { %4695 = vrcp.f32 %v640_v4 }
 0x5bd   :  { %v766_v44 = vpop.xlane.xlu2 %765  ;;  %vm651_vm4 = vcmp.eq.f32.partialorder %v650_v16, 8.507059e+37 }
 0x5be   :  { %v769_v28 = vsub.f32 %v5426_v30, %v766_v44  ;;  %v652_v30 = vand.u32 2147483648, %v634_v45  ;;  %v683_v44 = vor.u32 1.1754944e-38, %v682_v53 }
 0x5c0   :  { %v774_v57 = vmul.f32 1.442695, %v769_v28  ;;  %v653_v48 = vor.u32 1.1754944e-38, %v652_v30 }
 0x5c1   :  { %v4694_v23 = vpop.eup %4693 }
 0x5c2   :  { %v4696_v60 = vpop.eup %4695  ;;  %v642_v52 = vmul.f32 %v4694_v23, %v634_v45  ;;  %4697 = vpow2.f32 %v774_v57  ;;  %vm647_vm12 = vweird.f32 %v4694_v23  ;;  %v680_v45 = vand.u32 2147483647, %v640_v4  ;;  %v5511_v35 = vpop.xlane.xlu0 %1124 }
 0x5c3   :  { %v672_v20 = vmul.f32 %v4696_v60, %v640_v4  ;;  %vm648_vm3 = vmor %vm646_vm13, %vm647_vm12  ;;  %vm677_vm5 = vweird.f32 %v4696_v60 }
 0x5c4   :  { %v643_v0 = vsub.f32 1.0, %v642_v52  ;;  %vm678_vm7 = vmor %vm676_vm6, %vm677_vm5  ;;  %vm681_vm8 = vcmp.eq.f32.partialorder %v680_v45, 8.507059e+37 }
 0x5c5   :  { %v1174_v2 = vpop.permute.xlu2 %1173  ;;  %v673_v56 = vsub.f32 1.0, %v672_v20 }
 0x5c6   :  { %v644_v6 = vmul.f32 %v4694_v23, %v643_v0  ;;  %1194 = vmatpush.bf16.msra.mxu2 %v1174_v2 }
 0x5c7   :  { %v674_v36 = vmul.f32 %v4696_v60, %v673_v56 }
 0x5c8   :  { %v5504_v21 = vpop.eup %4697  ;;  %v645_v25 = vadd.f32 %v4694_v23, %v644_v6 }
 0x5c9   :  { %v782_v10 = vsel %vm324_vm2, %v5504_v21, 0.0  ;;  %v675_v38 = vadd.f32 %v4696_v60, %v674_v36 }
 0x5ca   :  { %783 = vadd.xlane.f32.xlu1 %v782_v10  ;;  %v649_v33 = vsel %vm648_vm3, %v4694_v23, %v645_v25  ;;  %v5517_v9 = vpop.xlane.xlu0 %977  ;;  %v5548_v25 = vpop.xlane.xlu1 %980 }
 0x5cb   :  { %v654_v43 = vsel %vm651_vm4, %v653_v48, %v649_v33  ;;  %v679_v49 = vsel %vm678_vm7, %v4696_v60, %v675_v38  ;;  %v1253_v60 = vsub.f32 %v5366_v12, %v5443_v18  ;;  %vm1002_vm13 = vweird.f32 %v5517_v9 }
 0x5cc   :  { %v655_v62 = vmul.f32 %v5422_v34, %v654_v43  ;;  %v684_v28 = vsel %vm681_vm8, %v683_v44, %v679_v49  ;;  %vm987_vm4 = vweird.f32 %v5495_v39 }
 0x5cd   :  { %v685_v34 = vmul.f32 %v5400_v59, %v684_v28  ;;  %v1257_v59 = vmul.f32 1.442695, %v1253_v60 }
 0x5ce   :  { %v686_v37 = vpack.c.bf16 %v670_v19, %v655_v62 }
 0x5cf   :  { %v687_v57 = vpack.c.bf16 %v685_v34, %v685_v34 }
 0x5d0   :  { %4280 = vmatmul.msk.bf16.vlgmr.msrb.gmra.mxu3 %vm324_vm2, %v686_v37 }
 0x5e0   :  { %4281 = vmatmul.msk.bf16.gmra.mxu3 %vm324_vm2, %v687_v57 }
 0x5e3   :  { %1029 = vrot.lane.b32.xlu1 %v5200_v47, %s4898_s23 }
 0x5ec   :  { %v5519_v23 = vpop.xlane.xlu0 %1406 }
 0x5f4   :  { %v5521_v4 = vpop.xlane.xlu0 %1409 }
 0x5fc   :  { %v1395_v52 = vpop.xlane.xlu0 %1394 }
 0x5fd   :  { %v1398_v51 = vsub.f32 %v5466_v11, %v1395_v52 }
 0x5fe   :  { %v5526_v41 = vpop.xlane.xlu2 %1262 }
 0x5ff   :  { %v1403_v0 = vmul.f32 1.442695, %v1398_v51  ;;  %v1008_v51 = vand.u32 2147483648, %v5517_v9 }
 0x601   :  { %4699 = vpow2.f32 %v1403_v0 }
 0x602   :  { %4701 = vpow2.f32 %v1257_v59 }
 0x606   :  { %v1251_v1 = vpop.xlane.xlu2 %1250 }
 0x607   :  { %v5528_v20 = vpop.eup %4699  ;;  %v1254_v2 = vsub.f32 %v5480_v5, %v1251_v1  ;;  %v1006_v1 = vand.u32 2147483647, %v5517_v9 }
 0x608   :  { %v1411_v8 = vsel %vm324_vm2, %v5528_v20, 0.0  ;;  %v5533_v6 = vpop.eup %4701 }
 0x609   :  { %v1259_v12 = vmul.f32 1.442695, %v1254_v2  ;;  %1412 = vadd.xlane.f32.xlu0 %v1411_v8  ;;  %v1264_v18 = vsel %vm324_vm2, %v5533_v6, 0.0  ;;  %vm1007_vm8 = vcmp.eq.f32.partialorder %v1006_v1, 8.507059e+37 }
 0x60b   :  { %4703 = vpow2.f32 %v1259_v12  ;;  %v993_v12 = vand.u32 2147483648, %v5495_v39 }
 0x60c   :  { %4705 = vrcp.f32 %v5517_v9 }
 0x60d   :  { %1265 = vadd.xlane.f32.xlu1 %v1264_v18  ;;  %4707 = vrcp.f32 %v5495_v39 }
 0x60e   :  { %4709 = vrcp.f32 %v5487_v42  ;;  %v855_v1 = vpop.f32.mrf.mxu2 }
 0x60f   :  { %v1464_v11 = vpop.permute.xlu0 %1463  ;;  %4711 = vrcp.f32 %v5493_v50 }
 0x610   :  { %v1473_v30 = vsel %vm410_vm9, %v1464_v11, 0  ;;  %v991_v11 = vand.u32 2147483647, %v5495_v39 }
 0x611   :  { %v5538_v16 = vpop.eup %4703  ;;  %1481 = vmatpush.bf16.msrb.mxu2 %v1473_v30 }
 0x612   :  { %v1267_v5 = vsel %vm324_vm2, %v5538_v16, 0.0  ;;  %v4706_v56 = vpop.eup %4705 }
 0x613   :  { %1268 = vadd.xlane.f32.xlu2 %v1267_v5  ;;  %v4708_v10 = vpop.eup %4707  ;;  %vm1003_vm10 = vweird.f32 %v4706_v56 }
 0x614   :  { %v983_v7 = vmul.f32 %v4708_v10, %v5495_v39  ;;  %v5555_v13 = vpop.eup %4709  ;;  %vm988_vm12 = vweird.f32 %v4708_v10  ;;  %vm5568_vm1 = vmor %vm1002_vm13, %vm1003_vm10  ;;  %v994_v39 = vor.u32 1.1754944e-38, %v993_v12  ;;  %vm992_vm10 = vcmp.eq.f32.partialorder %v991_v11, 8.507059e+37 }
 0x615   :  { %v5557_v29 = vpop.eup %4711  ;;  %v1127_v19 = vmul.f32 %v5555_v13, %v5487_v42  ;;  %vm989_vm7 = vmor %vm987_vm4, %vm988_vm12  ;;  %vm1132_vm12 = vweird.f32 %v5555_v13  ;;  %vm1146_vm13 = vweird.f32 %v5493_v50  ;;  %v1023_v12 = vand.u32 2147483648, %v5548_v25 }
 0x616   :  { %v984_v43 = vsub.f32 1.0, %v983_v7  ;;  %v1142_v38 = vmul.f32 %v5557_v29, %v5493_v50  ;;  %v1021_v11 = vand.u32 2147483647, %v5548_v25 }
 0x617   :  { %v1462_v27 = vpop.permute.xlu0 %1461  ;;  %v1128_v49 = vsub.f32 1.0, %v1127_v19 }
 0x618   :  { %1482 = vmatpush.bf16.msrb.mxu2 %v1462_v27  ;;  %v985_v53 = vmul.f32 %v4708_v10, %v984_v43  ;;  %v1143_v52 = vsub.f32 1.0, %v1142_v38  ;;  %v1152_v38 = vand.u32 2147483648, %v5493_v50 }
 0x619   :  { %v1129_v7 = vmul.f32 %v5555_v13, %v1128_v49 }
 0x61a   :  { %v986_v59 = vadd.f32 %v4708_v10, %v985_v53  ;;  %v1153_v0 = vor.u32 1.1754944e-38, %v1152_v38 }
 0x626   :  { %1317 = vrot.lane.b32.xlu1 %v5200_v47, %s4904_s29  ;;  %v998_v47 = vmul.f32 %v4706_v56, %v5517_v9  ;;  %v1009_v9 = vor.u32 1.1754944e-38, %v1008_v51 }
 0x628   :  { %v999_v33 = vsub.f32 1.0, %v998_v47  ;;  %v990_v47 = vsel %vm989_vm7, %v4708_v10, %v986_v59 }
 0x62a   :  { %v1000_v36 = vmul.f32 %v4706_v56, %v999_v33 }
 0x62c   :  { %v1001_v34 = vadd.f32 %v4706_v56, %v1000_v36  ;;  %v1320_v36 = vpop.permute.xlu2 %1319 }
 0x62e   :  { %4520 = vrot.lane.b32.xlu1 %v4519_v22, %s4906_s12  ;;  %v1005_v30 = vsel %vm5568_vm1, %v4706_v56, %v1001_v34  ;;  %v1144_v22 = vmul.f32 %v5557_v29, %v1143_v52  ;;  %vm1131_vm1 = vweird.f32 %v5487_v42 }
 0x62f   :  { %v1010_v33 = vsel %vm1007_vm8, %v1009_v9, %v1005_v30  ;;  %vm5615_vm4 = vmor %vm1131_vm1, %vm1132_vm12  ;;  %vm1017_vm8 = vweird.f32 %v5548_v25 }
 0x630   :  { %v1145_v19 = vadd.f32 %v5557_v29, %v1144_v22  ;;  %v1011_v10 = vmul.f32 %v5437_v24, %v1010_v33  ;;  %v1137_v24 = vand.u32 2147483648, %v5487_v42  ;;  %v1024_v22 = vor.u32 1.1754944e-38, %v1023_v12 }
 0x63d   :  { %v784_v48 = vpop.xlane.xlu1 %783 }
 0x63e   :  { %4713 = vrcp.f32 %v784_v48  ;;  %v826_v44 = vand.u32 2147483648, %v784_v48  ;;  %v824_v60 = vand.u32 2147483647, %v784_v48  ;;  %vm820_vm3 = vweird.f32 %v784_v48 }
 0x63f   :  { %4715 = vrcp.f32 %v5548_v25 }
 0x640   :  { %v827_v18 = vor.u32 1.1754944e-38, %v826_v44  ;;  %vm825_vm6 = vcmp.eq.f32.partialorder %v824_v60, 8.507059e+37  ;;  %4717 = vrcp.f32 %v5511_v35  ;;  %v1329_v60 = vsel %vm410_vm9, %v1320_v36, 0 }
 0x641   :  { %4719 = vrcp.f32 %v5521_v4 }
 0x642   :  { %4721 = vrcp.f32 %v5519_v23 }
 0x643   :  { %4723 = vrcp.f32 %v5526_v41 }
 0x644   :  { %v4714_v62 = vpop.eup %4713 }
 0x645   :  { %v816_v37 = vmul.f32 %v4714_v62, %v784_v48  ;;  %v5564_v28 = vpop.eup %4715  ;;  %vm821_vm11 = vweird.f32 %v4714_v62 }
 0x646   :  { %v1013_v8 = vmul.f32 %v5564_v28, %v5548_v25  ;;  %vm822_vm5 = vmor %vm820_vm3, %vm821_vm11  ;;  %vm1147_vm11 = vweird.f32 %v5557_v29 }
 0x647   :  { %v817_v45 = vsub.f32 1.0, %v816_v37  ;;  %v5589_v37 = vpop.eup %4717  ;;  %vm5602_vm3 = vmor %vm1146_vm13, %vm1147_vm11  ;;  %vm1022_vm11 = vcmp.eq.f32.partialorder %v1021_v11, 8.507059e+37  ;;  %vm1161_vm13 = vweird.f32 %v5511_v35 }
 0x648   :  { %v1014_v43 = vsub.f32 1.0, %v1013_v8  ;;  %v1157_v52 = vmul.f32 %v5589_v37, %v5511_v35  ;;  %vm1162_vm12 = vweird.f32 %v5589_v37  ;;  %v4720_v33 = vpop.eup %4719 }
 0x649   :  { %v818_v57 = vmul.f32 %v4714_v62, %v817_v45  ;;  %v1150_v45 = vand.u32 2147483647, %v5493_v50  ;;  %v1135_v50 = vand.u32 2147483647, %v5487_v42  ;;  %vm1163_vm1 = vmor %vm1161_vm13, %vm1162_vm12  ;;  %v1430_v36 = vmul.f32 %v4720_v33, %v5521_v4 }
 0x64a   :  { %v1015_v34 = vmul.f32 %v5564_v28, %v1014_v43 }
 0x64b   :  { %v819_v2 = vadd.f32 %v4714_v62, %v818_v57  ;;  %vm1136_vm7 = vcmp.eq.f32.partialorder %v1135_v50, 8.507059e+37 }
 0x64d   :  { %v823_v5 = vsel %vm822_vm5, %v4714_v62, %v819_v2  ;;  %v995_v62 = vsel %vm992_vm10, %v994_v39, %v990_v47  ;;  %vm1151_vm5 = vcmp.eq.f32.partialorder %v1150_v45, 8.507059e+37  ;;  %v1138_v2 = vor.u32 1.1754944e-38, %v1137_v24  ;;  %v857_v39 = vpop.f32.mrf.mxu2 }
 0x64e   :  { %v828_v27 = vsel %vm825_vm6, %v827_v18, %v823_v5  ;;  %v996_v44 = vmul.f32 %v5418_v58, %v995_v62  ;;  %v1149_v58 = vsel %vm5602_vm3, %v5557_v29, %v1145_v19  ;;  %v1016_v29 = vadd.f32 %v5564_v28, %v1015_v34  ;;  %v4722_v19 = vpop.eup %4721 }
 0x64f   :  { %v829_v48 = vmul.f32 %v5504_v21, %v828_v27  ;;  %v1130_v21 = vadd.f32 %v5555_v13, %v1129_v7  ;;  %vm1018_vm6 = vweird.f32 %v5564_v28  ;;  %v1154_v8 = vsel %vm1151_vm5, %v1153_v0, %v1149_v58 }
 0x650   :  { %v1027_v51 = vpack.c.bf16 %v1011_v10, %v996_v44  ;;  %v1158_v18 = vsub.f32 1.0, %v1157_v52  ;;  %vm1019_vm10 = vmor %vm1017_vm8, %vm1018_vm6  ;;  %v1155_v9 = vmul.f32 %v5411_v32, %v1154_v8  ;;  %v1165_v62 = vand.u32 2147483647, %v5511_v35  ;;  %v4724_v8 = vpop.eup %4723 }
 0x651   :  { %v831_v56 = vpack.c.bf16 %v829_v48, %v829_v48  ;;  %v1134_v42 = vsel %vm5615_vm4, %v5555_v13, %v1130_v21  ;;  %v1020_v27 = vsel %vm1019_vm10, %v5564_v28, %v1016_v29  ;;  %v1415_v38 = vmul.f32 %v4722_v19, %v5519_v23 }
 0x652   :  { %v1139_v30 = vsel %vm1136_vm7, %v1138_v2, %v1134_v42  ;;  %v1159_v48 = vmul.f32 %v5589_v37, %v1158_v18  ;;  %v1025_v25 = vsel %vm1022_vm11, %v1024_v22, %v1020_v27  ;;  %vm1166_vm3 = vcmp.eq.f32.partialorder %v1165_v62, 8.507059e+37 }
 0x653   :  { %4285 = vmatmul.msk.bf16.gmra.mxu2 %vm324_vm2, %v831_v56  ;;  %v711_v53 = vpop.f32.mrf.mxu3  ;;  %v1140_v47 = vmul.f32 %v5385_v26, %v1139_v30  ;;  %v1026_v32 = vmul.f32 %v5407_v46, %v1025_v25  ;;  %v1167_v26 = vand.u32 2147483648, %v5511_v35  ;;  %v4529_v56 = vpack.i.bf16 %v857_v39, %v855_v1 }
 0x654   :  { %v1160_v28 = vadd.f32 %v5589_v37, %v1159_v48  ;;  %v1431_v45 = vsub.f32 1.0, %v1430_v36  ;;  %v1416_v35 = vsub.f32 1.0, %v1415_v38  ;;  %vm1435_vm4 = vweird.f32 %v4720_v33 }
 0x655   :  { %v1030_v49 = vpop.permute.xlu1 %1029  ;;  %v1171_v7 = vpack.c.bf16 %v1155_v9, %v1140_v47  ;;  %v1028_v46 = vpack.c.bf16 %v1026_v32, %v1026_v32  ;;  %v1168_v21 = vor.u32 1.1754944e-38, %v1167_v26  ;;  %vm1420_vm5 = vweird.f32 %v4722_v19 }
 0x656   :  { %1050 = vmatpush.bf16.msra.mxu3 %v1030_v49  ;;  %v1164_v10 = vsel %vm1163_vm1, %v5589_v37, %v1160_v28  ;;  %v1432_v34 = vmul.f32 %v4720_v33, %v1431_v45  ;;  %v1417_v24 = vmul.f32 %v4722_v19, %v1416_v35  ;;  %v1440_v37 = vand.u32 2147483648, %v5521_v4 }
 0x657   :  { %vm1434_vm6 = vweird.f32 %v5521_v4  ;;  %v1438_v58 = vand.u32 2147483647, %v5521_v4  ;;  %v1425_v52 = vand.u32 2147483648, %v5519_v23  ;;  %vm1419_vm8 = vweird.f32 %v5519_v23 }
 0x658   :  { %v1418_v50 = vadd.f32 %v4722_v19, %v1417_v24  ;;  %vm1436_vm7 = vmor %vm1434_vm6, %vm1435_vm4  ;;  %v1441_v59 = vor.u32 1.1754944e-38, %v1440_v37  ;;  %vm1276_vm6 = vweird.f32 %v4724_v8  ;;  %v1279_v38 = vand.u32 2147483647, %v5526_v41 }
 0x659   :  { %4292 = vmatmul.msk.bf16.vlgmr.msra.gmra.mxu3 %vm324_vm2, %v1027_v51  ;;  %vm1421_vm10 = vmor %vm1419_vm8, %vm1420_vm5  ;;  %vm1439_vm11 = vcmp.eq.f32.partialorder %v1438_v58, 8.507059e+37  ;;  %v1426_v1 = vor.u32 1.1754944e-38, %v1425_v52  ;;  %vm1275_vm8 = vweird.f32 %v5526_v41 }
 0x65a   :  { %1337 = vmatpush.bf16.msrb.mxu3 %v1329_v60  ;;  %v1433_v60 = vadd.f32 %v4720_v33, %v1432_v34  ;;  %v1422_v0 = vsel %vm1421_vm10, %v4722_v19, %v1418_v50 }
 0x65b   :  { %v713_v5 = vpop.f32.mrf.mxu3 }
 0x65c   :  { %v4524_v13 = vpack.i.bf16 %v713_v5, %v711_v53  ;;  %v1169_v53 = vsel %vm1166_vm3, %v1168_v21, %v1164_v10  ;;  %v1437_v51 = vsel %vm1436_vm7, %v4720_v33, %v1433_v60  ;;  %v1281_v21 = vand.u32 2147483648, %v5526_v41 }
 0x65d   :  { %v1170_v44 = vmul.f32 %v5433_v3, %v1169_v53  ;;  %v1423_v3 = vand.u32 2147483647, %v5519_v23  ;;  %v1442_v42 = vsel %vm1439_vm11, %v1441_v59, %v1437_v51  ;;  %v1271_v23 = vmul.f32 %v4724_v8, %v5526_v41  ;;  %vm1277_vm11 = vmor %vm1275_vm8, %vm1276_vm6 }
 0x65e   :  { %4525 = vrot.lane.b32.xlu1 %v4524_v13, %s4907_s13  ;;  %v1443_v4 = vmul.f32 %v5453_v55, %v1442_v42  ;;  %v1282_v34 = vor.u32 1.1754944e-38, %v1281_v21  ;;  %vm903_vm6 = vcmask 130048  }
 0x65f   :  { %v1172_v57 = vpack.c.bf16 %v1170_v44, %v1170_v44  ;;  %vm1424_vm12 = vcmp.eq.f32.partialorder %v1423_v3, 8.507059e+37  ;;  %v1272_v13 = vsub.f32 1.0, %v1271_v23 }
 0x660   :  { %v1427_v29 = vsel %vm1424_vm12, %v1426_v1, %v1422_v0 }
 0x661   :  { %v1428_v12 = vmul.f32 %v5448_v40, %v1427_v29  ;;  %v1273_v40 = vmul.f32 %v4724_v8, %v1272_v13  ;;  %v4481_v29 = vld [vmem:[%s7056_s5] sm:$0xff] }
 0x663   :  { %4296 = vmatmul.msk.bf16.vlgmr.msra.gmra.mxu2 %vm324_vm2, %v1171_v7  ;;  %v5639_v43 = vpop.f32.mrf.mxu3  ;;  %v1459_v11 = vpack.c.bf16 %v1443_v4, %v1428_v12 }
 0x666   :  { %4530 = vrot.lane.b32.xlu1 %v4529_v56, %s7063_s14  ;;  %v1274_v56 = vadd.f32 %v4724_v8, %v1273_v40 }
 0x668   :  { %v1278_v44 = vsel %vm1277_vm11, %v4724_v8, %v1274_v56 }
 0x669   :  { %4293 = vmatmul.msk.bf16.gmra.mxu3 %vm324_vm2, %v1028_v46 }
 0x66b   :  { %v718_v49 = vpop.f32.mrf.mxu3 }
 0x673   :  { %4297 = vmatmul.msk.bf16.gmra.mxu2 %vm324_vm2, %v1172_v57 }
 0x67c   :  { %v1413_v2 = vpop.xlane.xlu0 %1412 }
 0x67d   :  { %4725 = vrcp.f32 %v1413_v2  ;;  %v1455_v47 = vand.u32 2147483648, %v1413_v2  ;;  %v1453_v25 = vand.u32 2147483647, %v1413_v2  ;;  %vm1449_vm1 = vweird.f32 %v1413_v2 }
 0x67f   :  { %v1456_v32 = vor.u32 1.1754944e-38, %v1455_v47  ;;  %vm1454_vm5 = vcmp.eq.f32.partialorder %v1453_v25, 8.507059e+37 }
 0x680   :  { %v1266_v18 = vpop.xlane.xlu1 %1265 }
 0x681   :  { %4727 = vrcp.f32 %v1266_v18  ;;  %v1296_v62 = vand.u32 2147483648, %v1266_v18  ;;  %vm1290_vm7 = vweird.f32 %v1266_v18  ;;  %v1294_v46 = vand.u32 2147483647, %v1266_v18 }
 0x683   :  { %v4726_v30 = vpop.eup %4725  ;;  %4304 = vmatmul.msk.bf16.vlgmr.msrb.gmra.mxu2 %vm324_vm2, %v1459_v11  ;;  %v1297_v35 = vor.u32 1.1754944e-38, %v1296_v62  ;;  %vm1295_vm12 = vcmp.eq.f32.partialorder %v1294_v46, 8.507059e+37 }
 0x684   :  { %v1445_v5 = vmul.f32 %v4726_v30, %v1413_v2  ;;  %vm1450_vm13 = vweird.f32 %v4726_v30 }
 0x685   :  { %vm1451_vm3 = vmor %vm1449_vm1, %vm1450_vm13  ;;  %vm1280_vm13 = vcmp.eq.f32.partialorder %v1279_v38, 8.507059e+37 }
 0x686   :  { %v1446_v9 = vsub.f32 1.0, %v1445_v5  ;;  %v1269_v27 = vpop.xlane.xlu2 %1268  ;;  %v1283_v57 = vsel %vm1280_vm13, %v1282_v34, %v1278_v44  ;;  %v5702_v44 = vld [vmem:[%s7057_s6] ss:$0 sm:$0xff] }
 0x687   :  { %v4728_v22 = vpop.eup %4727  ;;  %4729 = vrcp.f32 %v1269_v27  ;;  %v1284_v50 = vmul.f32 %v5469_v31, %v1283_v57  ;;  %v1311_v3 = vand.u32 2147483648, %v1269_v27  ;;  %v1309_v51 = vand.u32 2147483647, %v1269_v27  ;;  %v4482_v31 = vld [vmem:[%s7056_s5 + $0x8] sm:$0xff]  ;;  %v4887_v34 = vld [vmem:[%s7051_s0] sm:$0xff] }
 0x688   :  { %v1447_v55 = vmul.f32 %v4726_v30, %v1446_v9  ;;  %v1286_v48 = vmul.f32 %v4728_v22, %v1266_v18  ;;  %vm1291_vm4 = vweird.f32 %v4728_v22  ;;  %1572 = vmatpush.bf16.msra.mxu1 %v4482_v31 }
 0x689   :  { %vm1292_vm10 = vmor %vm1290_vm7, %vm1291_vm4  ;;  %v1312_v0 = vor.u32 1.1754944e-38, %v1311_v3 }
 0x68a   :  { %v1287_v7 = vsub.f32 1.0, %v1286_v48  ;;  %v1448_v39 = vadd.f32 %v4726_v30, %v1447_v55 }
 0x68c   :  { %v1288_v28 = vmul.f32 %v4728_v22, %v1287_v7  ;;  %v1452_v33 = vsel %vm1451_vm3, %v4726_v30, %v1448_v39  ;;  %vm1305_vm3 = vweird.f32 %v1269_v27  ;;  %1573 = vmatpush.bf16.msra.mxu1 %v4481_v29 }
 0x68d   :  { %v4730_v26 = vpop.eup %4729  ;;  %v1457_v19 = vsel %vm1454_vm5, %v1456_v32, %v1452_v33  ;;  %vm1310_vm5 = vcmp.eq.f32.partialorder %v1309_v51, 8.507059e+37 }
 0x68e   :  { %v1289_v36 = vadd.f32 %v4728_v22, %v1288_v28  ;;  %v1458_v10 = vmul.f32 %v5528_v20, %v1457_v19  ;;  %v1301_v45 = vmul.f32 %v4730_v26, %v1269_v27  ;;  %vm1306_vm1 = vweird.f32 %v4730_v26 }
 0x68f   :  { %vm1307_vm4 = vmor %vm1305_vm3, %vm1306_vm1 }
 0x690   :  { %v1293_v53 = vsel %vm1292_vm10, %v4728_v22, %v1289_v36  ;;  %v1460_v49 = vpack.c.bf16 %v1458_v10, %v1458_v10  ;;  %v1302_v20 = vsub.f32 1.0, %v1301_v45 }
 0x691   :  { %v1298_v24 = vsel %vm1295_vm12, %v1297_v35, %v1293_v53 }
 0x692   :  { %v1299_v60 = vmul.f32 %v5533_v6, %v1298_v24  ;;  %v1303_v41 = vmul.f32 %v4730_v26, %v1302_v20 }
 0x693   :  { %4305 = vmatmul.msk.bf16.gmra.mxu2 %vm324_vm2, %v1460_v49 }
 0x694   :  { %v1315_v58 = vpack.c.bf16 %v1299_v60, %v1284_v50  ;;  %v1304_v52 = vadd.f32 %v4730_v26, %v1303_v41 }
 0x696   :  { %v1308_v59 = vsel %vm1307_vm4, %v4730_v26, %v1304_v52 }
 0x697   :  { %v1313_v1 = vsel %vm1310_vm5, %v1312_v0, %v1308_v59 }
 0x698   :  { %v1318_v37 = vpop.permute.xlu1 %1317  ;;  %v1314_v6 = vmul.f32 %v5538_v16, %v1313_v1 }
 0x699   :  { %1338 = vmatpush.bf16.msrb.mxu3 %v1318_v37  ;;  %v4888_v37 = vld [vmem:[%s7051_s0 + $0x8] sm:$0xff] }
 0x69a   :  { %v1316_v42 = vpack.c.bf16 %v1314_v6, %v1314_v6 }
 0x69c   :  { %4300 = vmatmul.msk.bf16.vlgmr.msrb.gmra.mxu3 %vm324_vm2, %v1315_v58 }
 0x6a0   :  { %v4521_v2 = vpop.permute.xlu1 %4520 }
 0x6a1   :  { %v4523_v8 = vunpack.i.h.bf16 %v4521_v2  ;;  %v4522_v12 = vunpack.i.l.bf16 %v4521_v2 }
 0x6a3   :  { %v901_v30 = vsel %vm293_vm15, %v5294_v61, %v4523_v8  ;;  %v900_v5 = vsel %vm293_vm15, %v5284_v54, %v4522_v12 }
 0x6ac   :  { %4301 = vmatmul.msk.bf16.gmra.mxu3 %vm324_vm2, %v1316_v42 }
 0x6d0   :  { %v4526_v4 = vpop.permute.xlu1 %4525 }
 0x6d1   :  { %v4528_v23 = vunpack.i.h.bf16 %v4526_v4  ;;  %v4527_v16 = vunpack.i.l.bf16 %v4526_v4 }
 0x6d3   :  { %v905_v27 = vsel %vm903_vm6, %v901_v30, %v4528_v23  ;;  %v904_v22 = vsel %vm903_vm6, %v900_v5, %v4527_v16 }
 0x6d6   :  { %v860_v18 = vpop.f32.mrf.mxu2 }
 0x6d8   :  { %v4531_v11 = vpop.permute.xlu1 %4530 }
 0x6d9   :  { %v4533_v13 = vunpack.i.h.bf16 %v4531_v11  ;;  %v4532_v9 = vunpack.i.l.bf16 %v4531_v11 }
 0x6db   :  { %v907_v47 = vsel %vm324_vm2, %v904_v22, %v4532_v9  ;;  %v908_v55 = vsel %vm324_vm2, %v905_v27, %v4533_v13 }
 0x6dc   :  { %v1052_v48 = vpop.f32.mrf.mxu3  ;;  %v1538_v25 = vpack.c.bf16 %v908_v55, %v907_v47 }
 0x6de   :  { %v862_v40 = vpop.f32.mrf.mxu2  ;;  %4314 = vmatmul.msk.bf16.vlgmr.msra.gmra.mxu1 %vm7066_vm0, %v1538_v25 }
 0x6e4   :  { %v5687_v7 = vpop.f32.mrf.mxu3 }
 0x6e6   :  { %v1196_v61 = vpop.f32.mrf.mxu2 }
 0x6e7   :  { %v4534_v54 = vpack.i.bf16 %v1196_v61, %v5314_v17 }
 0x6e9   :  { %4535 = vrot.lane.b32.xlu1 %v4534_v54, %s4906_s12 }
 0x6ec   :  { %v5691_v39 = vpop.f32.mrf.mxu3 }
 0x6ee   :  { %v1198_v32 = vpop.f32.mrf.mxu2 }
 0x6f4   :  { %v1059_v28 = vpop.f32.mrf.mxu3 }
 0x6f6   :  { %v1201_v33 = vpop.f32.mrf.mxu2 }
 0x6f7   :  { %v4549_v38 = vpack.i.bf16 %v1201_v33, %v1198_v32 }
 0x6fe   :  { %v1203_v26 = vpop.f32.mrf.mxu2 }
 0x706   :  { %v1484_v56 = vpop.f32.mrf.mxu2 }
 0x707   :  { %v4544_v62 = vpack.i.bf16 %v1484_v56, %v860_v18 }
 0x709   :  { %4545 = vrot.lane.b32.xlu2 %v4544_v62, %s7063_s14 }
 0x70e   :  { %v1486_v19 = vpop.f32.mrf.mxu2 }
 0x716   :  { %v1489_v36 = vpop.f32.mrf.mxu2 }
 0x717   :  { %v4559_v45 = vpack.i.bf16 %v1489_v36, %v1486_v19  ;;  %v4889_v19 = vld [vmem:[%s7051_s0 + $0x10] sm:$0xff] }
 0x71e   :  { %v1491_v46 = vpop.f32.mrf.mxu2 }
 0x71f   :  { %v1340_v10 = vpop.f32.mrf.mxu3 }
 0x720   :  { %v4539_v21 = vpack.i.bf16 %v1340_v10, %v5639_v43 }
 0x722   :  { %4540 = vrot.lane.b32.xlu1 %v4539_v21, %s4907_s13 }
 0x727   :  { %v1342_v17 = vpop.f32.mrf.mxu3 }
 0x72a   :  { %4550 = vrot.lane.b32.xlu1 %v4549_v38, %s4906_s12  ;;  %v4890_v38 = vld [vmem:[%s7051_s0 + $0x18] sm:$0xff] }
 0x72f   :  { %v1345_v53 = vpop.f32.mrf.mxu3 }
 0x730   :  { %v4554_v49 = vpack.i.bf16 %v1345_v53, %v1342_v17 }
 0x732   :  { %4555 = vrot.lane.b32.xlu0 %v4554_v49, %s4907_s13  ;;  %4560 = vrot.lane.b32.xlu1 %v4559_v45, %s7063_s14 }
 0x737   :  { %v1347_v35 = vpop.f32.mrf.mxu3 }
 0x75b   :  { %v1575_v43 = vpop.f32.mrf.mxu1  ;;  %v4536_v52 = vpop.permute.xlu1 %4535 }
 0x75c   :  { %v1590_v24 = vadd.f32 %v4887_v34, %v1575_v43  ;;  %v4538_v3 = vunpack.i.h.bf16 %v4536_v52  ;;  %v4537_v51 = vunpack.i.l.bf16 %v4536_v52 }
 0x75e   :  { %v5708_v20 = vadd.f32 %v5702_v44, %v1590_v24  ;;  %v902_v42 = vsel %vm293_vm15, %v5299_v63, %v4537_v51  ;;  %v1529_v31 = vsel %vm293_vm15, %v1052_v48, %v4538_v3  ;;  %v4891_v24 = vld [vmem:[%s7051_s0 + $0x20] sm:$0xff] }
 0x760   :  { %v1606_v57 = vsel %vm7066_vm0, %v5708_v20, 0.0 }
 0x761   :  { %1607 = vadd.xlane.f32.xlu1 %v1606_v57 }
 0x763   :  { %v1577_v60 = vpop.f32.mrf.mxu1  ;;  %v4546_v59 = vpop.permute.xlu2 %4545 }
 0x764   :  { %v1591_v50 = vadd.f32 %v4888_v37, %v1577_v60  ;;  %v4548_v29 = vunpack.i.h.bf16 %v4546_v59  ;;  %v4547_v2 = vunpack.i.l.bf16 %v4546_v59 }
 0x766   :  { %v5716_v41 = vadd.f32 %v5702_v44, %v1591_v50 }
 0x768   :  { %v1609_v58 = vsel %vm7066_vm0, %v5716_v41, 0.0 }
 0x769   :  { %1610 = vadd.xlane.f32.xlu2 %v1609_v58 }
 0x794   :  { %v4541_v0 = vpop.permute.xlu1 %4540 }
 0x795   :  { %v4543_v1 = vunpack.i.h.bf16 %v4541_v0  ;;  %v4542_v6 = vunpack.i.l.bf16 %v4541_v0  ;;  %v4484_v0 = vld [vmem:[%s7060_s9 + $0x8] sm:$0xff] }
 0x796   :  { %1792 = vmatpush.bf16.msra.mxu3 %v4484_v0 }
 0x797   :  { %v1532_v4 = vsel %vm903_vm6, %v1529_v31, %v4543_v1  ;;  %v906_v8 = vsel %vm903_vm6, %v902_v42, %v4542_v6  ;;  %v4483_v6 = vld [vmem:[%s7060_s9] sm:$0xff] }
 0x798   :  { %v909_v12 = vsel %vm324_vm2, %v906_v8, %v4547_v2  ;;  %v1535_v18 = vsel %vm324_vm2, %v1532_v4, %v4548_v29  ;;  %v4892_v2 = vld [vmem:[%s7051_s0 + $0x28] sm:$0xff] }
 0x799   :  { %v1539_v23 = vpack.c.bf16 %v1535_v18, %v909_v12 }
 0x79a   :  { %1793 = vmatpush.bf16.msra.mxu3 %v4483_v6 }
 0x79b   :  { %4315 = vmatmul.msk.bf16.gmra.mxu1 %vm7066_vm0, %v1539_v23 }
 0x79c   :  { %v4551_v16 = vpop.permute.xlu1 %4550 }
 0x79d   :  { %v4553_v11 = vunpack.i.h.bf16 %v4551_v16  ;;  %v4552_v30 = vunpack.i.l.bf16 %v4551_v16 }
 0x79f   :  { %v1531_v47 = vsel %vm293_vm15, %v5691_v39, %v4553_v11  ;;  %v1530_v55 = vsel %vm293_vm15, %v5687_v7, %v4552_v30 }
 0x7a4   :  { %v4561_v5 = vpop.permute.xlu1 %4560  ;;  %v4556_v63 = vpop.permute.xlu0 %4555 }
 0x7a5   :  { %v4563_v13 = vunpack.i.h.bf16 %v4561_v5  ;;  %v4562_v9 = vunpack.i.l.bf16 %v4561_v5  ;;  %v4558_v27 = vunpack.i.h.bf16 %v4556_v63  ;;  %v4557_v22 = vunpack.i.l.bf16 %v4556_v63 }
 0x7a7   :  { %v1534_v48 = vsel %vm903_vm6, %v1531_v47, %v4558_v27  ;;  %v1533_v25 = vsel %vm903_vm6, %v1530_v55, %v4557_v22 }
 0x7a8   :  { %v1536_v40 = vsel %vm324_vm2, %v1533_v25, %v4562_v9  ;;  %v1537_v61 = vsel %vm324_vm2, %v1534_v48, %v4563_v13 }
 0x7a9   :  { %v1540_v54 = vpack.c.bf16 %v1537_v61, %v1536_v40 }
 0x7ab   :  { %4316 = vmatmul.msk.bf16.gmra.mxu1 %vm7066_vm0, %v1540_v54 }
 0x7d4   :  { %v1608_v32 = vpop.xlane.xlu1 %1607 }
 0x7d5   :  { %v1624_v28 = vmul.f32 %v1608_v32, %v4985_v14 }
 0x7d7   :  { %v5739_v33 = vsub.f32 %v5708_v20, %v1624_v28 }
 0x7d9   :  { %v1636_v7 = vmul.f32 %v5739_v33, %v5739_v33 }
 0x7db   :  { %v1642_v39 = vsel %vm7066_vm0, %v1636_v7, 0.0 }
 0x7dc   :  { %1643 = vadd.xlane.f32.xlu1 %v1642_v39  ;;  %v1611_v26 = vpop.xlane.xlu2 %1610 }
 0x7dd   :  { %v1625_v62 = vmul.f32 %v1611_v26, %v4985_v14 }
 0x7df   :  { %v5752_v10 = vsub.f32 %v5716_v41, %v1625_v62 }
 0x7e1   :  { %v1637_v45 = vmul.f32 %v5752_v10, %v5752_v10 }
 0x7e3   :  { %v1645_v35 = vsel %vm7066_vm0, %v1637_v45, 0.0 }
 0x818   :  { %v1580_v56 = vpop.f32.mrf.mxu1 }
 0x819   :  { %v1592_v36 = vadd.f32 %v4889_v19, %v1580_v56  ;;  %v5815_v56 = vld [vmem:[%s7058_s7] ss:$0 sm:$0xff] }
 0x81b   :  { %v5749_v46 = vadd.f32 %v5702_v44, %v1592_v36 }
 0x81d   :  { %v1612_v21 = vsel %vm7066_vm0, %v5749_v46, 0.0 }
 0x81e   :  { %1613 = vadd.xlane.f32.xlu0 %v1612_v21  ;;  %v5821_v21 = vld [vmem:[%s7059_s8] ss:$0 sm:$0xff] }
 0x820   :  { %v1582_v17 = vpop.f32.mrf.mxu1 }
 0x821   :  { %v1593_v53 = vadd.f32 %v4890_v38, %v1582_v17 }
 0x823   :  { %v5762_v49 = vadd.f32 %v5702_v44, %v1593_v53 }
 0x825   :  { %v1615_v43 = vsel %vm7066_vm0, %v5762_v49, 0.0 }
 0x826   :  { %1646 = vadd.xlane.f32.xlu0 %v1645_v35  ;;  %1616 = vadd.xlane.f32.xlu2 %v1615_v43 }
 0x828   :  { %v1585_v34 = vpop.f32.mrf.mxu1 }
 0x829   :  { %v1594_v57 = vadd.f32 %v4891_v24, %v1585_v34 }
 0x82b   :  { %v5771_v60 = vadd.f32 %v5702_v44, %v1594_v57 }
 0x82d   :  { %v1618_v37 = vsel %vm7066_vm0, %v5771_v60, 0.0 }
 0x82e   :  { %1619 = vadd.xlane.f32.xlu0 %v1618_v37 }
 0x830   :  { %v1587_v42 = vpop.f32.mrf.mxu1 }
 0x831   :  { %v1595_v4 = vadd.f32 %v4892_v2, %v1587_v42 }
 0x833   :  { %v5795_v30 = vadd.f32 %v5702_v44, %v1595_v4 }
 0x835   :  { %v1621_v22 = vsel %vm7066_vm0, %v5795_v30, 0.0 }
 0x84f   :  { %v1644_v50 = vpop.xlane.xlu1 %1643 }
 0x850   :  { %v1660_v58 = vmul.f32 %v1644_v50, %v4985_v14 }
 0x852   :  { %v1666_v52 = vadd.f32 1e-05, %v1660_v58 }
 0x854   :  { %4731 = vrsqrt.f32 %v1666_v52  ;;  %vm1678_vm8 = vweird.f32 %v1666_v52 }
 0x85a   :  { %v4732_v51 = vpop.eup %4731 }
 0x85b   :  { %v1673_v31 = vmul.f32 %v4732_v51, %v1666_v52  ;;  %vm1679_vm7 = vweird.f32 %v4732_v51 }
 0x85c   :  { %vm1680_vm10 = vmor %vm1678_vm8, %vm1679_vm7 }
 0x85d   :  { %v1674_v12 = vmul.f32 %v4732_v51, %v1673_v31 }
 0x85f   :  { %v1675_v13 = vmul.f32 0.5, %v1674_v12 }
 0x861   :  { %v1676_v47 = vsub.f32 1.5, %v1675_v13 }
 0x863   :  { %v1677_v40 = vmul.f32 %v4732_v51, %v1676_v47 }
 0x865   :  { %v1681_v7 = vsel %vm1680_vm10, %v4732_v51, %v1677_v40 }
 0x866   :  { %v1732_v62 = vmul.f32 %v1681_v7, %v5739_v33 }
 0x868   :  { %v1742_v17 = vmul.f32 %v5815_v56, %v1732_v62 }
 0x86a   :  { %v1752_v45 = vadd.f32 %v5821_v21, %v1742_v17 }
 0x891   :  { %v1614_v3 = vpop.xlane.xlu0 %1613 }
 0x892   :  { %v1626_v59 = vmul.f32 %v1614_v3, %v4985_v14 }
 0x894   :  { %v5781_v1 = vsub.f32 %v5749_v46, %v1626_v59 }
 0x896   :  { %v1638_v29 = vmul.f32 %v5781_v1, %v5781_v1 }
 0x898   :  { %v1648_v8 = vsel %vm7066_vm0, %v1638_v29, 0.0 }
 0x899   :  { %v1617_v18 = vpop.xlane.xlu2 %1616  ;;  %1649 = vadd.xlane.f32.xlu2 %v1648_v8  ;;  %v1647_v23 = vpop.xlane.xlu0 %1646 }
 0x89a   :  { %v1627_v16 = vmul.f32 %v1617_v18, %v4985_v14  ;;  %v1661_v11 = vmul.f32 %v1647_v23, %v4985_v14 }
 0x89c   :  { %v5798_v5 = vsub.f32 %v5762_v49, %v1627_v16  ;;  %v1667_v63 = vadd.f32 1e-05, %v1661_v11 }
 0x89e   :  { %4733 = vrsqrt.f32 %v1667_v63  ;;  %v1639_v9 = vmul.f32 %v5798_v5, %v5798_v5  ;;  %vm1688_vm12 = vweird.f32 %v1667_v63 }
 0x8a0   :  { %v1651_v27 = vsel %vm7066_vm0, %v1639_v9, 0.0 }
 0x8a1   :  { %1652 = vadd.xlane.f32.xlu1 %v1651_v27  ;;  %v1620_v55 = vpop.xlane.xlu0 %1619  ;;  %1622 = vadd.xlane.f32.xlu2 %v1621_v22 }
 0x8a2   :  { %v1628_v44 = vmul.f32 %v1620_v55, %v4985_v14 }
 0x8a4   :  { %v4734_v48 = vpop.eup %4733  ;;  %v5807_v25 = vsub.f32 %v5771_v60, %v1628_v44 }
 0x8a5   :  { %v1683_v61 = vmul.f32 %v4734_v48, %v1667_v63  ;;  %vm1689_vm11 = vweird.f32 %v4734_v48 }
 0x8a6   :  { %v1640_v54 = vmul.f32 %v5807_v25, %v5807_v25  ;;  %vm1690_vm13 = vmor %vm1688_vm12, %vm1689_vm11 }
 0x8a7   :  { %v1684_v32 = vmul.f32 %v4734_v48, %v1683_v61 }
 0x8a8   :  { %v1654_v28 = vsel %vm7066_vm0, %v1640_v54, 0.0 }
 0x8a9   :  { %v1685_v39 = vmul.f32 0.5, %v1684_v32  ;;  %1655 = vadd.xlane.f32.xlu1 %v1654_v28 }
 0x8ab   :  { %v1686_v26 = vsub.f32 1.5, %v1685_v39 }
 0x8ad   :  { %v1687_v19 = vmul.f32 %v4734_v48, %v1686_v26 }
 0x8af   :  { %v1691_v36 = vsel %vm1690_vm13, %v4734_v48, %v1687_v19 }
 0x8b0   :  { %v1733_v38 = vmul.f32 %v1691_v36, %v5752_v10 }
 0x8b2   :  { %v1743_v53 = vmul.f32 %v5815_v56, %v1733_v38 }
 0x8b4   :  { %v1753_v35 = vadd.f32 %v5821_v21, %v1743_v53 }
 0x8b6   :  { %v1758_v33 = vpack.c.bf16 %v1753_v35, %v1752_v45  ;;  %v4488_v45 = vld [vmem:[%s7061_s10 + $0x18] sm:$0xff] }
 0x8b7   :  { %2123 = vmatpush.bf16.msra.mxu0 %v4488_v45 }
 0x8b8   :  { %4325 = vmatmul.msk.bf16.vlgmr.msra.gmra.mxu3 %vm7066_vm0, %v1758_v33 }
 0x90c   :  { %v1650_v43 = vpop.xlane.xlu2 %1649 }
 0x90d   :  { %v1662_v34 = vmul.f32 %v1650_v43, %v4985_v14 }
 0x90f   :  { %v1668_v24 = vadd.f32 1e-05, %v1662_v34 }
 0x911   :  { %4735 = vrsqrt.f32 %v1668_v24  ;;  %vm1698_vm3 = vweird.f32 %v1668_v24 }
 0x914   :  { %v1653_v57 = vpop.xlane.xlu1 %1652  ;;  %v1623_v37 = vpop.xlane.xlu2 %1622 }
 0x915   :  { %v1663_v50 = vmul.f32 %v1653_v57, %v4985_v14  ;;  %v1629_v10 = vmul.f32 %v1623_v37, %v4985_v14 }
 0x917   :  { %v4736_v58 = vpop.eup %4735  ;;  %v1669_v52 = vadd.f32 1e-05, %v1663_v50  ;;  %v5833_v3 = vsub.f32 %v5795_v30, %v1629_v10  ;;  %v4487_v50 = vld [vmem:[%s7061_s10 + $0x10] sm:$0xff] }
 0x918   :  { %v1693_v51 = vmul.f32 %v4736_v58, %v1668_v24  ;;  %vm1699_vm1 = vweird.f32 %v4736_v58  ;;  %2124 = vmatpush.bf16.msra.mxu0 %v4487_v50 }
 0x919   :  { %4737 = vrsqrt.f32 %v1669_v52  ;;  %v1641_v59 = vmul.f32 %v5833_v3, %v5833_v3  ;;  %vm1700_vm4 = vmor %vm1698_vm3, %vm1699_vm1  ;;  %vm1708_vm7 = vweird.f32 %v1669_v52 }
 0x91a   :  { %v1694_v0 = vmul.f32 %v4736_v58, %v1693_v51 }
 0x91b   :  { %v1657_v6 = vsel %vm7066_vm0, %v1641_v59, 0.0 }
 0x91c   :  { %v1695_v42 = vmul.f32 0.5, %v1694_v0  ;;  %1658 = vadd.xlane.f32.xlu0 %v1657_v6  ;;  %v4486_v6 = vld [vmem:[%s7061_s10 + $0x8] sm:$0xff] }
 0x91d   :  { %2125 = vmatpush.bf16.msra.mxu0 %v4486_v6 }
 0x91e   :  { %v1696_v31 = vsub.f32 1.5, %v1695_v42 }
 0x91f   :  { %v4738_v29 = vpop.eup %4737 }
 0x920   :  { %v1697_v2 = vmul.f32 %v4736_v58, %v1696_v31  ;;  %v1703_v4 = vmul.f32 %v4738_v29, %v1669_v52  ;;  %vm1709_vm5 = vweird.f32 %v4738_v29 }
 0x921   :  { %vm1710_vm8 = vmor %vm1708_vm7, %vm1709_vm5  ;;  %vm7065_vm7 = vcmask 523264  }
 0x922   :  { %v1704_v8 = vmul.f32 %v4738_v29, %v1703_v4  ;;  %v1701_v12 = vsel %vm1700_vm4, %v4736_v58, %v1697_v2 }
 0x923   :  { %v1734_v16 = vmul.f32 %v1701_v12, %v5781_v1 }
 0x924   :  { %v1705_v18 = vmul.f32 0.5, %v1704_v8  ;;  %v4485_v8 = vld [vmem:[%s7061_s10] sm:$0xff] }
 0x925   :  { %v1744_v9 = vmul.f32 %v5815_v56, %v1734_v16  ;;  %2126 = vmatpush.bf16.msra.mxu0 %v4485_v8 }
 0x926   :  { %v1706_v23 = vsub.f32 1.5, %v1705_v18 }
 0x927   :  { %v1754_v22 = vadd.f32 %v5821_v21, %v1744_v9 }
 0x928   :  { %v1707_v11 = vmul.f32 %v4738_v29, %v1706_v23 }
 0x92a   :  { %v1711_v63 = vsel %vm1710_vm8, %v4738_v29, %v1707_v11 }
 0x92b   :  { %v1735_v13 = vmul.f32 %v1711_v63, %v5798_v5 }
 0x92d   :  { %v1745_v27 = vmul.f32 %v5815_v56, %v1735_v13 }
 0x92f   :  { %v1755_v47 = vadd.f32 %v5821_v21, %v1745_v27 }
 0x931   :  { %v1759_v55 = vpack.c.bf16 %v1755_v47, %v1754_v22 }
 0x933   :  { %4326 = vmatmul.msk.bf16.gmra.mxu3 %vm7066_vm0, %v1759_v55 }
 0x93b   :  { %v5845_v44 = vpop.f32.mrf.mxu3 }
 0x93c   :  { %v5848_v1 = vmul.f32 0.70710677, %v5845_v44 }
 0x93e   :  { %v1822_v48 = vmul.f32 %v5848_v1, %v5848_v1 }
 0x940   :  { %v1823_v5 = vmin.f32 %v1822_v48, 16.0 }
 0x942   :  { %v1824_v40 = vmul.f32 2.1237322e-06, %v1823_v5  ;;  %v1835_v61 = vmul.f32 3.8918573e-05, %v1823_v5 }
 0x943   :  { %v5852_v54 = vpop.f32.mrf.mxu3 }
 0x944   :  { %v1825_v32 = vadd.f32 0.00028619796, %v1824_v40  ;;  %v1836_v28 = vadd.f32 0.001143296, %v1835_v61  ;;  %v5855_v7 = vmul.f32 0.70710677, %v5852_v54 }
 0x946   :  { %v1837_v39 = vmul.f32 %v1836_v28, %v1823_v5  ;;  %v1862_v26 = vmul.f32 %v5855_v7, %v5855_v7  ;;  %v1826_v62 = vmul.f32 %v1825_v32, %v1823_v5 }
 0x948   :  { %v1838_v19 = vadd.f32 0.014752088, %v1837_v39  ;;  %v1863_v36 = vmin.f32 %v1862_v26, 16.0  ;;  %v1827_v35 = vadd.f32 0.0036580483, %v1826_v62 }
 0x94a   :  { %v1839_v17 = vmul.f32 %v1838_v19, %v1823_v5  ;;  %v1864_v38 = vmul.f32 2.1237322e-06, %v1863_v36  ;;  %v1875_v53 = vmul.f32 3.8918573e-05, %v1863_v36  ;;  %v1828_v10 = vmul.f32 %v1827_v35, %v1823_v5 }
 0x94c   :  { %v1840_v33 = vadd.f32 0.112945676, %v1839_v17  ;;  %v1865_v43 = vadd.f32 0.00028619796, %v1864_v38  ;;  %v1876_v34 = vadd.f32 0.001143296, %v1875_v53 }
 0x94d   :  { %v1829_v42 = vadd.f32 0.05243302, %v1828_v10 }
 0x94e   :  { %v1841_v24 = vmul.f32 %v1840_v33, %v1823_v5  ;;  %v1866_v57 = vmul.f32 %v1865_v43, %v1863_v36  ;;  %v1877_v37 = vmul.f32 %v1876_v34, %v1863_v36 }
 0x94f   :  { %v1830_v12 = vmul.f32 %v1829_v42, %v1823_v5 }
 0x950   :  { %v1842_v58 = vadd.f32 0.4994258, %v1841_v24  ;;  %v1867_v52 = vadd.f32 0.0036580483, %v1866_v57  ;;  %v1878_v51 = vadd.f32 0.014752088, %v1877_v37 }
 0x951   :  { %v1831_v63 = vadd.f32 0.18741608, %v1830_v12 }
 0x952   :  { %v1843_v59 = vmul.f32 %v1842_v58, %v1823_v5  ;;  %v1879_v0 = vmul.f32 %v1878_v51, %v1863_v36  ;;  %v1868_v29 = vmul.f32 %v1867_v52, %v1863_v36  ;;  %v1810_v51 = vmul.f32 0.5, %v5845_v44 }
 0x953   :  { %v1832_v47 = vmul.f32 %v1831_v63, %v1823_v5 }
 0x954   :  { %v1844_v31 = vadd.f32 1.0, %v1843_v59  ;;  %v1880_v2 = vadd.f32 0.112945676, %v1879_v0  ;;  %v1869_v18 = vadd.f32 0.05243302, %v1868_v29  ;;  %v1811_v59 = vmul.f32 0.5, %v5852_v54 }
 0x955   :  { %v1833_v28 = vadd.f32 1.1283791, %v1832_v47 }
 0x956   :  { %4739 = vrcp.f32 %v1844_v31  ;;  %v1881_v4 = vmul.f32 %v1880_v2, %v1863_v36  ;;  %v1870_v9 = vmul.f32 %v1869_v18, %v1863_v36  ;;  %v1856_v48 = vand.u32 2147483648, %v1844_v31 }
 0x957   :  { %v1854_v61 = vand.u32 2147483647, %v1844_v31  ;;  %vm1850_vm11 = vweird.f32 %v1844_v31  ;;  %v1834_v53 = vmul.f32 %v1833_v28, %v5848_v1 }
 0x958   :  { %v1882_v23 = vadd.f32 0.4994258, %v1881_v4  ;;  %v1871_v40 = vadd.f32 0.18741608, %v1870_v9  ;;  %v1857_v62 = vor.u32 1.1754944e-38, %v1856_v48 }
 0x959   :  { %vm1855_vm13 = vcmp.eq.f32.partialorder %v1854_v61, 8.507059e+37 }
 0x95a   :  { %v1883_v16 = vmul.f32 %v1882_v23, %v1863_v36  ;;  %v1872_v19 = vmul.f32 %v1871_v40, %v1863_v36 }
 0x95c   :  { %v4740_v11 = vpop.eup %4739  ;;  %v1884_v27 = vadd.f32 1.0, %v1883_v16  ;;  %v1873_v5 = vadd.f32 1.1283791, %v1872_v19 }
 0x95d   :  { %v1846_v13 = vmul.f32 %v4740_v11, %v1844_v31  ;;  %vm1851_vm10 = vweird.f32 %v4740_v11  ;;  %v1656_v31 = vpop.xlane.xlu1 %1655 }
 0x95e   :  { %4741 = vrcp.f32 %v1884_v27  ;;  %vm1852_vm12 = vmor %vm1850_vm11, %vm1851_vm10  ;;  %v1896_v35 = vand.u32 2147483648, %v1884_v27  ;;  %v1894_v34 = vand.u32 2147483647, %v1884_v27  ;;  %vm1890_vm3 = vweird.f32 %v1884_v27 }
 0x95f   :  { %v1847_v22 = vsub.f32 1.0, %v1846_v13  ;;  %v1874_v50 = vmul.f32 %v1873_v5, %v5855_v7  ;;  %v1664_v2 = vmul.f32 %v1656_v31, %v4985_v14 }
 0x960   :  { %v1897_v57 = vor.u32 1.1754944e-38, %v1896_v35  ;;  %vm1895_vm5 = vcmp.eq.f32.partialorder %v1894_v34, 8.507059e+37 }
 0x961   :  { %v1848_v55 = vmul.f32 %v4740_v11, %v1847_v22  ;;  %v1670_v7 = vadd.f32 1e-05, %v1664_v2 }
 0x963   :  { %v1849_v32 = vadd.f32 %v4740_v11, %v1848_v55  ;;  %4743 = vrsqrt.f32 %v1670_v7  ;;  %vm1718_vm10 = vweird.f32 %v1670_v7 }
 0x964   :  { %v4742_v39 = vpop.eup %4741 }
 0x965   :  { %v1853_v26 = vsel %vm1852_vm12, %v4740_v11, %v1849_v32  ;;  %v1886_v17 = vmul.f32 %v4742_v39, %v1884_v27  ;;  %vm1891_vm1 = vweird.f32 %v4742_v39 }
 0x966   :  { %v1858_v38 = vsel %vm1855_vm13, %v1857_v62, %v1853_v26  ;;  %vm1892_vm4 = vmor %vm1890_vm3, %vm1891_vm1 }
 0x967   :  { %v1887_v45 = vsub.f32 1.0, %v1886_v17  ;;  %v1859_v33 = vmul.f32 %v1858_v38, %v1834_v53 }
 0x969   :  { %v1888_v43 = vmul.f32 %v4742_v39, %v1887_v45  ;;  %v4328_v37 = vclamps-f32 %v1859_v33, 1.0  ;;  %v4744_v4 = vpop.eup %4743 }
 0x96a   :  { %v1713_v8 = vmul.f32 %v4744_v4, %v1670_v7  ;;  %vm1719_vm8 = vweird.f32 %v4744_v4 }
 0x96b   :  { %v1889_v24 = vadd.f32 %v4742_v39, %v1888_v43  ;;  %v2062_v52 = vadd.f32 1.0, %v4328_v37  ;;  %vm1720_vm11 = vmor %vm1718_vm10, %vm1719_vm8 }
 0x96c   :  { %v1714_v12 = vmul.f32 %v4744_v4, %v1713_v8 }
 0x96d   :  { %v1893_v36 = vsel %vm1892_vm4, %v4742_v39, %v1889_v24  ;;  %v2068_v6 = vmul.f32 %v2062_v52, %v1810_v51 }
 0x96e   :  { %v1898_v10 = vsel %vm1895_vm5, %v1897_v57, %v1893_v36  ;;  %v1715_v54 = vmul.f32 0.5, %v1714_v12 }
 0x96f   :  { %v1899_v58 = vmul.f32 %v1898_v10, %v1874_v50 }
 0x970   :  { %v1716_v16 = vsub.f32 1.5, %v1715_v54 }
 0x971   :  { %v4329_v1 = vclamps-f32 %v1899_v58, 1.0 }
 0x972   :  { %v1717_v63 = vmul.f32 %v4744_v4, %v1716_v16 }
 0x973   :  { %v2063_v0 = vadd.f32 1.0, %v4329_v1 }
 0x974   :  { %v1721_v27 = vsel %vm1720_vm11, %v4744_v4, %v1717_v63 }
 0x975   :  { %v2069_v42 = vmul.f32 %v2063_v0, %v1811_v59  ;;  %v1736_v55 = vmul.f32 %v1721_v27, %v5807_v25 }
 0x977   :  { %v2074_v29 = vpack.c.bf16 %v2069_v42, %v2068_v6  ;;  %v1746_v32 = vmul.f32 %v5815_v56, %v1736_v55 }
 0x979   :  { %4350 = vmatmul.msk.bf16.vlgmr.msra.gmra.mxu0 %vm7065_vm7, %v2074_v29  ;;  %v1756_v39 = vadd.f32 %v5821_v21, %v1746_v32 }
 0x98f   :  { %v1659_v18 = vpop.xlane.xlu0 %1658 }
 0x990   :  { %v1665_v44 = vmul.f32 %v1659_v18, %v4985_v14 }
 0x992   :  { %v1671_v23 = vadd.f32 1e-05, %v1665_v44 }
 0x994   :  { %4745 = vrsqrt.f32 %v1671_v23  ;;  %vm1728_vm13 = vweird.f32 %v1671_v23 }
 0x99a   :  { %v4746_v11 = vpop.eup %4745 }
 0x99b   :  { %v1723_v13 = vmul.f32 %v4746_v11, %v1671_v23  ;;  %vm1729_vm12 = vweird.f32 %v4746_v11 }
 0x99c   :  { %vm1730_vm1 = vmor %vm1728_vm13, %vm1729_vm12 }
 0x99d   :  { %v1724_v9 = vmul.f32 %v4746_v11, %v1723_v13 }
 0x99f   :  { %v1725_v22 = vmul.f32 0.5, %v1724_v9 }
 0x9a1   :  { %v1726_v47 = vsub.f32 1.5, %v1725_v22 }
 0x9a3   :  { %v1727_v48 = vmul.f32 %v4746_v11, %v1726_v47 }
 0x9a5   :  { %v1731_v40 = vsel %vm1730_vm1, %v4746_v11, %v1727_v48 }
 0x9a6   :  { %v1737_v61 = vmul.f32 %v1731_v40, %v5833_v3 }
 0x9a8   :  { %v1747_v28 = vmul.f32 %v5815_v56, %v1737_v61 }
 0x9aa   :  { %v1757_v26 = vadd.f32 %v5821_v21, %v1747_v28 }
 0x9ac   :  { %v1760_v62 = vpack.c.bf16 %v1757_v26, %v1756_v39 }
 0x9ae   :  { %4327 = vmatmul.msk.bf16.gmra.mxu3 %vm7066_vm0, %v1760_v62 }
 0x9b6   :  { %v5885_v19 = vpop.f32.mrf.mxu3 }
 0x9b7   :  { %v5888_v25 = vmul.f32 0.70710677, %v5885_v19 }
 0x9b9   :  { %v1902_v17 = vmul.f32 %v5888_v25, %v5888_v25 }
 0x9bb   :  { %v1903_v3 = vmin.f32 %v1902_v17, 16.0 }
 0x9bd   :  { %v1904_v38 = vmul.f32 2.1237322e-06, %v1903_v3  ;;  %v1915_v53 = vmul.f32 3.8918573e-05, %v1903_v3 }
 0x9be   :  { %v5892_v45 = vpop.f32.mrf.mxu3 }
 0x9bf   :  { %v1905_v56 = vadd.f32 0.00028619796, %v1904_v38  ;;  %v1916_v5 = vadd.f32 0.001143296, %v1915_v53  ;;  %v5895_v21 = vmul.f32 0.70710677, %v5892_v45 }
 0x9c1   :  { %v1917_v35 = vmul.f32 %v1916_v5, %v1903_v3  ;;  %v1942_v33 = vmul.f32 %v5895_v21, %v5895_v21  ;;  %v1906_v43 = vmul.f32 %v1905_v56, %v1903_v3 }
 0x9c3   :  { %v1918_v34 = vadd.f32 0.014752088, %v1917_v35  ;;  %v1943_v24 = vmin.f32 %v1942_v33, 16.0  ;;  %v1907_v36 = vadd.f32 0.0036580483, %v1906_v43 }
 0x9c5   :  { %v1919_v57 = vmul.f32 %v1918_v34, %v1903_v3  ;;  %v1944_v37 = vmul.f32 2.1237322e-06, %v1943_v24  ;;  %v1955_v50 = vmul.f32 3.8918573e-05, %v1943_v24  ;;  %v1908_v0 = vmul.f32 %v1907_v36, %v1903_v3 }
 0x9c7   :  { %v1920_v10 = vadd.f32 0.112945676, %v1919_v57  ;;  %v1945_v58 = vadd.f32 0.00028619796, %v1944_v37  ;;  %v1956_v52 = vadd.f32 0.001143296, %v1955_v50 }
 0x9c8   :  { %v1909_v7 = vadd.f32 0.05243302, %v1908_v0 }
 0x9c9   :  { %v1921_v1 = vmul.f32 %v1920_v10, %v1903_v3  ;;  %v1946_v51 = vmul.f32 %v1945_v58, %v1943_v24  ;;  %v1957_v59 = vmul.f32 %v1956_v52, %v1943_v24 }
 0x9ca   :  { %v1910_v44 = vmul.f32 %v1909_v7, %v1903_v3 }
 0x9cb   :  { %v1922_v6 = vadd.f32 0.4994258, %v1921_v1  ;;  %v1947_v42 = vadd.f32 0.0036580483, %v1946_v51  ;;  %v1958_v31 = vadd.f32 0.014752088, %v1957_v59 }
 0x9cc   :  { %v1911_v63 = vadd.f32 0.18741608, %v1910_v44  ;;  %v1812_v1 = vmul.f32 0.5, %v5885_v19  ;;  %v1813_v51 = vmul.f32 0.5, %v5892_v45 }
 0x9cd   :  { %v1923_v29 = vmul.f32 %v1922_v6, %v1903_v3  ;;  %v1959_v2 = vmul.f32 %v1958_v31, %v1943_v24  ;;  %v1948_v8 = vmul.f32 %v1947_v42, %v1943_v24 }
 0x9ce   :  { %v1912_v47 = vmul.f32 %v1911_v63, %v1903_v3 }
 0x9cf   :  { %v1924_v4 = vadd.f32 1.0, %v1923_v29  ;;  %v1960_v12 = vadd.f32 0.112945676, %v1959_v2  ;;  %v1949_v23 = vadd.f32 0.05243302, %v1948_v8 }
 0x9d0   :  { %v1913_v28 = vadd.f32 1.1283791, %v1912_v47 }
 0x9d1   :  { %4747 = vrcp.f32 %v1924_v4  ;;  %v1961_v18 = vmul.f32 %v1960_v12, %v1943_v24  ;;  %v1950_v9 = vmul.f32 %v1949_v23, %v1943_v24  ;;  %v1936_v48 = vand.u32 2147483648, %v1924_v4 }
 0x9d2   :  { %v1934_v61 = vand.u32 2147483647, %v1924_v4  ;;  %vm1930_vm4 = vweird.f32 %v1924_v4  ;;  %v1914_v56 = vmul.f32 %v1913_v28, %v5888_v25 }
 0x9d3   :  { %v1962_v54 = vadd.f32 0.4994258, %v1961_v18  ;;  %v1951_v40 = vadd.f32 0.18741608, %v1950_v9  ;;  %v1937_v62 = vor.u32 1.1754944e-38, %v1936_v48 }
 0x9d4   :  { %vm1935_vm8 = vcmp.eq.f32.partialorder %v1934_v61, 8.507059e+37 }
 0x9d5   :  { %v1963_v16 = vmul.f32 %v1962_v54, %v1943_v24  ;;  %v1952_v17 = vmul.f32 %v1951_v40, %v1943_v24 }
 0x9d7   :  { %v4748_v11 = vpop.eup %4747  ;;  %v1964_v27 = vadd.f32 1.0, %v1963_v16  ;;  %v1953_v3 = vadd.f32 1.1283791, %v1952_v17 }
 0x9d8   :  { %v1926_v13 = vmul.f32 %v4748_v11, %v1924_v4  ;;  %vm1931_vm3 = vweird.f32 %v4748_v11 }
 0x9d9   :  { %4749 = vrcp.f32 %v1964_v27  ;;  %vm1932_vm5 = vmor %vm1930_vm4, %vm1931_vm3  ;;  %v1976_v35 = vand.u32 2147483648, %v1964_v27  ;;  %v1974_v34 = vand.u32 2147483647, %v1964_v27  ;;  %vm1970_vm11 = vweird.f32 %v1964_v27 }
 0x9da   :  { %v1927_v22 = vsub.f32 1.0, %v1926_v13  ;;  %v1954_v36 = vmul.f32 %v1953_v3, %v5895_v21 }
 0x9db   :  { %v1977_v37 = vor.u32 1.1754944e-38, %v1976_v35  ;;  %vm1975_vm13 = vcmp.eq.f32.partialorder %v1974_v34, 8.507059e+37 }
 0x9dc   :  { %v1928_v55 = vmul.f32 %v4748_v11, %v1927_v22 }
 0x9de   :  { %v1929_v32 = vadd.f32 %v4748_v11, %v1928_v55 }
 0x9df   :  { %v4750_v39 = vpop.eup %4749 }
 0x9e0   :  { %v1933_v26 = vsel %vm1932_vm5, %v4748_v11, %v1929_v32  ;;  %v1966_v38 = vmul.f32 %v4750_v39, %v1964_v27  ;;  %vm1971_vm10 = vweird.f32 %v4750_v39 }
 0x9e1   :  { %v1938_v53 = vsel %vm1935_vm8, %v1937_v62, %v1933_v26  ;;  %vm1972_vm12 = vmor %vm1970_vm11, %vm1971_vm10 }
 0x9e2   :  { %v1967_v5 = vsub.f32 1.0, %v1966_v38  ;;  %v1939_v33 = vmul.f32 %v1938_v53, %v1914_v56 }
 0x9e4   :  { %v1968_v43 = vmul.f32 %v4750_v39, %v1967_v5  ;;  %v4330_v50 = vclamps-f32 %v1939_v33, 1.0 }
 0x9e6   :  { %v1969_v57 = vadd.f32 %v4750_v39, %v1968_v43  ;;  %v2064_v52 = vadd.f32 1.0, %v4330_v50 }
 0x9e8   :  { %v1973_v24 = vsel %vm1972_vm12, %v4750_v39, %v1969_v57  ;;  %v2070_v0 = vmul.f32 %v2064_v52, %v1812_v1 }
 0x9e9   :  { %v1978_v10 = vsel %vm1975_vm13, %v1977_v37, %v1973_v24 }
 0x9ea   :  { %v1979_v58 = vmul.f32 %v1978_v10, %v1954_v36 }
 0x9ec   :  { %v4331_v25 = vclamps-f32 %v1979_v58, 1.0 }
 0x9ee   :  { %v2065_v59 = vadd.f32 1.0, %v4331_v25 }
 0x9f0   :  { %v2071_v6 = vmul.f32 %v2065_v59, %v1813_v51 }
 0x9f2   :  { %v2075_v42 = vpack.c.bf16 %v2071_v6, %v2070_v0 }
 0x9f4   :  { %4351 = vmatmul.msk.bf16.gmra.mxu0 %vm7065_vm7, %v2075_v42 }
 0x9f6   :  { %v2128_v31 = vpop.f32.mrf.mxu0 }
 0x9f7   :  { %v5905_v29 = vadd.f32 %v2128_v31, %v5708_v20 }
 0x9f9   :  { %v2149_v21 = vsel %vm7066_vm0, %v5905_v29, 0.0 }
 0x9fa   :  { %2150 = vadd.xlane.f32.xlu2 %v2149_v21 }
 0x9fe   :  { %v2130_v2 = vpop.f32.mrf.mxu0 }
 0x9ff   :  { %v5910_v7 = vadd.f32 %v2130_v2, %v5716_v41 }
 0xa01   :  { %v2152_v19 = vsel %vm7066_vm0, %v5910_v7, 0.0 }
 0xa02   :  { %2153 = vadd.xlane.f32.xlu1 %v2152_v19 }
 0xa31   :  { %v5914_v45 = vpop.f32.mrf.mxu3 }
 0xa32   :  { %v5917_v4 = vmul.f32 0.70710677, %v5914_v45 }
 0xa34   :  { %v1982_v20 = vmul.f32 %v5917_v4, %v5917_v4 }
 0xa36   :  { %v1983_v8 = vmin.f32 %v1982_v20, 16.0 }
 0xa38   :  { %v1984_v12 = vmul.f32 2.1237322e-06, %v1983_v8  ;;  %v1995_v18 = vmul.f32 3.8918573e-05, %v1983_v8 }
 0xa39   :  { %v5921_v44 = vpop.f32.mrf.mxu3 }
 0xa3a   :  { %v1985_v23 = vadd.f32 0.00028619796, %v1984_v12  ;;  %v1996_v41 = vadd.f32 0.001143296, %v1995_v18  ;;  %v5924_v54 = vmul.f32 0.70710677, %v5921_v44 }
 0xa3c   :  { %v1997_v16 = vmul.f32 %v1996_v41, %v1983_v8  ;;  %v2022_v11 = vmul.f32 %v5924_v54, %v5924_v54  ;;  %v1986_v63 = vmul.f32 %v1985_v23, %v1983_v8 }
 0xa3e   :  { %v1998_v13 = vadd.f32 0.014752088, %v1997_v16  ;;  %v2023_v9 = vmin.f32 %v2022_v11, 16.0  ;;  %v1987_v55 = vadd.f32 0.0036580483, %v1986_v63 }
 0xa40   :  { %v1999_v27 = vmul.f32 %v1998_v13, %v1983_v8  ;;  %v2024_v22 = vmul.f32 2.1237322e-06, %v2023_v9  ;;  %v2035_v47 = vmul.f32 3.8918573e-05, %v2023_v9  ;;  %v1988_v26 = vmul.f32 %v1987_v55, %v1983_v8 }
 0xa42   :  { %v2000_v48 = vadd.f32 0.112945676, %v1999_v27  ;;  %v2025_v40 = vadd.f32 0.00028619796, %v2024_v22  ;;  %v2036_v61 = vadd.f32 0.001143296, %v2035_v47 }
 0xa43   :  { %v1989_v5 = vadd.f32 0.05243302, %v1988_v26 }
 0xa44   :  { %v2001_v32 = vmul.f32 %v2000_v48, %v1983_v8  ;;  %v2026_v28 = vmul.f32 %v2025_v40, %v2023_v9  ;;  %v2037_v39 = vmul.f32 %v2036_v61, %v2023_v9 }
 0xa45   :  { %v1990_v34 = vmul.f32 %v1989_v5, %v1983_v8 }
 0xa46   :  { %v2002_v62 = vadd.f32 0.4994258, %v2001_v32  ;;  %v2027_v17 = vadd.f32 0.0036580483, %v2026_v28  ;;  %v2038_v38 = vadd.f32 0.014752088, %v2037_v39 }
 0xa47   :  { %v1991_v24 = vadd.f32 0.18741608, %v1990_v34  ;;  %v1814_v32 = vmul.f32 0.5, %v5914_v45  ;;  %v1815_v28 = vmul.f32 0.5, %v5921_v44 }
 0xa48   :  { %v2003_v53 = vmul.f32 %v2002_v62, %v1983_v8  ;;  %v2039_v56 = vmul.f32 %v2038_v38, %v2023_v9  ;;  %v2028_v35 = vmul.f32 %v2027_v17, %v2023_v9 }
 0xa49   :  { %v1992_v1 = vmul.f32 %v1991_v24, %v1983_v8 }
 0xa4a   :  { %v2004_v3 = vadd.f32 1.0, %v2003_v53  ;;  %v2040_v33 = vadd.f32 0.112945676, %v2039_v56  ;;  %v2029_v57 = vadd.f32 0.05243302, %v2028_v35 }
 0xa4b   :  { %v1993_v31 = vadd.f32 1.1283791, %v1992_v1  ;;  %v4489_v1 = vld [vmem:[%s7055_s3 + $0x10] sm:$0xff] }
 0xa4c   :  { %4751 = vrcp.f32 %v2004_v3  ;;  %v2041_v43 = vmul.f32 %v2040_v33, %v2023_v9  ;;  %v2030_v58 = vmul.f32 %v2029_v57, %v2023_v9  ;;  %v2016_v59 = vand.u32 2147483648, %v2004_v3 }
 0xa4d   :  { %v2014_v6 = vand.u32 2147483647, %v2004_v3  ;;  %vm2010_vm3 = vweird.f32 %v2004_v3  ;;  %v1994_v23 = vmul.f32 %v1993_v31, %v5917_v4 }
 0xa4e   :  { %v2042_v37 = vadd.f32 0.4994258, %v2041_v43  ;;  %v2031_v0 = vadd.f32 0.18741608, %v2030_v58  ;;  %v2017_v19 = vor.u32 1.1754944e-38, %v2016_v59 }
 0xa4f   :  { %vm2015_vm5 = vcmp.eq.f32.partialorder %v2014_v6, 8.507059e+37 }
 0xa50   :  { %v2043_v50 = vmul.f32 %v2042_v37, %v2023_v9  ;;  %v2032_v20 = vmul.f32 %v2031_v0, %v2023_v9 }
 0xa52   :  { %v4752_v36 = vpop.eup %4751  ;;  %v2044_v52 = vadd.f32 1.0, %v2043_v50  ;;  %v2033_v8 = vadd.f32 1.1283791, %v2032_v20 }
 0xa53   :  { %v2006_v10 = vmul.f32 %v4752_v36, %v2004_v3  ;;  %vm2011_vm1 = vweird.f32 %v4752_v36 }
 0xa54   :  { %4753 = vrcp.f32 %v2044_v52  ;;  %vm2012_vm4 = vmor %vm2010_vm3, %vm2011_vm1  ;;  %v2056_v16 = vand.u32 2147483648, %v2044_v52  ;;  %v2054_v13 = vand.u32 2147483647, %v2044_v52  ;;  %vm2050_vm10 = vweird.f32 %v2044_v52 }
 0xa55   :  { %v2007_v25 = vsub.f32 1.0, %v2006_v10  ;;  %v2034_v55 = vmul.f32 %v2033_v8, %v5924_v54  ;;  %v4490_v10 = vld [vmem:[%s7055_s3 + $0x18] sm:$0xff] }
 0xa56   :  { %v2057_v22 = vor.u32 1.1754944e-38, %v2056_v16  ;;  %vm2055_vm12 = vcmp.eq.f32.partialorder %v2054_v13, 8.507059e+37  ;;  %2343 = vmatpush.bf16.msra.mxu2 %v4490_v10 }
 0xa57   :  { %v2008_v51 = vmul.f32 %v4752_v36, %v2007_v25 }
 0xa59   :  { %v2009_v42 = vadd.f32 %v4752_v36, %v2008_v51 }
 0xa5a   :  { %v4754_v21 = vpop.eup %4753  ;;  %2344 = vmatpush.bf16.msra.mxu2 %v4489_v1 }
 0xa5b   :  { %v2013_v2 = vsel %vm2012_vm4, %v4752_v36, %v2009_v42  ;;  %v2046_v12 = vmul.f32 %v4754_v21, %v2044_v52  ;;  %vm2051_vm8 = vweird.f32 %v4754_v21 }
 0xa5c   :  { %v2018_v18 = vsel %vm2015_vm5, %v2017_v19, %v2013_v2  ;;  %vm2052_vm11 = vmor %vm2050_vm10, %vm2051_vm8 }
 0xa5d   :  { %v2047_v41 = vsub.f32 1.0, %v2046_v12  ;;  %v2019_v11 = vmul.f32 %v2018_v18, %v1994_v23 }
 0xa5f   :  { %v2048_v63 = vmul.f32 %v4754_v21, %v2047_v41  ;;  %v4332_v47 = vclamps-f32 %v2019_v11, 1.0 }
 0xa61   :  { %v2049_v27 = vadd.f32 %v4754_v21, %v2048_v63  ;;  %v2066_v61 = vadd.f32 1.0, %v4332_v47 }
 0xa63   :  { %v2053_v9 = vsel %vm2052_vm11, %v4754_v21, %v2049_v27  ;;  %v2072_v26 = vmul.f32 %v2066_v61, %v1814_v32  ;;  %v5992_v61 = vld [vmem:[%s7052_s1 + $0x1] ss:$0 sm:$0xff] }
 0xa64   :  { %v2058_v48 = vsel %vm2055_vm12, %v2057_v22, %v2053_v9 }
 0xa65   :  { %v2059_v40 = vmul.f32 %v2058_v48, %v2034_v55 }
 0xa67   :  { %v4333_v4 = vclamps-f32 %v2059_v40, 1.0 }
 0xa69   :  { %v2067_v39 = vadd.f32 1.0, %v4333_v4 }
 0xa6b   :  { %v2073_v62 = vmul.f32 %v2067_v39, %v1815_v28  ;;  %v5998_v39 = vld [vmem:[%s7053_s2 + $0x1] ss:$0 sm:$0xff] }
 0xa6d   :  { %v2151_v17 = vpop.xlane.xlu2 %2150  ;;  %v2076_v38 = vpack.c.bf16 %v2073_v62, %v2072_v26 }
 0xa6e   :  { %v2167_v53 = vmul.f32 %v2151_v17, %v4985_v14 }
 0xa6f   :  { %4352 = vmatmul.msk.bf16.gmra.mxu0 %vm7065_vm7, %v2076_v38 }
 0xa70   :  { %v5935_v54 = vsub.f32 %v5905_v29, %v2167_v53 }
 0xa71   :  { %v2133_v56 = vpop.f32.mrf.mxu0 }
 0xa72   :  { %v5938_v5 = vadd.f32 %v2133_v56, %v5749_v46  ;;  %v2179_v45 = vmul.f32 %v5935_v54, %v5935_v54 }
 0xa74   :  { %v2155_v44 = vsel %vm7066_vm0, %v5938_v5, 0.0  ;;  %v2185_v3 = vsel %vm7066_vm0, %v2179_v45, 0.0 }
 0xa75   :  { %v2154_v35 = vpop.xlane.xlu1 %2153  ;;  %2156 = vadd.xlane.f32.xlu0 %v2155_v44  ;;  %2186 = vadd.xlane.f32.xlu1 %v2185_v3 }
 0xa76   :  { %v2168_v33 = vmul.f32 %v2154_v35, %v4985_v14 }
 0xa78   :  { %v5947_v43 = vsub.f32 %v5910_v7, %v2168_v33 }
 0xa79   :  { %v2135_v34 = vpop.f32.mrf.mxu0 }
 0xa7a   :  { %v5950_v46 = vadd.f32 %v2135_v34, %v5762_v49  ;;  %v2180_v57 = vmul.f32 %v5947_v43, %v5947_v43 }
 0xa7c   :  { %v2158_v37 = vsel %vm7066_vm0, %v5950_v46, 0.0  ;;  %v2188_v50 = vsel %vm7066_vm0, %v2180_v57, 0.0 }
 0xa7d   :  { %2159 = vadd.xlane.f32.xlu2 %v2158_v37  ;;  %2189 = vadd.xlane.f32.xlu0 %v2188_v50 }
 0xae8   :  { %v2157_v36 = vpop.xlane.xlu0 %2156  ;;  %v2187_v24 = vpop.xlane.xlu1 %2186 }
 0xae9   :  { %v2169_v58 = vmul.f32 %v2157_v36, %v4985_v14  ;;  %v2203_v49 = vmul.f32 %v2187_v24, %v4985_v14 }
 0xaeb   :  { %v5963_v52 = vsub.f32 %v5938_v5, %v2169_v58  ;;  %v2209_v25 = vadd.f32 1e-05, %v2203_v49 }
 0xaec   :  { %v2138_v51 = vpop.f32.mrf.mxu0 }
 0xaed   :  { %4755 = vrsqrt.f32 %v2209_v25  ;;  %v5969_v59 = vadd.f32 %v2138_v51, %v5771_v60  ;;  %v2181_v0 = vmul.f32 %v5963_v52, %v5963_v52  ;;  %vm2221_vm1 = vweird.f32 %v2209_v25 }
 0xaef   :  { %v2161_v6 = vsel %vm7066_vm0, %v5969_v59, 0.0  ;;  %v2191_v42 = vsel %vm7066_vm0, %v2181_v0, 0.0 }
 0xaf0   :  { %2162 = vadd.xlane.f32.xlu0 %v2161_v6  ;;  %2192 = vadd.xlane.f32.xlu2 %v2191_v42  ;;  %v2190_v31 = vpop.xlane.xlu0 %2189  ;;  %v2160_v21 = vpop.xlane.xlu2 %2159 }
 0xaf1   :  { %v2204_v2 = vmul.f32 %v2190_v31, %v4985_v14  ;;  %v2170_v19 = vmul.f32 %v2160_v21, %v4985_v14 }
 0xaf3   :  { %v4756_v20 = vpop.eup %4755  ;;  %v2210_v60 = vadd.f32 1e-05, %v2204_v2  ;;  %v5979_v12 = vsub.f32 %v5950_v46, %v2170_v19 }
 0xaf4   :  { %v2216_v18 = vmul.f32 %v4756_v20, %v2209_v25  ;;  %v2140_v23 = vpop.f32.mrf.mxu0  ;;  %vm2222_vm13 = vweird.f32 %v4756_v20 }
 0xaf5   :  { %4757 = vrsqrt.f32 %v2210_v60  ;;  %v5982_v41 = vadd.f32 %v2140_v23, %v5795_v30  ;;  %v2182_v8 = vmul.f32 %v5979_v12, %v5979_v12  ;;  %vm2223_vm3 = vmor %vm2221_vm1, %vm2222_vm13  ;;  %vm2231_vm5 = vweird.f32 %v2210_v60 }
 0xaf6   :  { %v2217_v16 = vmul.f32 %v4756_v20, %v2216_v18 }
 0xaf7   :  { %v2164_v11 = vsel %vm7066_vm0, %v5982_v41, 0.0  ;;  %v2194_v63 = vsel %vm7066_vm0, %v2182_v8, 0.0 }
 0xaf8   :  { %v2218_v13 = vmul.f32 0.5, %v2217_v16  ;;  %2165 = vadd.xlane.f32.xlu2 %v2164_v11  ;;  %2195 = vadd.xlane.f32.xlu1 %v2194_v63 }
 0xafa   :  { %v2219_v27 = vsub.f32 1.5, %v2218_v13 }
 0xafb   :  { %v4758_v22 = vpop.eup %4757 }
 0xafc   :  { %v2220_v47 = vmul.f32 %v4756_v20, %v2219_v27  ;;  %v2226_v55 = vmul.f32 %v4758_v22, %v2210_v60  ;;  %vm2232_vm4 = vweird.f32 %v4758_v22 }
 0xafd   :  { %vm2233_vm8 = vmor %vm2231_vm5, %vm2232_vm4 }
 0xafe   :  { %v2227_v30 = vmul.f32 %v4758_v22, %v2226_v55  ;;  %v2224_v9 = vsel %vm2223_vm3, %v4756_v20, %v2220_v47 }
 0xaff   :  { %v2275_v4 = vmul.f32 %v2224_v9, %v5935_v54 }
 0xb00   :  { %v2228_v48 = vmul.f32 0.5, %v2227_v30 }
 0xb01   :  { %v2286_v26 = vmul.f32 %v5992_v61, %v2275_v4 }
 0xb02   :  { %v2229_v40 = vsub.f32 1.5, %v2228_v48 }
 0xb03   :  { %v2297_v38 = vadd.f32 %v5998_v39, %v2286_v26 }
 0xb04   :  { %v2230_v32 = vmul.f32 %v4758_v22, %v2229_v40 }
 0xb06   :  { %v2234_v28 = vsel %vm2233_vm8, %v4758_v22, %v2230_v32 }
 0xb07   :  { %v2276_v62 = vmul.f32 %v2234_v28, %v5947_v43 }
 0xb09   :  { %v2287_v17 = vmul.f32 %v5992_v61, %v2276_v62 }
 0xb0b   :  { %v2298_v53 = vadd.f32 %v5998_v39, %v2287_v17 }
 0xb0d   :  { %v2303_v54 = vpack.c.bf16 %v2298_v53, %v2297_v38 }
 0xb0f   :  { %4368 = vmatmul.msk.bf16.vlgmr.msra.gmra.mxu2 %vm7066_vm0, %v2303_v54 }
 0xb63   :  { %v2163_v56 = vpop.xlane.xlu0 %2162  ;;  %v2193_v45 = vpop.xlane.xlu2 %2192 }
 0xb64   :  { %v2171_v44 = vmul.f32 %v2163_v56, %v4985_v14  ;;  %v2205_v3 = vmul.f32 %v2193_v45, %v4985_v14 }
 0xb66   :  { %v6009_v35 = vsub.f32 %v5969_v59, %v2171_v44  ;;  %v2211_v33 = vadd.f32 1e-05, %v2205_v3 }
 0xb68   :  { %4759 = vrsqrt.f32 %v2211_v33  ;;  %v2183_v43 = vmul.f32 %v6009_v35, %v6009_v35  ;;  %vm2241_vm11 = vweird.f32 %v2211_v33 }
 0xb6a   :  { %v2197_v34 = vsel %vm7066_vm0, %v2183_v43, 0.0 }
 0xb6b   :  { %2198 = vadd.xlane.f32.xlu1 %v2197_v34  ;;  %v2196_v57 = vpop.xlane.xlu1 %2195  ;;  %v2166_v37 = vpop.xlane.xlu2 %2165 }
 0xb6c   :  { %v2206_v50 = vmul.f32 %v2196_v57, %v4985_v14  ;;  %v2172_v36 = vmul.f32 %v2166_v37, %v4985_v14 }
 0xb6e   :  { %v4760_v24 = vpop.eup %4759  ;;  %v2212_v10 = vadd.f32 1e-05, %v2206_v50  ;;  %v6017_v58 = vsub.f32 %v5982_v41, %v2172_v36 }
 0xb6f   :  { %v2236_v49 = vmul.f32 %v4760_v24, %v2211_v33  ;;  %vm2242_vm10 = vweird.f32 %v4760_v24 }
 0xb70   :  { %4761 = vrsqrt.f32 %v2212_v10  ;;  %v2184_v25 = vmul.f32 %v6017_v58, %v6017_v58  ;;  %vm2243_vm12 = vmor %vm2241_vm11, %vm2242_vm10  ;;  %vm2251_vm1 = vweird.f32 %v2212_v10 }
 0xb71   :  { %v2237_v1 = vmul.f32 %v4760_v24, %v2236_v49 }
 0xb72   :  { %v2200_v51 = vsel %vm7066_vm0, %v2184_v25, 0.0 }
 0xb73   :  { %v2238_v0 = vmul.f32 0.5, %v2237_v1  ;;  %2201 = vadd.xlane.f32.xlu0 %v2200_v51 }
 0xb75   :  { %v2239_v6 = vsub.f32 1.5, %v2238_v0 }
 0xb76   :  { %v4762_v42 = vpop.eup %4761 }
 0xb77   :  { %v2240_v31 = vmul.f32 %v4760_v24, %v2239_v6  ;;  %v2246_v21 = vmul.f32 %v4762_v42, %v2212_v10  ;;  %vm2252_vm13 = vweird.f32 %v4762_v42 }
 0xb78   :  { %vm2253_vm3 = vmor %vm2251_vm1, %vm2252_vm13 }
 0xb79   :  { %v2247_v2 = vmul.f32 %v4762_v42, %v2246_v21  ;;  %v2244_v19 = vsel %vm2243_vm12, %v4760_v24, %v2240_v31 }
 0xb7a   :  { %v2277_v18 = vmul.f32 %v2244_v19, %v5963_v52  ;;  %v6032_v52 = vld [vmem:[%s7054_s4 + $0x1] ss:$0 sm:$0xff]  ;;  %s7097_s4 = smov 24  }
 0xb7b   :  { %v2248_v20 = vmul.f32 0.5, %v2247_v2 }
 0xb7c   :  { %v2288_v11 = vmul.f32 %v5992_v61, %v2277_v18 }
 0xb7d   :  { %v2249_v60 = vsub.f32 1.5, %v2248_v20 }
 0xb7e   :  { %v2299_v13 = vadd.f32 %v5998_v39, %v2288_v11 }
 0xb7f   :  { %v2250_v23 = vmul.f32 %v4762_v42, %v2249_v60 }
 0xb81   :  { %v2254_v8 = vsel %vm2253_vm3, %v4762_v42, %v2250_v23 }
 0xb82   :  { %v2278_v16 = vmul.f32 %v2254_v8, %v5979_v12 }
 0xb84   :  { %v2289_v63 = vmul.f32 %v5992_v61, %v2278_v16 }
 0xb86   :  { %v2300_v27 = vadd.f32 %v5998_v39, %v2289_v63 }
 0xb88   :  { %v2304_v22 = vpack.c.bf16 %v2300_v27, %v2299_v13 }
 0xb8a   :  { %4369 = vmatmul.msk.bf16.gmra.mxu2 %vm7066_vm0, %v2304_v22 }
 0xb92   :  { %v2346_v47 = vpop.f32.mrf.mxu2 }
 0xb93   :  { %v2347_v55 = vadd.f32 %v6032_v52, %v2346_v47 }
 0xb95   :  { %v2361_v12 = vpack.c.bf16 %v2347_v55, %v2347_v55 }
 0xb97   :  { %2367 = vst.msk [vmem:[#allocation2] sm:$0xf] %vm271_vm14, %v2361_v12 }
 0xb9a   :  { %v2348_v30 = vpop.f32.mrf.mxu2 }
 0xb9b   :  { %v2349_v9 = vadd.f32 %v6032_v52, %v2348_v30 }
 0xb9d   :  { %v2362_v48 = vpack.c.bf16 %v2349_v9, %v2349_v9 }
 0xb9e   :  { %v4373_v40 = vld [vmem:[#allocation2] sm:$0xf] }
 0xb9f   :  { %2368 = vst.msk [vmem:[#allocation2 + $0x4] sm:$0xf] %vm271_vm14, %v2362_v48 }
 0xba6   :  { %v4491_v4 = vld [vmem:[#allocation2] sm:$0xf0] }
 0xba7   :  { %v6038_v32 = vor.u32 %v4491_v4, %v4373_v40 }
 0xba9   :  { %2384 = vrot.lane.b32.xlu0 %v6038_v32, %s4894_s16 }
 0xbb1   :  { %2524 = vrot.lane.b32.xlu0 %v6038_v32, %s4895_s17 }
 0xbde   :  { %v2199_v28 = vpop.xlane.xlu1 %2198 }
 0xbdf   :  { %v2207_v26 = vmul.f32 %v2199_v28, %v4985_v14 }
 0xbe1   :  { %v2213_v62 = vadd.f32 1e-05, %v2207_v26 }
 0xbe3   :  { %4763 = vrsqrt.f32 %v2213_v62  ;;  %vm2261_vm5 = vweird.f32 %v2213_v62 }
 0xbe6   :  { %v2202_v17 = vpop.xlane.xlu0 %2201 }
 0xbe7   :  { %v2208_v38 = vmul.f32 %v2202_v17, %v4985_v14 }
 0xbe9   :  { %v4764_v53 = vpop.eup %4763  ;;  %v2214_v54 = vadd.f32 1e-05, %v2208_v38 }
 0xbea   :  { %v2256_v56 = vmul.f32 %v4764_v53, %v2213_v62  ;;  %vm2262_vm4 = vweird.f32 %v4764_v53 }
 0xbeb   :  { %4765 = vrsqrt.f32 %v2214_v54  ;;  %vm2263_vm8 = vmor %vm2261_vm5, %vm2262_vm4  ;;  %vm2271_vm11 = vweird.f32 %v2214_v54 }
 0xbec   :  { %v2257_v45 = vmul.f32 %v4764_v53, %v2256_v56 }
 0xbee   :  { %v2258_v44 = vmul.f32 0.5, %v2257_v45 }
 0xbf0   :  { %v2259_v3 = vsub.f32 1.5, %v2258_v44 }
 0xbf1   :  { %v4766_v33 = vpop.eup %4765 }
 0xbf2   :  { %v2260_v43 = vmul.f32 %v4764_v53, %v2259_v3  ;;  %v2266_v34 = vmul.f32 %v4766_v33, %v2214_v54  ;;  %vm2272_vm10 = vweird.f32 %v4766_v33 }
 0xbf3   :  { %vm2273_vm12 = vmor %vm2271_vm11, %vm2272_vm10 }
 0xbf4   :  { %v2267_v57 = vmul.f32 %v4766_v33, %v2266_v34  ;;  %v2264_v37 = vsel %vm2263_vm8, %v4764_v53, %v2260_v43 }
 0xbf5   :  { %v2279_v24 = vmul.f32 %v2264_v37, %v6009_v35 }
 0xbf6   :  { %v2268_v50 = vmul.f32 0.5, %v2267_v57 }
 0xbf7   :  { %v2290_v1 = vmul.f32 %v5992_v61, %v2279_v24 }
 0xbf8   :  { %v2269_v36 = vsub.f32 1.5, %v2268_v50 }
 0xbf9   :  { %v2301_v0 = vadd.f32 %v5998_v39, %v2290_v1 }
 0xbfa   :  { %v2270_v10 = vmul.f32 %v4766_v33, %v2269_v36 }
 0xbfc   :  { %v2274_v49 = vsel %vm2273_vm12, %v4766_v33, %v2270_v10 }
 0xbfd   :  { %v2280_v25 = vmul.f32 %v2274_v49, %v6017_v58 }
 0xbff   :  { %v2291_v51 = vmul.f32 %v5992_v61, %v2280_v25 }
 0xc01   :  { %v2302_v6 = vadd.f32 %v5998_v39, %v2291_v51 }
 0xc03   :  { %v2305_v42 = vpack.c.bf16 %v2302_v6, %v2301_v0 }
 0xc05   :  { %4370 = vmatmul.msk.bf16.gmra.mxu2 %vm7066_vm0, %v2305_v42 }
 0xc0d   :  { %v2351_v31 = vpop.f32.mrf.mxu2 }
 0xc0e   :  { %v2352_v35 = vadd.f32 %v6032_v52, %v2351_v31 }
 0xc10   :  { %v2363_v21 = vpack.c.bf16 %v2352_v35, %v2352_v35 }
 0xc12   :  { %2369 = vst.msk [vmem:[#allocation2 + $0x8] sm:$0xf] %vm271_vm14, %v2363_v21 }
 0xc15   :  { %v2353_v2 = vpop.f32.mrf.mxu2 }
 0xc16   :  { %v2354_v58 = vadd.f32 %v6032_v52, %v2353_v2 }
 0xc18   :  { %v2364_v19 = vpack.c.bf16 %v2354_v58, %v2354_v58 }
 0xc19   :  { %v2375_v20 = vld [vmem:[#allocation2 + $0x8] sm:$0xf] }
 0xc1a   :  { %v2381_v60 = vunpack.c.l.b16 %v2375_v20  ;;  %2370 = vst.msk [vmem:[#allocation2 + $0xc] sm:$0xf] %vm271_vm14, %v2364_v19 }
 0xc1b   :  { %v2385_v23 = vpop.permute.xlu0 %2384 }
 0xc1c   :  { %v6057_v61 = vpack.c.b16 %v2381_v60, %v2381_v60  ;;  %v2395_v8 = vsel %vm293_vm15, %v2385_v23, 0 }
 0xc1e   :  { %2530 = vrot.lane.b32.xlu1 %v6057_v61, %s4896_s18  ;;  %2386 = vrot.lane.b32.xlu2 %v6057_v61, %s4894_s16 }
 0xc1f   :  { %2818 = vrot.lane.b32.xlu0 %v6057_v61, %s4901_s26 }
 0xc21   :  { %v4393_v30 = vld [vmem:[#allocation2 + $0xc] sm:$0xf] }
 0xc23   :  { %v2525_v13 = vpop.permute.xlu0 %2524 }
 0xc26   :  { %2674 = vrot.lane.b32.xlu1 %v6057_v61, %s4900_s25  ;;  %2528 = vrot.lane.b32.xlu2 %v6038_v32, %s4896_s18 }
 0xc27   :  { %2668 = vrot.lane.b32.xlu0 %v6038_v32, %s4903_s28 }
 0xc2e   :  { %2672 = vrot.lane.b32.xlu1 %v6038_v32, %s4900_s25  ;;  %2816 = vrot.lane.b32.xlu2 %v6038_v32, %s4901_s26 }
 0xc36   :  { %2812 = vrot.lane.b32.xlu1 %v6038_v32, %s4902_s27  ;;  %2526 = vrot.lane.b32.xlu2 %v6057_v61, %s4895_s17 }
 0xc3e   :  { %2814 = vrot.lane.b32.xlu1 %v6057_v61, %s4902_s27  ;;  %2670 = vrot.lane.b32.xlu2 %v6057_v61, %s4903_s28 }
 0xc78   :  { %v2387_v39 = vpop.permute.xlu2 %2386 }
 0xc79   :  { %v2398_v18 = vsel %vm293_vm15, %v2387_v39, 0 }
 0xc7a   :  { %2406 = vmatpush.bf16.xpose.msrb.mxu1 %v2398_v18 }
 0xc80   :  { %v2529_v48 = vpop.permute.xlu2 %2528 }
 0xc81   :  { %v2539_v28 = vsel %vm293_vm15, %v2529_v48, 0 }
 0xc82   :  { %2407 = vmatpush.bf16.xpose.msrb.mxu1 %v2395_v8 }
 0xc88   :  { %v2356_v16 = vpop.f32.mrf.mxu2  ;;  %v2817_v17 = vpop.permute.xlu2 %2816 }
 0xc89   :  { %v2357_v11 = vadd.f32 %v6032_v52, %v2356_v16  ;;  %4375 = vmatmul.msk.bf16.vlgmr.msrb.gmra.mxu1 %vm293_vm15, %v6038_v32  ;;  %v2827_v56 = vsel %vm293_vm15, %v2817_v17, 0 }
 0xc8b   :  { %v2365_v63 = vpack.c.bf16 %v2357_v11, %v2357_v11 }
 0xc8d   :  { %2371 = vst.msk [vmem:[#allocation2 + $0x10] sm:$0xf] %vm271_vm14, %v2365_v63 }
 0xc90   :  { %v2531_v27 = vpop.permute.xlu1 %2530  ;;  %v2358_v22 = vpop.f32.mrf.mxu2 }
 0xc91   :  { %v2542_v47 = vsel %vm293_vm15, %v2531_v27, 0  ;;  %v2359_v55 = vadd.f32 %v6032_v52, %v2358_v22  ;;  %v2819_v4 = vpop.permute.xlu0 %2818  ;;  %v2527_v33 = vpop.permute.xlu2 %2526 }
 0xc92   :  { %2550 = vmatpush.bf16.xpose.msrb.mxu0 %v2542_v47  ;;  %v2830_v62 = vsel %vm293_vm15, %v2819_v4, 0 }
 0xc93   :  { %v2366_v12 = vpack.c.bf16 %v2359_v55, %v2359_v55 }
 0xc94   :  { %v4492_v9 = vld [vmem:[#allocation2 + $0xc] sm:$0xf0] }
 0xc95   :  { %v6091_v40 = vor.u32 %v4492_v9, %v4393_v30  ;;  %2372 = vst.msk [vmem:[#allocation2 + $0x14] sm:$0xf] %vm271_vm14, %v2366_v12 }
 0xc97   :  { %3152 = vrot.lane.b32.xlu2 %v6091_v40, %s4895_s17  ;;  %3156 = vrot.lane.b32.xlu1 %v6091_v40, %s4896_s18 }
 0xc98   :  { %3012 = vrot.lane.b32.xlu0 %v6091_v40, %s4894_s16  ;;  %v2675_v52 = vpop.permute.xlu1 %2674 }
 0xc99   :  { %v2686_v26 = vsel %vm293_vm15, %v2675_v52, 0  ;;  %4376 = vmatmul.msk.bf16.gmra.mxu1 %vm293_vm15, %v6057_v61  ;;  %v2669_v3 = vpop.permute.xlu0 %2668  ;;  %v2671_v43 = vpop.permute.xlu2 %2670 }
 0xc9a   :  { %2551 = vmatpush.bf16.xpose.msrb.mxu0 %v2539_v28  ;;  %2694 = vmatpush.bf16.xpose.msra.mxu1 %v2686_v26 }
 0xc9c   :  { %v3003_v38 = vld [vmem:[#allocation2 + $0x14] sm:$0xf] }
 0xc9d   :  { %v3009_v45 = vunpack.c.l.b16 %v3003_v38 }
 0xc9f   :  { %3296 = vrot.lane.b32.xlu2 %v6091_v40, %s4903_s28  ;;  %3444 = vrot.lane.b32.xlu1 %v6091_v40, %s4901_s26  ;;  %v6114_v44 = vpack.c.b16 %v3009_v45, %v3009_v45 }
 0xca0   :  { %3300 = vrot.lane.b32.xlu0 %v6091_v40, %s4900_s25  ;;  %v2673_v53 = vpop.permute.xlu1 %2672 }
 0xca1   :  { %v2683_v54 = vsel %vm293_vm15, %v2673_v53, 0  ;;  %4379 = vmatmul.msk.bf16.vlgmr.msrb.gmra.mxu0 %vm293_vm15, %v2525_v13 }
 0xca2   :  { %2838 = vmatpush.bf16.xpose.msra.mxu0 %v2830_v62  ;;  %2695 = vmatpush.bf16.xpose.msra.mxu1 %v2683_v54 }
 0xca7   :  { %2494 = vrot.lane.b32.xlu2 %v6057_v61, %s4898_s23  ;;  %2492 = vrot.lane.b32.xlu1 %v6038_v32, %s4898_s23 }
 0xca8   :  { %3014 = vrot.lane.b32.xlu0 %v6114_v44, %s4894_s16  ;;  %v2813_v34 = vpop.permute.xlu1 %2812 }
 0xca9   :  { %4383 = vmatmul.msk.bf16.vlgmr.msra.gmra.mxu1 %vm293_vm15, %v2669_v3 }
 0xcaa   :  { %2839 = vmatpush.bf16.xpose.msra.mxu0 %v2827_v56 }
 0xcaf   :  { %2782 = vrot.lane.b32.xlu2 %v6057_v61, %s4904_s29  ;;  %2926 = vrot.lane.b32.xlu1 %v6057_v61, %s4905_s30 }
 0xcb0   :  { %3440 = vrot.lane.b32.xlu0 %v6091_v40, %s4902_s27  ;;  %v2815_v57 = vpop.permute.xlu1 %2814 }
 0xcb1   :  { %4380 = vmatmul.msk.bf16.gmra.mxu0 %vm293_vm15, %v2527_v33 }
 0xcb7   :  { %3158 = vrot.lane.b32.xlu2 %v6114_v44, %s4896_s18  ;;  %3154 = vrot.lane.b32.xlu1 %v6114_v44, %s4895_s17 }
 0xcb8   :  { %2638 = vrot.lane.b32.xlu0 %v6057_v61, %s4899_s24 }
 0xcb9   :  { %4384 = vmatmul.msk.bf16.gmra.mxu1 %vm293_vm15, %v2671_v43 }
 0xcbf   :  { %2924 = vrot.lane.b32.xlu2 %v6038_v32, %s4905_s30  ;;  %3298 = vrot.lane.b32.xlu1 %v6114_v44, %s4903_s28 }
 0xcc0   :  { %2636 = vrot.lane.b32.xlu0 %v6038_v32, %s4899_s24 }
 0xcc1   :  { %4387 = vmatmul.msk.bf16.vlgmr.msra.gmra.mxu0 %vm293_vm15, %v2813_v34 }
 0xcc7   :  { %3446 = vrot.lane.b32.xlu2 %v6114_v44, %s4901_s26 }
 0xcc8   :  { %3302 = vrot.lane.b32.xlu0 %v6114_v44, %s4900_s25 }
 0xccf   :  { %3442 = vrot.lane.b32.xlu2 %v6114_v44, %s4902_s27 }
 0xcd0   :  { %2780 = vrot.lane.b32.xlu0 %v6038_v32, %s4904_s29 }
 0xcd1   :  { %4388 = vmatmul.msk.bf16.gmra.mxu0 %vm293_vm15, %v2815_v57 }
 0xcd7   :  { %3122 = vrot.lane.b32.xlu2 %v6114_v44, %s4898_s23 }
 0xcf1   :  { %v3153_v37 = vpop.permute.xlu2 %3152 }
 0xcf9   :  { %v6155_v50 = vpop.permute.xlu2 %3296 }
 0xd01   :  { %v2495_v36 = vpop.permute.xlu2 %2494 }
 0xd02   :  { %v2504_v24 = vsel %vm410_vm9, %v2495_v36, 0 }
 0xd03   :  { %2512 = vmatpush.bf16.msrb.mxu3 %v2504_v24 }
 0xd06   :  { %v2409_v10 = vpop.f32.mrf.mxu1 }
 0xd07   :  { %v6159_v49 = vadd.f32 %v2409_v10, %v5104_v15 }
 0xd09   :  { %v3157_v25 = vpop.permute.xlu1 %3156  ;;  %v2783_v1 = vpop.permute.xlu2 %2782  ;;  %v2418_v32 = vsel %vm324_vm2, %v6159_v49, -inf }
 0xd0a   :  { %v3013_v51 = vpop.permute.xlu0 %3012  ;;  %2419 = vmax.xlane.f32.xlu0 %v2418_v32  ;;  %v3167_v39 = vsel %vm293_vm15, %v3157_v25, 0  ;;  %v2792_v18 = vsel %vm410_vm9, %v2783_v1, 0 }
 0xd0b   :  { %v3023_v55 = vsel %vm293_vm15, %v3013_v51, 0 }
 0xd0e   :  { %v2411_v0 = vpop.f32.mrf.mxu1 }
 0xd0f   :  { %v6164_v6 = vadd.f32 %v2411_v0, %v5104_v15 }
 0xd11   :  { %v3445_v42 = vpop.permute.xlu1 %3444  ;;  %v3159_v31 = vpop.permute.xlu2 %3158  ;;  %v2421_v35 = vsel %vm324_vm2, %v6164_v6, -inf }
 0xd12   :  { %v6168_v21 = vpop.permute.xlu0 %3300  ;;  %v3170_v2 = vsel %vm293_vm15, %v3159_v31, 0  ;;  %2422 = vmax.xlane.f32.xlu1 %v2421_v35  ;;  %v3455_v52 = vsel %vm293_vm15, %v3445_v42, 0 }
 0xd13   :  { %3178 = vmatpush.bf16.xpose.msrb.mxu0 %v3170_v2  ;;  %v3311_v31 = vsel %vm293_vm15, %v6168_v21, 0 }
 0xd16   :  { %v2414_v58 = vpop.f32.mrf.mxu1 }
 0xd17   :  { %v6172_v19 = vadd.f32 %v2414_v58, %v5104_v15 }
 0xd19   :  { %v2493_v20 = vpop.permute.xlu1 %2492  ;;  %v2925_v60 = vpop.permute.xlu2 %2924  ;;  %v2424_v61 = vsel %vm324_vm2, %v6172_v19, -inf }
 0xd1a   :  { %v3015_v23 = vpop.permute.xlu0 %3014  ;;  %2425 = vmax.xlane.f32.xlu1 %v2424_v61  ;;  %2513 = vmatpush.bf16.msrb.mxu3 %v2493_v20 }
 0xd1b   :  { %v3026_v8 = vsel %vm293_vm15, %v3015_v23, 0  ;;  %3179 = vmatpush.bf16.xpose.msrb.mxu0 %v3167_v39 }
 0xd1c   :  { %3034 = vmatpush.bf16.xpose.msrb.mxu1 %v3026_v8 }
 0xd1e   :  { %2800 = vmatpush.bf16.msra.mxu3 %v2792_v18  ;;  %v2416_v16 = vpop.f32.mrf.mxu1  ;;  %v2553_v11 = vpop.f32.mrf.mxu0 }
 0xd1f   :  { %v6180_v63 = vadd.f32 %v2553_v11, %v5104_v15 }
 0xd21   :  { %v3447_v13 = vpop.permute.xlu2 %3446  ;;  %v2562_v27 = vsel %vm324_vm2, %v6180_v63, -inf  ;;  %v2927_v48 = vpop.permute.xlu1 %2926 }
 0xd22   :  { %v3441_v22 = vpop.permute.xlu0 %3440  ;;  %v3458_v47 = vsel %vm293_vm15, %v3447_v13, 0  ;;  %2563 = vmax.xlane.f32.xlu2 %v2562_v27  ;;  %4399 = vmatmul.msk.bf16.vlgmr.msrb.gmra.mxu0 %vm293_vm15, %v3153_v37  ;;  %v2936_v43 = vsel %vm410_vm9, %v2927_v48, 0 }
 0xd23   :  { %3466 = vmatpush.bf16.xpose.msra.mxu0 %v3458_v47 }
 0xd24   :  { %3035 = vmatpush.bf16.xpose.msrb.mxu1 %v3023_v55 }
 0xd26   :  { %v2555_v12 = vpop.f32.mrf.mxu0  ;;  %v2697_v30 = vpop.f32.mrf.mxu1 }
 0xd27   :  { %v6188_v9 = vadd.f32 %v2555_v12, %v5104_v15  ;;  %v6197_v62 = vadd.f32 %v2697_v30, %v5104_v15 }
 0xd29   :  { %v2565_v4 = vsel %vm324_vm2, %v6188_v9, -inf  ;;  %v2706_v45 = vsel %vm324_vm2, %v6197_v62, -inf  ;;  %v3155_v34 = vpop.permute.xlu1 %3154  ;;  %v3443_v61 = vpop.permute.xlu2 %3442 }
 0xd2a   :  { %v2639_v28 = vpop.permute.xlu0 %2638  ;;  %2566 = vmax.xlane.f32.xlu0 %v2565_v4 }
 0xd2b   :  { %v2648_v26 = vsel %vm410_vm9, %v2639_v28, 0  ;;  %4395 = vmatmul.msk.bf16.vlgmr.msrb.gmra.mxu1 %vm293_vm15, %v6091_v40  ;;  %3467 = vmatpush.bf16.xpose.msra.mxu0 %v3455_v52 }
 0xd2c   :  { %2656 = vmatpush.bf16.msrb.mxu2 %v2648_v26 }
 0xd2e   :  { %v2558_v17 = vpop.f32.mrf.mxu0  ;;  %v2699_v38 = vpop.f32.mrf.mxu1 }
 0xd2f   :  { %v6200_v53 = vadd.f32 %v2558_v17, %v5104_v15  ;;  %v6203_v54 = vadd.f32 %v2699_v38, %v5104_v15 }
 0xd31   :  { %v2709_v56 = vsel %vm324_vm2, %v6203_v54, -inf  ;;  %v2568_v3 = vsel %vm324_vm2, %v6200_v53, -inf  ;;  %v3299_v18 = vpop.permute.xlu1 %3298 }
 0xd32   :  { %v2637_v33 = vpop.permute.xlu0 %2636  ;;  %2710 = vmax.xlane.f32.xlu1 %v2709_v56  ;;  %2707 = vmax.xlane.f32.xlu0 %v2706_v45 }
 0xd33   :  { %2657 = vmatpush.bf16.msrb.mxu2 %v2637_v33  ;;  %2569 = vmax.xlane.f32.xlu2 %v2568_v3 }
 0xd34   :  { %4400 = vmatmul.msk.bf16.gmra.mxu0 %vm293_vm15, %v3155_v34  ;;  %v6278_v34 = vpop.permute.xlu2 %3122 }
 0xd36   :  { %v2560_v57 = vpop.f32.mrf.mxu0  ;;  %v2702_v37 = vpop.f32.mrf.mxu1 }
 0xd37   :  { %2944 = vmatpush.bf16.msra.mxu2 %v2936_v43  ;;  %v6214_v36 = vadd.f32 %v2702_v37, %v5104_v15 }
 0xd39   :  { %v2712_v24 = vsel %vm324_vm2, %v6214_v36, -inf }
 0xd3a   :  { %v3303_v10 = vpop.permute.xlu0 %3302  ;;  %2713 = vmax.xlane.f32.xlu1 %v2712_v24 }
 0xd3b   :  { %2945 = vmatpush.bf16.msra.mxu2 %v2925_v60  ;;  %v3314_v25 = vsel %vm293_vm15, %v3303_v10, 0  ;;  %4396 = vmatmul.msk.bf16.gmra.mxu1 %vm293_vm15, %v6114_v44 }
 0xd3c   :  { %3322 = vmatpush.bf16.xpose.msra.mxu1 %v3314_v25 }
 0xd3e   :  { %v2704_v1 = vpop.f32.mrf.mxu1  ;;  %v2841_v32 = vpop.f32.mrf.mxu0 }
 0xd3f   :  { %v6222_v51 = vadd.f32 %v2841_v32, %v5104_v15 }
 0xd41   :  { %v2850_v0 = vsel %vm324_vm2, %v6222_v51, -inf }
 0xd42   :  { %v2781_v42 = vpop.permute.xlu0 %2780  ;;  %2851 = vmax.xlane.f32.xlu2 %v2850_v0 }
 0xd43   :  { %2801 = vmatpush.bf16.msra.mxu3 %v2781_v42 }
 0xd44   :  { %4407 = vmatmul.msk.bf16.vlgmr.msra.gmra.mxu0 %vm293_vm15, %v3441_v22  ;;  %3323 = vmatpush.bf16.xpose.msra.mxu1 %v3311_v31 }
 0xd46   :  { %v2843_v35 = vpop.f32.mrf.mxu0 }
 0xd47   :  { %v6230_v2 = vadd.f32 %v2843_v35, %v5104_v15 }
 0xd49   :  { %v2853_v58 = vsel %vm324_vm2, %v6230_v2, -inf }
 0xd4a   :  { %2854 = vmax.xlane.f32.xlu0 %v2853_v58 }
 0xd4b   :  { %4403 = vmatmul.msk.bf16.vlgmr.msra.gmra.mxu1 %vm293_vm15, %v6155_v50 }
 0xd4e   :  { %v2846_v20 = vpop.f32.mrf.mxu0 }
 0xd4f   :  { %v6237_v60 = vadd.f32 %v2846_v20, %v5104_v15 }
 0xd51   :  { %v2856_v21 = vsel %vm324_vm2, %v6237_v60, -inf }
 0xd52   :  { %2857 = vmax.xlane.f32.xlu2 %v2856_v21 }
 0xd54   :  { %4408 = vmatmul.msk.bf16.gmra.mxu0 %vm293_vm15, %v3443_v61 }
 0xd56   :  { %v2848_v39 = vpop.f32.mrf.mxu0 }
 0xd5b   :  { %4404 = vmatmul.msk.bf16.gmra.mxu1 %vm293_vm15, %v3299_v18 }
 0xd7d   :  { %v2420_v43 = vpop.xlane.xlu0 %2419 }
 0xd7e   :  { %v2427_v10 = vsub.f32 %v6159_v49, %v2420_v43 }
 0xd80   :  { %v2430_v32 = vmul.f32 1.442695, %v2427_v10 }
 0xd82   :  { %4767 = vpow2.f32 %v2430_v32 }
 0xd85   :  { %v2423_v1 = vpop.xlane.xlu1 %2422 }
 0xd86   :  { %v2428_v58 = vsub.f32 %v6164_v6, %v2423_v1 }
 0xd8d   :  { %v2426_v6 = vpop.xlane.xlu1 %2425 }
 0xd95   :  { %v2564_v31 = vpop.xlane.xlu2 %2563 }
 0xd96   :  { %v2571_v61 = vsub.f32 %v6180_v63, %v2564_v31 }
 0xd9d   :  { %v2567_v0 = vpop.xlane.xlu0 %2566 }
 0xd9e   :  { %v2572_v49 = vsub.f32 %v6188_v9, %v2567_v0 }
 0xd9f   :  { %v3181_v23 = vpop.f32.mrf.mxu0 }
 0xda0   :  { %v6244_v8 = vadd.f32 %v3181_v23, %v5104_v15  ;;  %v2432_v23 = vmul.f32 1.442695, %v2428_v58 }
 0xda2   :  { %v3190_v50 = vsel %vm324_vm2, %v6244_v8, -inf  ;;  %4769 = vpow2.f32 %v2432_v23 }
 0xda3   :  { %3191 = vmax.xlane.f32.xlu0 %v3190_v50  ;;  %v2576_v50 = vmul.f32 1.442695, %v2572_v49 }
 0xda5   :  { %4771 = vpow2.f32 %v2576_v50  ;;  %v2711_v32 = vpop.xlane.xlu1 %2710 }
 0xda6   :  { %v2716_v58 = vsub.f32 %v6203_v54, %v2711_v32 }
 0xda7   :  { %v3183_v16 = vpop.f32.mrf.mxu0 }
 0xda8   :  { %v3037_v11 = vpop.f32.mrf.mxu1  ;;  %v6254_v22 = vadd.f32 %v3183_v16, %v5104_v15  ;;  %v2574_v16 = vmul.f32 1.442695, %v2571_v61  ;;  %v2720_v61 = vmul.f32 1.442695, %v2716_v58 }
 0xda9   :  { %v6249_v13 = vadd.f32 %v3037_v11, %v5104_v15  ;;  %v6299_v11 = vpop.eup %4767 }
 0xdaa   :  { %v3193_v4 = vsel %vm324_vm2, %v6254_v22, -inf  ;;  %4773 = vpow2.f32 %v2574_v16 }
 0xdab   :  { %v3046_v27 = vsel %vm324_vm2, %v6249_v13, -inf }
 0xdac   :  { %3047 = vmax.xlane.f32.xlu1 %v3046_v27 }
 0xdad   :  { %v2714_v49 = vpop.xlane.xlu1 %2713 }
 0xdb0   :  { %v3039_v47 = vpop.f32.mrf.mxu1 }
 0xdb1   :  { %v6257_v55 = vadd.f32 %v3039_v47, %v5104_v15  ;;  %v3186_v12 = vpop.f32.mrf.mxu0 }
 0xdb2   :  { %v6260_v30 = vadd.f32 %v3186_v12, %v5104_v15  ;;  %v2429_v12 = vsub.f32 %v6172_v19, %v2426_v6 }
 0xdb3   :  { %v3049_v48 = vsel %vm324_vm2, %v6257_v55, -inf }
 0xdb4   :  { %3050 = vmax.xlane.f32.xlu2 %v3049_v48  ;;  %3194 = vmax.xlane.f32.xlu1 %v3193_v4  ;;  %v3196_v52 = vsel %vm324_vm2, %v6260_v30, -inf  ;;  %v2436_v48 = vsel %vm324_vm2, %v6299_v11, 0.0 }
 0xdb5   :  { %3197 = vmax.xlane.f32.xlu0 %v3196_v52 }
 0xdb8   :  { %v3042_v28 = vpop.f32.mrf.mxu1 }
 0xdb9   :  { %v6269_v26 = vadd.f32 %v3042_v28, %v5104_v15  ;;  %v3188_v17 = vpop.f32.mrf.mxu0  ;;  %v2434_v28 = vmul.f32 1.442695, %v2429_v12 }
 0xdba   :  { %v2570_v17 = vpop.xlane.xlu2 %2569 }
 0xdbb   :  { %v3052_v38 = vsel %vm324_vm2, %v6269_v26, -inf  ;;  %4775 = vpow2.f32 %v2434_v28 }
 0xdbc   :  { %3053 = vmax.xlane.f32.xlu2 %v3052_v38 }
 0xdc0   :  { %v3044_v56 = vpop.f32.mrf.mxu1 }
 0xdc1   :  { %v3469_v45 = vpop.f32.mrf.mxu0 }
 0xdc2   :  { %v6274_v3 = vadd.f32 %v3469_v45, %v5104_v15  ;;  %v2573_v45 = vsub.f32 %v6200_v53, %v2570_v17  ;;  %v2852_v0 = vpop.xlane.xlu2 %2851 }
 0xdc3   :  { %v2859_v31 = vsub.f32 %v6222_v51, %v2852_v0 }
 0xdc4   :  { %v3478_v33 = vsel %vm324_vm2, %v6274_v3, -inf }
 0xdc5   :  { %3479 = vmax.xlane.f32.xlu1 %v3478_v33 }
 0xdc8   :  { %v3325_v57 = vpop.f32.mrf.mxu1 }
 0xdc9   :  { %v6281_v37 = vadd.f32 %v3325_v57, %v5104_v15  ;;  %v3471_v24 = vpop.f32.mrf.mxu0 }
 0xdca   :  { %v6287_v42 = vadd.f32 %v3471_v24, %v5104_v15  ;;  %v2578_v24 = vmul.f32 1.442695, %v2573_v45  ;;  %v2858_v6 = vpop.xlane.xlu2 %2857 }
 0xdcb   :  { %v3334_v25 = vsel %vm324_vm2, %v6281_v37, -inf  ;;  %v2861_v51 = vsub.f32 %v6237_v60, %v2858_v6 }
 0xdcc   :  { %3335 = vmax.xlane.f32.xlu0 %v3334_v25  ;;  %v3481_v18 = vsel %vm324_vm2, %v6287_v42, -inf  ;;  %4777 = vpow2.f32 %v2578_v24 }
 0xdd0   :  { %v3327_v35 = vpop.f32.mrf.mxu1 }
 0xdd1   :  { %v6291_v20 = vadd.f32 %v3327_v35, %v5104_v15  ;;  %v3474_v21 = vpop.f32.mrf.mxu0  ;;  %v2708_v35 = vpop.xlane.xlu0 %2707 }
 0xdd2   :  { %v6302_v27 = vadd.f32 %v3474_v21, %v5104_v15  ;;  %v2862_v21 = vmul.f32 1.442695, %v2859_v31 }
 0xdd3   :  { %v3337_v39 = vsel %vm324_vm2, %v6291_v20, -inf }
 0xdd4   :  { %3338 = vmax.xlane.f32.xlu2 %v3337_v39  ;;  %3482 = vmax.xlane.f32.xlu0 %v3481_v18  ;;  %v3484_v52 = vsel %vm324_vm2, %v6302_v27, -inf  ;;  %v2717_v39 = vsub.f32 %v6214_v36, %v2714_v49  ;;  %4779 = vpow2.f32 %v2862_v21  ;;  %v2866_v36 = vmul.f32 1.442695, %v2861_v51 }
 0xdd5   :  { %4781 = vpow2.f32 %v2720_v61 }
 0xdd6   :  { %v2722_v23 = vmul.f32 1.442695, %v2717_v39 }
 0xdd8   :  { %v3330_v9 = vpop.f32.mrf.mxu1  ;;  %4783 = vpow2.f32 %v2722_v23 }
 0xdd9   :  { %v6305_v63 = vadd.f32 %v3330_v9, %v5104_v15  ;;  %v3476_v47 = vpop.f32.mrf.mxu0  ;;  %v6314_v15 = vpop.eup %4769 }
 0xdda   :  { %v6316_v38 = vpop.eup %4771  ;;  %v2439_v43 = vsel %vm324_vm2, %v6314_v15, 0.0  ;;  %v2855_v18 = vpop.xlane.xlu0 %2854 }
 0xddb   :  { %v3340_v4 = vsel %vm324_vm2, %v6305_v63, -inf  ;;  %v6318_v56 = vpop.eup %4773  ;;  %v2583_v33 = vsel %vm324_vm2, %v6316_v38, 0.0  ;;  %v2860_v50 = vsub.f32 %v6230_v2, %v2855_v18  ;;  %v2715_v2 = vsub.f32 %v6197_v62, %v2708_v35 }
 0xddc   :  { %2437 = vadd.xlane.f32.xlu0 %v2436_v48  ;;  %3341 = vmax.xlane.f32.xlu1 %v3340_v4  ;;  %v2580_v57 = vsel %vm324_vm2, %v6318_v56, 0.0  ;;  %v6327_v10 = vpop.eup %4775 }
 0xddd   :  { %3485 = vmax.xlane.f32.xlu2 %v3484_v52  ;;  %v2442_v25 = vsel %vm324_vm2, %v6327_v10, 0.0  ;;  %v6331_v53 = vpop.eup %4777  ;;  %v2864_v9 = vmul.f32 1.442695, %v2860_v50 }
 0xdde   :  { %v2586_v1 = vsel %vm324_vm2, %v6331_v53, 0.0  ;;  %v6345_v16 = vpop.eup %4779 }
 0xddf   :  { %v2868_v54 = vsel %vm324_vm2, %v6345_v16, 0.0  ;;  %v6350_v12 = vpop.eup %4781  ;;  %4785 = vpow2.f32 %v2864_v9 }
 0xde0   :  { %v3332_v19 = vpop.f32.mrf.mxu1  ;;  %v2727_v52 = vsel %vm324_vm2, %v6350_v12, 0.0  ;;  %v6356_v28 = vpop.eup %4783  ;;  %4787 = vpow2.f32 %v2866_v36 }
 0xde1   :  { %v2718_v19 = vmul.f32 1.442695, %v2715_v2  ;;  %v2730_v45 = vsel %vm324_vm2, %v6356_v28, 0.0 }
 0xde4   :  { %2584 = vadd.xlane.f32.xlu0 %v2583_v33  ;;  %2440 = vadd.xlane.f32.xlu1 %v2439_v43 }
 0xde5   :  { %2581 = vadd.xlane.f32.xlu2 %v2580_v57  ;;  %v6361_v33 = vpop.eup %4785 }
 0xde6   :  { %v2871_v57 = vsel %vm324_vm2, %v6361_v33, 0.0  ;;  %v6366_v24 = vpop.eup %4787 }
 0xdec   :  { %2443 = vadd.xlane.f32.xlu1 %v2442_v25  ;;  %v2874_v25 = vsel %vm324_vm2, %v6366_v24, 0.0 }
 0xdf4   :  { %2587 = vadd.xlane.f32.xlu1 %v2586_v1 }
 0xdf8   :  { %3266 = vrot.lane.b32.xlu0 %v6114_v44, %s4899_s24 }
 0xdfd   :  { %3264 = vrot.lane.b32.xlu2 %v6091_v40, %s4899_s24 }
 0xe0d   :  { %3120 = vrot.lane.b32.xlu1 %v6091_v40, %s4898_s23 }
 0xe16   :  { %v3192_v47 = vpop.xlane.xlu0 %3191 }
 0xe17   :  { %v3199_v48 = vsub.f32 %v6244_v8, %v3192_v47 }
 0xe19   :  { %v3202_v60 = vmul.f32 1.442695, %v3199_v48 }
 0xe1b   :  { %4789 = vpow2.f32 %v3202_v60 }
 0xe1c   :  { %4791 = vpow2.f32 %v2718_v19 }
 0xe1f   :  { %v3048_v4 = vpop.xlane.xlu1 %3047 }
 0xe20   :  { %v3055_v17 = vsub.f32 %v6249_v13, %v3048_v4 }
 0xe21   :  { %v6370_v1 = vpop.eup %4789 }
 0xe22   :  { %2869 = vadd.xlane.f32.xlu0 %v2868_v54  ;;  %v3058_v62 = vmul.f32 1.442695, %v3055_v17  ;;  %v6372_v0 = vpop.eup %4791 }
 0xe23   :  { %v2724_v58 = vsel %vm324_vm2, %v6372_v0, 0.0 }
 0xe24   :  { %4793 = vpow2.f32 %v3058_v62 }
 0xe26   :  { %2728 = vadd.xlane.f32.xlu2 %v2727_v52 }
 0xe27   :  { %v3051_v8 = vpop.xlane.xlu2 %3050  ;;  %v3195_v32 = vpop.xlane.xlu1 %3194 }
 0xe28   :  { %v3056_v43 = vsub.f32 %v6257_v55, %v3051_v8  ;;  %v3200_v31 = vsub.f32 %v6254_v22, %v3195_v32  ;;  %v3208_v55 = vsel %vm324_vm2, %v6370_v1, 0.0  ;;  %v3198_v21 = vpop.xlane.xlu0 %3197 }
 0xe29   :  { %v3201_v54 = vsub.f32 %v6260_v30, %v3198_v21 }
 0xe2a   :  { %2731 = vadd.xlane.f32.xlu0 %v2730_v45  ;;  %v3060_v13 = vmul.f32 1.442695, %v3056_v43  ;;  %v6377_v35 = vpop.eup %4793  ;;  %v3204_v49 = vmul.f32 1.442695, %v3200_v31 }
 0xe2b   :  { %v3064_v61 = vsel %vm324_vm2, %v6377_v35, 0.0  ;;  %v3206_v52 = vmul.f32 1.442695, %v3201_v54 }
 0xe2c   :  { %4795 = vpow2.f32 %v3060_v13 }
 0xe2d   :  { %4797 = vpow2.f32 %v3204_v49 }
 0xe2e   :  { %2872 = vadd.xlane.f32.xlu2 %v2871_v57 }
 0xe2f   :  { %v3054_v39 = vpop.xlane.xlu2 %3053 }
 0xe30   :  { %v3057_v22 = vsub.f32 %v6269_v26, %v3054_v39 }
 0xe32   :  { %2875 = vadd.xlane.f32.xlu0 %v2874_v25  ;;  %v6383_v18 = vpop.eup %4795  ;;  %v3062_v9 = vmul.f32 1.442695, %v3057_v22 }
 0xe33   :  { %v3067_v23 = vsel %vm324_vm2, %v6383_v18, 0.0  ;;  %v6389_v47 = vpop.eup %4797 }
 0xe34   :  { %v3211_v48 = vsel %vm324_vm2, %v6389_v47, 0.0 }
 0xe36   :  { %3209 = vadd.xlane.f32.xlu2 %v3208_v55 }
 0xe37   :  { %2725 = vadd.xlane.f32.xlu1 %v2724_v58 }
 0xe38   :  { %v3480_v36 = vpop.xlane.xlu1 %3479 }
 0xe39   :  { %v3487_v30 = vsub.f32 %v6274_v3, %v3480_v36 }
 0xe3a   :  { %3065 = vadd.xlane.f32.xlu0 %v3064_v61 }
 0xe3b   :  { %v3490_v62 = vmul.f32 1.442695, %v3487_v30 }
 0xe3f   :  { %v3336_v50 = vpop.xlane.xlu0 %3335  ;;  %3068 = vadd.xlane.f32.xlu1 %v3067_v23 }
 0xe40   :  { %v3343_v6 = vsub.f32 %v6281_v37, %v3336_v50 }
 0xe42   :  { %v3346_v51 = vmul.f32 1.442695, %v3343_v6 }
 0xe44   :  { %4799 = vpow2.f32 %v3346_v51 }
 0xe45   :  { %4801 = vpow2.f32 %v3062_v9 }
 0xe47   :  { %v3483_v26 = vpop.xlane.xlu0 %3482  ;;  %3212 = vadd.xlane.f32.xlu1 %v3211_v48  ;;  %v3339_v2 = vpop.xlane.xlu2 %3338 }
 0xe48   :  { %v3488_v4 = vsub.f32 %v6287_v42, %v3483_v26 }
 0xe4a   :  { %v6395_v60 = vpop.eup %4799  ;;  %v3492_v37 = vmul.f32 1.442695, %v3488_v4 }
 0xe4b   :  { %v6397_v17 = vpop.eup %4801  ;;  %v3352_v19 = vsel %vm324_vm2, %v6395_v60, 0.0 }
 0xe4c   :  { %4803 = vpow2.f32 %v3492_v37  ;;  %3353 = vadd.xlane.f32.xlu0 %v3352_v19  ;;  %v3070_v42 = vsel %vm324_vm2, %v6397_v17, 0.0 }
 0xe4d   :  { %4805 = vpow2.f32 %v3206_v52 }
 0xe4e   :  { %3410 = vrot.lane.b32.xlu2 %v6114_v44, %s4904_s29 }
 0xe4f   :  { %v2438_v45 = vpop.xlane.xlu0 %2437  ;;  %v3342_v8 = vpop.xlane.xlu1 %3341  ;;  %3071 = vadd.xlane.f32.xlu1 %v3070_v42 }
 0xe50   :  { %4807 = vrcp.f32 %v2438_v45  ;;  %v6406_v43 = vpop.xlane.xlu2 %3485  ;;  %v3345_v25 = vsub.f32 %v6305_v63, %v3342_v8  ;;  %v3344_v63 = vsub.f32 %v6291_v20, %v3339_v2  ;;  %v2454_v23 = vand.u32 2147483647, %v2438_v45 }
 0xe51   :  { %4809 = vpow2.f32 %v3490_v62  ;;  %v2456_v50 = vand.u32 2147483648, %v2438_v45  ;;  %vm2450_vm14 = vweird.f32 %v2438_v45 }
 0xe52   :  { %v6408_v57 = vpop.eup %4803  ;;  %v3350_v39 = vmul.f32 1.442695, %v3345_v25  ;;  %v6432_v36 = vmul.f32 1.442695, %v3344_v63  ;;  %vm6434_vm13 = vcmp.eq.f32.partialorder %v2454_v23, 8.507059e+37 }
 0xe53   :  { %v6410_v13 = vpop.eup %4805  ;;  %v3499_v3 = vsel %vm324_vm2, %v6408_v57, 0.0  ;;  %v2457_v2 = vor.u32 1.1754944e-38, %v2456_v50 }
 0xe54   :  { %3500 = vadd.xlane.f32.xlu0 %v3499_v3  ;;  %v3214_v31 = vsel %vm324_vm2, %v6410_v13, 0.0 }
 0xe56   :  { %v6415_v32 = vpop.eup %4807 }
 0xe57   :  { %v2446_v55 = vmul.f32 %v6415_v32, %v2438_v45  ;;  %v2585_v58 = vpop.xlane.xlu0 %2584  ;;  %v6420_v21 = vpop.xlane.xlu1 %2440  ;;  %3215 = vadd.xlane.f32.xlu1 %v3214_v31  ;;  %vm2451_vm1 = vweird.f32 %v6415_v32 }
 0xe58   :  { %4811 = vrcp.f32 %v2585_v58  ;;  %v6422_v49 = vpop.xlane.xlu2 %2581  ;;  %v6425_v22 = vpop.eup %4809  ;;  %v2613_v9 = vand.u32 2147483647, %v2585_v58  ;;  %v2615_v20 = vand.u32 2147483648, %v2585_v58  ;;  %v2469_v52 = vand.u32 2147483647, %v6420_v21  ;;  %vm6458_vm8 = vmor %vm2450_vm14, %vm2451_vm1 }
 0xe59   :  { %v2447_v61 = vsub.f32 1.0, %v2446_v55  ;;  %4813 = vrcp.f32 %v6420_v21  ;;  %v3496_v51 = vsel %vm324_vm2, %v6425_v22, 0.0  ;;  %vm2609_vm3 = vweird.f32 %v2585_v58 }
 0xe5a   :  { %4815 = vrcp.f32 %v6422_v49  ;;  %vm6445_vm4 = vcmp.eq.f32.partialorder %v2613_v9, 8.507059e+37  ;;  %vm2465_vm5 = vweird.f32 %v6420_v21  ;;  %v2616_v25 = vor.u32 1.1754944e-38, %v2615_v20 }
 0xe5b   :  { %v2448_v6 = vmul.f32 %v6415_v32, %v2447_v61  ;;  %4817 = vpow2.f32 %v3350_v39  ;;  %v2471_v55 = vand.u32 2147483648, %v6420_v21  ;;  %v2598_v61 = vand.u32 2147483647, %v6422_v49 }
 0xe5c   :  { %vm6462_vm11 = vcmp.eq.f32.partialorder %v2469_v52, 8.507059e+37  ;;  %v2600_v20 = vand.u32 2147483648, %v6422_v49  ;;  %vm2594_vm14 = vweird.f32 %v6422_v49 }
 0xe5d   :  { %v2449_v30 = vadd.f32 %v6415_v32, %v2448_v6  ;;  %vm6472_vm0 = vcmp.eq.f32.partialorder %v2598_v61, 8.507059e+37 }
 0xe5e   :  { %v4812_v54 = vpop.eup %4811 }
 0xe5f   :  { %v4814_v26 = vpop.eup %4813  ;;  %v2605_v4 = vmul.f32 %v4812_v54, %v2585_v58  ;;  %v6440_v37 = vpop.xlane.xlu1 %2443  ;;  %3497 = vadd.xlane.f32.xlu1 %v3496_v51  ;;  %vm2610_vm10 = vweird.f32 %v4812_v54  ;;  %v2453_v9 = vsel %vm6458_vm8, %v6415_v32, %v2449_v30 }
 0xe60   :  { %v4816_v19 = vpop.eup %4815  ;;  %v2461_v42 = vmul.f32 %v4814_v26, %v6420_v21  ;;  %4819 = vrcp.f32 %v6440_v37  ;;  %vm2466_vm12 = vweird.f32 %v4814_v26  ;;  %vm2611_vm7 = vmor %vm2609_vm3, %vm2610_vm10  ;;  %v2458_v30 = vsel %vm6434_vm13, %v2457_v2, %v2453_v9 }
 0xe61   :  { %v2606_v8 = vsub.f32 1.0, %v2605_v4  ;;  %v2590_v3 = vmul.f32 %v4816_v19, %v6422_v49  ;;  %v6453_v39 = vpop.eup %4817  ;;  %vm2595_vm1 = vweird.f32 %v4816_v19  ;;  %vm2467_vm8 = vmor %vm2465_vm5, %vm2466_vm12  ;;  %v2459_v62 = vmul.f32 %v6299_v11, %v2458_v30 }
 0xe62   :  { %v2462_v31 = vsub.f32 1.0, %v2461_v42  ;;  %v3358_v32 = vsel %vm324_vm2, %v6453_v39, 0.0  ;;  %vm2596_vm3 = vmor %vm2594_vm14, %vm2595_vm1 }
 0xe63   :  { %v2607_v23 = vmul.f32 %v4812_v54, %v2606_v8  ;;  %v2591_v6 = vsub.f32 1.0, %v2590_v3  ;;  %v2472_v8 = vor.u32 1.1754944e-38, %v2471_v55  ;;  %v3265_v3 = vpop.permute.xlu2 %3264 }
 0xe64   :  { %v2463_v51 = vmul.f32 %v4814_v26, %v2462_v31 }
 0xe65   :  { %v2608_v45 = vadd.f32 %v4812_v54, %v2607_v23  ;;  %v2592_v4 = vmul.f32 %v4816_v19, %v2591_v6  ;;  %v2601_v6 = vor.u32 1.1754944e-38, %v2600_v20 }
 0xe66   :  { %v4820_v42 = vpop.eup %4819  ;;  %v2464_v52 = vadd.f32 %v4814_v26, %v2463_v51 }
 0xe67   :  { %v2612_v31 = vsel %vm2611_vm7, %v4812_v54, %v2608_v45  ;;  %v2593_v63 = vadd.f32 %v4816_v19, %v2592_v4  ;;  %v2476_v58 = vmul.f32 %v4820_v42, %v6440_v37  ;;  %v2588_v23 = vpop.xlane.xlu1 %2587  ;;  %3359 = vadd.xlane.f32.xlu1 %v3358_v32  ;;  %vm2481_vm7 = vweird.f32 %v4820_v42 }
 0xe68   :  { %v2617_v55 = vsel %vm6445_vm4, %v2616_v25, %v2612_v31  ;;  %v2468_v61 = vsel %vm2467_vm8, %v4814_v26, %v2464_v52  ;;  %4821 = vrcp.f32 %v2588_v23  ;;  %3554 = vrot.lane.b32.xlu0 %v6114_v44, %s4905_s30  ;;  %v2630_v4 = vand.u32 2147483648, %v2588_v23 }
 0xe69   :  { %v2618_v21 = vmul.f32 %v6316_v38, %v2617_v55  ;;  %v2473_v54 = vsel %vm6462_vm11, %v2472_v8, %v2468_v61  ;;  %v2597_v48 = vsel %vm2596_vm3, %v4816_v19, %v2593_v63  ;;  %v2477_v2 = vsub.f32 1.0, %v2476_v58 }
 0xe6a   :  { %v2474_v26 = vmul.f32 %v6314_v15, %v2473_v54  ;;  %v2602_v49 = vsel %vm6472_vm0, %v2601_v6, %v2597_v48  ;;  %v3267_v25 = vpop.permute.xlu0 %3266  ;;  %4823 = vpow2.f32 %v6432_v36  ;;  %v3132_v19 = vsel %vm410_vm9, %v6278_v34, 0 }
 0xe6b   :  { %v2603_v9 = vmul.f32 %v6318_v56, %v2602_v49  ;;  %v2478_v51 = vmul.f32 %v4820_v42, %v2477_v2  ;;  %v3276_v38 = vsel %vm410_vm9, %v3267_v25, 0  ;;  %v2486_v15 = vand.u32 2147483648, %v6440_v37 }
 0xe6c   :  { %v2490_v20 = vpack.c.bf16 %v2474_v26, %v2459_v62  ;;  %vm2480_vm0 = vweird.f32 %v6440_v37  ;;  %v2484_v56 = vand.u32 2147483647, %v6440_v37  ;;  %v2628_v30 = vand.u32 2147483647, %v2588_v23 }
 0xe6d   :  { %v2634_v44 = vpack.c.bf16 %v2618_v21, %v2603_v9  ;;  %v2479_v11 = vadd.f32 %v4820_v42, %v2478_v51  ;;  %vm2482_vm13 = vmor %vm2480_vm0, %vm2481_vm7  ;;  %v2487_v8 = vor.u32 1.1754944e-38, %v2486_v15  ;;  %vm2624_vm10 = vweird.f32 %v2588_v23 }
 0xe6e   :  { %v4822_v50 = vpop.eup %4821  ;;  %4377 = vmatmul.msk.bf16.vlgmr.msrb.gmra.mxu3 %vm324_vm2, %v2490_v20  ;;  %vm2485_vm5 = vcmp.eq.f32.partialorder %v2484_v56, 8.507059e+37  ;;  %v2631_v58 = vor.u32 1.1754944e-38, %v2630_v4  ;;  %vm2629_vm12 = vcmp.eq.f32.partialorder %v2628_v30, 8.507059e+37  ;;  %v3489_v48 = vsub.f32 %v6302_v27, %v6406_v43 }
 0xe6f   :  { %v2620_v45 = vmul.f32 %v4822_v50, %v2588_v23  ;;  %4381 = vmatmul.msk.bf16.vlgmr.msrb.gmra.mxu2 %vm324_vm2, %v2634_v44  ;;  %3140 = vmatpush.bf16.msrb.mxu3 %v3132_v19  ;;  %v2483_v52 = vsel %vm2482_vm13, %v4820_v42, %v2479_v11  ;;  %vm2625_vm4 = vweird.f32 %v4822_v50 }
 0xe70   :  { %3284 = vmatpush.bf16.msrb.mxu2 %v3276_v38  ;;  %v6507_v34 = vpop.eup %4823  ;;  %v2488_v63 = vsel %vm2485_vm5, %v2487_v8, %v2483_v52  ;;  %vm2626_vm11 = vmor %vm2624_vm10, %vm2625_vm4  ;;  %v3494_v2 = vmul.f32 1.442695, %v3489_v48 }
 0xe71   :  { %v2621_v36 = vsub.f32 1.0, %v2620_v45  ;;  %v3355_v37 = vsel %vm324_vm2, %v6507_v34, 0.0  ;;  %v2489_v55 = vmul.f32 %v6327_v10, %v2488_v63 }
 0xe72   :  { %4825 = vpow2.f32 %v3494_v2 }
 0xe73   :  { %v2622_v32 = vmul.f32 %v4822_v50, %v2621_v36  ;;  %v2491_v54 = vpack.c.bf16 %v2489_v55, %v2489_v55 }
 0xe74   :  { %3285 = vmatpush.bf16.msrb.mxu2 %v3265_v3 }
 0xe75   :  { %v2623_v31 = vadd.f32 %v4822_v50, %v2622_v32 }
 0xe77   :  { %3356 = vadd.xlane.f32.xlu2 %v3355_v37  ;;  %v2627_v42 = vsel %vm2626_vm11, %v4822_v50, %v2623_v31 }
 0xe78   :  { %v2632_v61 = vsel %vm2629_vm12, %v2631_v58, %v2627_v42  ;;  %v6519_v10 = vpop.eup %4825 }
 0xe79   :  { %v2633_v6 = vmul.f32 %v6331_v53, %v2632_v61  ;;  %v3502_v53 = vsel %vm324_vm2, %v6519_v10, 0.0 }
 0xe7b   :  { %v2635_v21 = vpack.c.bf16 %v2633_v6, %v2633_v6 }
 0xe7e   :  { %4378 = vmatmul.msk.bf16.gmra.mxu3 %vm324_vm2, %v2491_v54 }
 0xe7f   :  { %4382 = vmatmul.msk.bf16.gmra.mxu2 %vm324_vm2, %v2635_v21  ;;  %v3121_v23 = vpop.permute.xlu1 %3120 }
 0xe80   :  { %3141 = vmatpush.bf16.msrb.mxu3 %v3121_v23  ;;  %3552 = vrot.lane.b32.xlu1 %v6091_v40, %s4905_s30 }
 0xe8f   :  { %3408 = vrot.lane.b32.xlu2 %v6091_v40, %s4904_s29 }
 0xe92   :  { %3503 = vadd.xlane.f32.xlu0 %v3502_v53 }
 0xe95   :  { %v2870_v62 = vpop.xlane.xlu0 %2869 }
 0xe96   :  { %4827 = vrcp.f32 %v2870_v62  ;;  %v2888_v19 = vand.u32 2147483648, %v2870_v62  ;;  %vm2882_vm1 = vweird.f32 %v2870_v62  ;;  %v2886_v15 = vand.u32 2147483647, %v2870_v62 }
 0xe98   :  { %v2889_v8 = vor.u32 1.1754944e-38, %v2888_v19  ;;  %vm2887_vm7 = vcmp.eq.f32.partialorder %v2886_v15, 8.507059e+37 }
 0xe99   :  { %v6525_v26 = vpop.xlane.xlu2 %2728 }
 0xe9a   :  { %4829 = vrcp.f32 %v6525_v26  ;;  %vm2753_vm10 = vweird.f32 %v6525_v26 }
 0xe9c   :  { %v4828_v27 = vpop.eup %4827 }
 0xe9d   :  { %v2878_v43 = vmul.f32 %v4828_v27, %v2870_v62  ;;  %v6528_v49 = vpop.xlane.xlu0 %2731  ;;  %vm2883_vm14 = vweird.f32 %v4828_v27 }
 0xe9e   :  { %vm2884_vm8 = vmor %vm2882_vm1, %vm2883_vm14 }
 0xe9f   :  { %v2879_v25 = vsub.f32 1.0, %v2878_v43 }
 0xea0   :  { %v6530_v51 = vpop.eup %4829 }
 0xea1   :  { %v2873_v9 = vpop.xlane.xlu2 %2872  ;;  %v2880_v40 = vmul.f32 %v4828_v27, %v2879_v25  ;;  %v2749_v44 = vmul.f32 %v6530_v51, %v6525_v26  ;;  %vm2754_vm5 = vweird.f32 %v6530_v51  ;;  %v2759_v25 = vand.u32 2147483648, %v6525_v26 }
 0xea2   :  { %4831 = vrcp.f32 %v2873_v9  ;;  %v2903_v3 = vand.u32 2147483648, %v2873_v9  ;;  %v2901_v30 = vand.u32 2147483647, %v2873_v9  ;;  %vm2897_vm0 = vweird.f32 %v2873_v9  ;;  %vm6561_vm11 = vmor %vm2753_vm10, %vm2754_vm5 }
 0xea3   :  { %v2881_v50 = vadd.f32 %v4828_v27, %v2880_v40  ;;  %v2750_v45 = vsub.f32 1.0, %v2749_v44  ;;  %vm2768_vm10 = vweird.f32 %v6528_v49 }
 0xea4   :  { %v2904_v55 = vor.u32 1.1754944e-38, %v2903_v3  ;;  %vm2902_vm4 = vcmp.eq.f32.partialorder %v2901_v30, 8.507059e+37 }
 0xea5   :  { %v6532_v20 = vpop.xlane.xlu0 %2875  ;;  %v2885_v52 = vsel %vm2884_vm8, %v4828_v27, %v2881_v50  ;;  %v2751_v63 = vmul.f32 %v6530_v51, %v2750_v45  ;;  %v2760_v45 = vor.u32 1.1754944e-38, %v2759_v25 }
 0xea6   :  { %4833 = vrcp.f32 %v6532_v20  ;;  %v2890_v58 = vsel %vm2887_vm7, %v2889_v8, %v2885_v52  ;;  %v2916_v50 = vand.u32 2147483647, %v6532_v20  ;;  %vm2912_vm1 = vweird.f32 %v6532_v20 }
 0xea7   :  { %4835 = vrcp.f32 %v6528_v49  ;;  %v2891_v23 = vmul.f32 %v6345_v16, %v2890_v58  ;;  %v2752_v48 = vadd.f32 %v6530_v51, %v2751_v63  ;;  %v2774_v16 = vand.u32 2147483648, %v6528_v49 }
 0xea8   :  { %v4832_v38 = vpop.eup %4831 }
 0xea9   :  { %v2893_v11 = vmul.f32 %v4832_v38, %v2873_v9  ;;  %vm2898_vm3 = vweird.f32 %v4832_v38  ;;  %v6546_v61 = vpop.xlane.xlu2 %3209  ;;  %v2757_v9 = vand.u32 2147483647, %v6525_v26 }
 0xeaa   :  { %v6537_v56 = vpop.xlane.xlu1 %2725  ;;  %vm2899_vm13 = vmor %vm2897_vm0, %vm2898_vm3  ;;  %vm6586_vm0 = vcmp.eq.f32.partialorder %v2916_v50, 8.507059e+37 }
 0xeab   :  { %v2894_v36 = vsub.f32 1.0, %v2893_v11  ;;  %4837 = vrcp.f32 %v6537_v56  ;;  %v2744_v19 = vand.u32 2147483648, %v6537_v56  ;;  %v2742_v26 = vand.u32 2147483647, %v6537_v56 }
 0xeac   :  { %v6540_v4 = vpop.eup %4833  ;;  %4839 = vrcp.f32 %v6546_v61  ;;  %vm2758_vm8 = vcmp.eq.f32.partialorder %v2757_v9, 8.507059e+37  ;;  %vm2738_vm7 = vweird.f32 %v6537_v56 }
 0xead   :  { %v2895_v32 = vmul.f32 %v4832_v38, %v2894_v36  ;;  %v2908_v31 = vmul.f32 %v6540_v4, %v6532_v20  ;;  %v6548_v6 = vpop.eup %4835  ;;  %vm2913_vm12 = vweird.f32 %v6540_v4  ;;  %v2918_v36 = vand.u32 2147483648, %v6532_v20  ;;  %v6590_v63 = vpop.xlane.xlu0 %3065 }
 0xeae   :  { %v2764_v40 = vmul.f32 %v6548_v6, %v6528_v49  ;;  %vm6581_vm3 = vmor %vm2912_vm1, %vm2913_vm12  ;;  %vm2769_vm5 = vweird.f32 %v6548_v6 }
 0xeaf   :  { %v2896_v37 = vadd.f32 %v4832_v38, %v2895_v32  ;;  %v2909_v42 = vsub.f32 1.0, %v2908_v31  ;;  %v2745_v31 = vor.u32 1.1754944e-38, %v2744_v19 }
 0xeb0   :  { %v2765_v52 = vsub.f32 1.0, %v2764_v40 }
 0xeb1   :  { %v2900_v21 = vsel %vm2899_vm13, %v4832_v38, %v2896_v37  ;;  %v4838_v54 = vpop.eup %4837  ;;  %v2910_v27 = vmul.f32 %v6540_v4, %v2909_v42  ;;  %v2756_v38 = vsel %vm6561_vm11, %v6530_v51, %v2752_v48  ;;  %v3411_v48 = vpop.permute.xlu2 %3410  ;;  %vm6622_vm11 = vmor %vm2768_vm10, %vm2769_vm5 }
 0xeb2   :  { %v2905_v2 = vsel %vm2902_vm4, %v2904_v55, %v2900_v21  ;;  %v6553_v53 = vpop.xlane.xlu1 %3068  ;;  %v2734_v43 = vmul.f32 %v4838_v54, %v6537_v56  ;;  %vm2739_vm14 = vweird.f32 %v4838_v54  ;;  %v6579_v51 = vpop.eup %4839  ;;  %v2761_v32 = vsel %vm2758_vm8, %v2760_v45, %v2756_v38 }
 0xeb3   :  { %v2906_v62 = vmul.f32 %v6361_v33, %v2905_v2  ;;  %v2911_v11 = vadd.f32 %v6540_v4, %v2910_v27  ;;  %vm2740_vm13 = vmor %vm2738_vm7, %vm2739_vm14  ;;  %vm2743_vm4 = vcmp.eq.f32.partialorder %v2742_v26, 8.507059e+37  ;;  %4841 = vrcp.f32 %v6553_v53 }
 0xeb4   :  { %v2735_v44 = vsub.f32 1.0, %v2734_v43  ;;  %v2919_v56 = vor.u32 1.1754944e-38, %v2918_v36  ;;  %v3218_v42 = vmul.f32 %v6579_v51, %v6546_v61  ;;  %v2762_v21 = vmul.f32 %v6350_v12, %v2761_v32 }
 0xeb5   :  { %v2922_v33 = vpack.c.bf16 %v2906_v62, %v2891_v23  ;;  %v2915_v37 = vsel %vm6581_vm3, %v6540_v4, %v2911_v11  ;;  %v2766_v23 = vmul.f32 %v6548_v6, %v2765_v52  ;;  %v3420_v12 = vsel %vm410_vm9, %v3411_v48, 0 }
 0xeb6   :  { %v2736_v15 = vmul.f32 %v4838_v54, %v2735_v44  ;;  %v2920_v2 = vsel %vm6586_vm0, %v2919_v56, %v2915_v37  ;;  %v3219_v62 = vsub.f32 1.0, %v3218_v42  ;;  %v2775_v26 = vor.u32 1.1754944e-38, %v2774_v16 }
 0xeb7   :  { %4389 = vmatmul.msk.bf16.vlgmr.msra.gmra.mxu2 %vm324_vm2, %v2922_v33  ;;  %v2767_v43 = vadd.f32 %v6548_v6, %v2766_v23  ;;  %v2772_v33 = vand.u32 2147483647, %v6528_v49  ;;  %vm3223_vm1 = vweird.f32 %v6579_v51  ;;  %vm3222_vm3 = vweird.f32 %v6546_v61 }
 0xeb8   :  { %v2737_v3 = vadd.f32 %v4838_v54, %v2736_v15  ;;  %v3226_v56 = vand.u32 2147483647, %v6546_v61  ;;  %vm3224_vm0 = vmor %vm3222_vm3, %vm3223_vm1  ;;  %v3099_v16 = vand.u32 2147483648, %v6553_v53  ;;  %v3097_v38 = vand.u32 2147483647, %v6553_v53 }
 0xeb9   :  { %v6607_v27 = vpop.eup %4841  ;;  %v2771_v15 = vsel %vm6622_vm11, %v6548_v6, %v2767_v43  ;;  %vm2773_vm12 = vcmp.eq.f32.partialorder %v2772_v33, 8.507059e+37  ;;  %vm3093_vm11 = vweird.f32 %v6553_v53 }
 0xeba   :  { %v6592_v20 = vpop.xlane.xlu1 %3212  ;;  %v2741_v58 = vsel %vm2740_vm13, %v4838_v54, %v2737_v3  ;;  %v3089_v50 = vmul.f32 %v6607_v27, %v6553_v53  ;;  %v2776_v3 = vsel %vm2773_vm12, %v2775_v26, %v2771_v15  ;;  %vm3094_vm5 = vweird.f32 %v6607_v27 }
 0xebb   :  { %v2746_v55 = vsel %vm2743_vm4, %v2745_v31, %v2741_v58  ;;  %4843 = vrcp.f32 %v6592_v20  ;;  %v3243_v8 = vand.u32 2147483648, %v6592_v20  ;;  %vm3237_vm8 = vweird.f32 %v6592_v20 }
 0xebc   :  { %v2747_v54 = vmul.f32 %v6372_v0, %v2746_v55  ;;  %4845 = vrcp.f32 %v6590_v63  ;;  %v2921_v0 = vmul.f32 %v6366_v24, %v2920_v2  ;;  %v3220_v24 = vmul.f32 %v6579_v51, %v3219_v62 }
 0xebd   :  { %v3090_v32 = vsub.f32 1.0, %v3089_v50  ;;  %v3241_v30 = vand.u32 2147483647, %v6592_v20  ;;  %v3228_v31 = vand.u32 2147483648, %v6546_v61  ;;  %v2777_v55 = vmul.f32 %v6356_v28, %v2776_v3 }
 0xebe   :  { %v2778_v4 = vpack.c.bf16 %v2762_v21, %v2747_v54  ;;  %v2923_v11 = vpack.c.bf16 %v2921_v0, %v2921_v0  ;;  %v3221_v52 = vadd.f32 %v6579_v51, %v3220_v24  ;;  %v3244_v21 = vor.u32 1.1754944e-38, %v3243_v8 }
 0xebf   :  { %v6634_v36 = vpop.xlane.xlu0 %3353  ;;  %v3091_v23 = vmul.f32 %v6607_v27, %v3090_v32  ;;  %vm3242_vm13 = vcmp.eq.f32.partialorder %v3241_v30, 8.507059e+37  ;;  %v3229_v54 = vor.u32 1.1754944e-38, %v3228_v31  ;;  %vm3227_vm4 = vcmp.eq.f32.partialorder %v3226_v56, 8.507059e+37 }
 0xec0   :  { %4385 = vmatmul.msk.bf16.vlgmr.msra.gmra.mxu3 %vm324_vm2, %v2778_v4  ;;  %v2779_v2 = vpack.c.bf16 %v2777_v55, %v2777_v55  ;;  %v3084_v28 = vand.u32 2147483648, %v6590_v63  ;;  %vm3078_vm12 = vweird.f32 %v6590_v63  ;;  %v3082_v24 = vand.u32 2147483647, %v6590_v63 }
 0xec1   :  { %v4844_v25 = vpop.eup %4843  ;;  %3428 = vmatpush.bf16.msra.mxu3 %v3420_v12  ;;  %v3092_v43 = vadd.f32 %v6607_v27, %v3091_v23  ;;  %v3100_v15 = vor.u32 1.1754944e-38, %v3099_v16 }
 0xec2   :  { %v6615_v9 = vpop.xlane.xlu1 %3071  ;;  %v6617_v40 = vpop.eup %4845  ;;  %v3233_v44 = vmul.f32 %v4844_v25, %v6592_v20  ;;  %vm3238_vm14 = vweird.f32 %v4844_v25  ;;  %v3225_v20 = vsel %vm3224_vm0, %v6579_v51, %v3221_v52  ;;  %v3085_v26 = vor.u32 1.1754944e-38, %v3084_v28 }
 0xec3   :  { %v3074_v49 = vmul.f32 %v6617_v40, %v6590_v63  ;;  %vm3239_vm7 = vmor %vm3237_vm8, %vm3238_vm14  ;;  %4847 = vrcp.f32 %v6615_v9  ;;  %v3230_v4 = vsel %vm3227_vm4, %v3229_v54, %v3225_v20  ;;  %vm3079_vm10 = vweird.f32 %v6617_v40 }
 0xec4   :  { %v3234_v19 = vsub.f32 1.0, %v3233_v44  ;;  %v3231_v44 = vmul.f32 %v6370_v1, %v3230_v4  ;;  %vm3095_vm14 = vmor %vm3093_vm11, %vm3094_vm5  ;;  %vm3098_vm8 = vcmp.eq.f32.partialorder %v3097_v38, 8.507059e+37  ;;  %vm3083_vm3 = vcmp.eq.f32.partialorder %v3082_v24, 8.507059e+37 }
 0xec5   :  { %v3075_v58 = vsub.f32 1.0, %v3074_v49  ;;  %vm6679_vm1 = vmor %vm3078_vm12, %vm3079_vm10  ;;  %v3096_v1 = vsel %vm3095_vm14, %v6607_v27, %v3092_v43  ;;  %vm3108_vm5 = vweird.f32 %v6615_v9  ;;  %v3112_v28 = vand.u32 2147483647, %v6615_v9 }
 0xec6   :  { %v3235_v45 = vmul.f32 %v4844_v25, %v3234_v19 }
 0xec7   :  { %4390 = vmatmul.msk.bf16.gmra.mxu2 %vm324_vm2, %v2923_v11  ;;  %v3076_v48 = vmul.f32 %v6617_v40, %v3075_v58  ;;  %v6661_v12 = vpop.xlane.xlu0 %3500  ;;  %vm3113_vm11 = vcmp.eq.f32.partialorder %v3112_v28, 8.507059e+37 }
 0xec8   :  { %v3236_v6 = vadd.f32 %v4844_v25, %v3235_v45  ;;  %v3101_v45 = vsel %vm3098_vm8, %v3100_v15, %v3096_v1  ;;  %vm3525_vm8 = vweird.f32 %v6661_v12  ;;  %v3531_v1 = vand.u32 2147483648, %v6661_v12 }
 0xec9   :  { %v6655_v62 = vpop.eup %4847  ;;  %v3102_v31 = vmul.f32 %v6383_v18, %v3101_v45 }
 0xeca   :  { %v6644_v37 = vpop.xlane.xlu1 %3215  ;;  %v3240_v42 = vsel %vm3239_vm7, %v4844_v25, %v3236_v6  ;;  %v3077_v25 = vadd.f32 %v6617_v40, %v3076_v48  ;;  %v3104_v19 = vmul.f32 %v6655_v62, %v6615_v9 }
 0xecb   :  { %4849 = vrcp.f32 %v6644_v37  ;;  %v3245_v61 = vsel %vm3242_vm13, %v3244_v21, %v3240_v42  ;;  %v3258_v27 = vand.u32 2147483648, %v6644_v37  ;;  %v3256_v6 = vand.u32 2147483647, %v6644_v37 }
 0xecc   :  { %v3246_v51 = vmul.f32 %v6389_v47, %v3245_v61  ;;  %v3081_v63 = vsel %vm6679_vm1, %v6617_v40, %v3077_v25  ;;  %v3105_v3 = vsub.f32 1.0, %v3104_v19  ;;  %vm3252_vm0 = vweird.f32 %v6644_v37 }
 0xecd   :  { %v3086_v8 = vsel %vm3083_vm3, %v3085_v26, %v3081_v63  ;;  %v3259_v55 = vor.u32 1.1754944e-38, %v3258_v27  ;;  %vm3257_vm4 = vcmp.eq.f32.partialorder %v3256_v6, 8.507059e+37  ;;  %v3529_v19 = vand.u32 2147483647, %v6661_v12 }
 0xece   :  { %v3262_v53 = vpack.c.bf16 %v3246_v51, %v3231_v44  ;;  %v3087_v42 = vmul.f32 %v6377_v35, %v3086_v8  ;;  %v3106_v20 = vmul.f32 %v6655_v62, %v3105_v3 }
 0xed0   :  { %4386 = vmatmul.msk.bf16.gmra.mxu3 %vm324_vm2, %v2779_v2  ;;  %v3118_v23 = vpack.c.bf16 %v3102_v31, %v3087_v42  ;;  %v3107_v48 = vadd.f32 %v6655_v62, %v3106_v20  ;;  %v3114_v2 = vand.u32 2147483648, %v6615_v9  ;;  %v3372_v31 = vand.u32 2147483648, %v6634_v36 }
 0xed1   :  { %v4850_v0 = vpop.eup %4849 }
 0xed2   :  { %v6668_v33 = vpop.xlane.xlu1 %3497  ;;  %v3248_v47 = vmul.f32 %v4850_v0, %v6644_v37  ;;  %vm3253_vm7 = vweird.f32 %v4850_v0 }
 0xed3   :  { %4851 = vrcp.f32 %v6668_v33  ;;  %vm3254_vm13 = vmor %vm3252_vm0, %vm3253_vm7  ;;  %v3516_v9 = vand.u32 2147483648, %v6668_v33  ;;  %vm3510_vm1 = vweird.f32 %v6668_v33 }
 0xed4   :  { %4853 = vrcp.f32 %v6661_v12  ;;  %v3249_v11 = vsub.f32 1.0, %v3248_v47 }
 0xed5   :  { %4855 = vrcp.f32 %v6634_v36  ;;  %v3517_v15 = vor.u32 1.1754944e-38, %v3516_v9 }
 0xed6   :  { %v3250_v49 = vmul.f32 %v4850_v0, %v3249_v11 }
 0xed7   :  { %4401 = vmatmul.msk.bf16.vlgmr.msrb.gmra.mxu2 %vm324_vm2, %v3262_v53 }
 0xed8   :  { %v3251_v32 = vadd.f32 %v4850_v0, %v3250_v49  ;;  %v3532_v49 = vor.u32 1.1754944e-38, %v3531_v1 }
 0xed9   :  { %v6691_v52 = vpop.eup %4851 }
 0xeda   :  { %v6694_v30 = vpop.eup %4853  ;;  %v3555_v40 = vpop.permute.xlu0 %3554  ;;  %v3506_v58 = vmul.f32 %v6691_v52, %v6668_v33  ;;  %v3255_v21 = vsel %vm3254_vm13, %v4850_v0, %v3251_v32  ;;  %vm3511_vm12 = vweird.f32 %v6691_v52  ;;  %vm3530_vm13 = vcmp.eq.f32.partialorder %v3529_v19, 8.507059e+37 }
 0xedb   :  { %v3564_v56 = vsel %vm410_vm9, %v3555_v40, 0  ;;  %v3521_v37 = vmul.f32 %v6694_v30, %v6661_v12  ;;  %v3260_v18 = vsel %vm3257_vm4, %v3259_v55, %v3255_v21  ;;  %vm3109_vm9 = vweird.f32 %v6655_v62  ;;  %v6711_v4 = vpop.eup %4855  ;;  %v6728_v24 = vpop.xlane.xlu1 %3359  ;;  %vm3512_vm3 = vmor %vm3510_vm1, %vm3511_vm12 }
 0xedc   :  { %3572 = vmatpush.bf16.msra.mxu2 %v3564_v56  ;;  %v3507_v54 = vsub.f32 1.0, %v3506_v58  ;;  %v3261_v35 = vmul.f32 %v6410_v13, %v3260_v18  ;;  %vm3110_vm10 = vmor %vm3108_vm5, %vm3109_vm9  ;;  %v3362_v16 = vmul.f32 %v6711_v4, %v6634_v36  ;;  %v3115_v13 = vor.u32 1.1754944e-38, %v3114_v2 }
 0xedd   :  { %v3522_v61 = vsub.f32 1.0, %v3521_v37  ;;  %v3111_v25 = vsel %vm3110_vm10, %v6655_v62, %v3107_v48  ;;  %vm3526_vm14 = vweird.f32 %v6694_v30  ;;  %v3514_v62 = vand.u32 2147483647, %v6668_v33 }
 0xede   :  { %v3508_v43 = vmul.f32 %v6691_v52, %v3507_v54  ;;  %v3263_v0 = vpack.c.bf16 %v3261_v35, %v3261_v35  ;;  %v3116_v38 = vsel %vm3113_vm11, %v3115_v13, %v3111_v25  ;;  %v3363_v50 = vsub.f32 1.0, %v3362_v16  ;;  %vm3527_vm7 = vmor %vm3525_vm8, %vm3526_vm14 }
 0xedf   :  { %v3523_v51 = vmul.f32 %v6694_v30, %v3522_v61  ;;  %v3117_v63 = vmul.f32 %v6397_v17, %v3116_v38  ;;  %vm3515_vm0 = vcmp.eq.f32.partialorder %v3514_v62, 8.507059e+37  ;;  %vm3367_vm4 = vweird.f32 %v6711_v4 }
 0xee0   :  { %4397 = vmatmul.msk.bf16.vlgmr.msrb.gmra.mxu3 %vm324_vm2, %v3118_v23  ;;  %v3509_v44 = vadd.f32 %v6691_v52, %v3508_v43  ;;  %v3364_v26 = vmul.f32 %v6711_v4, %v3363_v50  ;;  %vm3366_vm9 = vweird.f32 %v6634_v36  ;;  %v3373_v54 = vor.u32 1.1754944e-38, %v3372_v31 }
 0xee1   :  { %v3524_v47 = vadd.f32 %v6694_v30, %v3523_v51  ;;  %v3119_v27 = vpack.c.bf16 %v3117_v63, %v3117_v63  ;;  %vm3368_vm5 = vmor %vm3366_vm9, %vm3367_vm4  ;;  %v3402_v9 = vand.u32 2147483648, %v6728_v24 }
 0xee2   :  { %v3513_v11 = vsel %vm3512_vm3, %v6691_v52, %v3509_v44  ;;  %v3365_v32 = vadd.f32 %v6711_v4, %v3364_v26  ;;  %vm3396_vm3 = vweird.f32 %v6728_v24 }
 0xee3   :  { %v3528_v33 = vsel %vm3527_vm7, %v6694_v30, %v3524_v47  ;;  %v3518_v45 = vsel %vm3515_vm0, %v3517_v15, %v3513_v11  ;;  %v3400_v47 = vand.u32 2147483647, %v6728_v24  ;;  %v3403_v62 = vor.u32 1.1754944e-38, %v3402_v9 }
 0xee4   :  { %v3533_v8 = vsel %vm3530_vm13, %v3532_v49, %v3528_v33  ;;  %v3519_v52 = vmul.f32 %v6425_v22, %v3518_v45  ;;  %v3370_v22 = vand.u32 2147483647, %v6634_v36  ;;  %v3369_v37 = vsel %vm3368_vm5, %v6711_v4, %v3365_v32 }
 0xee5   :  { %v3534_v58 = vmul.f32 %v6408_v57, %v3533_v8  ;;  %vm3401_vm0 = vcmp.eq.f32.partialorder %v3400_v47, 8.507059e+37 }
 0xee6   :  { %vm3371_vm11 = vcmp.eq.f32.partialorder %v3370_v22, 8.507059e+37 }
 0xee7   :  { %4402 = vmatmul.msk.bf16.gmra.mxu2 %vm324_vm2, %v3263_v0  ;;  %v3550_v55 = vpack.c.bf16 %v3534_v58, %v3519_v52  ;;  %v3374_v48 = vsel %vm3371_vm11, %v3373_v54, %v3369_v37 }
 0xee8   :  { %v3375_v51 = vmul.f32 %v6395_v60, %v3374_v48 }
 0xeea   :  { %v3357_v53 = vpop.xlane.xlu2 %3356 }
 0xeeb   :  { %4857 = vrcp.f32 %v3357_v53  ;;  %v3387_v20 = vand.u32 2147483648, %v3357_v53  ;;  %v3385_v23 = vand.u32 2147483647, %v3357_v53  ;;  %vm3381_vm12 = vweird.f32 %v3357_v53 }
 0xeec   :  { %4859 = vrcp.f32 %v6728_v24 }
 0xeed   :  { %v3388_v61 = vor.u32 1.1754944e-38, %v3387_v20  ;;  %vm3386_vm1 = vcmp.eq.f32.partialorder %v3385_v23, 8.507059e+37 }
 0xef0   :  { %4398 = vmatmul.msk.bf16.gmra.mxu3 %vm324_vm2, %v3119_v27 }
 0xef1   :  { %v4858_v12 = vpop.eup %4857  ;;  %v6739_v3 = vpop.f32.mrf.mxu3 }
 0xef2   :  { %v4860_v17 = vpop.eup %4859  ;;  %v3377_v6 = vmul.f32 %v4858_v12, %v3357_v53  ;;  %v2659_v30 = vpop.f32.mrf.mxu2  ;;  %vm3382_vm10 = vweird.f32 %v4858_v12 }
 0xef3   :  { %v3409_v40 = vpop.permute.xlu2 %3408  ;;  %v3553_v56 = vpop.permute.xlu1 %3552  ;;  %v3392_v21 = vmul.f32 %v4860_v17, %v6728_v24  ;;  %vm3383_vm14 = vmor %vm3381_vm12, %vm3382_vm10  ;;  %vm3397_vm8 = vweird.f32 %v4860_v17  ;;  %vm7098_vm10 = vcmask 261120  }
 0xef4   :  { %3429 = vmatpush.bf16.msra.mxu3 %v3409_v40  ;;  %v3378_v42 = vsub.f32 1.0, %v3377_v6  ;;  %3573 = vmatpush.bf16.msra.mxu2 %v3553_v56  ;;  %vm3398_vm7 = vmor %vm3396_vm3, %vm3397_vm8 }
 0xef5   :  { %v3393_v36 = vsub.f32 1.0, %v3392_v21  ;;  %vm7099_vm11 = vmmov %vm7098_vm10 }
 0xef6   :  { %v3379_v18 = vmul.f32 %v4858_v12, %v3378_v42  ;;  %vm7100_vm12 = vmmov %vm7098_vm10 }
 0xef7   :  { %4409 = vmatmul.msk.bf16.vlgmr.msra.gmra.mxu2 %vm324_vm2, %v3550_v55  ;;  %v3394_v25 = vmul.f32 %v4860_v17, %v3393_v36 }
 0xef8   :  { %v3380_v57 = vadd.f32 %v4858_v12, %v3379_v18 }
 0xef9   :  { %v6751_v35 = vpop.f32.mrf.mxu3  ;;  %v3395_v13 = vadd.f32 %v4860_v17, %v3394_v25  ;;  %v4493_v25 = vld [vmem:[%s7056_s5 + $0x10] sm:$0xff] }
 0xefa   :  { %v3384_v2 = vsel %vm3383_vm14, %v4858_v12, %v3380_v57  ;;  %v2661_v28 = vpop.f32.mrf.mxu2 }
 0xefb   :  { %v3389_v43 = vsel %vm3386_vm1, %v3388_v61, %v3384_v2  ;;  %v4564_v4 = vpack.i.bf16 %v2661_v28, %v2659_v30 }
 0xefc   :  { %v3390_v0 = vmul.f32 %v6507_v34, %v3389_v43  ;;  %v3399_v34 = vsel %vm3398_vm7, %v4860_v17, %v3395_v13 }
 0xefd   :  { %4565 = vrot.lane.b32.xlu2 %v4564_v4, %s4906_s12  ;;  %v3404_v50 = vsel %vm3401_vm0, %v3403_v62, %v3399_v34  ;;  %v4494_v4 = vld [vmem:[%s7056_s5 + $0x18] sm:$0xff] }
 0xefe   :  { %v3406_v16 = vpack.c.bf16 %v3390_v0, %v3375_v51  ;;  %v3405_v19 = vmul.f32 %v6453_v39, %v3404_v50  ;;  %3664 = vmatpush.bf16.msrb.mxu1 %v4494_v4 }
 0xf00   :  { %4405 = vmatmul.msk.bf16.vlgmr.msra.gmra.mxu3 %vm324_vm2, %v3406_v16  ;;  %v3407_v33 = vpack.c.bf16 %v3405_v19, %v3405_v19 }
 0xf01   :  { %v6756_v44 = vpop.f32.mrf.mxu3 }
 0xf02   :  { %v2664_v38 = vpop.f32.mrf.mxu2  ;;  %3665 = vmatpush.bf16.msrb.mxu1 %v4493_v25 }
 0xf05   :  { %v3504_v60 = vpop.xlane.xlu0 %3503 }
 0xf06   :  { %4861 = vrcp.f32 %v3504_v60  ;;  %v3546_v26 = vand.u32 2147483648, %v3504_v60  ;;  %v3544_v45 = vand.u32 2147483647, %v3504_v60  ;;  %vm3540_vm4 = vweird.f32 %v3504_v60 }
 0xf08   :  { %v3547_v27 = vor.u32 1.1754944e-38, %v3546_v26  ;;  %vm3545_vm5 = vcmp.eq.f32.partialorder %v3544_v45, 8.507059e+37 }
 0xf09   :  { %v2522_v1 = vpop.f32.mrf.mxu3 }
 0xf0a   :  { %v2666_v53 = vpop.f32.mrf.mxu2 }
 0xf0c   :  { %v4862_v11 = vpop.eup %4861 }
 0xf0d   :  { %v3536_v63 = vmul.f32 %v4862_v11, %v3504_v60  ;;  %vm3541_vm13 = vweird.f32 %v4862_v11 }
 0xf0e   :  { %vm3542_vm9 = vmor %vm3540_vm4, %vm3541_vm13 }
 0xf0f   :  { %v3537_v15 = vsub.f32 1.0, %v3536_v63 }
 0xf10   :  { %4406 = vmatmul.msk.bf16.gmra.mxu3 %vm324_vm2, %v3407_v33 }
 0xf11   :  { %v3538_v49 = vmul.f32 %v4862_v11, %v3537_v15 }
 0xf13   :  { %v3539_v24 = vadd.f32 %v4862_v11, %v3538_v49 }
 0xf15   :  { %v3543_v8 = vsel %vm3542_vm9, %v4862_v11, %v3539_v24 }
 0xf16   :  { %v3548_v12 = vsel %vm3545_vm5, %v3547_v27, %v3543_v8 }
 0xf17   :  { %v3549_v52 = vmul.f32 %v6519_v10, %v3548_v12 }
 0xf19   :  { %v3551_v39 = vpack.c.bf16 %v3549_v52, %v3549_v52 }
 0xf1b   :  { %4410 = vmatmul.msk.bf16.gmra.mxu2 %vm324_vm2, %v3551_v39 }
 0xf3a   :  { %v2947_v17 = vpop.f32.mrf.mxu2 }
 0xf42   :  { %v2949_v32 = vpop.f32.mrf.mxu2 }
 0xf43   :  { %v2803_v6 = vpop.f32.mrf.mxu3  ;;  %v4574_v22 = vpack.i.bf16 %v2949_v32, %v2947_v17 }
 0xf4a   :  { %v2952_v30 = vpop.f32.mrf.mxu2 }
 0xf4b   :  { %v2805_v40 = vpop.f32.mrf.mxu3 }
 0xf4c   :  { %v4569_v31 = vpack.i.bf16 %v2805_v40, %v2803_v6 }
 0xf4e   :  { %4570 = vrot.lane.b32.xlu2 %v4569_v31, %s4907_s13 }
 0xf52   :  { %v2954_v58 = vpop.f32.mrf.mxu2 }
 0xf53   :  { %v2808_v56 = vpop.f32.mrf.mxu3 }
 0xf56   :  { %4575 = vrot.lane.b32.xlu2 %v4574_v22, %s7097_s4 }
 0xf57   :  { %v4566_v47 = vpop.permute.xlu2 %4565 }
 0xf58   :  { %v4568_v62 = vunpack.i.h.bf16 %v4566_v47  ;;  %v4567_v50 = vunpack.i.l.bf16 %v4566_v47 }
 0xf5a   :  { %v3287_v42 = vpop.f32.mrf.mxu2  ;;  %v2993_v11 = vsel %vm293_vm15, %v6751_v35, %v4568_v62  ;;  %v2992_v63 = vsel %vm293_vm15, %v6739_v3, %v4567_v50 }
 0xf5b   :  { %v4579_v55 = vpack.i.bf16 %v3287_v42, %v2664_v38  ;;  %v2810_v21 = vpop.f32.mrf.mxu3 }
 0xf5d   :  { %4580 = vrot.lane.b32.xlu1 %v4579_v55, %s4906_s12 }
 0xf62   :  { %v3289_v10 = vpop.f32.mrf.mxu2 }
 0xf63   :  { %v3143_v20 = vpop.f32.mrf.mxu3 }
 0xf6a   :  { %v3292_v37 = vpop.f32.mrf.mxu2 }
 0xf6b   :  { %v4594_v18 = vpack.i.bf16 %v3292_v37, %v3289_v10  ;;  %v6769_v23 = vpop.f32.mrf.mxu3 }
 0xf6d   :  { %4595 = vrot.lane.b32.xlu0 %v4594_v18, %s4906_s12 }
 0xf72   :  { %v3294_v54 = vpop.f32.mrf.mxu2 }
 0xf73   :  { %v6772_v57 = vpop.f32.mrf.mxu3 }
 0xf7a   :  { %v3575_v48 = vpop.f32.mrf.mxu2 }
 0xf7b   :  { %v4589_v36 = vpack.i.bf16 %v3575_v48, %v2952_v30  ;;  %v3150_v61 = vpop.f32.mrf.mxu3 }
 0xf7d   :  { %4590 = vrot.lane.b32.xlu1 %v4589_v36, %s7097_s4 }
 0xf82   :  { %v3577_v16 = vpop.f32.mrf.mxu2 }
 0xf83   :  { %v3431_v2 = vpop.f32.mrf.mxu3 }
 0xf84   :  { %v4584_v28 = vpack.i.bf16 %v3431_v2, %v2808_v56 }
 0xf86   :  { %4585 = vrot.lane.b32.xlu2 %v4584_v28, %s4907_s13 }
 0xf8b   :  { %v3433_v43 = vpop.f32.mrf.mxu3 }
 0xf93   :  { %v3436_v51 = vpop.f32.mrf.mxu3 }
 0xf94   :  { %v4599_v0 = vpack.i.bf16 %v3436_v51, %v3433_v43 }
 0xf96   :  { %4600 = vrot.lane.b32.xlu2 %v4599_v0, %s4907_s13 }
 0xf9b   :  { %v3438_v13 = vpop.f32.mrf.mxu3 }
 0xf9e   :  { %v3580_v9 = vpop.f32.mrf.mxu2 }
 0xf9f   :  { %v4604_v38 = vpack.i.bf16 %v3580_v9, %v3577_v16 }
 0xfa1   :  { %4605 = vrot.lane.b32.xlu1 %v4604_v38, %s7097_s4 }
 0xfa6   :  { %v3582_v60 = vpop.f32.mrf.mxu2 }
 0xfa8   :  { %v4571_v34 = vpop.permute.xlu2 %4570 }
 0xfa9   :  { %v4573_v1 = vunpack.i.h.bf16 %v4571_v34  ;;  %v4572_v53 = vunpack.i.l.bf16 %v4571_v34 }
 0xfab   :  { %v2995_v26 = vsel %vm903_vm6, %v2992_v63, %v4572_v53  ;;  %v2996_v49 = vsel %vm903_vm6, %v2993_v11, %v4573_v1 }
 0xfb0   :  { %v4576_v19 = vpop.permute.xlu2 %4575 }
 0xfb1   :  { %v4578_v15 = vunpack.i.h.bf16 %v4576_v19  ;;  %v4577_v33 = vunpack.i.l.bf16 %v4576_v19 }
 0xfb3   :  { %v2998_v45 = vsel %vm324_vm2, %v2995_v26, %v4577_v33  ;;  %v2999_v24 = vsel %vm324_vm2, %v2996_v49, %v4578_v15 }
 0xfb4   :  { %v3629_v27 = vpack.c.bf16 %v2999_v24, %v2998_v45 }
 0xfb6   :  { %4423 = vmatmul.msk.bf16.vlgmr.msrb.gmra.mxu1 %vm7098_vm10, %v3629_v27 }
 0xfcf   :  { %v4581_v8 = vpop.permute.xlu1 %4580 }
 0xfd0   :  { %v4583_v52 = vunpack.i.h.bf16 %v4581_v8  ;;  %v4582_v35 = vunpack.i.l.bf16 %v4581_v8 }
 0xfd2   :  { %v3620_v32 = vsel %vm293_vm15, %v3143_v20, %v4583_v52  ;;  %v2994_v6 = vsel %vm293_vm15, %v6756_v44, %v4582_v35 }
 0xfdf   :  { %v4596_v55 = vpop.permute.xlu0 %4595 }
 0xfe0   :  { %v4586_v12 = vpop.permute.xlu2 %4585  ;;  %v4598_v10 = vunpack.i.h.bf16 %v4596_v55  ;;  %v4597_v20 = vunpack.i.l.bf16 %v4596_v55 }
 0xfe1   :  { %v4588_v39 = vunpack.i.h.bf16 %v4586_v12  ;;  %v4587_v17 = vunpack.i.l.bf16 %v4586_v12 }
 0xfe2   :  { %v3622_v54 = vsel %vm293_vm15, %v6772_v57, %v4598_v10  ;;  %v3621_v48 = vsel %vm293_vm15, %v6769_v23, %v4597_v20  ;;  %v4618_v57 = vld [vmem:[%s7057_s6 + $0x1] ss:$0 sm:$0xff]  ;;  %vm7101_vm15 = vmmov %vm7098_vm10 }
 0xfe3   :  { %v3623_v31 = vsel %vm903_vm6, %v3620_v32, %v4588_v39  ;;  %v2997_v58 = vsel %vm903_vm6, %v2994_v6, %v4587_v17 }
 0xfef   :  { %v4591_v3 = vpop.permute.xlu1 %4590 }
 0xff0   :  { %v4593_v30 = vunpack.i.h.bf16 %v4591_v3  ;;  %v4592_v40 = vunpack.i.l.bf16 %v4591_v3  ;;  %v4601_v21 = vpop.permute.xlu2 %4600 }
 0xff1   :  { %v4603_v37 = vunpack.i.h.bf16 %v4601_v21  ;;  %v4602_v18 = vunpack.i.l.bf16 %v4601_v21 }
 0xff2   :  { %v3000_v56 = vsel %vm324_vm2, %v2997_v58, %v4592_v40  ;;  %v3626_v22 = vsel %vm324_vm2, %v3623_v31, %v4593_v30 }
 0xff3   :  { %v3630_v42 = vpack.c.bf16 %v3626_v22, %v3000_v56  ;;  %v3625_v2 = vsel %vm903_vm6, %v3622_v54, %v4603_v37  ;;  %v3624_v28 = vsel %vm903_vm6, %v3621_v48, %v4602_v18 }
 0xff5   :  { %4424 = vmatmul.msk.bf16.gmra.mxu1 %vm7099_vm11, %v3630_v42 }
0x1013   :  { %v4606_v44 = vpop.permute.xlu1 %4605 }
0x1014   :  { %v4608_v36 = vunpack.i.h.bf16 %v4606_v44  ;;  %v4607_v61 = vunpack.i.l.bf16 %v4606_v44 }
0x1016   :  { %v3627_v43 = vsel %vm324_vm2, %v3624_v28, %v4607_v61  ;;  %v3628_v4 = vsel %vm324_vm2, %v3625_v2, %v4608_v36  ;;  %vm7102_vm2 = vmmov %vm7098_vm10  ;;  %v4496_v2 = vld [vmem:[%s7060_s9 + $0x18] sm:$0xff]  ;;  %v4495_v28 = vld [vmem:[%s7060_s9 + $0x10] sm:$0xff] }
0x1017   :  { %v3631_v51 = vpack.c.bf16 %v3628_v4, %v3627_v43  ;;  %vm7103_vm6 = vmmov %vm7102_vm2  ;;  %3888 = vmatpush.bf16.msrb.mxu3 %v4496_v2 }
0x1018   :  { %vm7104_vm14 = vmmov %vm7102_vm2 }
0x1019   :  { %4425 = vmatmul.msk.bf16.gmra.mxu1 %vm7100_vm12, %v3631_v51  ;;  %vm7105_vm1 = vmmov %vm7102_vm2 }
0x101a   :  { %vm7106_vm8 = vmmov %vm7105_vm1 }
0x101b   :  { %vm7107_vm3 = vmmov %vm7105_vm1  ;;  %3889 = vmatpush.bf16.msrb.mxu3 %v4495_v28 }
0x101c   :  { %vm7108_vm7 = vmmov %vm7105_vm1 }
0x101d   :  { %vm7109_vm0 = vmmov %vm7105_vm1 }
0x101e   :  { %vm7110_vm13 = vmmov %vm7109_vm0 }
0x101f   :  { %vm7111_vm4 = vmmov %vm7109_vm0 }
0x1020   :  { %vm7112_vm9 = vmmov %vm7109_vm0 }
0x1033   :  { %v3667_v0 = vpop.f32.mrf.mxu1 }
0x1034   :  { %v3682_v23 = vadd.f32 %v3667_v0, %v5905_v29 }
0x1036   :  { %v6814_v25 = vadd.f32 %v4618_v57, %v3682_v23 }
0x1038   :  { %v3699_v16 = vsel %vm7101_vm15, %v6814_v25, 0.0 }
0x1039   :  { %3700 = vadd.xlane.f32.xlu2 %v3699_v16 }
0x103b   :  { %v3669_v13 = vpop.f32.mrf.mxu1 }
0x103c   :  { %v3683_v9 = vadd.f32 %v3669_v13, %v5910_v7 }
0x103e   :  { %v6819_v38 = vadd.f32 %v4618_v57, %v3683_v9 }
0x1040   :  { %v3702_v47 = vsel %vm7102_vm2, %v6819_v38, 0.0 }
0x1041   :  { %3703 = vadd.xlane.f32.xlu1 %v3702_v47 }
0x1072   :  { %v3672_v60 = vpop.f32.mrf.mxu1 }
0x1073   :  { %v3684_v34 = vadd.f32 %v3672_v60, %v5938_v5 }
0x1075   :  { %v6824_v62 = vadd.f32 %v4618_v57, %v3684_v34 }
0x1077   :  { %v3705_v29 = vsel %vm7103_vm6, %v6824_v62, 0.0  ;;  %vm7113_vm6 = vmmov %vm7109_vm0 }
0x1078   :  { %3706 = vadd.xlane.f32.xlu0 %v3705_v29 }
0x107a   :  { %v3674_v50 = vpop.f32.mrf.mxu1 }
0x107b   :  { %v3685_v1 = vadd.f32 %v3674_v50, %v5950_v46 }
0x107d   :  { %v6829_v53 = vadd.f32 %v4618_v57, %v3685_v1 }
0x107f   :  { %v3708_v7 = vsel %vm7104_vm14, %v6829_v53, 0.0 }
0x1080   :  { %3709 = vadd.xlane.f32.xlu2 %v3708_v7  ;;  %v6896_v7 = vld [vmem:[%s7058_s7 + $0x1] ss:$0 sm:$0xff] }
0x1096   :  { %v3677_v19 = vpop.f32.mrf.mxu1 }
0x1097   :  { %v3686_v11 = vadd.f32 %v3677_v19, %v5969_v59 }
0x1099   :  { %v6834_v63 = vadd.f32 %v4618_v57, %v3686_v11 }
0x109b   :  { %v3711_v5 = vsel %vm7105_vm1, %v6834_v63, 0.0 }
0x109c   :  { %3712 = vadd.xlane.f32.xlu1 %v3711_v5 }
0x109e   :  { %v3679_v15 = vpop.f32.mrf.mxu1 }
0x109f   :  { %v3687_v33 = vadd.f32 %v3679_v15, %v5982_v41  ;;  %v6902_v15 = vld [vmem:[%s7059_s8 + $0x1] ss:$0 sm:$0xff] }
0x10a1   :  { %v6839_v26 = vadd.f32 %v4618_v57, %v3687_v33 }
0x10a3   :  { %v3714_v46 = vsel %vm7106_vm8, %v6839_v26, 0.0 }
0x10a4   :  { %3715 = vadd.xlane.f32.xlu2 %v3714_v46 }
0x10ac   :  { %v3701_v49 = vpop.xlane.xlu2 %3700 }
0x10ad   :  { %v3717_v45 = vmul.f32 %v3701_v49, %v4985_v14 }
0x10af   :  { %v6845_v59 = vsub.f32 %v6814_v25, %v3717_v45 }
0x10b1   :  { %v3729_v24 = vmul.f32 %v6845_v59, %v6845_v59 }
0x10b3   :  { %v3735_v27 = vsel %vm7107_vm3, %v3729_v24, 0.0 }
0x10b4   :  { %v3704_v8 = vpop.xlane.xlu1 %3703  ;;  %3736 = vadd.xlane.f32.xlu1 %v3735_v27 }
0x10b5   :  { %v3718_v41 = vmul.f32 %v3704_v8, %v4985_v14 }
0x10b7   :  { %v6852_v12 = vsub.f32 %v6819_v38, %v3718_v41 }
0x10b9   :  { %v3730_v52 = vmul.f32 %v6852_v12, %v6852_v12 }
0x10bb   :  { %v3738_v35 = vsel %vm7108_vm7, %v3730_v52, 0.0 }
0x10bc   :  { %3739 = vadd.xlane.f32.xlu0 %v3738_v35 }
0x10eb   :  { %v3707_v39 = vpop.xlane.xlu0 %3706 }
0x10ec   :  { %v3719_v17 = vmul.f32 %v3707_v39, %v4985_v14 }
0x10ee   :  { %v6859_v3 = vsub.f32 %v6824_v62, %v3719_v17 }
0x10f0   :  { %v3731_v32 = vmul.f32 %v6859_v3, %v6859_v3 }
0x10f2   :  { %v3741_v6 = vsel %vm7109_vm0, %v3731_v32, 0.0 }
0x10f3   :  { %v3710_v30 = vpop.xlane.xlu2 %3709  ;;  %3742 = vadd.xlane.f32.xlu2 %v3741_v6 }
0x10f4   :  { %v3720_v40 = vmul.f32 %v3710_v30, %v4985_v14 }
0x10f6   :  { %v6866_v31 = vsub.f32 %v6829_v53, %v3720_v40 }
0x10f8   :  { %v3732_v58 = vmul.f32 %v6866_v31, %v6866_v31 }
0x10fa   :  { %v3744_v56 = vsel %vm7110_vm13, %v3732_v58, 0.0  ;;  %vm7114_vm13 = vmmov %vm7111_vm4 }
0x10fb   :  { %3745 = vadd.xlane.f32.xlu1 %v3744_v56 }
0x110f   :  { %v3713_v22 = vpop.xlane.xlu1 %3712 }
0x1110   :  { %v3721_v42 = vmul.f32 %v3713_v22, %v4985_v14 }
0x1112   :  { %v6873_v55 = vsub.f32 %v6834_v63, %v3721_v42 }
0x1114   :  { %v3733_v21 = vmul.f32 %v6873_v55, %v6873_v55 }
0x1116   :  { %v3747_v10 = vsel %vm7111_vm4, %v3733_v21, 0.0 }
0x1117   :  { %3748 = vadd.xlane.f32.xlu0 %v3747_v10  ;;  %v3716_v20 = vpop.xlane.xlu2 %3715 }
0x1118   :  { %v3722_v37 = vmul.f32 %v3716_v20, %v4985_v14 }
0x111a   :  { %v6880_v18 = vsub.f32 %v6839_v26, %v3722_v37 }
0x111c   :  { %v3734_v44 = vmul.f32 %v6880_v18, %v6880_v18 }
0x111e   :  { %v3750_v54 = vsel %vm7112_vm9, %v3734_v44, 0.0 }
0x111f   :  { %3751 = vadd.xlane.f32.xlu2 %v3750_v54 }
0x1127   :  { %v3737_v48 = vpop.xlane.xlu1 %3736 }
0x1128   :  { %v3753_v36 = vmul.f32 %v3737_v48, %v4985_v14 }
0x112a   :  { %v3759_v61 = vadd.f32 1e-05, %v3753_v36 }
0x112c   :  { %4863 = vrsqrt.f32 %v3759_v61  ;;  %vm3771_vm10 = vweird.f32 %v3759_v61 }
0x112f   :  { %v3740_v43 = vpop.xlane.xlu0 %3739 }
0x1130   :  { %v3754_v4 = vmul.f32 %v3740_v43, %v4985_v14 }
0x1132   :  { %v4864_v51 = vpop.eup %4863  ;;  %v3760_v57 = vadd.f32 1e-05, %v3754_v4 }
0x1133   :  { %v3766_v0 = vmul.f32 %v4864_v51, %v3759_v61  ;;  %vm3772_vm5 = vweird.f32 %v4864_v51 }
0x1134   :  { %4865 = vrsqrt.f32 %v3760_v57  ;;  %vm3773_vm11 = vmor %vm3771_vm10, %vm3772_vm5  ;;  %vm3781_vm15 = vweird.f32 %v3760_v57 }
0x1135   :  { %v3767_v23 = vmul.f32 %v4864_v51, %v3766_v0 }
0x1137   :  { %v3768_v16 = vmul.f32 0.5, %v3767_v23 }
0x1139   :  { %v3769_v13 = vsub.f32 1.5, %v3768_v16 }
0x113a   :  { %v4866_v9 = vpop.eup %4865 }
0x113b   :  { %v3770_v47 = vmul.f32 %v4864_v51, %v3769_v13  ;;  %v3776_v60 = vmul.f32 %v4866_v9, %v3760_v57  ;;  %vm3782_vm12 = vweird.f32 %v4866_v9 }
0x113c   :  { %vm3783_vm2 = vmor %vm3781_vm15, %vm3782_vm12 }
0x113d   :  { %v3777_v34 = vmul.f32 %v4866_v9, %v3776_v60  ;;  %v3774_v29 = vsel %vm3773_vm11, %v4864_v51, %v3770_v47  ;;  %vm7115_vm15 = vmmov %vm7113_vm6 }
0x113e   :  { %v3825_v19 = vmul.f32 %v3774_v29, %v6845_v59 }
0x113f   :  { %v3778_v50 = vmul.f32 0.5, %v3777_v34 }
0x1140   :  { %v3836_v33 = vmul.f32 %v6896_v7, %v3825_v19 }
0x1141   :  { %v3779_v1 = vsub.f32 1.5, %v3778_v50 }
0x1142   :  { %v3847_v45 = vadd.f32 %v6902_v15, %v3836_v33 }
0x1143   :  { %v3780_v11 = vmul.f32 %v4866_v9, %v3779_v1 }
0x1145   :  { %v3784_v5 = vsel %vm3783_vm2, %v4866_v9, %v3780_v11 }
0x1146   :  { %v3826_v46 = vmul.f32 %v3784_v5, %v6852_v12 }
0x1148   :  { %v3837_v49 = vmul.f32 %v6896_v7, %v3826_v46 }
0x114a   :  { %v3848_v24 = vadd.f32 %v6902_v15, %v3837_v49 }
0x114c   :  { %v3853_v59 = vpack.c.bf16 %v3848_v24, %v3847_v45 }
0x114e   :  { %4441 = vmatmul.msk.bf16.vlgmr.msrb.gmra.mxu3 %vm7113_vm6, %v3853_v59 }
0x1166   :  { %v3743_v27 = vpop.xlane.xlu2 %3742 }
0x1167   :  { %v3755_v8 = vmul.f32 %v3743_v27, %v4985_v14 }
0x1169   :  { %v3761_v41 = vadd.f32 1e-05, %v3755_v8 }
0x116b   :  { %4867 = vrsqrt.f32 %v3761_v41  ;;  %vm3791_vm1 = vweird.f32 %v3761_v41 }
0x116e   :  { %v3746_v52 = vpop.xlane.xlu1 %3745 }
0x116f   :  { %v3756_v35 = vmul.f32 %v3746_v52, %v4985_v14 }
0x1171   :  { %v4868_v39 = vpop.eup %4867  ;;  %v3762_v17 = vadd.f32 1e-05, %v3756_v35 }
0x1172   :  { %v3786_v12 = vmul.f32 %v4868_v39, %v3761_v41  ;;  %vm3792_vm14 = vweird.f32 %v4868_v39 }
0x1173   :  { %4869 = vrsqrt.f32 %v3762_v17  ;;  %vm3793_vm8 = vmor %vm3791_vm1, %vm3792_vm14  ;;  %vm3801_vm7 = vweird.f32 %v3762_v17 }
0x1174   :  { %v3787_v32 = vmul.f32 %v4868_v39, %v3786_v12 }
0x1176   :  { %v3788_v6 = vmul.f32 0.5, %v3787_v32 }
0x1178   :  { %v3789_v30 = vsub.f32 1.5, %v3788_v6 }
0x1179   :  { %v4870_v40 = vpop.eup %4869 }
0x117a   :  { %v3790_v58 = vmul.f32 %v4868_v39, %v3789_v30  ;;  %v3796_v56 = vmul.f32 %v4870_v40, %v3762_v17  ;;  %vm3802_vm3 = vweird.f32 %v4870_v40 }
0x117b   :  { %vm3803_vm0 = vmor %vm3801_vm7, %vm3802_vm3 }
0x117c   :  { %v3797_v22 = vmul.f32 %v4870_v40, %v3796_v56  ;;  %v3794_v42 = vsel %vm3793_vm8, %v4868_v39, %v3790_v58 }
0x117d   :  { %v3827_v20 = vmul.f32 %v3794_v42, %v6859_v3 }
0x117e   :  { %v3798_v21 = vmul.f32 0.5, %v3797_v22 }
0x117f   :  { %v3838_v48 = vmul.f32 %v6896_v7, %v3827_v20 }
0x1180   :  { %v3799_v10 = vsub.f32 1.5, %v3798_v21 }
0x1181   :  { %v3849_v61 = vadd.f32 %v6902_v15, %v3838_v48 }
0x1182   :  { %v3800_v37 = vmul.f32 %v4870_v40, %v3799_v10 }
0x1184   :  { %v3804_v44 = vsel %vm3803_vm0, %v4870_v40, %v3800_v37 }
0x1185   :  { %v3828_v54 = vmul.f32 %v3804_v44, %v6866_v31 }
0x1187   :  { %v3839_v36 = vmul.f32 %v6896_v7, %v3828_v54 }
0x1189   :  { %v3850_v2 = vadd.f32 %v6902_v15, %v3839_v36 }
0x118a   :  { %v3749_v28 = vpop.xlane.xlu0 %3748 }
0x118b   :  { %v3757_v43 = vmul.f32 %v3749_v28, %v4985_v14  ;;  %v3854_v4 = vpack.c.bf16 %v3850_v2, %v3849_v61 }
0x118d   :  { %v3763_v51 = vadd.f32 1e-05, %v3757_v43  ;;  %4442 = vmatmul.msk.bf16.gmra.mxu3 %vm7114_vm13, %v3854_v4  ;;  %vm7116_vm13 = vcmask 523264  }
0x118f   :  { %4871 = vrsqrt.f32 %v3763_v51  ;;  %vm3811_vm9 = vweird.f32 %v3763_v51 }
0x1192   :  { %v3752_v3 = vpop.xlane.xlu2 %3751 }
0x1193   :  { %v3758_v57 = vmul.f32 %v3752_v3, %v4985_v14 }
0x1195   :  { %v4872_v31 = vpop.eup %4871  ;;  %v3764_v0 = vadd.f32 1e-05, %v3758_v57 }
0x1196   :  { %v3806_v23 = vmul.f32 %v4872_v31, %v3763_v51  ;;  %vm3812_vm4 = vweird.f32 %v4872_v31  ;;  %v4500_v51 = vld [vmem:[%s7061_s10 + $0x38] sm:$0xff] }
0x1197   :  { %4873 = vrsqrt.f32 %v3764_v0  ;;  %vm3813_vm5 = vmor %vm3811_vm9, %vm3812_vm4  ;;  %vm3821_vm11 = vweird.f32 %v3764_v0  ;;  %4219 = vmatpush.bf16.msrb.mxu0 %v4500_v51 }
0x1198   :  { %v3807_v16 = vmul.f32 %v4872_v31, %v3806_v23  ;;  %v4499_v23 = vld [vmem:[%s7061_s10 + $0x30] sm:$0xff] }
0x119a   :  { %v3808_v13 = vmul.f32 0.5, %v3807_v16 }
0x119b   :  { %4220 = vmatpush.bf16.msrb.mxu0 %v4499_v23 }
0x119c   :  { %v3809_v9 = vsub.f32 1.5, %v3808_v13 }
0x119d   :  { %v4874_v47 = vpop.eup %4873 }
0x119e   :  { %v3810_v60 = vmul.f32 %v4872_v31, %v3809_v9  ;;  %v3816_v34 = vmul.f32 %v4874_v47, %v3764_v0  ;;  %vm3822_vm10 = vweird.f32 %v4874_v47  ;;  %v4498_v9 = vld [vmem:[%s7061_s10 + $0x28] sm:$0xff] }
0x119f   :  { %vm3823_vm12 = vmor %vm3821_vm11, %vm3822_vm10  ;;  %4221 = vmatpush.bf16.msrb.mxu0 %v4498_v9 }
0x11a0   :  { %v3817_v29 = vmul.f32 %v4874_v47, %v3816_v34  ;;  %v3814_v50 = vsel %vm3813_vm5, %v4872_v31, %v3810_v60 }
0x11a1   :  { %v3829_v14 = vmul.f32 %v3814_v50, %v6873_v55 }
0x11a2   :  { %v3818_v1 = vmul.f32 0.5, %v3817_v29 }
0x11a3   :  { %v3840_v46 = vmul.f32 %v6896_v7, %v3829_v14 }
0x11a4   :  { %v3819_v19 = vsub.f32 1.5, %v3818_v1 }
0x11a5   :  { %v3851_v45 = vadd.f32 %v6902_v15, %v3840_v46 }
0x11a6   :  { %v3820_v11 = vmul.f32 %v4874_v47, %v3819_v19  ;;  %v4497_v19 = vld [vmem:[%s7061_s10 + $0x20] sm:$0xff] }
0x11a7   :  { %4222 = vmatpush.bf16.msrb.mxu0 %v4497_v19 }
0x11a8   :  { %v3824_v5 = vsel %vm3823_vm12, %v4874_v47, %v3820_v11 }
0x11a9   :  { %v3830_v33 = vmul.f32 %v3824_v5, %v6880_v18 }
0x11ab   :  { %v3841_v49 = vmul.f32 %v6896_v7, %v3830_v33 }
0x11ad   :  { %v3852_v24 = vadd.f32 %v6902_v15, %v3841_v49 }
0x11af   :  { %v3855_v59 = vpack.c.bf16 %v3852_v24, %v3851_v45 }
0x11b1   :  { %4443 = vmatmul.msk.bf16.gmra.mxu3 %vm7115_vm15, %v3855_v59 }
0x11d1   :  { %v6928_v27 = vpop.f32.mrf.mxu3 }
0x11d2   :  { %v6931_v55 = vmul.f32 0.70710677, %v6928_v27 }
0x11d4   :  { %v3918_v8 = vmul.f32 %v6931_v55, %v6931_v55 }
0x11d6   :  { %v3919_v18 = vmin.f32 %v3918_v8, 16.0 }
0x11d8   :  { %v3920_v41 = vmul.f32 2.1237322e-06, %v3919_v18  ;;  %v3931_v52 = vmul.f32 3.8918573e-05, %v3919_v18 }
0x11d9   :  { %v6935_v35 = vpop.f32.mrf.mxu3 }
0x11da   :  { %v3921_v7 = vadd.f32 0.00028619796, %v3920_v41  ;;  %v3932_v39 = vadd.f32 0.001143296, %v3931_v52  ;;  %v6938_v15 = vmul.f32 0.70710677, %v6935_v35 }
0x11dc   :  { %v3933_v17 = vmul.f32 %v3932_v39, %v3919_v18  ;;  %v3958_v12 = vmul.f32 %v6938_v15, %v6938_v15  ;;  %v3922_v32 = vmul.f32 %v3921_v7, %v3919_v18 }
0x11de   :  { %v3934_v6 = vadd.f32 0.014752088, %v3933_v17  ;;  %v3959_v30 = vmin.f32 %v3958_v12, 16.0  ;;  %v3923_v22 = vadd.f32 0.0036580483, %v3922_v32 }
0x11e0   :  { %v3935_v40 = vmul.f32 %v3934_v6, %v3919_v18  ;;  %v3960_v58 = vmul.f32 2.1237322e-06, %v3959_v30  ;;  %v3971_v56 = vmul.f32 3.8918573e-05, %v3959_v30  ;;  %v3924_v54 = vmul.f32 %v3923_v22, %v3919_v18 }
0x11e2   :  { %v3936_v42 = vadd.f32 0.112945676, %v3935_v40  ;;  %v3961_v21 = vadd.f32 0.00028619796, %v3960_v58  ;;  %v3972_v10 = vadd.f32 0.001143296, %v3971_v56 }
0x11e3   :  { %v3925_v43 = vadd.f32 0.05243302, %v3924_v54  ;;  %v3907_v54 = vmul.f32 0.5, %v6935_v35 }
0x11e4   :  { %v3937_v20 = vmul.f32 %v3936_v42, %v3919_v18  ;;  %v3962_v37 = vmul.f32 %v3961_v21, %v3959_v30  ;;  %v3973_v44 = vmul.f32 %v3972_v10, %v3959_v30 }
0x11e5   :  { %v3926_v0 = vmul.f32 %v3925_v43, %v3919_v18 }
0x11e6   :  { %v3938_v48 = vadd.f32 0.4994258, %v3937_v20  ;;  %v3963_v36 = vadd.f32 0.0036580483, %v3962_v37  ;;  %v3974_v61 = vadd.f32 0.014752088, %v3973_v44 }
0x11e7   :  { %v3927_v34 = vadd.f32 0.18741608, %v3926_v0  ;;  %v3906_v44 = vmul.f32 0.5, %v6928_v27 }
0x11e8   :  { %v3939_v2 = vmul.f32 %v3938_v48, %v3919_v18  ;;  %v3975_v28 = vmul.f32 %v3974_v61, %v3959_v30  ;;  %v3964_v3 = vmul.f32 %v3963_v36, %v3959_v30 }
0x11e9   :  { %v3928_v11 = vmul.f32 %v3927_v34, %v3919_v18 }
0x11ea   :  { %v3940_v4 = vadd.f32 1.0, %v3939_v2  ;;  %v3976_v57 = vadd.f32 0.112945676, %v3975_v28  ;;  %v3965_v16 = vadd.f32 0.05243302, %v3964_v3 }
0x11eb   :  { %v3929_v24 = vadd.f32 1.1283791, %v3928_v11 }
0x11ec   :  { %4875 = vrcp.f32 %v3940_v4  ;;  %v3977_v31 = vmul.f32 %v3976_v57, %v3959_v30  ;;  %v3966_v50 = vmul.f32 %v3965_v16, %v3959_v30  ;;  %v3952_v33 = vand.u32 2147483648, %v3940_v4 }
0x11ed   :  { %v3950_v49 = vand.u32 2147483647, %v3940_v4  ;;  %vm3946_vm6 = vweird.f32 %v3940_v4  ;;  %v3930_v17 = vmul.f32 %v3929_v24, %v6931_v55 }
0x11ee   :  { %v3978_v13 = vadd.f32 0.4994258, %v3977_v31  ;;  %v3967_v46 = vadd.f32 0.18741608, %v3966_v50  ;;  %v3953_v41 = vor.u32 1.1754944e-38, %v3952_v33 }
0x11ef   :  { %vm3951_vm1 = vcmp.eq.f32.partialorder %v3950_v49, 8.507059e+37 }
0x11f0   :  { %v3979_v47 = vmul.f32 %v3978_v13, %v3959_v30  ;;  %v3968_v52 = vmul.f32 %v3967_v46, %v3959_v30 }
0x11f2   :  { %v4876_v60 = vpop.eup %4875  ;;  %v3980_v1 = vadd.f32 1.0, %v3979_v47  ;;  %v3969_v12 = vadd.f32 1.1283791, %v3968_v52 }
0x11f3   :  { %v3942_v29 = vmul.f32 %v4876_v60, %v3940_v4  ;;  %vm3947_vm2 = vweird.f32 %v4876_v60 }
0x11f4   :  { %4877 = vrcp.f32 %v3980_v1  ;;  %vm3948_vm14 = vmor %vm3946_vm6, %vm3947_vm2  ;;  %v3992_v32 = vand.u32 2147483648, %v3980_v1  ;;  %v3990_v58 = vand.u32 2147483647, %v3980_v1  ;;  %vm3986_vm3 = vweird.f32 %v3980_v1 }
0x11f5   :  { %v3943_v14 = vsub.f32 1.0, %v3942_v29  ;;  %v3970_v21 = vmul.f32 %v3969_v12, %v6938_v15  ;;  %vm7117_vm6 = vmmov %vm7116_vm13 }
0x11f6   :  { %v3993_v22 = vor.u32 1.1754944e-38, %v3992_v32  ;;  %vm3991_vm0 = vcmp.eq.f32.partialorder %v3990_v58, 8.507059e+37 }
0x11f7   :  { %v3944_v5 = vmul.f32 %v4876_v60, %v3943_v14 }
0x11f9   :  { %v3945_v45 = vadd.f32 %v4876_v60, %v3944_v5 }
0x11fa   :  { %v4878_v59 = vpop.eup %4877 }
0x11fb   :  { %v3949_v8 = vsel %vm3948_vm14, %v4876_v60, %v3945_v45  ;;  %v3982_v7 = vmul.f32 %v4878_v59, %v3980_v1  ;;  %vm3987_vm8 = vweird.f32 %v4878_v59 }
0x11fc   :  { %v3954_v39 = vsel %vm3951_vm1, %v3953_v41, %v3949_v8  ;;  %vm3988_vm7 = vmor %vm3986_vm3, %vm3987_vm8 }
0x11fd   :  { %v3983_v18 = vsub.f32 1.0, %v3982_v7  ;;  %v3955_v6 = vmul.f32 %v3954_v39, %v3930_v17 }
0x11ff   :  { %v3984_v40 = vmul.f32 %v4878_v59, %v3983_v18  ;;  %v4444_v42 = vclamps-f32 %v3955_v6, 1.0 }
0x1201   :  { %v3985_v56 = vadd.f32 %v4878_v59, %v3984_v40  ;;  %v4158_v37 = vadd.f32 1.0, %v4444_v42 }
0x1203   :  { %v3989_v30 = vsel %vm3988_vm7, %v4878_v59, %v3985_v56  ;;  %v4164_v36 = vmul.f32 %v4158_v37, %v3906_v44 }
0x1204   :  { %v3994_v10 = vsel %vm3991_vm0, %v3993_v22, %v3989_v30 }
0x1205   :  { %v3995_v20 = vmul.f32 %v3994_v10, %v3970_v21 }
0x1207   :  { %v4445_v55 = vclamps-f32 %v3995_v20, 1.0 }
0x1209   :  { %v4159_v48 = vadd.f32 1.0, %v4445_v55 }
0x120b   :  { %v4165_v61 = vmul.f32 %v4159_v48, %v3907_v54 }
0x120d   :  { %v4170_v2 = vpack.c.bf16 %v4165_v61, %v4164_v36 }
0x120f   :  { %4474 = vmatmul.msk.bf16.vlgmr.msrb.gmra.mxu0 %vm7116_vm13, %v4170_v2 }
0x1210   :  { %v6958_v28 = vpop.f32.mrf.mxu3 }
0x1211   :  { %v6961_v43 = vmul.f32 0.70710677, %v6958_v28 }
0x1213   :  { %v3998_v15 = vmul.f32 %v6961_v43, %v6961_v43 }
0x1215   :  { %v3999_v4 = vmin.f32 %v3998_v15, 16.0 }
0x1217   :  { %v4000_v51 = vmul.f32 2.1237322e-06, %v3999_v4  ;;  %v4011_v3 = vmul.f32 3.8918573e-05, %v3999_v4 }
0x1218   :  { %v6966_v27 = vpop.f32.mrf.mxu3 }
0x1219   :  { %v4001_v35 = vadd.f32 0.00028619796, %v4000_v51  ;;  %v4012_v57 = vadd.f32 0.001143296, %v4011_v3  ;;  %v6969_v31 = vmul.f32 0.70710677, %v6966_v27 }
0x121b   :  { %v4013_v0 = vmul.f32 %v4012_v57, %v3999_v4  ;;  %v4038_v23 = vmul.f32 %v6969_v31, %v6969_v31  ;;  %v4002_v16 = vmul.f32 %v4001_v35, %v3999_v4 }
0x121d   :  { %v4014_v13 = vadd.f32 0.014752088, %v4013_v0  ;;  %v4039_v9 = vmin.f32 %v4038_v23, 16.0  ;;  %v4003_v29 = vadd.f32 0.0036580483, %v4002_v16 }
0x121f   :  { %v4015_v47 = vmul.f32 %v4014_v13, %v3999_v4  ;;  %v4040_v60 = vmul.f32 2.1237322e-06, %v4039_v9  ;;  %v4051_v34 = vmul.f32 3.8918573e-05, %v4039_v9  ;;  %v4004_v33 = vmul.f32 %v4003_v29, %v3999_v4 }
0x1221   :  { %v4016_v50 = vadd.f32 0.112945676, %v4015_v47  ;;  %v4041_v1 = vadd.f32 0.00028619796, %v4040_v60  ;;  %v4052_v19 = vadd.f32 0.001143296, %v4051_v34 }
0x1222   :  { %v4005_v41 = vadd.f32 0.05243302, %v4004_v33 }
0x1223   :  { %v4017_v14 = vmul.f32 %v4016_v50, %v3999_v4  ;;  %v4042_v11 = vmul.f32 %v4041_v1, %v4039_v9  ;;  %v4053_v5 = vmul.f32 %v4052_v19, %v4039_v9 }
0x1224   :  { %v4006_v18 = vmul.f32 %v4005_v41, %v3999_v4 }
0x1225   :  { %v4018_v46 = vadd.f32 0.4994258, %v4017_v14  ;;  %v4043_v49 = vadd.f32 0.0036580483, %v4042_v11  ;;  %v4054_v45 = vadd.f32 0.014752088, %v4053_v5 }
0x1226   :  { %v4007_v58 = vadd.f32 0.18741608, %v4006_v18 }
0x1227   :  { %v4019_v24 = vmul.f32 %v4018_v46, %v3999_v4  ;;  %v4044_v59 = vmul.f32 %v4043_v49, %v4039_v9  ;;  %v4055_v8 = vmul.f32 %v4054_v45, %v4039_v9 }
0x1228   :  { %v4008_v10 = vmul.f32 %v4007_v58, %v3999_v4 }
0x1229   :  { %v4020_v52 = vadd.f32 1.0, %v4019_v24  ;;  %v4056_v7 = vadd.f32 0.112945676, %v4055_v8  ;;  %v4045_v39 = vadd.f32 0.05243302, %v4044_v59 }
0x122a   :  { %v4009_v61 = vadd.f32 1.1283791, %v4008_v10 }
0x122b   :  { %4879 = vrcp.f32 %v4020_v52  ;;  %v4057_v17 = vmul.f32 %v4056_v7, %v4039_v9  ;;  %v4046_v32 = vmul.f32 %v4045_v39, %v4039_v9  ;;  %v4032_v55 = vand.u32 2147483648, %v4020_v52 }
0x122c   :  { %v4030_v44 = vand.u32 2147483647, %v4020_v52  ;;  %vm4026_vm9 = vweird.f32 %v4020_v52  ;;  %v4010_v13 = vmul.f32 %v4009_v61, %v6961_v43 }
0x122d   :  { %v4058_v12 = vadd.f32 0.4994258, %v4057_v17  ;;  %v4047_v21 = vadd.f32 0.18741608, %v4046_v32  ;;  %v4033_v4 = vor.u32 1.1754944e-38, %v4032_v55 }
0x122e   :  { %vm4031_vm10 = vcmp.eq.f32.partialorder %v4030_v44, 8.507059e+37 }
0x122f   :  { %v4059_v6 = vmul.f32 %v4058_v12, %v4039_v9  ;;  %v4048_v36 = vmul.f32 %v4047_v21, %v4039_v9 }
0x1231   :  { %v4880_v40 = vpop.eup %4879  ;;  %v4060_v22 = vadd.f32 1.0, %v4059_v6  ;;  %v4049_v0 = vadd.f32 1.1283791, %v4048_v36 }
0x1232   :  { %v4022_v56 = vmul.f32 %v4880_v40, %v4020_v52  ;;  %vm4027_vm4 = vweird.f32 %v4880_v40 }
0x1233   :  { %4881 = vrcp.f32 %v4060_v22  ;;  %vm4028_vm5 = vmor %vm4026_vm9, %vm4027_vm4  ;;  %v4070_v47 = vand.u32 2147483647, %v4060_v22  ;;  %v4072_v34 = vand.u32 2147483648, %v4060_v22  ;;  %v4050_v5 = vmul.f32 %v4049_v0, %v6969_v31 }
0x1234   :  { %v4023_v42 = vsub.f32 1.0, %v4022_v56  ;;  %v6973_v30 = vpop.f32.mrf.mxu3  ;;  %vm4066_vm12 = vweird.f32 %v4060_v22  ;;  %vm7118_vm9 = vmmov %vm7117_vm6 }
0x1235   :  { %v6976_v20 = vmul.f32 0.70710677, %v6973_v30  ;;  %vm4071_vm2 = vcmp.eq.f32.partialorder %v4070_v47, 8.507059e+37  ;;  %v4073_v46 = vor.u32 1.1754944e-38, %v4072_v34 }
0x1236   :  { %v4024_v37 = vmul.f32 %v4880_v40, %v4023_v42  ;;  %v3909_v42 = vmul.f32 0.5, %v6966_v27 }
0x1237   :  { %v4078_v54 = vmul.f32 %v6976_v20, %v6976_v20 }
0x1238   :  { %v4025_v48 = vadd.f32 %v4880_v40, %v4024_v37 }
0x1239   :  { %v6980_v2 = vmin.f32 %v4078_v54, 16.0  ;;  %v4882_v15 = vpop.eup %4881 }
0x123a   :  { %v4029_v51 = vsel %vm4028_vm5, %v4880_v40, %v4025_v48  ;;  %v4062_v3 = vmul.f32 %v4882_v15, %v4060_v22  ;;  %vm4067_vm11 = vweird.f32 %v4882_v15  ;;  %v3908_v22 = vmul.f32 0.5, %v6958_v28 }
0x123b   :  { %v4080_v35 = vmul.f32 2.1237322e-06, %v6980_v2  ;;  %v4034_v57 = vsel %vm4031_vm10, %v4033_v4, %v4029_v51  ;;  %v4091_v23 = vmul.f32 3.8918573e-05, %v6980_v2  ;;  %vm4068_vm15 = vmor %vm4066_vm12, %vm4067_vm11  ;;  %vm7119_vm5 = vcmask 261120  }
0x123c   :  { %v6984_v16 = vpop.f32.mrf.mxu3  ;;  %v4063_v9 = vsub.f32 1.0, %v4062_v3  ;;  %v4035_v1 = vmul.f32 %v4034_v57, %v4010_v13  ;;  %vm7120_vm10 = vmmov %vm7119_vm5 }
0x123d   :  { %v6988_v60 = vmul.f32 0.70710677, %v6984_v16  ;;  %v4081_v29 = vadd.f32 0.00028619796, %v4080_v35  ;;  %v4092_v50 = vadd.f32 0.001143296, %v4091_v23  ;;  %vm7121_vm11 = vmmov %vm7119_vm5 }
0x123e   :  { %v4064_v19 = vmul.f32 %v4882_v15, %v4063_v9  ;;  %v4446_v24 = vclamps-f32 %v4035_v1, 1.0  ;;  %vm7122_vm12 = vmmov %vm7119_vm5 }
0x123f   :  { %v4118_v14 = vmul.f32 %v6988_v60, %v6988_v60  ;;  %v4093_v11 = vmul.f32 %v4092_v50, %v6980_v2  ;;  %v4082_v49 = vmul.f32 %v4081_v29, %v6980_v2 }
0x1240   :  { %v4065_v33 = vadd.f32 %v4882_v15, %v4064_v19  ;;  %v4160_v32 = vadd.f32 1.0, %v4446_v24 }
0x1241   :  { %v6994_v43 = vmin.f32 %v4118_v14, 16.0  ;;  %v4094_v45 = vadd.f32 0.014752088, %v4093_v11  ;;  %v4083_v18 = vadd.f32 0.0036580483, %v4082_v49 }
0x1242   :  { %v4069_v59 = vsel %vm4068_vm15, %v4882_v15, %v4065_v33  ;;  %v4166_v44 = vmul.f32 %v4160_v32, %v3908_v22  ;;  %vm7123_vm15 = vmmov %vm7119_vm5 }
0x1243   :  { %v4120_v8 = vmul.f32 2.1237322e-06, %v6994_v43  ;;  %v4131_v41 = vmul.f32 3.8918573e-05, %v6994_v43  ;;  %v4074_v52 = vsel %vm4071_vm2, %v4073_v46, %v4069_v59  ;;  %v4095_v7 = vmul.f32 %v4094_v45, %v6980_v2  ;;  %vm7124_vm2 = vmmov %vm7119_vm5 }
0x1244   :  { %v4075_v31 = vmul.f32 %v4074_v52, %v4050_v5  ;;  %v4084_v10 = vmul.f32 %v4083_v18, %v6980_v2 }
0x1245   :  { %v4121_v39 = vadd.f32 0.00028619796, %v4120_v8  ;;  %v4132_v17 = vadd.f32 0.001143296, %v4131_v41  ;;  %v4096_v12 = vadd.f32 0.112945676, %v4095_v7 }
0x1246   :  { %v4447_v6 = vclamps-f32 %v4075_v31, 1.0  ;;  %v4085_v51 = vadd.f32 0.05243302, %v4084_v10 }
0x1247   :  { %v4122_v40 = vmul.f32 %v4121_v39, %v6994_v43  ;;  %v4133_v58 = vmul.f32 %v4132_v17, %v6994_v43  ;;  %v4097_v56 = vmul.f32 %v4096_v12, %v6980_v2 }
0x1248   :  { %v4161_v21 = vadd.f32 1.0, %v4447_v6  ;;  %v4086_v35 = vmul.f32 %v4085_v51, %v6980_v2 }
0x1249   :  { %v4098_v37 = vadd.f32 0.4994258, %v4097_v56  ;;  %v4134_v55 = vadd.f32 0.014752088, %v4133_v58  ;;  %v4123_v48 = vadd.f32 0.0036580483, %v4122_v40 }
0x124a   :  { %v4167_v54 = vmul.f32 %v4161_v21, %v3909_v42  ;;  %v4087_v9 = vadd.f32 0.18741608, %v4086_v35  ;;  %v3910_v42 = vmul.f32 0.5, %v6973_v30  ;;  %v3911_v21 = vmul.f32 0.5, %v6984_v16 }
0x124b   :  { %v4099_v36 = vmul.f32 %v4098_v37, %v6980_v2  ;;  %v4135_v61 = vmul.f32 %v4134_v55, %v6994_v43  ;;  %v4124_v28 = vmul.f32 %v4123_v48, %v6994_v43 }
0x124c   :  { %v4171_v15 = vpack.c.bf16 %v4167_v54, %v4166_v44  ;;  %v4088_v1 = vmul.f32 %v4087_v9, %v6980_v2 }
0x124d   :  { %v4100_v4 = vadd.f32 1.0, %v4099_v36  ;;  %v4136_v3 = vadd.f32 0.112945676, %v4135_v61  ;;  %v4125_v57 = vadd.f32 0.05243302, %v4124_v28 }
0x124e   :  { %4475 = vmatmul.msk.bf16.gmra.mxu0 %vm7117_vm6, %v4171_v15  ;;  %v4089_v46 = vadd.f32 1.1283791, %v4088_v1 }
0x124f   :  { %4883 = vrcp.f32 %v4100_v4  ;;  %v4137_v27 = vmul.f32 %v4136_v3, %v6994_v43  ;;  %v4126_v34 = vmul.f32 %v4125_v57, %v6994_v43  ;;  %v4112_v14 = vand.u32 2147483648, %v4100_v4 }
0x1250   :  { %v4110_v5 = vand.u32 2147483647, %v4100_v4  ;;  %vm4106_vm1 = vweird.f32 %v4100_v4  ;;  %v4090_v52 = vmul.f32 %v4089_v46, %v6976_v20 }
0x1251   :  { %v4138_v0 = vadd.f32 0.4994258, %v4137_v27  ;;  %v4127_v11 = vadd.f32 0.18741608, %v4126_v34  ;;  %v4113_v24 = vor.u32 1.1754944e-38, %v4112_v14 }
0x1252   :  { %vm4111_vm3 = vcmp.eq.f32.partialorder %v4110_v5, 8.507059e+37 }
0x1253   :  { %v4139_v23 = vmul.f32 %v4138_v0, %v6994_v43  ;;  %v4128_v59 = vmul.f32 %v4127_v11, %v6994_v43 }
0x1255   :  { %v4884_v13 = vpop.eup %4883  ;;  %v4140_v29 = vadd.f32 1.0, %v4139_v23  ;;  %v4129_v7 = vadd.f32 1.1283791, %v4128_v59 }
0x1256   :  { %v4102_v47 = vmul.f32 %v4884_v13, %v4100_v4  ;;  %vm4107_vm14 = vweird.f32 %v4884_v13 }
0x1257   :  { %4885 = vrcp.f32 %v4140_v29  ;;  %vm4108_vm8 = vmor %vm4106_vm1, %vm4107_vm14  ;;  %v4152_v31 = vand.u32 2147483648, %v4140_v29  ;;  %v4150_v18 = vand.u32 2147483647, %v4140_v29  ;;  %vm4146_vm0 = vweird.f32 %v4140_v29 }
0x1258   :  { %v4103_v50 = vsub.f32 1.0, %v4102_v47  ;;  %v4130_v40 = vmul.f32 %v4129_v7, %v6988_v60 }
0x1259   :  { %v4153_v32 = vor.u32 1.1754944e-38, %v4152_v31  ;;  %vm4151_vm4 = vcmp.eq.f32.partialorder %v4150_v18, 8.507059e+37 }
0x125a   :  { %v4104_v19 = vmul.f32 %v4884_v13, %v4103_v50 }
0x125c   :  { %v4105_v33 = vadd.f32 %v4884_v13, %v4104_v19 }
0x125d   :  { %v4886_v49 = vpop.eup %4885 }
0x125e   :  { %v4109_v45 = vsel %vm4108_vm8, %v4884_v13, %v4105_v33  ;;  %v4142_v8 = vmul.f32 %v4886_v49, %v4140_v29  ;;  %vm4147_vm7 = vweird.f32 %v4886_v49 }
0x125f   :  { %v4114_v41 = vsel %vm4111_vm3, %v4113_v24, %v4109_v45  ;;  %vm4148_vm13 = vmor %vm4146_vm0, %vm4147_vm7 }
0x1260   :  { %v4143_v2 = vsub.f32 1.0, %v4142_v8  ;;  %v4115_v39 = vmul.f32 %v4114_v41, %v4090_v52 }
0x1262   :  { %v4144_v17 = vmul.f32 %v4886_v49, %v4143_v2  ;;  %v4448_v6 = vclamps-f32 %v4115_v39, 1.0 }
0x1264   :  { %v4145_v12 = vadd.f32 %v4886_v49, %v4144_v17  ;;  %v4162_v22 = vadd.f32 1.0, %v4448_v6 }
0x1266   :  { %v4149_v43 = vsel %vm4148_vm13, %v4886_v49, %v4145_v12  ;;  %v4168_v37 = vmul.f32 %v4162_v22, %v3910_v42 }
0x1267   :  { %v4154_v58 = vsel %vm4151_vm4, %v4153_v32, %v4149_v43 }
0x1268   :  { %v4155_v56 = vmul.f32 %v4154_v58, %v4130_v40 }
0x126a   :  { %v4449_v20 = vclamps-f32 %v4155_v56, 1.0 }
0x126c   :  { %v4163_v10 = vadd.f32 1.0, %v4449_v20 }
0x126e   :  { %v4169_v55 = vmul.f32 %v4163_v10, %v3911_v21 }
0x1270   :  { %v4172_v44 = vpack.c.bf16 %v4169_v55, %v4168_v37 }
0x1272   :  { %4476 = vmatmul.msk.bf16.gmra.mxu0 %vm7118_vm9, %v4172_v44 }
0x128c   :  { %v4224_v54 = vpop.f32.mrf.mxu0 }
0x128d   :  { %v4239_v48 = vadd.f32 %v4224_v54, %v6814_v25 }
0x128f   :  { %4245 = vst.msk [vmem:[%s7062_s11] sm:$0xff] %vm7119_vm5, %v4239_v48 }
0x1294   :  { %v4226_v60 = vpop.f32.mrf.mxu0 }
0x1295   :  { %v4240_v36 = vadd.f32 %v4226_v60, %v6819_v38 }
0x1297   :  { %4246 = vst.msk [vmem:[%s7062_s11 + $0x8] sm:$0xff] %vm7120_vm10, %v4240_v36 }
0x12cb   :  { %v4229_v30 = vpop.f32.mrf.mxu0 }
0x12cc   :  { %v4241_v16 = vadd.f32 %v4229_v30, %v6824_v62 }
0x12ce   :  { %4247 = vst.msk [vmem:[%s7062_s11 + $0x10] sm:$0xff] %vm7121_vm11, %v4241_v16 }
0x12d3   :  { %v4231_v25 = vpop.f32.mrf.mxu0 }
0x12d4   :  { %v4242_v61 = vadd.f32 %v4231_v25, %v6829_v53 }
0x12d6   :  { %4248 = vst.msk [vmem:[%s7062_s11 + $0x18] sm:$0xff] %vm7122_vm12, %v4242_v61 }
0x12ef   :  { %v4234_v38 = vpop.f32.mrf.mxu0 }
0x12f0   :  { %v4243_v15 = vadd.f32 %v4234_v38, %v6834_v63 }
0x12f2   :  { %4249 = vst.msk [vmem:[%s7062_s11 + $0x20] sm:$0xff] %vm7123_vm15, %v4243_v15 }
0x12f7   :  { %v4236_v62 = vpop.f32.mrf.mxu0 }
0x12f8   :  { %v4244_v51 = vadd.f32 %v4236_v62, %v6839_v26 }
0x12fa   :  { %4250 = vst.msk [vmem:[%s7062_s11 + $0x28] sm:$0xff] %vm7124_vm2, %v4244_v51 }

</bundles_post_ra>
